<compile_context>
chip_gen: v6e
topology: v6e:2x2x1
jax: 0.10.0
libtpu: 0.0.40
codegen_flags: <defaults>
</compile_context>

<pallas_src>
import math

import jax
import jax.numpy as jnp
from jax import lax
from jax.experimental import pallas as pl
from jax.experimental.pallas import tpu as pltpu


# ----------------------------------------------------------------------------
# Fused kernel: embedding output -> N bidirectional LSTM layers -> MLP head
# ----------------------------------------------------------------------------
def _make_fused_kernel(T, B, H, num_layers):
    """Build the fused kernel body for fixed static shapes."""
    n_lstm = num_layers * 2 * 3  # (wih, whh, b) per direction per layer

    def kernel(*refs):
        x_ref = refs[0]                                   # [T, B, E]
        lstm_refs = refs[1:1 + n_lstm]
        (w1_ref, b1_ref, w2_ref, b2_ref,
         w3_ref, b3_ref) = refs[1 + n_lstm:1 + n_lstm + 6]
        out_ref = refs[1 + n_lstm + 6]                    # [B, C_pad]
        act_a, act_b, gx_scr = refs[1 + n_lstm + 7:1 + n_lstm + 10]

        def run_direction(xin, wih_ref, whh_ref, b_ref, out_scr, col, reverse):
            """One LSTM direction over the full sequence (zero initial state)."""
            din = xin.shape[-1]
            # Hoisted input projection: one big matmul for all timesteps.
            proj = jnp.dot(xin.reshape(T * B, din), wih_ref[...],
                           preferred_element_type=jnp.float32) + b_ref[...]
            gx_scr[...] = proj.reshape(T, B, 4 * H)
            whh = whh_ref[...]
            h = None
            c = None
            for s in range(T):                       # statically unrolled, T small
                t = (T - 1 - s) if reverse else s
                if s == 0:
                    gates = gx_scr[t]                # h0 = 0 -> skip h @ W_hh
                else:
                    gates = gx_scr[t] + jnp.dot(
                        h, whh, preferred_element_type=jnp.float32)
                # PyTorch gate order: i, f, g, o  (H = 128 -> lane-aligned slices)
                i_g = jax.nn.sigmoid(gates[:, 0 * H:1 * H])
                f_g = jax.nn.sigmoid(gates[:, 1 * H:2 * H])
                g_g = jnp.tanh(gates[:, 2 * H:3 * H])
                o_g = jax.nn.sigmoid(gates[:, 3 * H:4 * H])
                c = i_g * g_g if s == 0 else f_g * c + i_g * g_g
                h = o_g * jnp.tanh(c)
                # Write into the fwd/bwd half of the layer output (in-kernel concat).
                out_scr[t, :, col:col + H] = h

        cur_in = x_ref[...].astype(jnp.float32)           # [T, B, E]
        bufs = (act_a, act_b)
        for l in range(num_layers):
            wih_f, whh_f, b_f, wih_b, whh_b, b_b = lstm_refs[l * 6:(l + 1) * 6]
            out_scr = bufs[l % 2]                         # ping-pong activations
            run_direction(cur_in, wih_f, whh_f, b_f, out_scr, 0, reverse=False)
            run_direction(cur_in, wih_b, whh_b, b_b, out_scr, H, reverse=True)
            cur_in = out_scr[...]                         # [T, B, 2H]

        # torch: cat(lstm_out[:, -1, :H], lstm_out[:, 0, H:]) -> [B, 2H]
        feat = jnp.concatenate(
            [cur_in[T - 1, :, 0:H], cur_in[0, :, H:2 * H]], axis=-1)

        # Head: relu -> linear1 -> relu -> linear2 -> relu -> linear3
        # (dropout = identity in eval mode)
        hh = jnp.maximum(feat, 0.0)
        hh = jnp.dot(hh, w1_ref[...], preferred_element_type=jnp.float32) + b1_ref[...]
        hh = jnp.maximum(hh, 0.0)
        hh = jnp.dot(hh, w2_ref[...], preferred_element_type=jnp.float32) + b2_ref[...]
        hh = jnp.maximum(hh, 0.0)
        hh = jnp.dot(hh, w3_ref[...], preferred_element_type=jnp.float32) + b3_ref[...]
        out_ref[...] = hh.astype(out_ref.dtype)           # lane-dense [B, C_pad]

    return kernel


def sequence_forward_pallas(token_ids, params):
    """Full forward pass; embedding gather stays in JAX (not the hot path)."""
    emb = jnp.take(params["embedding"], token_ids, axis=0)       # [B, T, E]
    x_tm = jnp.transpose(emb, (1, 0, 2)).astype(jnp.float32)     # [T, B, E]
    T, B, _ = x_tm.shape
    H = params["lstm"][0]["fwd"]["whh"].shape[0]
    num_layers = len(params["lstm"])

    w1, b1 = params["linear1"]
    w2, b2 = params["linear2"]
    w3, b3 = params["linear3"]
    C = w3.shape[1]
    C_pad = ((C + 127) // 128) * 128                     # lane-dense output
    w3p = jnp.pad(w3, ((0, 0), (0, C_pad - C)))
    b3p = jnp.pad(b3, ((0, 0), (0, C_pad - C)))

    lstm_flat = []
    for layer in params["lstm"]:
        for d in ("fwd", "bwd"):
            lstm_flat += [layer[d]["wih"], layer[d]["whh"], layer[d]["b"]]

    args = [x_tm] + lstm_flat + [w1, b1, w2, b2, w3p, b3p]

    out_pad = pl.pallas_call(
        _make_fused_kernel(T, B, H, num_layers),
        out_shape=jax.ShapeDtypeStruct((B, C_pad), jnp.float32),
        in_specs=[pl.BlockSpec(memory_space=pltpu.MemorySpace.VMEM)] * len(args),
        out_specs=pl.BlockSpec(memory_space=pltpu.MemorySpace.VMEM),
        scratch_shapes=[
            pltpu.VMEM((T, B, 2 * H), jnp.float32),   # layer activations (ping)
            pltpu.VMEM((T, B, 2 * H), jnp.float32),   # layer activations (pong)
            pltpu.VMEM((T, B, 4 * H), jnp.float32),   # hoisted input-proj gates
        ],
    )(*args)
    return out_pad[:, :C]


# ----------------------------------------------------------------------------
# Pure-JAX reference (for verification)
# ----------------------------------------------------------------------------
def _lstm_ref_single(x_tm, wih, whh, bias):
    H = whh.shape[0]
    B = x_tm.shape[1]

    def step(carry, x_t):
        h, c = carry
        gates = x_t @ wih + h @ whh + bias[0]
        i = jax.nn.sigmoid(gates[:, 0 * H:1 * H])
        f = jax.nn.sigmoid(gates[:, 1 * H:2 * H])
        g = jnp.tanh(gates[:, 2 * H:3 * H])
        o = jax.nn.sigmoid(gates[:, 3 * H:4 * H])
        c = f * c + i * g
        h = o * jnp.tanh(c)
        return (h, c), h

    init = (jnp.zeros((B, H), jnp.float32), jnp.zeros((B, H), jnp.float32))
    _, ys = lax.scan(step, init, x_tm)
    return ys


def sequence_forward_ref(token_ids, params):
    emb = jnp.take(params["embedding"], token_ids, axis=0)
    x = jnp.transpose(emb, (1, 0, 2)).astype(jnp.float32)
    H = params["lstm"][0]["fwd"]["whh"].shape[0]
    for layer in params["lstm"]:
        fwd = _lstm_ref_single(x, layer["fwd"]["wih"], layer["fwd"]["whh"],
                               layer["fwd"]["b"])
        bwd = _lstm_ref_single(x[::-1], layer["bwd"]["wih"], layer["bwd"]["whh"],
                               layer["bwd"]["b"])[::-1]
        x = jnp.concatenate([fwd, bwd], axis=-1)
    feat = jnp.concatenate([x[-1, :, :H], x[0, :, H:]], axis=-1)
    w1, b1 = params["linear1"]
    w2, b2 = params["linear2"]
    w3, b3 = params["linear3"]
    h = jnp.maximum(feat, 0.0)
    h = jnp.maximum(h @ w1 + b1, 0.0)
    h = jnp.maximum(h @ w2 + b2, 0.0)
    return h @ w3 + b3


# ----------------------------------------------------------------------------
# Deterministic parameter init (PyTorch-like uniform bounds)
# ----------------------------------------------------------------------------
def init_params(key, num_classes, embed_dim, hidden, num_layers):
    keys = iter(jax.random.split(key, 64))

    def uni(k, shape, bound):
        return jax.random.uniform(k, shape, jnp.float32, -bound, bound)

    params = {}
    params["embedding"] = jax.random.normal(
        next(keys), (num_classes, embed_dim), jnp.float32)

    kH = 1.0 / math.sqrt(hidden)
    layers = []
    for l in range(num_layers):
        din = embed_dim if l == 0 else 2 * hidden
        layer = {}
        for d in ("fwd", "bwd"):
            layer[d] = {
                "wih": uni(next(keys), (din, 4 * hidden), kH),
                "whh": uni(next(keys), (hidden, 4 * hidden), kH),
                # bias = b_ih + b_hh (both uniform), kept fused as (1, 4H)
                "b": uni(next(keys), (1, 4 * hidden), kH)
                     + uni(next(keys), (1, 4 * hidden), kH),
            }
        layers.append(layer)
    params["lstm"] = layers

    def linear(kw, kb, din, dout):
        bound = 1.0 / math.sqrt(din)
        return uni(kw, (din, dout), bound), uni(kb, (1, dout), bound)

    params["linear1"] = linear(next(keys), next(keys), 2 * hidden, 128)
    params["linear2"] = linear(next(keys), next(keys), 128, 128)
    params["linear3"] = linear(next(keys), next(keys), 128, num_classes)
    return params


if __name__ == "__main__":
    # Small, TPU-friendly hyperparameters consistent with the module.
    NUM_CLASSES = 16
    SEQ_LEN = 8
    EMBED_DIM = 64
    NUM_LAYERS = 2
    HIDDEN = 128
    BATCH = 8

    key = jax.random.PRNGKey(0)
    pkey, dkey = jax.random.split(key)
    params = init_params(pkey, NUM_CLASSES, EMBED_DIM, HIDDEN, NUM_LAYERS)
    tokens = jax.random.randint(dkey, (BATCH, SEQ_LEN), 0, NUM_CLASSES,
                                dtype=jnp.int32)

    out = jax.block_until_ready(sequence_forward_pallas(tokens, params))
    assert out.shape == (BATCH, NUM_CLASSES)

    ref = jax.block_until_ready(sequence_forward_ref(tokens, params))
    max_err = float(jnp.max(jnp.abs(out - ref)))
    assert jnp.allclose(out, ref, atol=2e-3, rtol=2e-3), max_err

    print("KERNEL_OK")
</pallas_src>

<mosaic_0001>
module attributes {stable_mosaic.version = 11 : i64} {
  func.func @kernel(%arg0: memref<8x8x64xf32, #tpu.memory_space<vmem>>, %arg1: memref<64x512xf32, #tpu.memory_space<vmem>>, %arg2: memref<128x512xf32, #tpu.memory_space<vmem>>, %arg3: memref<1x512xf32, #tpu.memory_space<vmem>>, %arg4: memref<64x512xf32, #tpu.memory_space<vmem>>, %arg5: memref<128x512xf32, #tpu.memory_space<vmem>>, %arg6: memref<1x512xf32, #tpu.memory_space<vmem>>, %arg7: memref<256x512xf32, #tpu.memory_space<vmem>>, %arg8: memref<128x512xf32, #tpu.memory_space<vmem>>, %arg9: memref<1x512xf32, #tpu.memory_space<vmem>>, %arg10: memref<256x512xf32, #tpu.memory_space<vmem>>, %arg11: memref<128x512xf32, #tpu.memory_space<vmem>>, %arg12: memref<1x512xf32, #tpu.memory_space<vmem>>, %arg13: memref<256x128xf32, #tpu.memory_space<vmem>>, %arg14: memref<1x128xf32, #tpu.memory_space<vmem>>, %arg15: memref<128x128xf32, #tpu.memory_space<vmem>>, %arg16: memref<1x128xf32, #tpu.memory_space<vmem>>, %arg17: memref<128x128xf32, #tpu.memory_space<vmem>>, %arg18: memref<1x128xf32, #tpu.memory_space<vmem>>, %arg19: memref<8x128xf32, #tpu.memory_space<vmem>>, %arg20: memref<8x8x256xf32, #tpu.memory_space<vmem>>, %arg21: memref<8x8x256xf32, #tpu.memory_space<vmem>>, %arg22: memref<8x8x512xf32, #tpu.memory_space<vmem>>) attributes {dimension_semantics = [], scalar_prefetch = 0 : i64, scratch_operands = 3 : i64, tpu.core_type = #tpu.core_type<tc>} {
    %c0 = arith.constant 0 : index
    %c0_0 = arith.constant 0 : index
    %c0_1 = arith.constant 0 : index
    %0 = vector.load %arg0[%c0, %c0_0, %c0_1] : memref<8x8x64xf32, #tpu.memory_space<vmem>>, vector<8x8x64xf32>
    %1 = vector.shape_cast %0 : vector<8x8x64xf32> to vector<64x64xf32>
    %c0_2 = arith.constant 0 : index
    %c0_3 = arith.constant 0 : index
    %2 = vector.load %arg1[%c0_2, %c0_3] : memref<64x512xf32, #tpu.memory_space<vmem>>, vector<64x512xf32>
    %cst = arith.constant dense<0.000000e+00> : vector<64x512xf32>
    %3 = tpu.matmul %1, %2, %cst {dimension_numbers = #tpu.dot_dimension_numbers<[1], [0], [0], [1], [0, 0, 1, 1], [], []>} : vector<64x64xf32>, vector<64x512xf32>, vector<64x512xf32> -> vector<64x512xf32>
    %c0_4 = arith.constant 0 : index
    %c0_5 = arith.constant 0 : index
    %4 = vector.load %arg3[%c0_4, %c0_5] : memref<1x512xf32, #tpu.memory_space<vmem>>, vector<1x512xf32>
    %5 = vector.broadcast %4 : vector<1x512xf32> to vector<64x512xf32>
    %6 = arith.addf %3, %5 : vector<64x512xf32>
    %7 = vector.shape_cast %6 : vector<64x512xf32> to vector<8x8x512xf32>
    %c0_6 = arith.constant 0 : index
    %c0_7 = arith.constant 0 : index
    %c0_8 = arith.constant 0 : index
    %8 = vector.load %arg22[%c0_6, %c0_7, %c0_8] : memref<8x8x512xf32, #tpu.memory_space<vmem>>, vector<8x8x512xf32>
    tpu.vector_store %arg22[%c0_6, %c0_7, %c0_8], %7 {strides = array<i32>} : memref<8x8x512xf32, #tpu.memory_space<vmem>>, vector<8x8x512xf32>,
    %c0_9 = arith.constant 0 : index
    %c0_10 = arith.constant 0 : index
    %9 = vector.load %arg2[%c0_9, %c0_10] : memref<128x512xf32, #tpu.memory_space<vmem>>, vector<128x512xf32>
    %c0_11 = arith.constant 0 : index
    %c0_12 = arith.constant 0 : index
    %c0_13 = arith.constant 0 : index
    %10 = vector.load %arg22[%c0_11, %c0_12, %c0_13] : memref<8x8x512xf32, #tpu.memory_space<vmem>>, vector<1x8x512xf32>
    %11 = vector.shape_cast %10 : vector<1x8x512xf32> to vector<8x512xf32>
    %12 = vector.extract_strided_slice %11 {offsets = [0, 0], sizes = [8, 128], strides = [1, 1]} : vector<8x512xf32> to vector<8x128xf32>
    %13 = arith.negf %12 : vector<8x128xf32>
    %14 = math.exp %13 : vector<8x128xf32>
    %cst_14 = arith.constant 1.000000e+00 : f32
    %15 = vector.broadcast %cst_14 : f32 to vector<8x128xf32>
    %16 = arith.addf %15, %14 : vector<8x128xf32>
    %17 = arith.divf %15, %16 : vector<8x128xf32>
    %18 = vector.extract_strided_slice %11 {offsets = [0, 256], sizes = [8, 128], strides = [1, 1]} : vector<8x512xf32> to vector<8x128xf32>
    %19 = math.tanh %18 : vector<8x128xf32>
    %20 = vector.extract_strided_slice %11 {offsets = [0, 384], sizes = [8, 128], strides = [1, 1]} : vector<8x512xf32> to vector<8x128xf32>
    %21 = arith.negf %20 : vector<8x128xf32>
    %22 = math.exp %21 : vector<8x128xf32>
    %cst_15 = arith.constant 1.000000e+00 : f32
    %23 = vector.broadcast %cst_15 : f32 to vector<8x128xf32>
    %24 = arith.addf %23, %22 : vector<8x128xf32>
    %25 = arith.divf %23, %24 : vector<8x128xf32>
    %26 = arith.mulf %17, %19 : vector<8x128xf32>
    %27 = math.tanh %26 : vector<8x128xf32>
    %28 = arith.mulf %25, %27 : vector<8x128xf32>
    %c0_16 = arith.constant 0 : index
    %c0_17 = arith.constant 0 : index
    %c0_18 = arith.constant 0 : index
    %29 = vector.load %arg20[%c0_16, %c0_17, %c0_18] : memref<8x8x256xf32, #tpu.memory_space<vmem>>, vector<1x8x128xf32>
    %30 = vector.shape_cast %29 : vector<1x8x128xf32> to vector<8x128xf32>
    %31 = vector.shape_cast %28 : vector<8x128xf32> to vector<1x8x128xf32>
    tpu.vector_store %arg20[%c0_16, %c0_17, %c0_18], %31 {strides = array<i32>} : memref<8x8x256xf32, #tpu.memory_space<vmem>>, vector<1x8x128xf32>,
    %c1 = arith.constant 1 : index
    %c0_19 = arith.constant 0 : index
    %c0_20 = arith.constant 0 : index
    %32 = vector.load %arg22[%c1, %c0_19, %c0_20] : memref<8x8x512xf32, #tpu.memory_space<vmem>>, vector<1x8x512xf32>
    %33 = vector.shape_cast %32 : vector<1x8x512xf32> to vector<8x512xf32>
    %cst_21 = arith.constant dense<0.000000e+00> : vector<8x512xf32>
    %34 = tpu.matmul %28, %9, %cst_21 {dimension_numbers = #tpu.dot_dimension_numbers<[1], [0], [0], [1], [0, 0, 1, 1], [], []>} : vector<8x128xf32>, vector<128x512xf32>, vector<8x512xf32> -> vector<8x512xf32>
    %35 = arith.addf %33, %34 : vector<8x512xf32>
    %36 = vector.extract_strided_slice %35 {offsets = [0, 0], sizes = [8, 128], strides = [1, 1]} : vector<8x512xf32> to vector<8x128xf32>
    %37 = arith.negf %36 : vector<8x128xf32>
    %38 = math.exp %37 : vector<8x128xf32>
    %cst_22 = arith.constant 1.000000e+00 : f32
    %39 = vector.broadcast %cst_22 : f32 to vector<8x128xf32>
    %40 = arith.addf %39, %38 : vector<8x128xf32>
    %41 = arith.divf %39, %40 : vector<8x128xf32>
    %42 = vector.extract_strided_slice %35 {offsets = [0, 128], sizes = [8, 128], strides = [1, 1]} : vector<8x512xf32> to vector<8x128xf32>
    %43 = arith.negf %42 : vector<8x128xf32>
    %44 = math.exp %43 : vector<8x128xf32>
    %cst_23 = arith.constant 1.000000e+00 : f32
    %45 = vector.broadcast %cst_23 : f32 to vector<8x128xf32>
    %46 = arith.addf %45, %44 : vector<8x128xf32>
    %47 = arith.divf %45, %46 : vector<8x128xf32>
    %48 = vector.extract_strided_slice %35 {offsets = [0, 256], sizes = [8, 128], strides = [1, 1]} : vector<8x512xf32> to vector<8x128xf32>
    %49 = math.tanh %48 : vector<8x128xf32>
    %50 = vector.extract_strided_slice %35 {offsets = [0, 384], sizes = [8, 128], strides = [1, 1]} : vector<8x512xf32> to vector<8x128xf32>
    %51 = arith.negf %50 : vector<8x128xf32>
    %52 = math.exp %51 : vector<8x128xf32>
    %cst_24 = arith.constant 1.000000e+00 : f32
    %53 = vector.broadcast %cst_24 : f32 to vector<8x128xf32>
    %54 = arith.addf %53, %52 : vector<8x128xf32>
    %55 = arith.divf %53, %54 : vector<8x128xf32>
    %56 = arith.mulf %47, %26 : vector<8x128xf32>
    %57 = arith.mulf %41, %49 : vector<8x128xf32>
    %58 = arith.addf %56, %57 : vector<8x128xf32>
    %59 = math.tanh %58 : vector<8x128xf32>
    %60 = arith.mulf %55, %59 : vector<8x128xf32>
    %c1_25 = arith.constant 1 : index
    %c0_26 = arith.constant 0 : index
    %c0_27 = arith.constant 0 : index
    %61 = vector.load %arg20[%c1_25, %c0_26, %c0_27] : memref<8x8x256xf32, #tpu.memory_space<vmem>>, vector<1x8x128xf32>
    %62 = vector.shape_cast %61 : vector<1x8x128xf32> to vector<8x128xf32>
    %63 = vector.shape_cast %60 : vector<8x128xf32> to vector<1x8x128xf32>
    tpu.vector_store %arg20[%c1_25, %c0_26, %c0_27], %63 {strides = array<i32>} : memref<8x8x256xf32, #tpu.memory_space<vmem>>, vector<1x8x128xf32>,
    %c2 = arith.constant 2 : index
    %c0_28 = arith.constant 0 : index
    %c0_29 = arith.constant 0 : index
    %64 = vector.load %arg22[%c2, %c0_28, %c0_29] : memref<8x8x512xf32, #tpu.memory_space<vmem>>, vector<1x8x512xf32>
    %65 = vector.shape_cast %64 : vector<1x8x512xf32> to vector<8x512xf32>
    %cst_30 = arith.constant dense<0.000000e+00> : vector<8x512xf32>
    %66 = tpu.matmul %60, %9, %cst_30 {dimension_numbers = #tpu.dot_dimension_numbers<[1], [0], [0], [1], [0, 0, 1, 1], [], []>} : vector<8x128xf32>, vector<128x512xf32>, vector<8x512xf32> -> vector<8x512xf32>
    %67 = arith.addf %65, %66 : vector<8x512xf32>
    %68 = vector.extract_strided_slice %67 {offsets = [0, 0], sizes = [8, 128], strides = [1, 1]} : vector<8x512xf32> to vector<8x128xf32>
    %69 = arith.negf %68 : vector<8x128xf32>
    %70 = math.exp %69 : vector<8x128xf32>
    %cst_31 = arith.constant 1.000000e+00 : f32
    %71 = vector.broadcast %cst_31 : f32 to vector<8x128xf32>
    %72 = arith.addf %71, %70 : vector<8x128xf32>
    %73 = arith.divf %71, %72 : vector<8x128xf32>
    %74 = vector.extract_strided_slice %67 {offsets = [0, 128], sizes = [8, 128], strides = [1, 1]} : vector<8x512xf32> to vector<8x128xf32>
    %75 = arith.negf %74 : vector<8x128xf32>
    %76 = math.exp %75 : vector<8x128xf32>
    %cst_32 = arith.constant 1.000000e+00 : f32
    %77 = vector.broadcast %cst_32 : f32 to vector<8x128xf32>
    %78 = arith.addf %77, %76 : vector<8x128xf32>
    %79 = arith.divf %77, %78 : vector<8x128xf32>
    %80 = vector.extract_strided_slice %67 {offsets = [0, 256], sizes = [8, 128], strides = [1, 1]} : vector<8x512xf32> to vector<8x128xf32>
    %81 = math.tanh %80 : vector<8x128xf32>
    %82 = vector.extract_strided_slice %67 {offsets = [0, 384], sizes = [8, 128], strides = [1, 1]} : vector<8x512xf32> to vector<8x128xf32>
    %83 = arith.negf %82 : vector<8x128xf32>
    %84 = math.exp %83 : vector<8x128xf32>
    %cst_33 = arith.constant 1.000000e+00 : f32
    %85 = vector.broadcast %cst_33 : f32 to vector<8x128xf32>
    %86 = arith.addf %85, %84 : vector<8x128xf32>
    %87 = arith.divf %85, %86 : vector<8x128xf32>
    %88 = arith.mulf %79, %58 : vector<8x128xf32>
    %89 = arith.mulf %73, %81 : vector<8x128xf32>
    %90 = arith.addf %88, %89 : vector<8x128xf32>
    %91 = math.tanh %90 : vector<8x128xf32>
    %92 = arith.mulf %87, %91 : vector<8x128xf32>
    %c2_34 = arith.constant 2 : index
    %c0_35 = arith.constant 0 : index
    %c0_36 = arith.constant 0 : index
    %93 = vector.load %arg20[%c2_34, %c0_35, %c0_36] : memref<8x8x256xf32, #tpu.memory_space<vmem>>, vector<1x8x128xf32>
    %94 = vector.shape_cast %93 : vector<1x8x128xf32> to vector<8x128xf32>
    %95 = vector.shape_cast %92 : vector<8x128xf32> to vector<1x8x128xf32>
    tpu.vector_store %arg20[%c2_34, %c0_35, %c0_36], %95 {strides = array<i32>} : memref<8x8x256xf32, #tpu.memory_space<vmem>>, vector<1x8x128xf32>,
    %c3 = arith.constant 3 : index
    %c0_37 = arith.constant 0 : index
    %c0_38 = arith.constant 0 : index
    %96 = vector.load %arg22[%c3, %c0_37, %c0_38] : memref<8x8x512xf32, #tpu.memory_space<vmem>>, vector<1x8x512xf32>
    %97 = vector.shape_cast %96 : vector<1x8x512xf32> to vector<8x512xf32>
    %cst_39 = arith.constant dense<0.000000e+00> : vector<8x512xf32>
    %98 = tpu.matmul %92, %9, %cst_39 {dimension_numbers = #tpu.dot_dimension_numbers<[1], [0], [0], [1], [0, 0, 1, 1], [], []>} : vector<8x128xf32>, vector<128x512xf32>, vector<8x512xf32> -> vector<8x512xf32>
    %99 = arith.addf %97, %98 : vector<8x512xf32>
    %100 = vector.extract_strided_slice %99 {offsets = [0, 0], sizes = [8, 128], strides = [1, 1]} : vector<8x512xf32> to vector<8x128xf32>
    %101 = arith.negf %100 : vector<8x128xf32>
    %102 = math.exp %101 : vector<8x128xf32>
    %cst_40 = arith.constant 1.000000e+00 : f32
    %103 = vector.broadcast %cst_40 : f32 to vector<8x128xf32>
    %104 = arith.addf %103, %102 : vector<8x128xf32>
    %105 = arith.divf %103, %104 : vector<8x128xf32>
    %106 = vector.extract_strided_slice %99 {offsets = [0, 128], sizes = [8, 128], strides = [1, 1]} : vector<8x512xf32> to vector<8x128xf32>
    %107 = arith.negf %106 : vector<8x128xf32>
    %108 = math.exp %107 : vector<8x128xf32>
    %cst_41 = arith.constant 1.000000e+00 : f32
    %109 = vector.broadcast %cst_41 : f32 to vector<8x128xf32>
    %110 = arith.addf %109, %108 : vector<8x128xf32>
    %111 = arith.divf %109, %110 : vector<8x128xf32>
    %112 = vector.extract_strided_slice %99 {offsets = [0, 256], sizes = [8, 128], strides = [1, 1]} : vector<8x512xf32> to vector<8x128xf32>
    %113 = math.tanh %112 : vector<8x128xf32>
    %114 = vector.extract_strided_slice %99 {offsets = [0, 384], sizes = [8, 128], strides = [1, 1]} : vector<8x512xf32> to vector<8x128xf32>
    %115 = arith.negf %114 : vector<8x128xf32>
    %116 = math.exp %115 : vector<8x128xf32>
    %cst_42 = arith.constant 1.000000e+00 : f32
    %117 = vector.broadcast %cst_42 : f32 to vector<8x128xf32>
    %118 = arith.addf %117, %116 : vector<8x128xf32>
    %119 = arith.divf %117, %118 : vector<8x128xf32>
    %120 = arith.mulf %111, %90 : vector<8x128xf32>
    %121 = arith.mulf %105, %113 : vector<8x128xf32>
    %122 = arith.addf %120, %121 : vector<8x128xf32>
    %123 = math.tanh %122 : vector<8x128xf32>
    %124 = arith.mulf %119, %123 : vector<8x128xf32>
    %c3_43 = arith.constant 3 : index
    %c0_44 = arith.constant 0 : index
    %c0_45 = arith.constant 0 : index
    %125 = vector.load %arg20[%c3_43, %c0_44, %c0_45] : memref<8x8x256xf32, #tpu.memory_space<vmem>>, vector<1x8x128xf32>
    %126 = vector.shape_cast %125 : vector<1x8x128xf32> to vector<8x128xf32>
    %127 = vector.shape_cast %124 : vector<8x128xf32> to vector<1x8x128xf32>
    tpu.vector_store %arg20[%c3_43, %c0_44, %c0_45], %127 {strides = array<i32>} : memref<8x8x256xf32, #tpu.memory_space<vmem>>, vector<1x8x128xf32>,
    %c4 = arith.constant 4 : index
    %c0_46 = arith.constant 0 : index
    %c0_47 = arith.constant 0 : index
    %128 = vector.load %arg22[%c4, %c0_46, %c0_47] : memref<8x8x512xf32, #tpu.memory_space<vmem>>, vector<1x8x512xf32>
    %129 = vector.shape_cast %128 : vector<1x8x512xf32> to vector<8x512xf32>
    %cst_48 = arith.constant dense<0.000000e+00> : vector<8x512xf32>
    %130 = tpu.matmul %124, %9, %cst_48 {dimension_numbers = #tpu.dot_dimension_numbers<[1], [0], [0], [1], [0, 0, 1, 1], [], []>} : vector<8x128xf32>, vector<128x512xf32>, vector<8x512xf32> -> vector<8x512xf32>
    %131 = arith.addf %129, %130 : vector<8x512xf32>
    %132 = vector.extract_strided_slice %131 {offsets = [0, 0], sizes = [8, 128], strides = [1, 1]} : vector<8x512xf32> to vector<8x128xf32>
    %133 = arith.negf %132 : vector<8x128xf32>
    %134 = math.exp %133 : vector<8x128xf32>
    %cst_49 = arith.constant 1.000000e+00 : f32
    %135 = vector.broadcast %cst_49 : f32 to vector<8x128xf32>
    %136 = arith.addf %135, %134 : vector<8x128xf32>
    %137 = arith.divf %135, %136 : vector<8x128xf32>
    %138 = vector.extract_strided_slice %131 {offsets = [0, 128], sizes = [8, 128], strides = [1, 1]} : vector<8x512xf32> to vector<8x128xf32>
    %139 = arith.negf %138 : vector<8x128xf32>
    %140 = math.exp %139 : vector<8x128xf32>
    %cst_50 = arith.constant 1.000000e+00 : f32
    %141 = vector.broadcast %cst_50 : f32 to vector<8x128xf32>
    %142 = arith.addf %141, %140 : vector<8x128xf32>
    %143 = arith.divf %141, %142 : vector<8x128xf32>
    %144 = vector.extract_strided_slice %131 {offsets = [0, 256], sizes = [8, 128], strides = [1, 1]} : vector<8x512xf32> to vector<8x128xf32>
    %145 = math.tanh %144 : vector<8x128xf32>
    %146 = vector.extract_strided_slice %131 {offsets = [0, 384], sizes = [8, 128], strides = [1, 1]} : vector<8x512xf32> to vector<8x128xf32>
    %147 = arith.negf %146 : vector<8x128xf32>
    %148 = math.exp %147 : vector<8x128xf32>
    %cst_51 = arith.constant 1.000000e+00 : f32
    %149 = vector.broadcast %cst_51 : f32 to vector<8x128xf32>
    %150 = arith.addf %149, %148 : vector<8x128xf32>
    %151 = arith.divf %149, %150 : vector<8x128xf32>
    %152 = arith.mulf %143, %122 : vector<8x128xf32>
    %153 = arith.mulf %137, %145 : vector<8x128xf32>
    %154 = arith.addf %152, %153 : vector<8x128xf32>
    %155 = math.tanh %154 : vector<8x128xf32>
    %156 = arith.mulf %151, %155 : vector<8x128xf32>
    %c4_52 = arith.constant 4 : index
    %c0_53 = arith.constant 0 : index
    %c0_54 = arith.constant 0 : index
    %157 = vector.load %arg20[%c4_52, %c0_53, %c0_54] : memref<8x8x256xf32, #tpu.memory_space<vmem>>, vector<1x8x128xf32>
    %158 = vector.shape_cast %157 : vector<1x8x128xf32> to vector<8x128xf32>
    %159 = vector.shape_cast %156 : vector<8x128xf32> to vector<1x8x128xf32>
    tpu.vector_store %arg20[%c4_52, %c0_53, %c0_54], %159 {strides = array<i32>} : memref<8x8x256xf32, #tpu.memory_space<vmem>>, vector<1x8x128xf32>,
    %c5 = arith.constant 5 : index
    %c0_55 = arith.constant 0 : index
    %c0_56 = arith.constant 0 : index
    %160 = vector.load %arg22[%c5, %c0_55, %c0_56] : memref<8x8x512xf32, #tpu.memory_space<vmem>>, vector<1x8x512xf32>
    %161 = vector.shape_cast %160 : vector<1x8x512xf32> to vector<8x512xf32>
    %cst_57 = arith.constant dense<0.000000e+00> : vector<8x512xf32>
    %162 = tpu.matmul %156, %9, %cst_57 {dimension_numbers = #tpu.dot_dimension_numbers<[1], [0], [0], [1], [0, 0, 1, 1], [], []>} : vector<8x128xf32>, vector<128x512xf32>, vector<8x512xf32> -> vector<8x512xf32>
    %163 = arith.addf %161, %162 : vector<8x512xf32>
    %164 = vector.extract_strided_slice %163 {offsets = [0, 0], sizes = [8, 128], strides = [1, 1]} : vector<8x512xf32> to vector<8x128xf32>
    %165 = arith.negf %164 : vector<8x128xf32>
    %166 = math.exp %165 : vector<8x128xf32>
    %cst_58 = arith.constant 1.000000e+00 : f32
    %167 = vector.broadcast %cst_58 : f32 to vector<8x128xf32>
    %168 = arith.addf %167, %166 : vector<8x128xf32>
    %169 = arith.divf %167, %168 : vector<8x128xf32>
    %170 = vector.extract_strided_slice %163 {offsets = [0, 128], sizes = [8, 128], strides = [1, 1]} : vector<8x512xf32> to vector<8x128xf32>
    %171 = arith.negf %170 : vector<8x128xf32>
    %172 = math.exp %171 : vector<8x128xf32>
    %cst_59 = arith.constant 1.000000e+00 : f32
    %173 = vector.broadcast %cst_59 : f32 to vector<8x128xf32>
    %174 = arith.addf %173, %172 : vector<8x128xf32>
    %175 = arith.divf %173, %174 : vector<8x128xf32>
    %176 = vector.extract_strided_slice %163 {offsets = [0, 256], sizes = [8, 128], strides = [1, 1]} : vector<8x512xf32> to vector<8x128xf32>
    %177 = math.tanh %176 : vector<8x128xf32>
    %178 = vector.extract_strided_slice %163 {offsets = [0, 384], sizes = [8, 128], strides = [1, 1]} : vector<8x512xf32> to vector<8x128xf32>
    %179 = arith.negf %178 : vector<8x128xf32>
    %180 = math.exp %179 : vector<8x128xf32>
    %cst_60 = arith.constant 1.000000e+00 : f32
    %181 = vector.broadcast %cst_60 : f32 to vector<8x128xf32>
    %182 = arith.addf %181, %180 : vector<8x128xf32>
    %183 = arith.divf %181, %182 : vector<8x128xf32>
    %184 = arith.mulf %175, %154 : vector<8x128xf32>
    %185 = arith.mulf %169, %177 : vector<8x128xf32>
    %186 = arith.addf %184, %185 : vector<8x128xf32>
    %187 = math.tanh %186 : vector<8x128xf32>
    %188 = arith.mulf %183, %187 : vector<8x128xf32>
    %c5_61 = arith.constant 5 : index
    %c0_62 = arith.constant 0 : index
    %c0_63 = arith.constant 0 : index
    %189 = vector.load %arg20[%c5_61, %c0_62, %c0_63] : memref<8x8x256xf32, #tpu.memory_space<vmem>>, vector<1x8x128xf32>
    %190 = vector.shape_cast %189 : vector<1x8x128xf32> to vector<8x128xf32>
    %191 = vector.shape_cast %188 : vector<8x128xf32> to vector<1x8x128xf32>
    tpu.vector_store %arg20[%c5_61, %c0_62, %c0_63], %191 {strides = array<i32>} : memref<8x8x256xf32, #tpu.memory_space<vmem>>, vector<1x8x128xf32>,
    %c6 = arith.constant 6 : index
    %c0_64 = arith.constant 0 : index
    %c0_65 = arith.constant 0 : index
    %192 = vector.load %arg22[%c6, %c0_64, %c0_65] : memref<8x8x512xf32, #tpu.memory_space<vmem>>, vector<1x8x512xf32>
    %193 = vector.shape_cast %192 : vector<1x8x512xf32> to vector<8x512xf32>
    %cst_66 = arith.constant dense<0.000000e+00> : vector<8x512xf32>
    %194 = tpu.matmul %188, %9, %cst_66 {dimension_numbers = #tpu.dot_dimension_numbers<[1], [0], [0], [1], [0, 0, 1, 1], [], []>} : vector<8x128xf32>, vector<128x512xf32>, vector<8x512xf32> -> vector<8x512xf32>
    %195 = arith.addf %193, %194 : vector<8x512xf32>
    %196 = vector.extract_strided_slice %195 {offsets = [0, 0], sizes = [8, 128], strides = [1, 1]} : vector<8x512xf32> to vector<8x128xf32>
    %197 = arith.negf %196 : vector<8x128xf32>
    %198 = math.exp %197 : vector<8x128xf32>
    %cst_67 = arith.constant 1.000000e+00 : f32
    %199 = vector.broadcast %cst_67 : f32 to vector<8x128xf32>
    %200 = arith.addf %199, %198 : vector<8x128xf32>
    %201 = arith.divf %199, %200 : vector<8x128xf32>
    %202 = vector.extract_strided_slice %195 {offsets = [0, 128], sizes = [8, 128], strides = [1, 1]} : vector<8x512xf32> to vector<8x128xf32>
    %203 = arith.negf %202 : vector<8x128xf32>
    %204 = math.exp %203 : vector<8x128xf32>
    %cst_68 = arith.constant 1.000000e+00 : f32
    %205 = vector.broadcast %cst_68 : f32 to vector<8x128xf32>
    %206 = arith.addf %205, %204 : vector<8x128xf32>
    %207 = arith.divf %205, %206 : vector<8x128xf32>
    %208 = vector.extract_strided_slice %195 {offsets = [0, 256], sizes = [8, 128], strides = [1, 1]} : vector<8x512xf32> to vector<8x128xf32>
    %209 = math.tanh %208 : vector<8x128xf32>
    %210 = vector.extract_strided_slice %195 {offsets = [0, 384], sizes = [8, 128], strides = [1, 1]} : vector<8x512xf32> to vector<8x128xf32>
    %211 = arith.negf %210 : vector<8x128xf32>
    %212 = math.exp %211 : vector<8x128xf32>
    %cst_69 = arith.constant 1.000000e+00 : f32
    %213 = vector.broadcast %cst_69 : f32 to vector<8x128xf32>
    %214 = arith.addf %213, %212 : vector<8x128xf32>
    %215 = arith.divf %213, %214 : vector<8x128xf32>
    %216 = arith.mulf %207, %186 : vector<8x128xf32>
    %217 = arith.mulf %201, %209 : vector<8x128xf32>
    %218 = arith.addf %216, %217 : vector<8x128xf32>
    %219 = math.tanh %218 : vector<8x128xf32>
    %220 = arith.mulf %215, %219 : vector<8x128xf32>
    %c6_70 = arith.constant 6 : index
    %c0_71 = arith.constant 0 : index
    %c0_72 = arith.constant 0 : index
    %221 = vector.load %arg20[%c6_70, %c0_71, %c0_72] : memref<8x8x256xf32, #tpu.memory_space<vmem>>, vector<1x8x128xf32>
    %222 = vector.shape_cast %221 : vector<1x8x128xf32> to vector<8x128xf32>
    %223 = vector.shape_cast %220 : vector<8x128xf32> to vector<1x8x128xf32>
    tpu.vector_store %arg20[%c6_70, %c0_71, %c0_72], %223 {strides = array<i32>} : memref<8x8x256xf32, #tpu.memory_space<vmem>>, vector<1x8x128xf32>,
    %c7 = arith.constant 7 : index
    %c0_73 = arith.constant 0 : index
    %c0_74 = arith.constant 0 : index
    %224 = vector.load %arg22[%c7, %c0_73, %c0_74] : memref<8x8x512xf32, #tpu.memory_space<vmem>>, vector<1x8x512xf32>
    %225 = vector.shape_cast %224 : vector<1x8x512xf32> to vector<8x512xf32>
    %cst_75 = arith.constant dense<0.000000e+00> : vector<8x512xf32>
    %226 = tpu.matmul %220, %9, %cst_75 {dimension_numbers = #tpu.dot_dimension_numbers<[1], [0], [0], [1], [0, 0, 1, 1], [], []>} : vector<8x128xf32>, vector<128x512xf32>, vector<8x512xf32> -> vector<8x512xf32>
    %227 = arith.addf %225, %226 : vector<8x512xf32>
    %228 = vector.extract_strided_slice %227 {offsets = [0, 0], sizes = [8, 128], strides = [1, 1]} : vector<8x512xf32> to vector<8x128xf32>
    %229 = arith.negf %228 : vector<8x128xf32>
    %230 = math.exp %229 : vector<8x128xf32>
    %cst_76 = arith.constant 1.000000e+00 : f32
    %231 = vector.broadcast %cst_76 : f32 to vector<8x128xf32>
    %232 = arith.addf %231, %230 : vector<8x128xf32>
    %233 = arith.divf %231, %232 : vector<8x128xf32>
    %234 = vector.extract_strided_slice %227 {offsets = [0, 128], sizes = [8, 128], strides = [1, 1]} : vector<8x512xf32> to vector<8x128xf32>
    %235 = arith.negf %234 : vector<8x128xf32>
    %236 = math.exp %235 : vector<8x128xf32>
    %cst_77 = arith.constant 1.000000e+00 : f32
    %237 = vector.broadcast %cst_77 : f32 to vector<8x128xf32>
    %238 = arith.addf %237, %236 : vector<8x128xf32>
    %239 = arith.divf %237, %238 : vector<8x128xf32>
    %240 = vector.extract_strided_slice %227 {offsets = [0, 256], sizes = [8, 128], strides = [1, 1]} : vector<8x512xf32> to vector<8x128xf32>
    %241 = math.tanh %240 : vector<8x128xf32>
    %242 = vector.extract_strided_slice %227 {offsets = [0, 384], sizes = [8, 128], strides = [1, 1]} : vector<8x512xf32> to vector<8x128xf32>
    %243 = arith.negf %242 : vector<8x128xf32>
    %244 = math.exp %243 : vector<8x128xf32>
    %cst_78 = arith.constant 1.000000e+00 : f32
    %245 = vector.broadcast %cst_78 : f32 to vector<8x128xf32>
    %246 = arith.addf %245, %244 : vector<8x128xf32>
    %247 = arith.divf %245, %246 : vector<8x128xf32>
    %248 = arith.mulf %239, %218 : vector<8x128xf32>
    %249 = arith.mulf %233, %241 : vector<8x128xf32>
    %250 = arith.addf %248, %249 : vector<8x128xf32>
    %251 = math.tanh %250 : vector<8x128xf32>
    %252 = arith.mulf %247, %251 : vector<8x128xf32>
    %c7_79 = arith.constant 7 : index
    %c0_80 = arith.constant 0 : index
    %c0_81 = arith.constant 0 : index
    %253 = vector.load %arg20[%c7_79, %c0_80, %c0_81] : memref<8x8x256xf32, #tpu.memory_space<vmem>>, vector<1x8x128xf32>
    %254 = vector.shape_cast %253 : vector<1x8x128xf32> to vector<8x128xf32>
    %255 = vector.shape_cast %252 : vector<8x128xf32> to vector<1x8x128xf32>
    tpu.vector_store %arg20[%c7_79, %c0_80, %c0_81], %255 {strides = array<i32>} : memref<8x8x256xf32, #tpu.memory_space<vmem>>, vector<1x8x128xf32>,
    %256 = vector.shape_cast %0 : vector<8x8x64xf32> to vector<64x64xf32>
    %c0_82 = arith.constant 0 : index
    %c0_83 = arith.constant 0 : index
    %257 = vector.load %arg4[%c0_82, %c0_83] : memref<64x512xf32, #tpu.memory_space<vmem>>, vector<64x512xf32>
    %cst_84 = arith.constant dense<0.000000e+00> : vector<64x512xf32>
    %258 = tpu.matmul %256, %257, %cst_84 {dimension_numbers = #tpu.dot_dimension_numbers<[1], [0], [0], [1], [0, 0, 1, 1], [], []>} : vector<64x64xf32>, vector<64x512xf32>, vector<64x512xf32> -> vector<64x512xf32>
    %c0_85 = arith.constant 0 : index
    %c0_86 = arith.constant 0 : index
    %259 = vector.load %arg6[%c0_85, %c0_86] : memref<1x512xf32, #tpu.memory_space<vmem>>, vector<1x512xf32>
    %260 = vector.broadcast %259 : vector<1x512xf32> to vector<64x512xf32>
    %261 = arith.addf %258, %260 : vector<64x512xf32>
    %262 = vector.shape_cast %261 : vector<64x512xf32> to vector<8x8x512xf32>
    %c0_87 = arith.constant 0 : index
    %c0_88 = arith.constant 0 : index
    %c0_89 = arith.constant 0 : index
    %263 = vector.load %arg22[%c0_87, %c0_88, %c0_89] : memref<8x8x512xf32, #tpu.memory_space<vmem>>, vector<8x8x512xf32>
    tpu.vector_store %arg22[%c0_87, %c0_88, %c0_89], %262 {strides = array<i32>} : memref<8x8x512xf32, #tpu.memory_space<vmem>>, vector<8x8x512xf32>,
    %c0_90 = arith.constant 0 : index
    %c0_91 = arith.constant 0 : index
    %264 = vector.load %arg5[%c0_90, %c0_91] : memref<128x512xf32, #tpu.memory_space<vmem>>, vector<128x512xf32>
    %c7_92 = arith.constant 7 : index
    %c0_93 = arith.constant 0 : index
    %c0_94 = arith.constant 0 : index
    %265 = vector.load %arg22[%c7_92, %c0_93, %c0_94] : memref<8x8x512xf32, #tpu.memory_space<vmem>>, vector<1x8x512xf32>
    %266 = vector.shape_cast %265 : vector<1x8x512xf32> to vector<8x512xf32>
    %267 = vector.extract_strided_slice %266 {offsets = [0, 0], sizes = [8, 128], strides = [1, 1]} : vector<8x512xf32> to vector<8x128xf32>
    %268 = arith.negf %267 : vector<8x128xf32>
    %269 = math.exp %268 : vector<8x128xf32>
    %cst_95 = arith.constant 1.000000e+00 : f32
    %270 = vector.broadcast %cst_95 : f32 to vector<8x128xf32>
    %271 = arith.addf %270, %269 : vector<8x128xf32>
    %272 = arith.divf %270, %271 : vector<8x128xf32>
    %273 = vector.extract_strided_slice %266 {offsets = [0, 256], sizes = [8, 128], strides = [1, 1]} : vector<8x512xf32> to vector<8x128xf32>
    %274 = math.tanh %273 : vector<8x128xf32>
    %275 = vector.extract_strided_slice %266 {offsets = [0, 384], sizes = [8, 128], strides = [1, 1]} : vector<8x512xf32> to vector<8x128xf32>
    %276 = arith.negf %275 : vector<8x128xf32>
    %277 = math.exp %276 : vector<8x128xf32>
    %cst_96 = arith.constant 1.000000e+00 : f32
    %278 = vector.broadcast %cst_96 : f32 to vector<8x128xf32>
    %279 = arith.addf %278, %277 : vector<8x128xf32>
    %280 = arith.divf %278, %279 : vector<8x128xf32>
    %281 = arith.mulf %272, %274 : vector<8x128xf32>
    %282 = math.tanh %281 : vector<8x128xf32>
    %283 = arith.mulf %280, %282 : vector<8x128xf32>
    %c7_97 = arith.constant 7 : index
    %c0_98 = arith.constant 0 : index
    %c128 = arith.constant 128 : index
    %284 = vector.load %arg20[%c7_97, %c0_98, %c128] : memref<8x8x256xf32, #tpu.memory_space<vmem>>, vector<1x8x128xf32>
    %285 = vector.shape_cast %284 : vector<1x8x128xf32> to vector<8x128xf32>
    %286 = vector.shape_cast %283 : vector<8x128xf32> to vector<1x8x128xf32>
    tpu.vector_store %arg20[%c7_97, %c0_98, %c128], %286 {strides = array<i32>} : memref<8x8x256xf32, #tpu.memory_space<vmem>>, vector<1x8x128xf32>,
    %c6_99 = arith.constant 6 : index
    %c0_100 = arith.constant 0 : index
    %c0_101 = arith.constant 0 : index
    %287 = vector.load %arg22[%c6_99, %c0_100, %c0_101] : memref<8x8x512xf32, #tpu.memory_space<vmem>>, vector<1x8x512xf32>
    %288 = vector.shape_cast %287 : vector<1x8x512xf32> to vector<8x512xf32>
    %cst_102 = arith.constant dense<0.000000e+00> : vector<8x512xf32>
    %289 = tpu.matmul %283, %264, %cst_102 {dimension_numbers = #tpu.dot_dimension_numbers<[1], [0], [0], [1], [0, 0, 1, 1], [], []>} : vector<8x128xf32>, vector<128x512xf32>, vector<8x512xf32> -> vector<8x512xf32>
    %290 = arith.addf %288, %289 : vector<8x512xf32>
    %291 = vector.extract_strided_slice %290 {offsets = [0, 0], sizes = [8, 128], strides = [1, 1]} : vector<8x512xf32> to vector<8x128xf32>
    %292 = arith.negf %291 : vector<8x128xf32>
    %293 = math.exp %292 : vector<8x128xf32>
    %cst_103 = arith.constant 1.000000e+00 : f32
    %294 = vector.broadcast %cst_103 : f32 to vector<8x128xf32>
    %295 = arith.addf %294, %293 : vector<8x128xf32>
    %296 = arith.divf %294, %295 : vector<8x128xf32>
    %297 = vector.extract_strided_slice %290 {offsets = [0, 128], sizes = [8, 128], strides = [1, 1]} : vector<8x512xf32> to vector<8x128xf32>
    %298 = arith.negf %297 : vector<8x128xf32>
    %299 = math.exp %298 : vector<8x128xf32>
    %cst_104 = arith.constant 1.000000e+00 : f32
    %300 = vector.broadcast %cst_104 : f32 to vector<8x128xf32>
    %301 = arith.addf %300, %299 : vector<8x128xf32>
    %302 = arith.divf %300, %301 : vector<8x128xf32>
    %303 = vector.extract_strided_slice %290 {offsets = [0, 256], sizes = [8, 128], strides = [1, 1]} : vector<8x512xf32> to vector<8x128xf32>
    %304 = math.tanh %303 : vector<8x128xf32>
    %305 = vector.extract_strided_slice %290 {offsets = [0, 384], sizes = [8, 128], strides = [1, 1]} : vector<8x512xf32> to vector<8x128xf32>
    %306 = arith.negf %305 : vector<8x128xf32>
    %307 = math.exp %306 : vector<8x128xf32>
    %cst_105 = arith.constant 1.000000e+00 : f32
    %308 = vector.broadcast %cst_105 : f32 to vector<8x128xf32>
    %309 = arith.addf %308, %307 : vector<8x128xf32>
    %310 = arith.divf %308, %309 : vector<8x128xf32>
    %311 = arith.mulf %302, %281 : vector<8x128xf32>
    %312 = arith.mulf %296, %304 : vector<8x128xf32>
    %313 = arith.addf %311, %312 : vector<8x128xf32>
    %314 = math.tanh %313 : vector<8x128xf32>
    %315 = arith.mulf %310, %314 : vector<8x128xf32>
    %c6_106 = arith.constant 6 : index
    %c0_107 = arith.constant 0 : index
    %c128_108 = arith.constant 128 : index
    %316 = vector.load %arg20[%c6_106, %c0_107, %c128_108] : memref<8x8x256xf32, #tpu.memory_space<vmem>>, vector<1x8x128xf32>
    %317 = vector.shape_cast %316 : vector<1x8x128xf32> to vector<8x128xf32>
    %318 = vector.shape_cast %315 : vector<8x128xf32> to vector<1x8x128xf32>
    tpu.vector_store %arg20[%c6_106, %c0_107, %c128_108], %318 {strides = array<i32>} : memref<8x8x256xf32, #tpu.memory_space<vmem>>, vector<1x8x128xf32>,
    %c5_109 = arith.constant 5 : index
    %c0_110 = arith.constant 0 : index
    %c0_111 = arith.constant 0 : index
    %319 = vector.load %arg22[%c5_109, %c0_110, %c0_111] : memref<8x8x512xf32, #tpu.memory_space<vmem>>, vector<1x8x512xf32>
    %320 = vector.shape_cast %319 : vector<1x8x512xf32> to vector<8x512xf32>
    %cst_112 = arith.constant dense<0.000000e+00> : vector<8x512xf32>
    %321 = tpu.matmul %315, %264, %cst_112 {dimension_numbers = #tpu.dot_dimension_numbers<[1], [0], [0], [1], [0, 0, 1, 1], [], []>} : vector<8x128xf32>, vector<128x512xf32>, vector<8x512xf32> -> vector<8x512xf32>
    %322 = arith.addf %320, %321 : vector<8x512xf32>
    %323 = vector.extract_strided_slice %322 {offsets = [0, 0], sizes = [8, 128], strides = [1, 1]} : vector<8x512xf32> to vector<8x128xf32>
    %324 = arith.negf %323 : vector<8x128xf32>
    %325 = math.exp %324 : vector<8x128xf32>
    %cst_113 = arith.constant 1.000000e+00 : f32
    %326 = vector.broadcast %cst_113 : f32 to vector<8x128xf32>
    %327 = arith.addf %326, %325 : vector<8x128xf32>
    %328 = arith.divf %326, %327 : vector<8x128xf32>
    %329 = vector.extract_strided_slice %322 {offsets = [0, 128], sizes = [8, 128], strides = [1, 1]} : vector<8x512xf32> to vector<8x128xf32>
    %330 = arith.negf %329 : vector<8x128xf32>
    %331 = math.exp %330 : vector<8x128xf32>
    %cst_114 = arith.constant 1.000000e+00 : f32
    %332 = vector.broadcast %cst_114 : f32 to vector<8x128xf32>
    %333 = arith.addf %332, %331 : vector<8x128xf32>
    %334 = arith.divf %332, %333 : vector<8x128xf32>
    %335 = vector.extract_strided_slice %322 {offsets = [0, 256], sizes = [8, 128], strides = [1, 1]} : vector<8x512xf32> to vector<8x128xf32>
    %336 = math.tanh %335 : vector<8x128xf32>
    %337 = vector.extract_strided_slice %322 {offsets = [0, 384], sizes = [8, 128], strides = [1, 1]} : vector<8x512xf32> to vector<8x128xf32>
    %338 = arith.negf %337 : vector<8x128xf32>
    %339 = math.exp %338 : vector<8x128xf32>
    %cst_115 = arith.constant 1.000000e+00 : f32
    %340 = vector.broadcast %cst_115 : f32 to vector<8x128xf32>
    %341 = arith.addf %340, %339 : vector<8x128xf32>
    %342 = arith.divf %340, %341 : vector<8x128xf32>
    %343 = arith.mulf %334, %313 : vector<8x128xf32>
    %344 = arith.mulf %328, %336 : vector<8x128xf32>
    %345 = arith.addf %343, %344 : vector<8x128xf32>
    %346 = math.tanh %345 : vector<8x128xf32>
    %347 = arith.mulf %342, %346 : vector<8x128xf32>
    %c5_116 = arith.constant 5 : index
    %c0_117 = arith.constant 0 : index
    %c128_118 = arith.constant 128 : index
    %348 = vector.load %arg20[%c5_116, %c0_117, %c128_118] : memref<8x8x256xf32, #tpu.memory_space<vmem>>, vector<1x8x128xf32>
    %349 = vector.shape_cast %348 : vector<1x8x128xf32> to vector<8x128xf32>
    %350 = vector.shape_cast %347 : vector<8x128xf32> to vector<1x8x128xf32>
    tpu.vector_store %arg20[%c5_116, %c0_117, %c128_118], %350 {strides = array<i32>} : memref<8x8x256xf32, #tpu.memory_space<vmem>>, vector<1x8x128xf32>,
    %c4_119 = arith.constant 4 : index
    %c0_120 = arith.constant 0 : index
    %c0_121 = arith.constant 0 : index
    %351 = vector.load %arg22[%c4_119, %c0_120, %c0_121] : memref<8x8x512xf32, #tpu.memory_space<vmem>>, vector<1x8x512xf32>
    %352 = vector.shape_cast %351 : vector<1x8x512xf32> to vector<8x512xf32>
    %cst_122 = arith.constant dense<0.000000e+00> : vector<8x512xf32>
    %353 = tpu.matmul %347, %264, %cst_122 {dimension_numbers = #tpu.dot_dimension_numbers<[1], [0], [0], [1], [0, 0, 1, 1], [], []>} : vector<8x128xf32>, vector<128x512xf32>, vector<8x512xf32> -> vector<8x512xf32>
    %354 = arith.addf %352, %353 : vector<8x512xf32>
    %355 = vector.extract_strided_slice %354 {offsets = [0, 0], sizes = [8, 128], strides = [1, 1]} : vector<8x512xf32> to vector<8x128xf32>
    %356 = arith.negf %355 : vector<8x128xf32>
    %357 = math.exp %356 : vector<8x128xf32>
    %cst_123 = arith.constant 1.000000e+00 : f32
    %358 = vector.broadcast %cst_123 : f32 to vector<8x128xf32>
    %359 = arith.addf %358, %357 : vector<8x128xf32>
    %360 = arith.divf %358, %359 : vector<8x128xf32>
    %361 = vector.extract_strided_slice %354 {offsets = [0, 128], sizes = [8, 128], strides = [1, 1]} : vector<8x512xf32> to vector<8x128xf32>
    %362 = arith.negf %361 : vector<8x128xf32>
    %363 = math.exp %362 : vector<8x128xf32>
    %cst_124 = arith.constant 1.000000e+00 : f32
    %364 = vector.broadcast %cst_124 : f32 to vector<8x128xf32>
    %365 = arith.addf %364, %363 : vector<8x128xf32>
    %366 = arith.divf %364, %365 : vector<8x128xf32>
    %367 = vector.extract_strided_slice %354 {offsets = [0, 256], sizes = [8, 128], strides = [1, 1]} : vector<8x512xf32> to vector<8x128xf32>
    %368 = math.tanh %367 : vector<8x128xf32>
    %369 = vector.extract_strided_slice %354 {offsets = [0, 384], sizes = [8, 128], strides = [1, 1]} : vector<8x512xf32> to vector<8x128xf32>
    %370 = arith.negf %369 : vector<8x128xf32>
    %371 = math.exp %370 : vector<8x128xf32>
    %cst_125 = arith.constant 1.000000e+00 : f32
    %372 = vector.broadcast %cst_125 : f32 to vector<8x128xf32>
    %373 = arith.addf %372, %371 : vector<8x128xf32>
    %374 = arith.divf %372, %373 : vector<8x128xf32>
    %375 = arith.mulf %366, %345 : vector<8x128xf32>
    %376 = arith.mulf %360, %368 : vector<8x128xf32>
    %377 = arith.addf %375, %376 : vector<8x128xf32>
    %378 = math.tanh %377 : vector<8x128xf32>
    %379 = arith.mulf %374, %378 : vector<8x128xf32>
    %c4_126 = arith.constant 4 : index
    %c0_127 = arith.constant 0 : index
    %c128_128 = arith.constant 128 : index
    %380 = vector.load %arg20[%c4_126, %c0_127, %c128_128] : memref<8x8x256xf32, #tpu.memory_space<vmem>>, vector<1x8x128xf32>
    %381 = vector.shape_cast %380 : vector<1x8x128xf32> to vector<8x128xf32>
    %382 = vector.shape_cast %379 : vector<8x128xf32> to vector<1x8x128xf32>
    tpu.vector_store %arg20[%c4_126, %c0_127, %c128_128], %382 {strides = array<i32>} : memref<8x8x256xf32, #tpu.memory_space<vmem>>, vector<1x8x128xf32>,
    %c3_129 = arith.constant 3 : index
    %c0_130 = arith.constant 0 : index
    %c0_131 = arith.constant 0 : index
    %383 = vector.load %arg22[%c3_129, %c0_130, %c0_131] : memref<8x8x512xf32, #tpu.memory_space<vmem>>, vector<1x8x512xf32>
    %384 = vector.shape_cast %383 : vector<1x8x512xf32> to vector<8x512xf32>
    %cst_132 = arith.constant dense<0.000000e+00> : vector<8x512xf32>
    %385 = tpu.matmul %379, %264, %cst_132 {dimension_numbers = #tpu.dot_dimension_numbers<[1], [0], [0], [1], [0, 0, 1, 1], [], []>} : vector<8x128xf32>, vector<128x512xf32>, vector<8x512xf32> -> vector<8x512xf32>
    %386 = arith.addf %384, %385 : vector<8x512xf32>
    %387 = vector.extract_strided_slice %386 {offsets = [0, 0], sizes = [8, 128], strides = [1, 1]} : vector<8x512xf32> to vector<8x128xf32>
    %388 = arith.negf %387 : vector<8x128xf32>
    %389 = math.exp %388 : vector<8x128xf32>
    %cst_133 = arith.constant 1.000000e+00 : f32
    %390 = vector.broadcast %cst_133 : f32 to vector<8x128xf32>
    %391 = arith.addf %390, %389 : vector<8x128xf32>
    %392 = arith.divf %390, %391 : vector<8x128xf32>
    %393 = vector.extract_strided_slice %386 {offsets = [0, 128], sizes = [8, 128], strides = [1, 1]} : vector<8x512xf32> to vector<8x128xf32>
    %394 = arith.negf %393 : vector<8x128xf32>
    %395 = math.exp %394 : vector<8x128xf32>
    %cst_134 = arith.constant 1.000000e+00 : f32
    %396 = vector.broadcast %cst_134 : f32 to vector<8x128xf32>
    %397 = arith.addf %396, %395 : vector<8x128xf32>
    %398 = arith.divf %396, %397 : vector<8x128xf32>
    %399 = vector.extract_strided_slice %386 {offsets = [0, 256], sizes = [8, 128], strides = [1, 1]} : vector<8x512xf32> to vector<8x128xf32>
    %400 = math.tanh %399 : vector<8x128xf32>
    %401 = vector.extract_strided_slice %386 {offsets = [0, 384], sizes = [8, 128], strides = [1, 1]} : vector<8x512xf32> to vector<8x128xf32>
    %402 = arith.negf %401 : vector<8x128xf32>
    %403 = math.exp %402 : vector<8x128xf32>
    %cst_135 = arith.constant 1.000000e+00 : f32
    %404 = vector.broadcast %cst_135 : f32 to vector<8x128xf32>
    %405 = arith.addf %404, %403 : vector<8x128xf32>
    %406 = arith.divf %404, %405 : vector<8x128xf32>
    %407 = arith.mulf %398, %377 : vector<8x128xf32>
    %408 = arith.mulf %392, %400 : vector<8x128xf32>
    %409 = arith.addf %407, %408 : vector<8x128xf32>
    %410 = math.tanh %409 : vector<8x128xf32>
    %411 = arith.mulf %406, %410 : vector<8x128xf32>
    %c3_136 = arith.constant 3 : index
    %c0_137 = arith.constant 0 : index
    %c128_138 = arith.constant 128 : index
    %412 = vector.load %arg20[%c3_136, %c0_137, %c128_138] : memref<8x8x256xf32, #tpu.memory_space<vmem>>, vector<1x8x128xf32>
    %413 = vector.shape_cast %412 : vector<1x8x128xf32> to vector<8x128xf32>
    %414 = vector.shape_cast %411 : vector<8x128xf32> to vector<1x8x128xf32>
    tpu.vector_store %arg20[%c3_136, %c0_137, %c128_138], %414 {strides = array<i32>} : memref<8x8x256xf32, #tpu.memory_space<vmem>>, vector<1x8x128xf32>,
    %c2_139 = arith.constant 2 : index
    %c0_140 = arith.constant 0 : index
    %c0_141 = arith.constant 0 : index
    %415 = vector.load %arg22[%c2_139, %c0_140, %c0_141] : memref<8x8x512xf32, #tpu.memory_space<vmem>>, vector<1x8x512xf32>
    %416 = vector.shape_cast %415 : vector<1x8x512xf32> to vector<8x512xf32>
    %cst_142 = arith.constant dense<0.000000e+00> : vector<8x512xf32>
    %417 = tpu.matmul %411, %264, %cst_142 {dimension_numbers = #tpu.dot_dimension_numbers<[1], [0], [0], [1], [0, 0, 1, 1], [], []>} : vector<8x128xf32>, vector<128x512xf32>, vector<8x512xf32> -> vector<8x512xf32>
    %418 = arith.addf %416, %417 : vector<8x512xf32>
    %419 = vector.extract_strided_slice %418 {offsets = [0, 0], sizes = [8, 128], strides = [1, 1]} : vector<8x512xf32> to vector<8x128xf32>
    %420 = arith.negf %419 : vector<8x128xf32>
    %421 = math.exp %420 : vector<8x128xf32>
    %cst_143 = arith.constant 1.000000e+00 : f32
    %422 = vector.broadcast %cst_143 : f32 to vector<8x128xf32>
    %423 = arith.addf %422, %421 : vector<8x128xf32>
    %424 = arith.divf %422, %423 : vector<8x128xf32>
    %425 = vector.extract_strided_slice %418 {offsets = [0, 128], sizes = [8, 128], strides = [1, 1]} : vector<8x512xf32> to vector<8x128xf32>
    %426 = arith.negf %425 : vector<8x128xf32>
    %427 = math.exp %426 : vector<8x128xf32>
    %cst_144 = arith.constant 1.000000e+00 : f32
    %428 = vector.broadcast %cst_144 : f32 to vector<8x128xf32>
    %429 = arith.addf %428, %427 : vector<8x128xf32>
    %430 = arith.divf %428, %429 : vector<8x128xf32>
    %431 = vector.extract_strided_slice %418 {offsets = [0, 256], sizes = [8, 128], strides = [1, 1]} : vector<8x512xf32> to vector<8x128xf32>
    %432 = math.tanh %431 : vector<8x128xf32>
    %433 = vector.extract_strided_slice %418 {offsets = [0, 384], sizes = [8, 128], strides = [1, 1]} : vector<8x512xf32> to vector<8x128xf32>
    %434 = arith.negf %433 : vector<8x128xf32>
    %435 = math.exp %434 : vector<8x128xf32>
    %cst_145 = arith.constant 1.000000e+00 : f32
    %436 = vector.broadcast %cst_145 : f32 to vector<8x128xf32>
    %437 = arith.addf %436, %435 : vector<8x128xf32>
    %438 = arith.divf %436, %437 : vector<8x128xf32>
    %439 = arith.mulf %430, %409 : vector<8x128xf32>
    %440 = arith.mulf %424, %432 : vector<8x128xf32>
    %441 = arith.addf %439, %440 : vector<8x128xf32>
    %442 = math.tanh %441 : vector<8x128xf32>
    %443 = arith.mulf %438, %442 : vector<8x128xf32>
    %c2_146 = arith.constant 2 : index
    %c0_147 = arith.constant 0 : index
    %c128_148 = arith.constant 128 : index
    %444 = vector.load %arg20[%c2_146, %c0_147, %c128_148] : memref<8x8x256xf32, #tpu.memory_space<vmem>>, vector<1x8x128xf32>
    %445 = vector.shape_cast %444 : vector<1x8x128xf32> to vector<8x128xf32>
    %446 = vector.shape_cast %443 : vector<8x128xf32> to vector<1x8x128xf32>
    tpu.vector_store %arg20[%c2_146, %c0_147, %c128_148], %446 {strides = array<i32>} : memref<8x8x256xf32, #tpu.memory_space<vmem>>, vector<1x8x128xf32>,
    %c1_149 = arith.constant 1 : index
    %c0_150 = arith.constant 0 : index
    %c0_151 = arith.constant 0 : index
    %447 = vector.load %arg22[%c1_149, %c0_150, %c0_151] : memref<8x8x512xf32, #tpu.memory_space<vmem>>, vector<1x8x512xf32>
    %448 = vector.shape_cast %447 : vector<1x8x512xf32> to vector<8x512xf32>
    %cst_152 = arith.constant dense<0.000000e+00> : vector<8x512xf32>
    %449 = tpu.matmul %443, %264, %cst_152 {dimension_numbers = #tpu.dot_dimension_numbers<[1], [0], [0], [1], [0, 0, 1, 1], [], []>} : vector<8x128xf32>, vector<128x512xf32>, vector<8x512xf32> -> vector<8x512xf32>
    %450 = arith.addf %448, %449 : vector<8x512xf32>
    %451 = vector.extract_strided_slice %450 {offsets = [0, 0], sizes = [8, 128], strides = [1, 1]} : vector<8x512xf32> to vector<8x128xf32>
    %452 = arith.negf %451 : vector<8x128xf32>
    %453 = math.exp %452 : vector<8x128xf32>
    %cst_153 = arith.constant 1.000000e+00 : f32
    %454 = vector.broadcast %cst_153 : f32 to vector<8x128xf32>
    %455 = arith.addf %454, %453 : vector<8x128xf32>
    %456 = arith.divf %454, %455 : vector<8x128xf32>
    %457 = vector.extract_strided_slice %450 {offsets = [0, 128], sizes = [8, 128], strides = [1, 1]} : vector<8x512xf32> to vector<8x128xf32>
    %458 = arith.negf %457 : vector<8x128xf32>
    %459 = math.exp %458 : vector<8x128xf32>
    %cst_154 = arith.constant 1.000000e+00 : f32
    %460 = vector.broadcast %cst_154 : f32 to vector<8x128xf32>
    %461 = arith.addf %460, %459 : vector<8x128xf32>
    %462 = arith.divf %460, %461 : vector<8x128xf32>
    %463 = vector.extract_strided_slice %450 {offsets = [0, 256], sizes = [8, 128], strides = [1, 1]} : vector<8x512xf32> to vector<8x128xf32>
    %464 = math.tanh %463 : vector<8x128xf32>
    %465 = vector.extract_strided_slice %450 {offsets = [0, 384], sizes = [8, 128], strides = [1, 1]} : vector<8x512xf32> to vector<8x128xf32>
    %466 = arith.negf %465 : vector<8x128xf32>
    %467 = math.exp %466 : vector<8x128xf32>
    %cst_155 = arith.constant 1.000000e+00 : f32
    %468 = vector.broadcast %cst_155 : f32 to vector<8x128xf32>
    %469 = arith.addf %468, %467 : vector<8x128xf32>
    %470 = arith.divf %468, %469 : vector<8x128xf32>
    %471 = arith.mulf %462, %441 : vector<8x128xf32>
    %472 = arith.mulf %456, %464 : vector<8x128xf32>
    %473 = arith.addf %471, %472 : vector<8x128xf32>
    %474 = math.tanh %473 : vector<8x128xf32>
    %475 = arith.mulf %470, %474 : vector<8x128xf32>
    %c1_156 = arith.constant 1 : index
    %c0_157 = arith.constant 0 : index
    %c128_158 = arith.constant 128 : index
    %476 = vector.load %arg20[%c1_156, %c0_157, %c128_158] : memref<8x8x256xf32, #tpu.memory_space<vmem>>, vector<1x8x128xf32>
    %477 = vector.shape_cast %476 : vector<1x8x128xf32> to vector<8x128xf32>
    %478 = vector.shape_cast %475 : vector<8x128xf32> to vector<1x8x128xf32>
    tpu.vector_store %arg20[%c1_156, %c0_157, %c128_158], %478 {strides = array<i32>} : memref<8x8x256xf32, #tpu.memory_space<vmem>>, vector<1x8x128xf32>,
    %c0_159 = arith.constant 0 : index
    %c0_160 = arith.constant 0 : index
    %c0_161 = arith.constant 0 : index
    %479 = vector.load %arg22[%c0_159, %c0_160, %c0_161] : memref<8x8x512xf32, #tpu.memory_space<vmem>>, vector<1x8x512xf32>
    %480 = vector.shape_cast %479 : vector<1x8x512xf32> to vector<8x512xf32>
    %cst_162 = arith.constant dense<0.000000e+00> : vector<8x512xf32>
    %481 = tpu.matmul %475, %264, %cst_162 {dimension_numbers = #tpu.dot_dimension_numbers<[1], [0], [0], [1], [0, 0, 1, 1], [], []>} : vector<8x128xf32>, vector<128x512xf32>, vector<8x512xf32> -> vector<8x512xf32>
    %482 = arith.addf %480, %481 : vector<8x512xf32>
    %483 = vector.extract_strided_slice %482 {offsets = [0, 0], sizes = [8, 128], strides = [1, 1]} : vector<8x512xf32> to vector<8x128xf32>
    %484 = arith.negf %483 : vector<8x128xf32>
    %485 = math.exp %484 : vector<8x128xf32>
    %cst_163 = arith.constant 1.000000e+00 : f32
    %486 = vector.broadcast %cst_163 : f32 to vector<8x128xf32>
    %487 = arith.addf %486, %485 : vector<8x128xf32>
    %488 = arith.divf %486, %487 : vector<8x128xf32>
    %489 = vector.extract_strided_slice %482 {offsets = [0, 128], sizes = [8, 128], strides = [1, 1]} : vector<8x512xf32> to vector<8x128xf32>
    %490 = arith.negf %489 : vector<8x128xf32>
    %491 = math.exp %490 : vector<8x128xf32>
    %cst_164 = arith.constant 1.000000e+00 : f32
    %492 = vector.broadcast %cst_164 : f32 to vector<8x128xf32>
    %493 = arith.addf %492, %491 : vector<8x128xf32>
    %494 = arith.divf %492, %493 : vector<8x128xf32>
    %495 = vector.extract_strided_slice %482 {offsets = [0, 256], sizes = [8, 128], strides = [1, 1]} : vector<8x512xf32> to vector<8x128xf32>
    %496 = math.tanh %495 : vector<8x128xf32>
    %497 = vector.extract_strided_slice %482 {offsets = [0, 384], sizes = [8, 128], strides = [1, 1]} : vector<8x512xf32> to vector<8x128xf32>
    %498 = arith.negf %497 : vector<8x128xf32>
    %499 = math.exp %498 : vector<8x128xf32>
    %cst_165 = arith.constant 1.000000e+00 : f32
    %500 = vector.broadcast %cst_165 : f32 to vector<8x128xf32>
    %501 = arith.addf %500, %499 : vector<8x128xf32>
    %502 = arith.divf %500, %501 : vector<8x128xf32>
    %503 = arith.mulf %494, %473 : vector<8x128xf32>
    %504 = arith.mulf %488, %496 : vector<8x128xf32>
    %505 = arith.addf %503, %504 : vector<8x128xf32>
    %506 = math.tanh %505 : vector<8x128xf32>
    %507 = arith.mulf %502, %506 : vector<8x128xf32>
    %c0_166 = arith.constant 0 : index
    %c0_167 = arith.constant 0 : index
    %c128_168 = arith.constant 128 : index
    %508 = vector.load %arg20[%c0_166, %c0_167, %c128_168] : memref<8x8x256xf32, #tpu.memory_space<vmem>>, vector<1x8x128xf32>
    %509 = vector.shape_cast %508 : vector<1x8x128xf32> to vector<8x128xf32>
    %510 = vector.shape_cast %507 : vector<8x128xf32> to vector<1x8x128xf32>
    tpu.vector_store %arg20[%c0_166, %c0_167, %c128_168], %510 {strides = array<i32>} : memref<8x8x256xf32, #tpu.memory_space<vmem>>, vector<1x8x128xf32>,
    %c0_169 = arith.constant 0 : index
    %c0_170 = arith.constant 0 : index
    %c0_171 = arith.constant 0 : index
    %511 = vector.load %arg20[%c0_169, %c0_170, %c0_171] : memref<8x8x256xf32, #tpu.memory_space<vmem>>, vector<8x8x256xf32>
    %512 = vector.shape_cast %511 : vector<8x8x256xf32> to vector<64x256xf32>
    %c0_172 = arith.constant 0 : index
    %c0_173 = arith.constant 0 : index
    %513 = vector.load %arg7[%c0_172, %c0_173] : memref<256x512xf32, #tpu.memory_space<vmem>>, vector<256x512xf32>
    %cst_174 = arith.constant dense<0.000000e+00> : vector<64x512xf32>
    %514 = tpu.matmul %512, %513, %cst_174 {dimension_numbers = #tpu.dot_dimension_numbers<[1], [0], [0], [1], [0, 0, 1, 1], [], []>} : vector<64x256xf32>, vector<256x512xf32>, vector<64x512xf32> -> vector<64x512xf32>
    %c0_175 = arith.constant 0 : index
    %c0_176 = arith.constant 0 : index
    %515 = vector.load %arg9[%c0_175, %c0_176] : memref<1x512xf32, #tpu.memory_space<vmem>>, vector<1x512xf32>
    %516 = vector.broadcast %515 : vector<1x512xf32> to vector<64x512xf32>
    %517 = arith.addf %514, %516 : vector<64x512xf32>
    %518 = vector.shape_cast %517 : vector<64x512xf32> to vector<8x8x512xf32>
    %c0_177 = arith.constant 0 : index
    %c0_178 = arith.constant 0 : index
    %c0_179 = arith.constant 0 : index
    %519 = vector.load %arg22[%c0_177, %c0_178, %c0_179] : memref<8x8x512xf32, #tpu.memory_space<vmem>>, vector<8x8x512xf32>
    tpu.vector_store %arg22[%c0_177, %c0_178, %c0_179], %518 {strides = array<i32>} : memref<8x8x512xf32, #tpu.memory_space<vmem>>, vector<8x8x512xf32>,
    %c0_180 = arith.constant 0 : index
    %c0_181 = arith.constant 0 : index
    %520 = vector.load %arg8[%c0_180, %c0_181] : memref<128x512xf32, #tpu.memory_space<vmem>>, vector<128x512xf32>
    %c0_182 = arith.constant 0 : index
    %c0_183 = arith.constant 0 : index
    %c0_184 = arith.constant 0 : index
    %521 = vector.load %arg22[%c0_182, %c0_183, %c0_184] : memref<8x8x512xf32, #tpu.memory_space<vmem>>, vector<1x8x512xf32>
    %522 = vector.shape_cast %521 : vector<1x8x512xf32> to vector<8x512xf32>
    %523 = vector.extract_strided_slice %522 {offsets = [0, 0], sizes = [8, 128], strides = [1, 1]} : vector<8x512xf32> to vector<8x128xf32>
    %524 = arith.negf %523 : vector<8x128xf32>
    %525 = math.exp %524 : vector<8x128xf32>
    %cst_185 = arith.constant 1.000000e+00 : f32
    %526 = vector.broadcast %cst_185 : f32 to vector<8x128xf32>
    %527 = arith.addf %526, %525 : vector<8x128xf32>
    %528 = arith.divf %526, %527 : vector<8x128xf32>
    %529 = vector.extract_strided_slice %522 {offsets = [0, 256], sizes = [8, 128], strides = [1, 1]} : vector<8x512xf32> to vector<8x128xf32>
    %530 = math.tanh %529 : vector<8x128xf32>
    %531 = vector.extract_strided_slice %522 {offsets = [0, 384], sizes = [8, 128], strides = [1, 1]} : vector<8x512xf32> to vector<8x128xf32>
    %532 = arith.negf %531 : vector<8x128xf32>
    %533 = math.exp %532 : vector<8x128xf32>
    %cst_186 = arith.constant 1.000000e+00 : f32
    %534 = vector.broadcast %cst_186 : f32 to vector<8x128xf32>
    %535 = arith.addf %534, %533 : vector<8x128xf32>
    %536 = arith.divf %534, %535 : vector<8x128xf32>
    %537 = arith.mulf %528, %530 : vector<8x128xf32>
    %538 = math.tanh %537 : vector<8x128xf32>
    %539 = arith.mulf %536, %538 : vector<8x128xf32>
    %c0_187 = arith.constant 0 : index
    %c0_188 = arith.constant 0 : index
    %c0_189 = arith.constant 0 : index
    %540 = vector.load %arg21[%c0_187, %c0_188, %c0_189] : memref<8x8x256xf32, #tpu.memory_space<vmem>>, vector<1x8x128xf32>
    %541 = vector.shape_cast %540 : vector<1x8x128xf32> to vector<8x128xf32>
    %542 = vector.shape_cast %539 : vector<8x128xf32> to vector<1x8x128xf32>
    tpu.vector_store %arg21[%c0_187, %c0_188, %c0_189], %542 {strides = array<i32>} : memref<8x8x256xf32, #tpu.memory_space<vmem>>, vector<1x8x128xf32>,
    %c1_190 = arith.constant 1 : index
    %c0_191 = arith.constant 0 : index
    %c0_192 = arith.constant 0 : index
    %543 = vector.load %arg22[%c1_190, %c0_191, %c0_192] : memref<8x8x512xf32, #tpu.memory_space<vmem>>, vector<1x8x512xf32>
    %544 = vector.shape_cast %543 : vector<1x8x512xf32> to vector<8x512xf32>
    %cst_193 = arith.constant dense<0.000000e+00> : vector<8x512xf32>
    %545 = tpu.matmul %539, %520, %cst_193 {dimension_numbers = #tpu.dot_dimension_numbers<[1], [0], [0], [1], [0, 0, 1, 1], [], []>} : vector<8x128xf32>, vector<128x512xf32>, vector<8x512xf32> -> vector<8x512xf32>
    %546 = arith.addf %544, %545 : vector<8x512xf32>
    %547 = vector.extract_strided_slice %546 {offsets = [0, 0], sizes = [8, 128], strides = [1, 1]} : vector<8x512xf32> to vector<8x128xf32>
    %548 = arith.negf %547 : vector<8x128xf32>
    %549 = math.exp %548 : vector<8x128xf32>
    %cst_194 = arith.constant 1.000000e+00 : f32
    %550 = vector.broadcast %cst_194 : f32 to vector<8x128xf32>
    %551 = arith.addf %550, %549 : vector<8x128xf32>
    %552 = arith.divf %550, %551 : vector<8x128xf32>
    %553 = vector.extract_strided_slice %546 {offsets = [0, 128], sizes = [8, 128], strides = [1, 1]} : vector<8x512xf32> to vector<8x128xf32>
    %554 = arith.negf %553 : vector<8x128xf32>
    %555 = math.exp %554 : vector<8x128xf32>
    %cst_195 = arith.constant 1.000000e+00 : f32
    %556 = vector.broadcast %cst_195 : f32 to vector<8x128xf32>
    %557 = arith.addf %556, %555 : vector<8x128xf32>
    %558 = arith.divf %556, %557 : vector<8x128xf32>
    %559 = vector.extract_strided_slice %546 {offsets = [0, 256], sizes = [8, 128], strides = [1, 1]} : vector<8x512xf32> to vector<8x128xf32>
    %560 = math.tanh %559 : vector<8x128xf32>
    %561 = vector.extract_strided_slice %546 {offsets = [0, 384], sizes = [8, 128], strides = [1, 1]} : vector<8x512xf32> to vector<8x128xf32>
    %562 = arith.negf %561 : vector<8x128xf32>
    %563 = math.exp %562 : vector<8x128xf32>
    %cst_196 = arith.constant 1.000000e+00 : f32
    %564 = vector.broadcast %cst_196 : f32 to vector<8x128xf32>
    %565 = arith.addf %564, %563 : vector<8x128xf32>
    %566 = arith.divf %564, %565 : vector<8x128xf32>
    %567 = arith.mulf %558, %537 : vector<8x128xf32>
    %568 = arith.mulf %552, %560 : vector<8x128xf32>
    %569 = arith.addf %567, %568 : vector<8x128xf32>
    %570 = math.tanh %569 : vector<8x128xf32>
    %571 = arith.mulf %566, %570 : vector<8x128xf32>
    %c1_197 = arith.constant 1 : index
    %c0_198 = arith.constant 0 : index
    %c0_199 = arith.constant 0 : index
    %572 = vector.load %arg21[%c1_197, %c0_198, %c0_199] : memref<8x8x256xf32, #tpu.memory_space<vmem>>, vector<1x8x128xf32>
    %573 = vector.shape_cast %572 : vector<1x8x128xf32> to vector<8x128xf32>
    %574 = vector.shape_cast %571 : vector<8x128xf32> to vector<1x8x128xf32>
    tpu.vector_store %arg21[%c1_197, %c0_198, %c0_199], %574 {strides = array<i32>} : memref<8x8x256xf32, #tpu.memory_space<vmem>>, vector<1x8x128xf32>,
    %c2_200 = arith.constant 2 : index
    %c0_201 = arith.constant 0 : index
    %c0_202 = arith.constant 0 : index
    %575 = vector.load %arg22[%c2_200, %c0_201, %c0_202] : memref<8x8x512xf32, #tpu.memory_space<vmem>>, vector<1x8x512xf32>
    %576 = vector.shape_cast %575 : vector<1x8x512xf32> to vector<8x512xf32>
    %cst_203 = arith.constant dense<0.000000e+00> : vector<8x512xf32>
    %577 = tpu.matmul %571, %520, %cst_203 {dimension_numbers = #tpu.dot_dimension_numbers<[1], [0], [0], [1], [0, 0, 1, 1], [], []>} : vector<8x128xf32>, vector<128x512xf32>, vector<8x512xf32> -> vector<8x512xf32>
    %578 = arith.addf %576, %577 : vector<8x512xf32>
    %579 = vector.extract_strided_slice %578 {offsets = [0, 0], sizes = [8, 128], strides = [1, 1]} : vector<8x512xf32> to vector<8x128xf32>
    %580 = arith.negf %579 : vector<8x128xf32>
    %581 = math.exp %580 : vector<8x128xf32>
    %cst_204 = arith.constant 1.000000e+00 : f32
    %582 = vector.broadcast %cst_204 : f32 to vector<8x128xf32>
    %583 = arith.addf %582, %581 : vector<8x128xf32>
    %584 = arith.divf %582, %583 : vector<8x128xf32>
    %585 = vector.extract_strided_slice %578 {offsets = [0, 128], sizes = [8, 128], strides = [1, 1]} : vector<8x512xf32> to vector<8x128xf32>
    %586 = arith.negf %585 : vector<8x128xf32>
    %587 = math.exp %586 : vector<8x128xf32>
    %cst_205 = arith.constant 1.000000e+00 : f32
    %588 = vector.broadcast %cst_205 : f32 to vector<8x128xf32>
    %589 = arith.addf %588, %587 : vector<8x128xf32>
    %590 = arith.divf %588, %589 : vector<8x128xf32>
    %591 = vector.extract_strided_slice %578 {offsets = [0, 256], sizes = [8, 128], strides = [1, 1]} : vector<8x512xf32> to vector<8x128xf32>
    %592 = math.tanh %591 : vector<8x128xf32>
    %593 = vector.extract_strided_slice %578 {offsets = [0, 384], sizes = [8, 128], strides = [1, 1]} : vector<8x512xf32> to vector<8x128xf32>
    %594 = arith.negf %593 : vector<8x128xf32>
    %595 = math.exp %594 : vector<8x128xf32>
    %cst_206 = arith.constant 1.000000e+00 : f32
    %596 = vector.broadcast %cst_206 : f32 to vector<8x128xf32>
    %597 = arith.addf %596, %595 : vector<8x128xf32>
    %598 = arith.divf %596, %597 : vector<8x128xf32>
    %599 = arith.mulf %590, %569 : vector<8x128xf32>
    %600 = arith.mulf %584, %592 : vector<8x128xf32>
    %601 = arith.addf %599, %600 : vector<8x128xf32>
    %602 = math.tanh %601 : vector<8x128xf32>
    %603 = arith.mulf %598, %602 : vector<8x128xf32>
    %c2_207 = arith.constant 2 : index
    %c0_208 = arith.constant 0 : index
    %c0_209 = arith.constant 0 : index
    %604 = vector.load %arg21[%c2_207, %c0_208, %c0_209] : memref<8x8x256xf32, #tpu.memory_space<vmem>>, vector<1x8x128xf32>
    %605 = vector.shape_cast %604 : vector<1x8x128xf32> to vector<8x128xf32>
    %606 = vector.shape_cast %603 : vector<8x128xf32> to vector<1x8x128xf32>
    tpu.vector_store %arg21[%c2_207, %c0_208, %c0_209], %606 {strides = array<i32>} : memref<8x8x256xf32, #tpu.memory_space<vmem>>, vector<1x8x128xf32>,
    %c3_210 = arith.constant 3 : index
    %c0_211 = arith.constant 0 : index
    %c0_212 = arith.constant 0 : index
    %607 = vector.load %arg22[%c3_210, %c0_211, %c0_212] : memref<8x8x512xf32, #tpu.memory_space<vmem>>, vector<1x8x512xf32>
    %608 = vector.shape_cast %607 : vector<1x8x512xf32> to vector<8x512xf32>
    %cst_213 = arith.constant dense<0.000000e+00> : vector<8x512xf32>
    %609 = tpu.matmul %603, %520, %cst_213 {dimension_numbers = #tpu.dot_dimension_numbers<[1], [0], [0], [1], [0, 0, 1, 1], [], []>} : vector<8x128xf32>, vector<128x512xf32>, vector<8x512xf32> -> vector<8x512xf32>
    %610 = arith.addf %608, %609 : vector<8x512xf32>
    %611 = vector.extract_strided_slice %610 {offsets = [0, 0], sizes = [8, 128], strides = [1, 1]} : vector<8x512xf32> to vector<8x128xf32>
    %612 = arith.negf %611 : vector<8x128xf32>
    %613 = math.exp %612 : vector<8x128xf32>
    %cst_214 = arith.constant 1.000000e+00 : f32
    %614 = vector.broadcast %cst_214 : f32 to vector<8x128xf32>
    %615 = arith.addf %614, %613 : vector<8x128xf32>
    %616 = arith.divf %614, %615 : vector<8x128xf32>
    %617 = vector.extract_strided_slice %610 {offsets = [0, 128], sizes = [8, 128], strides = [1, 1]} : vector<8x512xf32> to vector<8x128xf32>
    %618 = arith.negf %617 : vector<8x128xf32>
    %619 = math.exp %618 : vector<8x128xf32>
    %cst_215 = arith.constant 1.000000e+00 : f32
    %620 = vector.broadcast %cst_215 : f32 to vector<8x128xf32>
    %621 = arith.addf %620, %619 : vector<8x128xf32>
    %622 = arith.divf %620, %621 : vector<8x128xf32>
    %623 = vector.extract_strided_slice %610 {offsets = [0, 256], sizes = [8, 128], strides = [1, 1]} : vector<8x512xf32> to vector<8x128xf32>
    %624 = math.tanh %623 : vector<8x128xf32>
    %625 = vector.extract_strided_slice %610 {offsets = [0, 384], sizes = [8, 128], strides = [1, 1]} : vector<8x512xf32> to vector<8x128xf32>
    %626 = arith.negf %625 : vector<8x128xf32>
    %627 = math.exp %626 : vector<8x128xf32>
    %cst_216 = arith.constant 1.000000e+00 : f32
    %628 = vector.broadcast %cst_216 : f32 to vector<8x128xf32>
    %629 = arith.addf %628, %627 : vector<8x128xf32>
    %630 = arith.divf %628, %629 : vector<8x128xf32>
    %631 = arith.mulf %622, %601 : vector<8x128xf32>
    %632 = arith.mulf %616, %624 : vector<8x128xf32>
    %633 = arith.addf %631, %632 : vector<8x128xf32>
    %634 = math.tanh %633 : vector<8x128xf32>
    %635 = arith.mulf %630, %634 : vector<8x128xf32>
    %c3_217 = arith.constant 3 : index
    %c0_218 = arith.constant 0 : index
    %c0_219 = arith.constant 0 : index
    %636 = vector.load %arg21[%c3_217, %c0_218, %c0_219] : memref<8x8x256xf32, #tpu.memory_space<vmem>>, vector<1x8x128xf32>
    %637 = vector.shape_cast %636 : vector<1x8x128xf32> to vector<8x128xf32>
    %638 = vector.shape_cast %635 : vector<8x128xf32> to vector<1x8x128xf32>
    tpu.vector_store %arg21[%c3_217, %c0_218, %c0_219], %638 {strides = array<i32>} : memref<8x8x256xf32, #tpu.memory_space<vmem>>, vector<1x8x128xf32>,
    %c4_220 = arith.constant 4 : index
    %c0_221 = arith.constant 0 : index
    %c0_222 = arith.constant 0 : index
    %639 = vector.load %arg22[%c4_220, %c0_221, %c0_222] : memref<8x8x512xf32, #tpu.memory_space<vmem>>, vector<1x8x512xf32>
    %640 = vector.shape_cast %639 : vector<1x8x512xf32> to vector<8x512xf32>
    %cst_223 = arith.constant dense<0.000000e+00> : vector<8x512xf32>
    %641 = tpu.matmul %635, %520, %cst_223 {dimension_numbers = #tpu.dot_dimension_numbers<[1], [0], [0], [1], [0, 0, 1, 1], [], []>} : vector<8x128xf32>, vector<128x512xf32>, vector<8x512xf32> -> vector<8x512xf32>
    %642 = arith.addf %640, %641 : vector<8x512xf32>
    %643 = vector.extract_strided_slice %642 {offsets = [0, 0], sizes = [8, 128], strides = [1, 1]} : vector<8x512xf32> to vector<8x128xf32>
    %644 = arith.negf %643 : vector<8x128xf32>
    %645 = math.exp %644 : vector<8x128xf32>
    %cst_224 = arith.constant 1.000000e+00 : f32
    %646 = vector.broadcast %cst_224 : f32 to vector<8x128xf32>
    %647 = arith.addf %646, %645 : vector<8x128xf32>
    %648 = arith.divf %646, %647 : vector<8x128xf32>
    %649 = vector.extract_strided_slice %642 {offsets = [0, 128], sizes = [8, 128], strides = [1, 1]} : vector<8x512xf32> to vector<8x128xf32>
    %650 = arith.negf %649 : vector<8x128xf32>
    %651 = math.exp %650 : vector<8x128xf32>
    %cst_225 = arith.constant 1.000000e+00 : f32
    %652 = vector.broadcast %cst_225 : f32 to vector<8x128xf32>
    %653 = arith.addf %652, %651 : vector<8x128xf32>
    %654 = arith.divf %652, %653 : vector<8x128xf32>
    %655 = vector.extract_strided_slice %642 {offsets = [0, 256], sizes = [8, 128], strides = [1, 1]} : vector<8x512xf32> to vector<8x128xf32>
    %656 = math.tanh %655 : vector<8x128xf32>
    %657 = vector.extract_strided_slice %642 {offsets = [0, 384], sizes = [8, 128], strides = [1, 1]} : vector<8x512xf32> to vector<8x128xf32>
    %658 = arith.negf %657 : vector<8x128xf32>
    %659 = math.exp %658 : vector<8x128xf32>
    %cst_226 = arith.constant 1.000000e+00 : f32
    %660 = vector.broadcast %cst_226 : f32 to vector<8x128xf32>
    %661 = arith.addf %660, %659 : vector<8x128xf32>
    %662 = arith.divf %660, %661 : vector<8x128xf32>
    %663 = arith.mulf %654, %633 : vector<8x128xf32>
    %664 = arith.mulf %648, %656 : vector<8x128xf32>
    %665 = arith.addf %663, %664 : vector<8x128xf32>
    %666 = math.tanh %665 : vector<8x128xf32>
    %667 = arith.mulf %662, %666 : vector<8x128xf32>
    %c4_227 = arith.constant 4 : index
    %c0_228 = arith.constant 0 : index
    %c0_229 = arith.constant 0 : index
    %668 = vector.load %arg21[%c4_227, %c0_228, %c0_229] : memref<8x8x256xf32, #tpu.memory_space<vmem>>, vector<1x8x128xf32>
    %669 = vector.shape_cast %668 : vector<1x8x128xf32> to vector<8x128xf32>
    %670 = vector.shape_cast %667 : vector<8x128xf32> to vector<1x8x128xf32>
    tpu.vector_store %arg21[%c4_227, %c0_228, %c0_229], %670 {strides = array<i32>} : memref<8x8x256xf32, #tpu.memory_space<vmem>>, vector<1x8x128xf32>,
    %c5_230 = arith.constant 5 : index
    %c0_231 = arith.constant 0 : index
    %c0_232 = arith.constant 0 : index
    %671 = vector.load %arg22[%c5_230, %c0_231, %c0_232] : memref<8x8x512xf32, #tpu.memory_space<vmem>>, vector<1x8x512xf32>
    %672 = vector.shape_cast %671 : vector<1x8x512xf32> to vector<8x512xf32>
    %cst_233 = arith.constant dense<0.000000e+00> : vector<8x512xf32>
    %673 = tpu.matmul %667, %520, %cst_233 {dimension_numbers = #tpu.dot_dimension_numbers<[1], [0], [0], [1], [0, 0, 1, 1], [], []>} : vector<8x128xf32>, vector<128x512xf32>, vector<8x512xf32> -> vector<8x512xf32>
    %674 = arith.addf %672, %673 : vector<8x512xf32>
    %675 = vector.extract_strided_slice %674 {offsets = [0, 0], sizes = [8, 128], strides = [1, 1]} : vector<8x512xf32> to vector<8x128xf32>
    %676 = arith.negf %675 : vector<8x128xf32>
    %677 = math.exp %676 : vector<8x128xf32>
    %cst_234 = arith.constant 1.000000e+00 : f32
    %678 = vector.broadcast %cst_234 : f32 to vector<8x128xf32>
    %679 = arith.addf %678, %677 : vector<8x128xf32>
    %680 = arith.divf %678, %679 : vector<8x128xf32>
    %681 = vector.extract_strided_slice %674 {offsets = [0, 128], sizes = [8, 128], strides = [1, 1]} : vector<8x512xf32> to vector<8x128xf32>
    %682 = arith.negf %681 : vector<8x128xf32>
    %683 = math.exp %682 : vector<8x128xf32>
    %cst_235 = arith.constant 1.000000e+00 : f32
    %684 = vector.broadcast %cst_235 : f32 to vector<8x128xf32>
    %685 = arith.addf %684, %683 : vector<8x128xf32>
    %686 = arith.divf %684, %685 : vector<8x128xf32>
    %687 = vector.extract_strided_slice %674 {offsets = [0, 256], sizes = [8, 128], strides = [1, 1]} : vector<8x512xf32> to vector<8x128xf32>
    %688 = math.tanh %687 : vector<8x128xf32>
    %689 = vector.extract_strided_slice %674 {offsets = [0, 384], sizes = [8, 128], strides = [1, 1]} : vector<8x512xf32> to vector<8x128xf32>
    %690 = arith.negf %689 : vector<8x128xf32>
    %691 = math.exp %690 : vector<8x128xf32>
    %cst_236 = arith.constant 1.000000e+00 : f32
    %692 = vector.broadcast %cst_236 : f32 to vector<8x128xf32>
    %693 = arith.addf %692, %691 : vector<8x128xf32>
    %694 = arith.divf %692, %693 : vector<8x128xf32>
    %695 = arith.mulf %686, %665 : vector<8x128xf32>
    %696 = arith.mulf %680, %688 : vector<8x128xf32>
    %697 = arith.addf %695, %696 : vector<8x128xf32>
    %698 = math.tanh %697 : vector<8x128xf32>
    %699 = arith.mulf %694, %698 : vector<8x128xf32>
    %c5_237 = arith.constant 5 : index
    %c0_238 = arith.constant 0 : index
    %c0_239 = arith.constant 0 : index
    %700 = vector.load %arg21[%c5_237, %c0_238, %c0_239] : memref<8x8x256xf32, #tpu.memory_space<vmem>>, vector<1x8x128xf32>
    %701 = vector.shape_cast %700 : vector<1x8x128xf32> to vector<8x128xf32>
    %702 = vector.shape_cast %699 : vector<8x128xf32> to vector<1x8x128xf32>
    tpu.vector_store %arg21[%c5_237, %c0_238, %c0_239], %702 {strides = array<i32>} : memref<8x8x256xf32, #tpu.memory_space<vmem>>, vector<1x8x128xf32>,
    %c6_240 = arith.constant 6 : index
    %c0_241 = arith.constant 0 : index
    %c0_242 = arith.constant 0 : index
    %703 = vector.load %arg22[%c6_240, %c0_241, %c0_242] : memref<8x8x512xf32, #tpu.memory_space<vmem>>, vector<1x8x512xf32>
    %704 = vector.shape_cast %703 : vector<1x8x512xf32> to vector<8x512xf32>
    %cst_243 = arith.constant dense<0.000000e+00> : vector<8x512xf32>
    %705 = tpu.matmul %699, %520, %cst_243 {dimension_numbers = #tpu.dot_dimension_numbers<[1], [0], [0], [1], [0, 0, 1, 1], [], []>} : vector<8x128xf32>, vector<128x512xf32>, vector<8x512xf32> -> vector<8x512xf32>
    %706 = arith.addf %704, %705 : vector<8x512xf32>
    %707 = vector.extract_strided_slice %706 {offsets = [0, 0], sizes = [8, 128], strides = [1, 1]} : vector<8x512xf32> to vector<8x128xf32>
    %708 = arith.negf %707 : vector<8x128xf32>
    %709 = math.exp %708 : vector<8x128xf32>
    %cst_244 = arith.constant 1.000000e+00 : f32
    %710 = vector.broadcast %cst_244 : f32 to vector<8x128xf32>
    %711 = arith.addf %710, %709 : vector<8x128xf32>
    %712 = arith.divf %710, %711 : vector<8x128xf32>
    %713 = vector.extract_strided_slice %706 {offsets = [0, 128], sizes = [8, 128], strides = [1, 1]} : vector<8x512xf32> to vector<8x128xf32>
    %714 = arith.negf %713 : vector<8x128xf32>
    %715 = math.exp %714 : vector<8x128xf32>
    %cst_245 = arith.constant 1.000000e+00 : f32
    %716 = vector.broadcast %cst_245 : f32 to vector<8x128xf32>
    %717 = arith.addf %716, %715 : vector<8x128xf32>
    %718 = arith.divf %716, %717 : vector<8x128xf32>
    %719 = vector.extract_strided_slice %706 {offsets = [0, 256], sizes = [8, 128], strides = [1, 1]} : vector<8x512xf32> to vector<8x128xf32>
    %720 = math.tanh %719 : vector<8x128xf32>
    %721 = vector.extract_strided_slice %706 {offsets = [0, 384], sizes = [8, 128], strides = [1, 1]} : vector<8x512xf32> to vector<8x128xf32>
    %722 = arith.negf %721 : vector<8x128xf32>
    %723 = math.exp %722 : vector<8x128xf32>
    %cst_246 = arith.constant 1.000000e+00 : f32
    %724 = vector.broadcast %cst_246 : f32 to vector<8x128xf32>
    %725 = arith.addf %724, %723 : vector<8x128xf32>
    %726 = arith.divf %724, %725 : vector<8x128xf32>
    %727 = arith.mulf %718, %697 : vector<8x128xf32>
    %728 = arith.mulf %712, %720 : vector<8x128xf32>
    %729 = arith.addf %727, %728 : vector<8x128xf32>
    %730 = math.tanh %729 : vector<8x128xf32>
    %731 = arith.mulf %726, %730 : vector<8x128xf32>
    %c6_247 = arith.constant 6 : index
    %c0_248 = arith.constant 0 : index
    %c0_249 = arith.constant 0 : index
    %732 = vector.load %arg21[%c6_247, %c0_248, %c0_249] : memref<8x8x256xf32, #tpu.memory_space<vmem>>, vector<1x8x128xf32>
    %733 = vector.shape_cast %732 : vector<1x8x128xf32> to vector<8x128xf32>
    %734 = vector.shape_cast %731 : vector<8x128xf32> to vector<1x8x128xf32>
    tpu.vector_store %arg21[%c6_247, %c0_248, %c0_249], %734 {strides = array<i32>} : memref<8x8x256xf32, #tpu.memory_space<vmem>>, vector<1x8x128xf32>,
    %c7_250 = arith.constant 7 : index
    %c0_251 = arith.constant 0 : index
    %c0_252 = arith.constant 0 : index
    %735 = vector.load %arg22[%c7_250, %c0_251, %c0_252] : memref<8x8x512xf32, #tpu.memory_space<vmem>>, vector<1x8x512xf32>
    %736 = vector.shape_cast %735 : vector<1x8x512xf32> to vector<8x512xf32>
    %cst_253 = arith.constant dense<0.000000e+00> : vector<8x512xf32>
    %737 = tpu.matmul %731, %520, %cst_253 {dimension_numbers = #tpu.dot_dimension_numbers<[1], [0], [0], [1], [0, 0, 1, 1], [], []>} : vector<8x128xf32>, vector<128x512xf32>, vector<8x512xf32> -> vector<8x512xf32>
    %738 = arith.addf %736, %737 : vector<8x512xf32>
    %739 = vector.extract_strided_slice %738 {offsets = [0, 0], sizes = [8, 128], strides = [1, 1]} : vector<8x512xf32> to vector<8x128xf32>
    %740 = arith.negf %739 : vector<8x128xf32>
    %741 = math.exp %740 : vector<8x128xf32>
    %cst_254 = arith.constant 1.000000e+00 : f32
    %742 = vector.broadcast %cst_254 : f32 to vector<8x128xf32>
    %743 = arith.addf %742, %741 : vector<8x128xf32>
    %744 = arith.divf %742, %743 : vector<8x128xf32>
    %745 = vector.extract_strided_slice %738 {offsets = [0, 128], sizes = [8, 128], strides = [1, 1]} : vector<8x512xf32> to vector<8x128xf32>
    %746 = arith.negf %745 : vector<8x128xf32>
    %747 = math.exp %746 : vector<8x128xf32>
    %cst_255 = arith.constant 1.000000e+00 : f32
    %748 = vector.broadcast %cst_255 : f32 to vector<8x128xf32>
    %749 = arith.addf %748, %747 : vector<8x128xf32>
    %750 = arith.divf %748, %749 : vector<8x128xf32>
    %751 = vector.extract_strided_slice %738 {offsets = [0, 256], sizes = [8, 128], strides = [1, 1]} : vector<8x512xf32> to vector<8x128xf32>
    %752 = math.tanh %751 : vector<8x128xf32>
    %753 = vector.extract_strided_slice %738 {offsets = [0, 384], sizes = [8, 128], strides = [1, 1]} : vector<8x512xf32> to vector<8x128xf32>
    %754 = arith.negf %753 : vector<8x128xf32>
    %755 = math.exp %754 : vector<8x128xf32>
    %cst_256 = arith.constant 1.000000e+00 : f32
    %756 = vector.broadcast %cst_256 : f32 to vector<8x128xf32>
    %757 = arith.addf %756, %755 : vector<8x128xf32>
    %758 = arith.divf %756, %757 : vector<8x128xf32>
    %759 = arith.mulf %750, %729 : vector<8x128xf32>
    %760 = arith.mulf %744, %752 : vector<8x128xf32>
    %761 = arith.addf %759, %760 : vector<8x128xf32>
    %762 = math.tanh %761 : vector<8x128xf32>
    %763 = arith.mulf %758, %762 : vector<8x128xf32>
    %c7_257 = arith.constant 7 : index
    %c0_258 = arith.constant 0 : index
    %c0_259 = arith.constant 0 : index
    %764 = vector.load %arg21[%c7_257, %c0_258, %c0_259] : memref<8x8x256xf32, #tpu.memory_space<vmem>>, vector<1x8x128xf32>
    %765 = vector.shape_cast %764 : vector<1x8x128xf32> to vector<8x128xf32>
    %766 = vector.shape_cast %763 : vector<8x128xf32> to vector<1x8x128xf32>
    tpu.vector_store %arg21[%c7_257, %c0_258, %c0_259], %766 {strides = array<i32>} : memref<8x8x256xf32, #tpu.memory_space<vmem>>, vector<1x8x128xf32>,
    %767 = vector.shape_cast %511 : vector<8x8x256xf32> to vector<64x256xf32>
    %c0_260 = arith.constant 0 : index
    %c0_261 = arith.constant 0 : index
    %768 = vector.load %arg10[%c0_260, %c0_261] : memref<256x512xf32, #tpu.memory_space<vmem>>, vector<256x512xf32>
    %cst_262 = arith.constant dense<0.000000e+00> : vector<64x512xf32>
    %769 = tpu.matmul %767, %768, %cst_262 {dimension_numbers = #tpu.dot_dimension_numbers<[1], [0], [0], [1], [0, 0, 1, 1], [], []>} : vector<64x256xf32>, vector<256x512xf32>, vector<64x512xf32> -> vector<64x512xf32>
    %c0_263 = arith.constant 0 : index
    %c0_264 = arith.constant 0 : index
    %770 = vector.load %arg12[%c0_263, %c0_264] : memref<1x512xf32, #tpu.memory_space<vmem>>, vector<1x512xf32>
    %771 = vector.broadcast %770 : vector<1x512xf32> to vector<64x512xf32>
    %772 = arith.addf %769, %771 : vector<64x512xf32>
    %773 = vector.shape_cast %772 : vector<64x512xf32> to vector<8x8x512xf32>
    %c0_265 = arith.constant 0 : index
    %c0_266 = arith.constant 0 : index
    %c0_267 = arith.constant 0 : index
    %774 = vector.load %arg22[%c0_265, %c0_266, %c0_267] : memref<8x8x512xf32, #tpu.memory_space<vmem>>, vector<8x8x512xf32>
    tpu.vector_store %arg22[%c0_265, %c0_266, %c0_267], %773 {strides = array<i32>} : memref<8x8x512xf32, #tpu.memory_space<vmem>>, vector<8x8x512xf32>,
    %c0_268 = arith.constant 0 : index
    %c0_269 = arith.constant 0 : index
    %775 = vector.load %arg11[%c0_268, %c0_269] : memref<128x512xf32, #tpu.memory_space<vmem>>, vector<128x512xf32>
    %c7_270 = arith.constant 7 : index
    %c0_271 = arith.constant 0 : index
    %c0_272 = arith.constant 0 : index
    %776 = vector.load %arg22[%c7_270, %c0_271, %c0_272] : memref<8x8x512xf32, #tpu.memory_space<vmem>>, vector<1x8x512xf32>
    %777 = vector.shape_cast %776 : vector<1x8x512xf32> to vector<8x512xf32>
    %778 = vector.extract_strided_slice %777 {offsets = [0, 0], sizes = [8, 128], strides = [1, 1]} : vector<8x512xf32> to vector<8x128xf32>
    %779 = arith.negf %778 : vector<8x128xf32>
    %780 = math.exp %779 : vector<8x128xf32>
    %cst_273 = arith.constant 1.000000e+00 : f32
    %781 = vector.broadcast %cst_273 : f32 to vector<8x128xf32>
    %782 = arith.addf %781, %780 : vector<8x128xf32>
    %783 = arith.divf %781, %782 : vector<8x128xf32>
    %784 = vector.extract_strided_slice %777 {offsets = [0, 256], sizes = [8, 128], strides = [1, 1]} : vector<8x512xf32> to vector<8x128xf32>
    %785 = math.tanh %784 : vector<8x128xf32>
    %786 = vector.extract_strided_slice %777 {offsets = [0, 384], sizes = [8, 128], strides = [1, 1]} : vector<8x512xf32> to vector<8x128xf32>
    %787 = arith.negf %786 : vector<8x128xf32>
    %788 = math.exp %787 : vector<8x128xf32>
    %cst_274 = arith.constant 1.000000e+00 : f32
    %789 = vector.broadcast %cst_274 : f32 to vector<8x128xf32>
    %790 = arith.addf %789, %788 : vector<8x128xf32>
    %791 = arith.divf %789, %790 : vector<8x128xf32>
    %792 = arith.mulf %783, %785 : vector<8x128xf32>
    %793 = math.tanh %792 : vector<8x128xf32>
    %794 = arith.mulf %791, %793 : vector<8x128xf32>
    %c7_275 = arith.constant 7 : index
    %c0_276 = arith.constant 0 : index
    %c128_277 = arith.constant 128 : index
    %795 = vector.load %arg21[%c7_275, %c0_276, %c128_277] : memref<8x8x256xf32, #tpu.memory_space<vmem>>, vector<1x8x128xf32>
    %796 = vector.shape_cast %795 : vector<1x8x128xf32> to vector<8x128xf32>
    %797 = vector.shape_cast %794 : vector<8x128xf32> to vector<1x8x128xf32>
    tpu.vector_store %arg21[%c7_275, %c0_276, %c128_277], %797 {strides = array<i32>} : memref<8x8x256xf32, #tpu.memory_space<vmem>>, vector<1x8x128xf32>,
    %c6_278 = arith.constant 6 : index
    %c0_279 = arith.constant 0 : index
    %c0_280 = arith.constant 0 : index
    %798 = vector.load %arg22[%c6_278, %c0_279, %c0_280] : memref<8x8x512xf32, #tpu.memory_space<vmem>>, vector<1x8x512xf32>
    %799 = vector.shape_cast %798 : vector<1x8x512xf32> to vector<8x512xf32>
    %cst_281 = arith.constant dense<0.000000e+00> : vector<8x512xf32>
    %800 = tpu.matmul %794, %775, %cst_281 {dimension_numbers = #tpu.dot_dimension_numbers<[1], [0], [0], [1], [0, 0, 1, 1], [], []>} : vector<8x128xf32>, vector<128x512xf32>, vector<8x512xf32> -> vector<8x512xf32>
    %801 = arith.addf %799, %800 : vector<8x512xf32>
    %802 = vector.extract_strided_slice %801 {offsets = [0, 0], sizes = [8, 128], strides = [1, 1]} : vector<8x512xf32> to vector<8x128xf32>
    %803 = arith.negf %802 : vector<8x128xf32>
    %804 = math.exp %803 : vector<8x128xf32>
    %cst_282 = arith.constant 1.000000e+00 : f32
    %805 = vector.broadcast %cst_282 : f32 to vector<8x128xf32>
    %806 = arith.addf %805, %804 : vector<8x128xf32>
    %807 = arith.divf %805, %806 : vector<8x128xf32>
    %808 = vector.extract_strided_slice %801 {offsets = [0, 128], sizes = [8, 128], strides = [1, 1]} : vector<8x512xf32> to vector<8x128xf32>
    %809 = arith.negf %808 : vector<8x128xf32>
    %810 = math.exp %809 : vector<8x128xf32>
    %cst_283 = arith.constant 1.000000e+00 : f32
    %811 = vector.broadcast %cst_283 : f32 to vector<8x128xf32>
    %812 = arith.addf %811, %810 : vector<8x128xf32>
    %813 = arith.divf %811, %812 : vector<8x128xf32>
    %814 = vector.extract_strided_slice %801 {offsets = [0, 256], sizes = [8, 128], strides = [1, 1]} : vector<8x512xf32> to vector<8x128xf32>
    %815 = math.tanh %814 : vector<8x128xf32>
    %816 = vector.extract_strided_slice %801 {offsets = [0, 384], sizes = [8, 128], strides = [1, 1]} : vector<8x512xf32> to vector<8x128xf32>
    %817 = arith.negf %816 : vector<8x128xf32>
    %818 = math.exp %817 : vector<8x128xf32>
    %cst_284 = arith.constant 1.000000e+00 : f32
    %819 = vector.broadcast %cst_284 : f32 to vector<8x128xf32>
    %820 = arith.addf %819, %818 : vector<8x128xf32>
    %821 = arith.divf %819, %820 : vector<8x128xf32>
    %822 = arith.mulf %813, %792 : vector<8x128xf32>
    %823 = arith.mulf %807, %815 : vector<8x128xf32>
    %824 = arith.addf %822, %823 : vector<8x128xf32>
    %825 = math.tanh %824 : vector<8x128xf32>
    %826 = arith.mulf %821, %825 : vector<8x128xf32>
    %c6_285 = arith.constant 6 : index
    %c0_286 = arith.constant 0 : index
    %c128_287 = arith.constant 128 : index
    %827 = vector.load %arg21[%c6_285, %c0_286, %c128_287] : memref<8x8x256xf32, #tpu.memory_space<vmem>>, vector<1x8x128xf32>
    %828 = vector.shape_cast %827 : vector<1x8x128xf32> to vector<8x128xf32>
    %829 = vector.shape_cast %826 : vector<8x128xf32> to vector<1x8x128xf32>
    tpu.vector_store %arg21[%c6_285, %c0_286, %c128_287], %829 {strides = array<i32>} : memref<8x8x256xf32, #tpu.memory_space<vmem>>, vector<1x8x128xf32>,
    %c5_288 = arith.constant 5 : index
    %c0_289 = arith.constant 0 : index
    %c0_290 = arith.constant 0 : index
    %830 = vector.load %arg22[%c5_288, %c0_289, %c0_290] : memref<8x8x512xf32, #tpu.memory_space<vmem>>, vector<1x8x512xf32>
    %831 = vector.shape_cast %830 : vector<1x8x512xf32> to vector<8x512xf32>
    %cst_291 = arith.constant dense<0.000000e+00> : vector<8x512xf32>
    %832 = tpu.matmul %826, %775, %cst_291 {dimension_numbers = #tpu.dot_dimension_numbers<[1], [0], [0], [1], [0, 0, 1, 1], [], []>} : vector<8x128xf32>, vector<128x512xf32>, vector<8x512xf32> -> vector<8x512xf32>
    %833 = arith.addf %831, %832 : vector<8x512xf32>
    %834 = vector.extract_strided_slice %833 {offsets = [0, 0], sizes = [8, 128], strides = [1, 1]} : vector<8x512xf32> to vector<8x128xf32>
    %835 = arith.negf %834 : vector<8x128xf32>
    %836 = math.exp %835 : vector<8x128xf32>
    %cst_292 = arith.constant 1.000000e+00 : f32
    %837 = vector.broadcast %cst_292 : f32 to vector<8x128xf32>
    %838 = arith.addf %837, %836 : vector<8x128xf32>
    %839 = arith.divf %837, %838 : vector<8x128xf32>
    %840 = vector.extract_strided_slice %833 {offsets = [0, 128], sizes = [8, 128], strides = [1, 1]} : vector<8x512xf32> to vector<8x128xf32>
    %841 = arith.negf %840 : vector<8x128xf32>
    %842 = math.exp %841 : vector<8x128xf32>
    %cst_293 = arith.constant 1.000000e+00 : f32
    %843 = vector.broadcast %cst_293 : f32 to vector<8x128xf32>
    %844 = arith.addf %843, %842 : vector<8x128xf32>
    %845 = arith.divf %843, %844 : vector<8x128xf32>
    %846 = vector.extract_strided_slice %833 {offsets = [0, 256], sizes = [8, 128], strides = [1, 1]} : vector<8x512xf32> to vector<8x128xf32>
    %847 = math.tanh %846 : vector<8x128xf32>
    %848 = vector.extract_strided_slice %833 {offsets = [0, 384], sizes = [8, 128], strides = [1, 1]} : vector<8x512xf32> to vector<8x128xf32>
    %849 = arith.negf %848 : vector<8x128xf32>
    %850 = math.exp %849 : vector<8x128xf32>
    %cst_294 = arith.constant 1.000000e+00 : f32
    %851 = vector.broadcast %cst_294 : f32 to vector<8x128xf32>
    %852 = arith.addf %851, %850 : vector<8x128xf32>
    %853 = arith.divf %851, %852 : vector<8x128xf32>
    %854 = arith.mulf %845, %824 : vector<8x128xf32>
    %855 = arith.mulf %839, %847 : vector<8x128xf32>
    %856 = arith.addf %854, %855 : vector<8x128xf32>
    %857 = math.tanh %856 : vector<8x128xf32>
    %858 = arith.mulf %853, %857 : vector<8x128xf32>
    %c5_295 = arith.constant 5 : index
    %c0_296 = arith.constant 0 : index
    %c128_297 = arith.constant 128 : index
    %859 = vector.load %arg21[%c5_295, %c0_296, %c128_297] : memref<8x8x256xf32, #tpu.memory_space<vmem>>, vector<1x8x128xf32>
    %860 = vector.shape_cast %859 : vector<1x8x128xf32> to vector<8x128xf32>
    %861 = vector.shape_cast %858 : vector<8x128xf32> to vector<1x8x128xf32>
    tpu.vector_store %arg21[%c5_295, %c0_296, %c128_297], %861 {strides = array<i32>} : memref<8x8x256xf32, #tpu.memory_space<vmem>>, vector<1x8x128xf32>,
    %c4_298 = arith.constant 4 : index
    %c0_299 = arith.constant 0 : index
    %c0_300 = arith.constant 0 : index
    %862 = vector.load %arg22[%c4_298, %c0_299, %c0_300] : memref<8x8x512xf32, #tpu.memory_space<vmem>>, vector<1x8x512xf32>
    %863 = vector.shape_cast %862 : vector<1x8x512xf32> to vector<8x512xf32>
    %cst_301 = arith.constant dense<0.000000e+00> : vector<8x512xf32>
    %864 = tpu.matmul %858, %775, %cst_301 {dimension_numbers = #tpu.dot_dimension_numbers<[1], [0], [0], [1], [0, 0, 1, 1], [], []>} : vector<8x128xf32>, vector<128x512xf32>, vector<8x512xf32> -> vector<8x512xf32>
    %865 = arith.addf %863, %864 : vector<8x512xf32>
    %866 = vector.extract_strided_slice %865 {offsets = [0, 0], sizes = [8, 128], strides = [1, 1]} : vector<8x512xf32> to vector<8x128xf32>
    %867 = arith.negf %866 : vector<8x128xf32>
    %868 = math.exp %867 : vector<8x128xf32>
    %cst_302 = arith.constant 1.000000e+00 : f32
    %869 = vector.broadcast %cst_302 : f32 to vector<8x128xf32>
    %870 = arith.addf %869, %868 : vector<8x128xf32>
    %871 = arith.divf %869, %870 : vector<8x128xf32>
    %872 = vector.extract_strided_slice %865 {offsets = [0, 128], sizes = [8, 128], strides = [1, 1]} : vector<8x512xf32> to vector<8x128xf32>
    %873 = arith.negf %872 : vector<8x128xf32>
    %874 = math.exp %873 : vector<8x128xf32>
    %cst_303 = arith.constant 1.000000e+00 : f32
    %875 = vector.broadcast %cst_303 : f32 to vector<8x128xf32>
    %876 = arith.addf %875, %874 : vector<8x128xf32>
    %877 = arith.divf %875, %876 : vector<8x128xf32>
    %878 = vector.extract_strided_slice %865 {offsets = [0, 256], sizes = [8, 128], strides = [1, 1]} : vector<8x512xf32> to vector<8x128xf32>
    %879 = math.tanh %878 : vector<8x128xf32>
    %880 = vector.extract_strided_slice %865 {offsets = [0, 384], sizes = [8, 128], strides = [1, 1]} : vector<8x512xf32> to vector<8x128xf32>
    %881 = arith.negf %880 : vector<8x128xf32>
    %882 = math.exp %881 : vector<8x128xf32>
    %cst_304 = arith.constant 1.000000e+00 : f32
    %883 = vector.broadcast %cst_304 : f32 to vector<8x128xf32>
    %884 = arith.addf %883, %882 : vector<8x128xf32>
    %885 = arith.divf %883, %884 : vector<8x128xf32>
    %886 = arith.mulf %877, %856 : vector<8x128xf32>
    %887 = arith.mulf %871, %879 : vector<8x128xf32>
    %888 = arith.addf %886, %887 : vector<8x128xf32>
    %889 = math.tanh %888 : vector<8x128xf32>
    %890 = arith.mulf %885, %889 : vector<8x128xf32>
    %c4_305 = arith.constant 4 : index
    %c0_306 = arith.constant 0 : index
    %c128_307 = arith.constant 128 : index
    %891 = vector.load %arg21[%c4_305, %c0_306, %c128_307] : memref<8x8x256xf32, #tpu.memory_space<vmem>>, vector<1x8x128xf32>
    %892 = vector.shape_cast %891 : vector<1x8x128xf32> to vector<8x128xf32>
    %893 = vector.shape_cast %890 : vector<8x128xf32> to vector<1x8x128xf32>
    tpu.vector_store %arg21[%c4_305, %c0_306, %c128_307], %893 {strides = array<i32>} : memref<8x8x256xf32, #tpu.memory_space<vmem>>, vector<1x8x128xf32>,
    %c3_308 = arith.constant 3 : index
    %c0_309 = arith.constant 0 : index
    %c0_310 = arith.constant 0 : index
    %894 = vector.load %arg22[%c3_308, %c0_309, %c0_310] : memref<8x8x512xf32, #tpu.memory_space<vmem>>, vector<1x8x512xf32>
    %895 = vector.shape_cast %894 : vector<1x8x512xf32> to vector<8x512xf32>
    %cst_311 = arith.constant dense<0.000000e+00> : vector<8x512xf32>
    %896 = tpu.matmul %890, %775, %cst_311 {dimension_numbers = #tpu.dot_dimension_numbers<[1], [0], [0], [1], [0, 0, 1, 1], [], []>} : vector<8x128xf32>, vector<128x512xf32>, vector<8x512xf32> -> vector<8x512xf32>
    %897 = arith.addf %895, %896 : vector<8x512xf32>
    %898 = vector.extract_strided_slice %897 {offsets = [0, 0], sizes = [8, 128], strides = [1, 1]} : vector<8x512xf32> to vector<8x128xf32>
    %899 = arith.negf %898 : vector<8x128xf32>
    %900 = math.exp %899 : vector<8x128xf32>
    %cst_312 = arith.constant 1.000000e+00 : f32
    %901 = vector.broadcast %cst_312 : f32 to vector<8x128xf32>
    %902 = arith.addf %901, %900 : vector<8x128xf32>
    %903 = arith.divf %901, %902 : vector<8x128xf32>
    %904 = vector.extract_strided_slice %897 {offsets = [0, 128], sizes = [8, 128], strides = [1, 1]} : vector<8x512xf32> to vector<8x128xf32>
    %905 = arith.negf %904 : vector<8x128xf32>
    %906 = math.exp %905 : vector<8x128xf32>
    %cst_313 = arith.constant 1.000000e+00 : f32
    %907 = vector.broadcast %cst_313 : f32 to vector<8x128xf32>
    %908 = arith.addf %907, %906 : vector<8x128xf32>
    %909 = arith.divf %907, %908 : vector<8x128xf32>
    %910 = vector.extract_strided_slice %897 {offsets = [0, 256], sizes = [8, 128], strides = [1, 1]} : vector<8x512xf32> to vector<8x128xf32>
    %911 = math.tanh %910 : vector<8x128xf32>
    %912 = vector.extract_strided_slice %897 {offsets = [0, 384], sizes = [8, 128], strides = [1, 1]} : vector<8x512xf32> to vector<8x128xf32>
    %913 = arith.negf %912 : vector<8x128xf32>
    %914 = math.exp %913 : vector<8x128xf32>
    %cst_314 = arith.constant 1.000000e+00 : f32
    %915 = vector.broadcast %cst_314 : f32 to vector<8x128xf32>
    %916 = arith.addf %915, %914 : vector<8x128xf32>
    %917 = arith.divf %915, %916 : vector<8x128xf32>
    %918 = arith.mulf %909, %888 : vector<8x128xf32>
    %919 = arith.mulf %903, %911 : vector<8x128xf32>
    %920 = arith.addf %918, %919 : vector<8x128xf32>
    %921 = math.tanh %920 : vector<8x128xf32>
    %922 = arith.mulf %917, %921 : vector<8x128xf32>
    %c3_315 = arith.constant 3 : index
    %c0_316 = arith.constant 0 : index
    %c128_317 = arith.constant 128 : index
    %923 = vector.load %arg21[%c3_315, %c0_316, %c128_317] : memref<8x8x256xf32, #tpu.memory_space<vmem>>, vector<1x8x128xf32>
    %924 = vector.shape_cast %923 : vector<1x8x128xf32> to vector<8x128xf32>
    %925 = vector.shape_cast %922 : vector<8x128xf32> to vector<1x8x128xf32>
    tpu.vector_store %arg21[%c3_315, %c0_316, %c128_317], %925 {strides = array<i32>} : memref<8x8x256xf32, #tpu.memory_space<vmem>>, vector<1x8x128xf32>,
    %c2_318 = arith.constant 2 : index
    %c0_319 = arith.constant 0 : index
    %c0_320 = arith.constant 0 : index
    %926 = vector.load %arg22[%c2_318, %c0_319, %c0_320] : memref<8x8x512xf32, #tpu.memory_space<vmem>>, vector<1x8x512xf32>
    %927 = vector.shape_cast %926 : vector<1x8x512xf32> to vector<8x512xf32>
    %cst_321 = arith.constant dense<0.000000e+00> : vector<8x512xf32>
    %928 = tpu.matmul %922, %775, %cst_321 {dimension_numbers = #tpu.dot_dimension_numbers<[1], [0], [0], [1], [0, 0, 1, 1], [], []>} : vector<8x128xf32>, vector<128x512xf32>, vector<8x512xf32> -> vector<8x512xf32>
    %929 = arith.addf %927, %928 : vector<8x512xf32>
    %930 = vector.extract_strided_slice %929 {offsets = [0, 0], sizes = [8, 128], strides = [1, 1]} : vector<8x512xf32> to vector<8x128xf32>
    %931 = arith.negf %930 : vector<8x128xf32>
    %932 = math.exp %931 : vector<8x128xf32>
    %cst_322 = arith.constant 1.000000e+00 : f32
    %933 = vector.broadcast %cst_322 : f32 to vector<8x128xf32>
    %934 = arith.addf %933, %932 : vector<8x128xf32>
    %935 = arith.divf %933, %934 : vector<8x128xf32>
    %936 = vector.extract_strided_slice %929 {offsets = [0, 128], sizes = [8, 128], strides = [1, 1]} : vector<8x512xf32> to vector<8x128xf32>
    %937 = arith.negf %936 : vector<8x128xf32>
    %938 = math.exp %937 : vector<8x128xf32>
    %cst_323 = arith.constant 1.000000e+00 : f32
    %939 = vector.broadcast %cst_323 : f32 to vector<8x128xf32>
    %940 = arith.addf %939, %938 : vector<8x128xf32>
    %941 = arith.divf %939, %940 : vector<8x128xf32>
    %942 = vector.extract_strided_slice %929 {offsets = [0, 256], sizes = [8, 128], strides = [1, 1]} : vector<8x512xf32> to vector<8x128xf32>
    %943 = math.tanh %942 : vector<8x128xf32>
    %944 = vector.extract_strided_slice %929 {offsets = [0, 384], sizes = [8, 128], strides = [1, 1]} : vector<8x512xf32> to vector<8x128xf32>
    %945 = arith.negf %944 : vector<8x128xf32>
    %946 = math.exp %945 : vector<8x128xf32>
    %cst_324 = arith.constant 1.000000e+00 : f32
    %947 = vector.broadcast %cst_324 : f32 to vector<8x128xf32>
    %948 = arith.addf %947, %946 : vector<8x128xf32>
    %949 = arith.divf %947, %948 : vector<8x128xf32>
    %950 = arith.mulf %941, %920 : vector<8x128xf32>
    %951 = arith.mulf %935, %943 : vector<8x128xf32>
    %952 = arith.addf %950, %951 : vector<8x128xf32>
    %953 = math.tanh %952 : vector<8x128xf32>
    %954 = arith.mulf %949, %953 : vector<8x128xf32>
    %c2_325 = arith.constant 2 : index
    %c0_326 = arith.constant 0 : index
    %c128_327 = arith.constant 128 : index
    %955 = vector.load %arg21[%c2_325, %c0_326, %c128_327] : memref<8x8x256xf32, #tpu.memory_space<vmem>>, vector<1x8x128xf32>
    %956 = vector.shape_cast %955 : vector<1x8x128xf32> to vector<8x128xf32>
    %957 = vector.shape_cast %954 : vector<8x128xf32> to vector<1x8x128xf32>
    tpu.vector_store %arg21[%c2_325, %c0_326, %c128_327], %957 {strides = array<i32>} : memref<8x8x256xf32, #tpu.memory_space<vmem>>, vector<1x8x128xf32>,
    %c1_328 = arith.constant 1 : index
    %c0_329 = arith.constant 0 : index
    %c0_330 = arith.constant 0 : index
    %958 = vector.load %arg22[%c1_328, %c0_329, %c0_330] : memref<8x8x512xf32, #tpu.memory_space<vmem>>, vector<1x8x512xf32>
    %959 = vector.shape_cast %958 : vector<1x8x512xf32> to vector<8x512xf32>
    %cst_331 = arith.constant dense<0.000000e+00> : vector<8x512xf32>
    %960 = tpu.matmul %954, %775, %cst_331 {dimension_numbers = #tpu.dot_dimension_numbers<[1], [0], [0], [1], [0, 0, 1, 1], [], []>} : vector<8x128xf32>, vector<128x512xf32>, vector<8x512xf32> -> vector<8x512xf32>
    %961 = arith.addf %959, %960 : vector<8x512xf32>
    %962 = vector.extract_strided_slice %961 {offsets = [0, 0], sizes = [8, 128], strides = [1, 1]} : vector<8x512xf32> to vector<8x128xf32>
    %963 = arith.negf %962 : vector<8x128xf32>
    %964 = math.exp %963 : vector<8x128xf32>
    %cst_332 = arith.constant 1.000000e+00 : f32
    %965 = vector.broadcast %cst_332 : f32 to vector<8x128xf32>
    %966 = arith.addf %965, %964 : vector<8x128xf32>
    %967 = arith.divf %965, %966 : vector<8x128xf32>
    %968 = vector.extract_strided_slice %961 {offsets = [0, 128], sizes = [8, 128], strides = [1, 1]} : vector<8x512xf32> to vector<8x128xf32>
    %969 = arith.negf %968 : vector<8x128xf32>
    %970 = math.exp %969 : vector<8x128xf32>
    %cst_333 = arith.constant 1.000000e+00 : f32
    %971 = vector.broadcast %cst_333 : f32 to vector<8x128xf32>
    %972 = arith.addf %971, %970 : vector<8x128xf32>
    %973 = arith.divf %971, %972 : vector<8x128xf32>
    %974 = vector.extract_strided_slice %961 {offsets = [0, 256], sizes = [8, 128], strides = [1, 1]} : vector<8x512xf32> to vector<8x128xf32>
    %975 = math.tanh %974 : vector<8x128xf32>
    %976 = vector.extract_strided_slice %961 {offsets = [0, 384], sizes = [8, 128], strides = [1, 1]} : vector<8x512xf32> to vector<8x128xf32>
    %977 = arith.negf %976 : vector<8x128xf32>
    %978 = math.exp %977 : vector<8x128xf32>
    %cst_334 = arith.constant 1.000000e+00 : f32
    %979 = vector.broadcast %cst_334 : f32 to vector<8x128xf32>
    %980 = arith.addf %979, %978 : vector<8x128xf32>
    %981 = arith.divf %979, %980 : vector<8x128xf32>
    %982 = arith.mulf %973, %952 : vector<8x128xf32>
    %983 = arith.mulf %967, %975 : vector<8x128xf32>
    %984 = arith.addf %982, %983 : vector<8x128xf32>
    %985 = math.tanh %984 : vector<8x128xf32>
    %986 = arith.mulf %981, %985 : vector<8x128xf32>
    %c1_335 = arith.constant 1 : index
    %c0_336 = arith.constant 0 : index
    %c128_337 = arith.constant 128 : index
    %987 = vector.load %arg21[%c1_335, %c0_336, %c128_337] : memref<8x8x256xf32, #tpu.memory_space<vmem>>, vector<1x8x128xf32>
    %988 = vector.shape_cast %987 : vector<1x8x128xf32> to vector<8x128xf32>
    %989 = vector.shape_cast %986 : vector<8x128xf32> to vector<1x8x128xf32>
    tpu.vector_store %arg21[%c1_335, %c0_336, %c128_337], %989 {strides = array<i32>} : memref<8x8x256xf32, #tpu.memory_space<vmem>>, vector<1x8x128xf32>,
    %c0_338 = arith.constant 0 : index
    %c0_339 = arith.constant 0 : index
    %c0_340 = arith.constant 0 : index
    %990 = vector.load %arg22[%c0_338, %c0_339, %c0_340] : memref<8x8x512xf32, #tpu.memory_space<vmem>>, vector<1x8x512xf32>
    %991 = vector.shape_cast %990 : vector<1x8x512xf32> to vector<8x512xf32>
    %cst_341 = arith.constant dense<0.000000e+00> : vector<8x512xf32>
    %992 = tpu.matmul %986, %775, %cst_341 {dimension_numbers = #tpu.dot_dimension_numbers<[1], [0], [0], [1], [0, 0, 1, 1], [], []>} : vector<8x128xf32>, vector<128x512xf32>, vector<8x512xf32> -> vector<8x512xf32>
    %993 = arith.addf %991, %992 : vector<8x512xf32>
    %994 = vector.extract_strided_slice %993 {offsets = [0, 0], sizes = [8, 128], strides = [1, 1]} : vector<8x512xf32> to vector<8x128xf32>
    %995 = arith.negf %994 : vector<8x128xf32>
    %996 = math.exp %995 : vector<8x128xf32>
    %cst_342 = arith.constant 1.000000e+00 : f32
    %997 = vector.broadcast %cst_342 : f32 to vector<8x128xf32>
    %998 = arith.addf %997, %996 : vector<8x128xf32>
    %999 = arith.divf %997, %998 : vector<8x128xf32>
    %1000 = vector.extract_strided_slice %993 {offsets = [0, 128], sizes = [8, 128], strides = [1, 1]} : vector<8x512xf32> to vector<8x128xf32>
    %1001 = arith.negf %1000 : vector<8x128xf32>
    %1002 = math.exp %1001 : vector<8x128xf32>
    %cst_343 = arith.constant 1.000000e+00 : f32
    %1003 = vector.broadcast %cst_343 : f32 to vector<8x128xf32>
    %1004 = arith.addf %1003, %1002 : vector<8x128xf32>
    %1005 = arith.divf %1003, %1004 : vector<8x128xf32>
    %1006 = vector.extract_strided_slice %993 {offsets = [0, 256], sizes = [8, 128], strides = [1, 1]} : vector<8x512xf32> to vector<8x128xf32>
    %1007 = math.tanh %1006 : vector<8x128xf32>
    %1008 = vector.extract_strided_slice %993 {offsets = [0, 384], sizes = [8, 128], strides = [1, 1]} : vector<8x512xf32> to vector<8x128xf32>
    %1009 = arith.negf %1008 : vector<8x128xf32>
    %1010 = math.exp %1009 : vector<8x128xf32>
    %cst_344 = arith.constant 1.000000e+00 : f32
    %1011 = vector.broadcast %cst_344 : f32 to vector<8x128xf32>
    %1012 = arith.addf %1011, %1010 : vector<8x128xf32>
    %1013 = arith.divf %1011, %1012 : vector<8x128xf32>
    %1014 = arith.mulf %1005, %984 : vector<8x128xf32>
    %1015 = arith.mulf %999, %1007 : vector<8x128xf32>
    %1016 = arith.addf %1014, %1015 : vector<8x128xf32>
    %1017 = math.tanh %1016 : vector<8x128xf32>
    %1018 = arith.mulf %1013, %1017 : vector<8x128xf32>
    %c0_345 = arith.constant 0 : index
    %c0_346 = arith.constant 0 : index
    %c128_347 = arith.constant 128 : index
    %1019 = vector.load %arg21[%c0_345, %c0_346, %c128_347] : memref<8x8x256xf32, #tpu.memory_space<vmem>>, vector<1x8x128xf32>
    %1020 = vector.shape_cast %1019 : vector<1x8x128xf32> to vector<8x128xf32>
    %1021 = vector.shape_cast %1018 : vector<8x128xf32> to vector<1x8x128xf32>
    tpu.vector_store %arg21[%c0_345, %c0_346, %c128_347], %1021 {strides = array<i32>} : memref<8x8x256xf32, #tpu.memory_space<vmem>>, vector<1x8x128xf32>,
    %c0_348 = arith.constant 0 : index
    %c0_349 = arith.constant 0 : index
    %c0_350 = arith.constant 0 : index
    %1022 = vector.load %arg21[%c0_348, %c0_349, %c0_350] : memref<8x8x256xf32, #tpu.memory_space<vmem>>, vector<8x8x256xf32>
    %1023 = vector.extract_strided_slice %1022 {offsets = [7, 0, 0], sizes = [1, 8, 128], strides = [1, 1, 1]} : vector<8x8x256xf32> to vector<1x8x128xf32>
    %1024 = vector.shape_cast %1023 : vector<1x8x128xf32> to vector<8x128xf32>
    %1025 = vector.extract_strided_slice %1022 {offsets = [0, 0, 128], sizes = [1, 8, 128], strides = [1, 1, 1]} : vector<8x8x256xf32> to vector<1x8x128xf32>
    %1026 = vector.shape_cast %1025 : vector<1x8x128xf32> to vector<8x128xf32>
    %1027 = tpu.concatenate %1024, %1026 in 1 : vector<8x128xf32>, vector<8x128xf32> -> vector<8x256xf32>
    %cst_351 = arith.constant 0.000000e+00 : f32
    %1028 = vector.broadcast %cst_351 : f32 to vector<8x256xf32>
    %1029 = arith.maximumf %1027, %1028 : vector<8x256xf32>
    %c0_352 = arith.constant 0 : index
    %c0_353 = arith.constant 0 : index
    %1030 = vector.load %arg13[%c0_352, %c0_353] : memref<256x128xf32, #tpu.memory_space<vmem>>, vector<256x128xf32>
    %cst_354 = arith.constant dense<0.000000e+00> : vector<8x128xf32>
    %1031 = tpu.matmul %1029, %1030, %cst_354 {dimension_numbers = #tpu.dot_dimension_numbers<[1], [0], [0], [1], [0, 0, 1, 1], [], []>} : vector<8x256xf32>, vector<256x128xf32>, vector<8x128xf32> -> vector<8x128xf32>
    %c0_355 = arith.constant 0 : index
    %c0_356 = arith.constant 0 : index
    %1032 = vector.load %arg14[%c0_355, %c0_356] : memref<1x128xf32, #tpu.memory_space<vmem>>, vector<1x128xf32>
    %1033 = vector.broadcast %1032 : vector<1x128xf32> to vector<8x128xf32>
    %1034 = arith.addf %1031, %1033 : vector<8x128xf32>
    %cst_357 = arith.constant 0.000000e+00 : f32
    %1035 = vector.broadcast %cst_357 : f32 to vector<8x128xf32>
    %1036 = arith.maximumf %1034, %1035 : vector<8x128xf32>
    %c0_358 = arith.constant 0 : index
    %c0_359 = arith.constant 0 : index
    %1037 = vector.load %arg15[%c0_358, %c0_359] : memref<128x128xf32, #tpu.memory_space<vmem>>, vector<128x128xf32>
    %cst_360 = arith.constant dense<0.000000e+00> : vector<8x128xf32>
    %1038 = tpu.matmul %1036, %1037, %cst_360 {dimension_numbers = #tpu.dot_dimension_numbers<[1], [0], [0], [1], [0, 0, 1, 1], [], []>} : vector<8x128xf32>, vector<128x128xf32>, vector<8x128xf32> -> vector<8x128xf32>
    %c0_361 = arith.constant 0 : index
    %c0_362 = arith.constant 0 : index
    %1039 = vector.load %arg16[%c0_361, %c0_362] : memref<1x128xf32, #tpu.memory_space<vmem>>, vector<1x128xf32>
    %1040 = vector.broadcast %1039 : vector<1x128xf32> to vector<8x128xf32>
    %1041 = arith.addf %1038, %1040 : vector<8x128xf32>
    %cst_363 = arith.constant 0.000000e+00 : f32
    %1042 = vector.broadcast %cst_363 : f32 to vector<8x128xf32>
    %1043 = arith.maximumf %1041, %1042 : vector<8x128xf32>
    %c0_364 = arith.constant 0 : index
    %c0_365 = arith.constant 0 : index
    %1044 = vector.load %arg17[%c0_364, %c0_365] : memref<128x128xf32, #tpu.memory_space<vmem>>, vector<128x128xf32>
    %cst_366 = arith.constant dense<0.000000e+00> : vector<8x128xf32>
    %1045 = tpu.matmul %1043, %1044, %cst_366 {dimension_numbers = #tpu.dot_dimension_numbers<[1], [0], [0], [1], [0, 0, 1, 1], [], []>} : vector<8x128xf32>, vector<128x128xf32>, vector<8x128xf32> -> vector<8x128xf32>
    %c0_367 = arith.constant 0 : index
    %c0_368 = arith.constant 0 : index
    %1046 = vector.load %arg18[%c0_367, %c0_368] : memref<1x128xf32, #tpu.memory_space<vmem>>, vector<1x128xf32>
    %1047 = vector.broadcast %1046 : vector<1x128xf32> to vector<8x128xf32>
    %1048 = arith.addf %1045, %1047 : vector<8x128xf32>
    %c0_369 = arith.constant 0 : index
    %c0_370 = arith.constant 0 : index
    %1049 = vector.load %arg19[%c0_369, %c0_370] : memref<8x128xf32, #tpu.memory_space<vmem>>, vector<8x128xf32>
    tpu.vector_store %arg19[%c0_369, %c0_370], %1048 {strides = array<i32>} : memref<8x128xf32, #tpu.memory_space<vmem>>, vector<8x128xf32>,
    return
  }
}

</mosaic_0001>

<bundles_post_ra>
// kernel: tpu_custom_call.1
= control target key start
LH: loop header
LB: loop body
LE: loop exit
PB: predicated region body
PF: predicated region fallthrough
CT: control target
= control target key end

     0   :  { %s12540_s0 = inlined_call_operand.hbm [shape: f32[8,8,64], index: 0, kind: input, shape index: {}]   ;;  %s12541_s1 = inlined_call_operand.hbm [shape: f32[64,512], index: 1, kind: input, shape index: {}]   ;;  %s12542_s2 = inlined_call_operand.hbm [shape: f32[128,512], index: 2, kind: input, shape index: {}]   ;;  %s12543_s3 = inlined_call_operand.vmem [shape: f32[1,512], index: 3, kind: input, shape index: {}]   ;;  %s12544_s4 = inlined_call_operand.hbm [shape: f32[64,512], index: 4, kind: input, shape index: {}]   ;;  %s12545_s5 = inlined_call_operand.hbm [shape: f32[128,512], index: 5, kind: input, shape index: {}]   ;;  %s12546_s6 = inlined_call_operand.vmem [shape: f32[1,512], index: 6, kind: input, shape index: {}]   ;;  %s12547_s7 = inlined_call_operand.hbm [shape: f32[256,512], index: 7, kind: input, shape index: {}]   ;;  %s12548_s8 = inlined_call_operand.hbm [shape: f32[128,512], index: 8, kind: input, shape index: {}]   ;;  %s12549_s9 = inlined_call_operand.vmem [shape: f32[1,512], index: 9, kind: input, shape index: {}]   ;;  %s12550_s10 = inlined_call_operand.hbm [shape: f32[256,512], index: 10, kind: input, shape index: {}]   ;;  %s12551_s11 = inlined_call_operand.hbm [shape: f32[128,512], index: 11, kind: input, shape index: {}]   ;;  %s12552_s12 = inlined_call_operand.vmem [shape: f32[1,512], index: 12, kind: input, shape index: {}]   ;;  %s12553_s13 = inlined_call_operand.hbm [shape: f32[256,128], index: 13, kind: input, shape index: {}]   ;;  %s12554_s14 = inlined_call_operand.vmem [shape: f32[1,128], index: 14, kind: input, shape index: {}]   ;;  %s12555_s15 = inlined_call_operand.hbm [shape: f32[128,128], index: 15, kind: input, shape index: {}]   ;;  %s12556_s16 = inlined_call_operand.vmem [shape: f32[1,128], index: 16, kind: input, shape index: {}]   ;;  %s12557_s17 = inlined_call_operand.hbm [shape: f32[128,128], index: 17, kind: input, shape index: {}]   ;;  %s12558_s18 = inlined_call_operand.vmem [shape: f32[1,128], index: 18, kind: input, shape index: {}]   ;;  %s12559_s19 = inlined_call_operand.hbm [shape: f32[8,128], index: 19, kind: output, shape index: {}]  }
   0x1   :  { %12910 = sst [smem:[#allocation105_spill]] %s12540_s0 }
   0x2   :  { %12911 = sst [smem:[#allocation106_spill]] %s12541_s1 }
   0x3   :  { %12912 = sst [smem:[#allocation107_spill]] %s12542_s2 }
   0x4   :  { %12913 = sst [smem:[#allocation108_spill]] %s12543_s3 }
   0x5   :  { %24 = vsyncpa [#allocation6], 0 }
   0x6   :  { %25 = vsyncpa [#allocation9], 0 }
   0x7   :  { %26 = vsyncpa [#allocation12], 0 }
   0x8   :  { %27 = vsyncpa [#allocation15], 0 }
   0x9   :  { %28 = vsyncpa [#allocation18], 0 }
   0xa   :  { %29 = vsyncpa [#allocation21], 0 }
   0xb   :  { %30 = vsyncpa [#allocation24], 0 }
   0xc   :  { %31 = vsyncpa [#allocation7], 0  ;;  %s8616_s0 = smov [#allocation8]  }
   0xd   :  { %s49_s30 = sshll.u32 %s8616_s0, 4  ;;  %s50_s30 = int_to_ptr.vmem [resolvable:$true] %s49_s30 }
   0xe   :  { %s8348_s20 = scalar_lea.vmem %s50_s30, 4096  ;;  %p8353_p1 = scmp.lt.s32.totalorder %s50_s30, %s50_s30 }
   0xf   :  { %p8349_p0 = scmp.ne.s32.totalorder %s50_s30, %s8348_s20  ;;  %p8354_p2 = scmp.lt.s32.totalorder %s8348_s20, %s8348_s20 }
  0x11   :  { %p8355_p3 = por %p8354_p2, %p8353_p1 }
  0x13   :  { %p8356_p4 = pnand %p8355_p3, %p8349_p0 }
  0x15   :  { %8359 = shalt.err (!%p8356_p4)
}
  0x16   :  { %s8617_s21 = smov 512   ;;  %s8618_s1 = smov 32  }
  0x17   :  { %s12914_s23 = sld [smem:[#allocation106_spill]]  ;;  %s8619_s24 = smov [#allocation11]  }
  0x18   :  { %s75_s25 = sshll.u32 %s8619_s24, 4  ;;  %s8620_s3 = smov [#allocation14]   ;;  %s76_s25 = int_to_ptr.vmem [resolvable:$true] %s75_s25 }
  0x19   :  { %s101_s26 = sshll.u32 %s8620_s3, 4  ;;  %s8368_s27 = scalar_lea.vmem %s76_s25, 4096  ;;  %s102_s26 = int_to_ptr.vmem [resolvable:$true] %s101_s26 }
  0x1a   :  { %p8369_p5 = scmp.ne.s32.totalorder %s76_s25, %s8368_s27  ;;  %p8373_p6 = scmp.lt.s32.totalorder %s76_s25, %s76_s25 }
  0x1b   :  { %p8374_p7 = scmp.lt.s32.totalorder %s8368_s27, %s8368_s27 }
  0x1d   :  { %55 = dma.hbm_to_vmem [thread:$0]  %s12914_s23, 4096, %s50_s30, [#allocation9], %s8617_s21, %s8617_s21, %s8618_s1  }
  0x1e   :  { %p8375_p8 = por %p8374_p7, %p8373_p6 }
  0x20   :  { %p8376_p9 = pnand %p8375_p8, %p8369_p5 }
  0x22   :  { %8379 = shalt.err (!%p8376_p9)
}
  0x23   :  { %81 = dma.hbm_to_vmem [thread:$0]  %s12544_s4, 4096, %s76_s25, [#allocation12], %s8617_s21, %s8617_s21, %s8618_s1  }
  0x24   :  { %s8388_s0 = scalar_lea.vmem %s102_s26, 16384  ;;  %p8393_p11 = scmp.lt.s32.totalorder %s102_s26, %s102_s26 }
  0x25   :  { %p8389_p10 = scmp.ne.s32.totalorder %s102_s26, %s8388_s0  ;;  %p8394_p12 = scmp.lt.s32.totalorder %s8388_s0, %s8388_s0 }
  0x27   :  { %p8395_p13 = por %p8394_p12, %p8393_p11 }
  0x29   :  { %p8396_p0 = pnand %p8395_p13, %p8389_p10 }
  0x2b   :  { %8399 = shalt.err (!%p8396_p0)
}
  0x2c   :  { %107 = dma.hbm_to_vmem [thread:$0]  %s12547_s7, 16384, %s102_s26, [#allocation15], %s8617_s21, %s8617_s21, %s8618_s1  }
  0x2d   :  { %s8621_s22 = smov [#allocation17]  }
  0x2e   :  { %s127_s2 = sshll.u32 %s8621_s22, 4  ;;  %s128_s2 = int_to_ptr.vmem [resolvable:$true] %s127_s2 }
  0x2f   :  { %s8408_s23 = scalar_lea.vmem %s128_s2, 16384  ;;  %p8413_p2 = scmp.lt.s32.totalorder %s128_s2, %s128_s2 }
  0x30   :  { %p8409_p1 = scmp.ne.s32.totalorder %s128_s2, %s8408_s23  ;;  %p8414_p3 = scmp.lt.s32.totalorder %s8408_s23, %s8408_s23 }
  0x32   :  { %p8415_p4 = por %p8414_p3, %p8413_p2 }
  0x34   :  { %p8416_p5 = pnand %p8415_p4, %p8409_p1 }
  0x36   :  { %8419 = shalt.err (!%p8416_p5)
}
  0x37   :  { %133 = dma.hbm_to_vmem [thread:$0]  %s12550_s10, 16384, %s128_s2, [#allocation18], %s8617_s21, %s8617_s21, %s8618_s1  }
  0x38   :  { %s8622_s25 = smov [#allocation20]   ;;  %s8623_s7 = smov [#allocation5]  }
  0x39   :  { %s153_s3 = sshll.u32 %s8622_s25, 4  ;;  %s37_s26 = sshll.u32 %s8623_s7, 4  ;;  %s154_s3 = int_to_ptr.vmem [resolvable:$true] %s153_s3  ;;  %s38_s26 = int_to_ptr.vmem [resolvable:$true] %s37_s26 }
  0x3a   :  { %s8428_s27 = scalar_lea.vmem %s154_s3, 4096  ;;  %p8433_p7 = scmp.lt.s32.totalorder %s154_s3, %s154_s3 }
  0x3b   :  { %p8429_p6 = scmp.ne.s32.totalorder %s154_s3, %s8428_s27  ;;  %p8434_p8 = scmp.lt.s32.totalorder %s8428_s27, %s8428_s27 }
  0x3d   :  { %p8435_p9 = por %p8434_p8, %p8433_p7 }
  0x3f   :  { %p8436_p10 = pnand %p8435_p9, %p8429_p6 }
  0x41   :  { %8439 = shalt.err (!%p8436_p10)
}
  0x42   :  { %s8624_s28 = smov 128   ;;  %s8625_s29 = smov 8  }
  0x43   :  { %159 = dma.hbm_to_vmem [thread:$0]  %s12553_s13, 4096, %s154_s3, [#allocation21], %s8624_s28, %s8624_s28, %s8625_s29  }
  0x44   :  { %s8448_s30 = scalar_lea.vmem %s38_s26, 1024  ;;  %p8453_p12 = scmp.lt.s32.totalorder %s38_s26, %s38_s26 }
  0x45   :  { %p8449_p11 = scmp.ne.s32.totalorder %s38_s26, %s8448_s30  ;;  %p8454_p13 = scmp.lt.s32.totalorder %s8448_s30, %s8448_s30 }
  0x47   :  { %p8455_p0 = por %p8454_p13, %p8453_p12 }
  0x49   :  { %p8456_p1 = pnand %p8455_p0, %p8449_p11 }
  0x4b   :  { %8459 = shalt.err (!%p8456_p1)
}
  0x4c   :  { %s12915_s2 = sld [smem:[#allocation105_spill]]  ;;  %s8626_s23 = smov [#allocation10]  }
  0x4d   :  { %s61_s4 = sshll.u32 %s8626_s23, 4  ;;  %s8627_s24 = smov [#allocation13]   ;;  %s62_s4 = int_to_ptr.vmem [resolvable:$true] %s61_s4 }
  0x4e   :  { %s87_s25 = sshll.u32 %s8627_s24, 4  ;;  %s8468_s13 = scalar_lea.vmem %s62_s4, 8192  ;;  %s88_s25 = int_to_ptr.vmem [resolvable:$true] %s87_s25 }
  0x4f   :  { %p8469_p2 = scmp.ne.s32.totalorder %s62_s4, %s8468_s13  ;;  %p8473_p3 = scmp.lt.s32.totalorder %s62_s4, %s62_s4 }
  0x50   :  { %p8474_p4 = scmp.lt.s32.totalorder %s8468_s13, %s8468_s13 }
  0x52   :  { %43 = dma.hbm_to_vmem [thread:$0]  %s12915_s2, 1024, %s38_s26, [#allocation6], %s8624_s28, %s8624_s28, %s8625_s29  }
  0x53   :  { %p8475_p5 = por %p8474_p4, %p8473_p3 }
  0x55   :  { %p8476_p6 = pnand %p8475_p5, %p8469_p2 }
  0x57   :  { %8479 = shalt.err (!%p8476_p6)
}
  0x58   :  { %s12916_s27 = sld [smem:[#allocation107_spill]]  ;;  %s8488_s26 = scalar_lea.vmem %s88_s25, 8192 }
  0x59   :  { %p8489_p7 = scmp.ne.s32.totalorder %s88_s25, %s8488_s26  ;;  %p8493_p8 = scmp.lt.s32.totalorder %s88_s25, %s88_s25 }
  0x5a   :  { %p8494_p9 = scmp.lt.s32.totalorder %s8488_s26, %s8488_s26 }
  0x5c   :  { %p8495_p10 = por %p8494_p9, %p8493_p8 }
  0x5e   :  { %67 = dma.hbm_to_vmem [thread:$0]  %s12916_s27, 8192, %s62_s4, [#allocation9], %s8617_s21, %s8617_s21, %s8618_s1  }
  0x5f   :  { %p8496_p11 = pnand %p8495_p10, %p8489_p7 }
  0x61   :  { %8499 = shalt.err (!%p8496_p11)
}
  0x62   :  { %93 = dma.hbm_to_vmem [thread:$0]  %s12545_s5, 8192, %s88_s25, [#allocation12], %s8617_s21, %s8617_s21, %s8618_s1  }
  0x63   :  { %s8628_s30 = smov [#allocation16]   ;;  %s8629_s22 = smov [#allocation19]  }
  0x64   :  { %s113_s20 = sshll.u32 %s8628_s30, 4  ;;  %s139_s2 = sshll.u32 %s8629_s22, 4  ;;  %s114_s20 = int_to_ptr.vmem [resolvable:$true] %s113_s20  ;;  %s140_s2 = int_to_ptr.vmem [resolvable:$true] %s139_s2 }
  0x65   :  { %s8508_s23 = scalar_lea.vmem %s114_s20, 8192  ;;  %p8513_p13 = scmp.lt.s32.totalorder %s114_s20, %s114_s20 }
  0x66   :  { %p8509_p12 = scmp.ne.s32.totalorder %s114_s20, %s8508_s23  ;;  %p8514_p0 = scmp.lt.s32.totalorder %s8508_s23, %s8508_s23 }
  0x68   :  { %p8515_p1 = por %p8514_p0, %p8513_p13 }
  0x6a   :  { %p8516_p2 = pnand %p8515_p1, %p8509_p12 }
  0x6c   :  { %8519 = shalt.err (!%p8516_p2)
}
  0x6d   :  { %119 = dma.hbm_to_vmem [thread:$0]  %s12548_s8, 8192, %s114_s20, [#allocation15], %s8617_s21, %s8617_s21, %s8618_s1  }
  0x6e   :  { %s8528_s5 = scalar_lea.vmem %s140_s2, 8192  ;;  %p8533_p4 = scmp.lt.s32.totalorder %s140_s2, %s140_s2 }
  0x6f   :  { %p8529_p3 = scmp.ne.s32.totalorder %s140_s2, %s8528_s5  ;;  %p8534_p5 = scmp.lt.s32.totalorder %s8528_s5, %s8528_s5 }
  0x71   :  { %p8535_p6 = por %p8534_p5, %p8533_p4 }
  0x73   :  { %p8536_p7 = pnand %p8535_p6, %p8529_p3 }
  0x75   :  { %8539 = shalt.err (!%p8536_p7)
}
  0x76   :  { %145 = dma.hbm_to_vmem [thread:$0]  %s12551_s11, 8192, %s140_s2, [#allocation18], %s8617_s21, %s8617_s21, %s8618_s1  }
  0x77   :  { %s8630_s3 = smov [#allocation22]   ;;  %s8631_s27 = smov [#allocation23]  }
  0x78   :  { %s167_s7 = sshll.u32 %s8630_s3, 4  ;;  %s181_s26 = sshll.u32 %s8631_s27, 4  ;;  %s168_s7 = int_to_ptr.vmem [resolvable:$true] %s167_s7  ;;  %s182_s26 = int_to_ptr.vmem [resolvable:$true] %s181_s26 }
  0x79   :  { %s8548_s8 = scalar_lea.vmem %s168_s7, 2048  ;;  %p8553_p9 = scmp.lt.s32.totalorder %s168_s7, %s168_s7 }
  0x7a   :  { %p8549_p8 = scmp.ne.s32.totalorder %s168_s7, %s8548_s8  ;;  %p8554_p10 = scmp.lt.s32.totalorder %s8548_s8, %s8548_s8 }
  0x7c   :  { %p8555_p11 = por %p8554_p10, %p8553_p9 }
  0x7e   :  { %p8556_p12 = pnand %p8555_p11, %p8549_p8 }
  0x80   :  { %8559 = shalt.err (!%p8556_p12)
}
  0x81   :  { %173 = dma.hbm_to_vmem [thread:$0]  %s12555_s15, 2048, %s168_s7, [#allocation21], %s8624_s28, %s8624_s28, %s8625_s29  }
  0x82   :  { %s8568_s11 = scalar_lea.vmem %s182_s26, 2048  ;;  %p8573_p0 = scmp.lt.s32.totalorder %s182_s26, %s182_s26 }
  0x83   :  { %p8569_p13 = scmp.ne.s32.totalorder %s182_s26, %s8568_s11  ;;  %p8574_p1 = scmp.lt.s32.totalorder %s8568_s11, %s8568_s11 }
  0x85   :  { %p8575_p2 = por %p8574_p1, %p8573_p0 }
  0x87   :  { %p8576_p3 = pnand %p8575_p2, %p8569_p13 }
  0x89   :  { %8579 = shalt.err (!%p8576_p3)
}
  0x8a   :  { %187 = dma.hbm_to_vmem [thread:$0]  %s12557_s17, 2048, %s182_s26, [#allocation24], %s8624_s28, %s8624_s28, %s8625_s29  }
  0x8b   :  { %8600 = dma.done.wait [#allocation6], 1024  }
  0x8c   :  { %8601 = vsyncadd [#allocation6], 4294966272 }
  0x8d   :  { %8602 = dma.done.wait [#allocation9], 12288  }
  0x8e   :  { %8603 = vsyncadd [#allocation9], 4294955008 }
  0x8f   :  { %8604 = dma.done.wait [#allocation12], 12288  }
  0x90   :  { %8605 = vsyncadd [#allocation12], 4294955008 }
  0x91   :  { %8606 = dma.done.wait [#allocation15], 24576  }
  0x92   :  { %8607 = vsyncadd [#allocation15], 4294942720 }
  0x93   :  { %8608 = dma.done.wait [#allocation18], 24576  }
  0x94   :  { %8609 = vsyncadd [#allocation18], 4294942720 }
  0x95   :  { %8610 = dma.done.wait [#allocation21], 6144  }
  0x96   :  { %8611 = vsyncadd [#allocation21], 4294961152 }
  0x97   :  { %8612 = dma.done.wait [#allocation24], 2048  }
  0x98   :  { %8613 = vsyncadd [#allocation24], 4294965248  ;;  %v12562_v0 = vmov 0.0   ;;  %v263_v1 = vld [vmem:[#allocation8 + $0xe8] sm:$0xff]  ;;  %v262_v2 = vld [vmem:[#allocation8 + $0xe0] sm:$0xff]  ;;  %vm288_vm0 = vcmask 523264  }
  0x99   :  { %377 = vmatprep.mubr.f32.mxu0 %v12562_v0  ;;  %490 = vmatprep.mubr.f32.mxu1 %v12562_v0  ;;  %v259_v3 = vld [vmem:[#allocation8 + $0xc8] sm:$0xff]  ;;  %v258_v4 = vld [vmem:[#allocation8 + $0xc0] sm:$0xff]  ;;  %v265_v8 = vld [vmem:[#allocation8 + $0xf8] sm:$0xff]  ;;  %s12944_s28 = sld [smem:[#allocation108_spill]]  ;;  %vm8633_vm1 = vmmov 0   ;;  %s8634_s5 = smov [#allocation25]  }
  0x9a   :  { %329 = vmatprep.subr.mxu0 %v263_v1  ;;  %v255_v5 = vld [vmem:[#allocation8 + $0xa8] sm:$0xff]  ;;  %v254_v6 = vld [vmem:[#allocation8 + $0xa0] sm:$0xff]  ;;  %442 = vmatprep.subr.mxu1 %v265_v8  ;;  %v264_v10 = vld [vmem:[#allocation8 + $0xf0] sm:$0xff]  ;;  %s7280_s25 = sshll.u32 %s8634_s5, 4  ;;  %s7281_s25 = int_to_ptr.vmem [resolvable:$true] %s7280_s25 }
  0x9b   :  { %330 = vmatpush1.msra.mxu0 %v262_v2  ;;  %v251_v7 = vld [vmem:[#allocation8 + $0x88] sm:$0xff]  ;;  %v250_v9 = vld [vmem:[#allocation8 + $0x80] sm:$0xff]  ;;  %v261_v11 = vld [vmem:[#allocation8 + $0xd8] sm:$0xff]  ;;  %443 = vmatpush1.msra.mxu1 %v264_v10  ;;  %s8580_s13 = scalar_lea.vmem %s7281_s25, 128  ;;  %p8585_p5 = scmp.lt.s32.totalorder %s7281_s25, %s7281_s25 }
  0x9c   :  { %331 = vmatprep.subr.mxu0 %v259_v3  ;;  %v247_v12 = vld [vmem:[#allocation8 + $0x68] sm:$0xff]  ;;  %v260_v13 = vld [vmem:[#allocation8 + $0xd0] sm:$0xff]  ;;  %v246_v14 = vld [vmem:[#allocation8 + $0x60] sm:$0xff]  ;;  %444 = vmatprep.subr.mxu1 %v261_v11  ;;  %p8581_p4 = scmp.ne.s32.totalorder %s7281_s25, %s8580_s13  ;;  %p8586_p6 = scmp.lt.s32.totalorder %s8580_s13, %s8580_s13 }
  0x9d   :  { %332 = vmatpush1.msra.mxu0 %v258_v4  ;;  %v257_v15 = vld [vmem:[#allocation8 + $0xb8] sm:$0xff]  ;;  %v256_v16 = vld [vmem:[#allocation8 + $0xb0] sm:$0xff]  ;;  %v243_v17 = vld [vmem:[#allocation8 + $0x48] sm:$0xff]  ;;  %445 = vmatpush1.msra.mxu1 %v260_v13 }
  0x9e   :  { %333 = vmatprep.subr.mxu0 %v255_v5  ;;  %v253_v18 = vld [vmem:[#allocation8 + $0x98] sm:$0xff]  ;;  %v242_v19 = vld [vmem:[#allocation8 + $0x40] sm:$0xff]  ;;  %446 = vmatprep.subr.mxu1 %v257_v15  ;;  %v252_v20 = vld [vmem:[#allocation8 + $0x90] sm:$0xff]  ;;  %p8587_p7 = por %p8586_p6, %p8585_p5 }
  0x9f   :  { %334 = vmatpush1.msra.mxu0 %v254_v6  ;;  %v239_v21 = vld [vmem:[#allocation8 + $0x28] sm:$0xff]  ;;  %447 = vmatpush1.msra.mxu1 %v256_v16  ;;  %v249_v22 = vld [vmem:[#allocation8 + $0x78] sm:$0xff]  ;;  %v238_v23 = vld [vmem:[#allocation8 + $0x20] sm:$0xff] }
  0xa0   :  { %335 = vmatprep.subr.mxu0 %v251_v7  ;;  %448 = vmatprep.subr.mxu1 %v253_v18  ;;  %v248_v24 = vld [vmem:[#allocation8 + $0x70] sm:$0xff]  ;;  %v235_v25 = vld [vmem:[#allocation8 + $0x8] sm:$0xff]  ;;  %v245_v26 = vld [vmem:[#allocation8 + $0x58] sm:$0xff]  ;;  %p8588_p8 = pnand %p8587_p7, %p8581_p4 }
  0xa1   :  { %336 = vmatpush1.msra.mxu0 %v250_v9  ;;  %449 = vmatpush1.msra.mxu1 %v252_v20  ;;  %v234_v27 = vld [vmem:[#allocation8] sm:$0xff]  ;;  %v244_v28 = vld [vmem:[#allocation8 + $0x50] sm:$0xff]  ;;  %v241_v30 = vld [vmem:[#allocation8 + $0x38] sm:$0xff] }
  0xa2   :  { %337 = vmatprep.subr.mxu0 %v247_v12  ;;  %450 = vmatprep.subr.mxu1 %v249_v22  ;;  %v226_v29 = vld [vmem:[#allocation5] sm:$0xff]  ;;  %v240_v31 = vld [vmem:[#allocation8 + $0x30] sm:$0xff]  ;;  %v237_v32 = vld [vmem:[#allocation8 + $0x18] sm:$0xff] }
  0xa3   :  { %338 = vmatpush1.msra.mxu0 %v246_v14  ;;  %451 = vmatpush1.msra.mxu1 %v248_v24  ;;  %v236_v33 = vld [vmem:[#allocation8 + $0x10] sm:$0xff]  ;;  %v8813_v34 = vld [vmem:[#allocation10 + $0x1e8] sm:$0xff]  ;;  %v8815_v35 = vld [vmem:[#allocation10 + $0x1f8] sm:$0xff] }
  0xa4   :  { %339 = vmatprep.subr.mxu0 %v243_v17  ;;  %452 = vmatprep.subr.mxu1 %v245_v26  ;;  %12917 = vst [vmem:[#allocation34_spill] sm:$0xff] %v8813_v34  ;;  %12918 = vst [vmem:[#allocation35_spill] sm:$0xff] %v8815_v35  ;;  %v8818_v36 = vld [vmem:[#allocation10 + $0x1e0] sm:$0xff]  ;;  %v8821_v37 = vld [vmem:[#allocation10 + $0x1f0] sm:$0xff] }
  0xa5   :  { %340 = vmatpush1.msra.mxu0 %v242_v19  ;;  %453 = vmatpush1.msra.mxu1 %v244_v28  ;;  %v8824_v38 = vld [vmem:[#allocation10 + $0x1c8] sm:$0xff]  ;;  %v8827_v40 = vld [vmem:[#allocation10 + $0x1d8] sm:$0xff]  ;;  %v8831_v41 = vld [vmem:[#allocation10 + $0x1c0] sm:$0xff] }
  0xa6   :  { %341 = vmatprep.subr.mxu0 %v239_v21  ;;  %454 = vmatprep.subr.mxu1 %v241_v30  ;;  %v227_v39 = vld [vmem:[#allocation5 + $0x8] sm:$0xff]  ;;  %v8833_v42 = vld [vmem:[#allocation10 + $0x1d0] sm:$0xff]  ;;  %v8839_v44 = vld [vmem:[#allocation10 + $0x1b8] sm:$0xff] }
  0xa7   :  { %342 = vmatpush1.msra.mxu0 %v238_v23  ;;  %455 = vmatpush1.msra.mxu1 %v240_v31  ;;  %v8837_v43 = vld [vmem:[#allocation10 + $0x1a8] sm:$0xff]  ;;  %v8843_v45 = vld [vmem:[#allocation10 + $0x1a0] sm:$0xff]  ;;  %v8845_v46 = vld [vmem:[#allocation10 + $0x1b0] sm:$0xff] }
  0xa8   :  { %343 = vmatprep.subr.mxu0 %v235_v25  ;;  %456 = vmatprep.subr.mxu1 %v237_v32  ;;  %v8849_v47 = vld [vmem:[#allocation10 + $0x188] sm:$0xff]  ;;  %v228_v48 = vld [vmem:[#allocation5 + $0x10] sm:$0xff]  ;;  %v8851_v49 = vld [vmem:[#allocation10 + $0x198] sm:$0xff] }
  0xa9   :  { %344 = vmatpush1.msra.mxu0 %v234_v27  ;;  %457 = vmatpush1.msra.mxu1 %v236_v33  ;;  %v8855_v50 = vld [vmem:[#allocation10 + $0x180] sm:$0xff]  ;;  %v8859_v51 = vld [vmem:[#allocation10 + $0x168] sm:$0xff]  ;;  %v8861_v52 = vld [vmem:[#allocation10 + $0x190] sm:$0xff] }
  0xaa   :  { %7295 = vmatmul.mubr.msk.f32.vlgmr.msra.gmra.mxu0 %vm288_vm0, %v226_v29  ;;  %7303 = vmatmul.mubr.msk.f32.vlgmr.msra.gmra.mxu1 %vm288_vm0, %v226_v29  ;;  %v8865_v53 = vld [vmem:[#allocation10 + $0x160] sm:$0xff]  ;;  %v8869_v54 = vld [vmem:[#allocation10 + $0x178] sm:$0xff]  ;;  %v8873_v55 = vld [vmem:[#allocation10 + $0x148] sm:$0xff] }
  0xab   :  { %383 = vmatprep.mubr.f32.mxu0 %v12562_v0  ;;  %496 = vmatprep.mubr.f32.mxu1 %v12562_v0  ;;  %v8875_v56 = vld [vmem:[#allocation10 + $0x170] sm:$0xff]  ;;  %v229_v57 = vld [vmem:[#allocation5 + $0x18] sm:$0xff]  ;;  %v8883_v59 = vld [vmem:[#allocation10 + $0x140] sm:$0xff] }
  0xac   :  { %660 = vmatprep.subr.mxu0 %v8813_v34  ;;  %731 = vmatprep.subr.mxu1 %v8815_v35  ;;  %v8879_v58 = vld [vmem:[#allocation10 + $0x158] sm:$0xff]  ;;  %v8887_v60 = vld [vmem:[#allocation10 + $0x128] sm:$0xff]  ;;  %v8889_v61 = vld [vmem:[#allocation10 + $0x150] sm:$0xff] }
  0xad   :  { %661 = vmatpush1.msra.mxu0 %v8818_v36  ;;  %732 = vmatpush1.msra.mxu1 %v8821_v37  ;;  %v8893_v62 = vld [vmem:[#allocation10 + $0x120] sm:$0xff]  ;;  %v8897_v63 = vld [vmem:[#allocation10 + $0x138] sm:$0xff]  ;;  %v8901_v1 = vld [vmem:[#allocation10 + $0x108] sm:$0xff] }
  0xae   :  { %662 = vmatprep.subr.mxu0 %v8824_v38  ;;  %7296 = vmatmul.mubr.msk.f32.gmra.mxu0 %vm288_vm0, %v227_v39  ;;  %v8903_v2 = vld [vmem:[#allocation10 + $0x130] sm:$0xff]  ;;  %v230_v3 = vld [vmem:[#allocation5 + $0x20] sm:$0xff]  ;;  %v8907_v4 = vld [vmem:[#allocation10 + $0x118] sm:$0xff] }
  0xaf   :  { %663 = vmatpush1.msra.mxu0 %v8831_v41  ;;  %733 = vmatprep.subr.mxu1 %v8827_v40  ;;  %v8911_v5 = vld [vmem:[#allocation10 + $0x100] sm:$0xff]  ;;  %v8915_v6 = vld [vmem:[#allocation10 + $0xe8] sm:$0xff]  ;;  %v8917_v7 = vld [vmem:[#allocation10 + $0x110] sm:$0xff] }
  0xb0   :  { %664 = vmatprep.subr.mxu0 %v8837_v43  ;;  %734 = vmatpush1.msra.mxu1 %v8833_v42  ;;  %v8921_v8 = vld [vmem:[#allocation10 + $0xe0] sm:$0xff]  ;;  %v8925_v9 = vld [vmem:[#allocation10 + $0xf8] sm:$0xff]  ;;  %v8929_v10 = vld [vmem:[#allocation10 + $0xc8] sm:$0xff] }
  0xb1   :  { %7304 = vmatmul.mubr.msk.f32.gmra.mxu1 %vm288_vm0, %v227_v39  ;;  %665 = vmatpush1.msra.mxu0 %v8843_v45  ;;  %v8931_v11 = vld [vmem:[#allocation10 + $0xf0] sm:$0xff]  ;;  %v231_v12 = vld [vmem:[#allocation5 + $0x28] sm:$0xff]  ;;  %v8935_v13 = vld [vmem:[#allocation10 + $0xd8] sm:$0xff] }
  0xb2   :  { %735 = vmatprep.subr.mxu1 %v8839_v44  ;;  %389 = vmatprep.mubr.f32.mxu0 %v12562_v0  ;;  %v8939_v14 = vld [vmem:[#allocation10 + $0xc0] sm:$0xff]  ;;  %v8943_v15 = vld [vmem:[#allocation10 + $0xa8] sm:$0xff]  ;;  %v8945_v16 = vld [vmem:[#allocation10 + $0xd0] sm:$0xff] }
  0xb3   :  { %666 = vmatprep.subr.mxu0 %v8849_v47  ;;  %736 = vmatpush1.msra.mxu1 %v8845_v46  ;;  %v8949_v17 = vld [vmem:[#allocation10 + $0xa0] sm:$0xff]  ;;  %v8953_v18 = vld [vmem:[#allocation10 + $0xb8] sm:$0xff]  ;;  %v8957_v19 = vld [vmem:[#allocation10 + $0x88] sm:$0xff] }
  0xb4   :  { %7297 = vmatmul.mubr.msk.f32.gmra.mxu0 %vm288_vm0, %v228_v48  ;;  %737 = vmatprep.subr.mxu1 %v8851_v49  ;;  %12919 = vst [vmem:[#allocation36_spill] sm:$0xff] %v8949_v17  ;;  %12920 = vst [vmem:[#allocation37_spill] sm:$0xff] %v8957_v19  ;;  %v8959_v20 = vld [vmem:[#allocation10 + $0xb0] sm:$0xff]  ;;  %v8963_v22 = vld [vmem:[#allocation10 + $0x98] sm:$0xff] }
  0xb5   :  { %667 = vmatpush1.msra.mxu0 %v8855_v50  ;;  %502 = vmatprep.mubr.f32.mxu1 %v12562_v0  ;;  %12921 = vst [vmem:[#allocation38_spill] sm:$0xff] %v8959_v20  ;;  %v232_v21 = vld [vmem:[#allocation5 + $0x30] sm:$0xff]  ;;  %12922 = vst [vmem:[#allocation39_spill] sm:$0xff] %v8963_v22  ;;  %v8967_v23 = vld [vmem:[#allocation10 + $0x80] sm:$0xff] }
  0xb6   :  { %668 = vmatprep.subr.mxu0 %v8859_v51  ;;  %738 = vmatpush1.msra.mxu1 %v8861_v52  ;;  %12923 = vst [vmem:[#allocation40_spill] sm:$0xff] %v8967_v23  ;;  %v8971_v24 = vld [vmem:[#allocation10 + $0x68] sm:$0xff]  ;;  %v8973_v25 = vld [vmem:[#allocation10 + $0x90] sm:$0xff]  ;;  %v8977_v26 = vld [vmem:[#allocation10 + $0x60] sm:$0xff] }
  0xb7   :  { %7305 = vmatmul.mubr.msk.f32.gmra.mxu1 %vm288_vm0, %v228_v48  ;;  %669 = vmatpush1.msra.mxu0 %v8865_v53  ;;  %12924 = vst [vmem:[#allocation41_spill] sm:$0xff] %v8971_v24  ;;  %12925 = vst [vmem:[#allocation42_spill] sm:$0xff] %v8973_v25  ;;  %v8981_v27 = vld [vmem:[#allocation10 + $0x78] sm:$0xff]  ;;  %v8985_v28 = vld [vmem:[#allocation10 + $0x48] sm:$0xff] }
  0xb8   :  { %739 = vmatprep.subr.mxu1 %v8869_v54  ;;  %395 = vmatprep.mubr.f32.mxu0 %v12562_v0  ;;  %12926 = vst [vmem:[#allocation43_spill] sm:$0xff] %v8977_v26  ;;  %12927 = vst [vmem:[#allocation44_spill] sm:$0xff] %v8981_v27  ;;  %v8987_v29 = vld [vmem:[#allocation10 + $0x70] sm:$0xff]  ;;  %v233_v30 = vld [vmem:[#allocation5 + $0x38] sm:$0xff] }
  0xb9   :  { %670 = vmatprep.subr.mxu0 %v8873_v55  ;;  %740 = vmatpush1.msra.mxu1 %v8875_v56  ;;  %12928 = vst [vmem:[#allocation45_spill] sm:$0xff] %v8985_v28  ;;  %12929 = vst [vmem:[#allocation46_spill] sm:$0xff] %v8987_v29  ;;  %v8991_v31 = vld [vmem:[#allocation10 + $0x58] sm:$0xff]  ;;  %v8995_v32 = vld [vmem:[#allocation10 + $0x40] sm:$0xff] }
  0xba   :  { %7298 = vmatmul.mubr.msk.f32.gmra.mxu0 %vm288_vm0, %v229_v57  ;;  %741 = vmatprep.subr.mxu1 %v8879_v58  ;;  %12930 = vst [vmem:[#allocation47_spill] sm:$0xff] %v8991_v31  ;;  %12931 = vst [vmem:[#allocation48_spill] sm:$0xff] %v8995_v32  ;;  %v8999_v33 = vld [vmem:[#allocation10 + $0x28] sm:$0xff]  ;;  %v9001_v39 = vld [vmem:[#allocation10 + $0x50] sm:$0xff] }
  0xbb   :  { %671 = vmatpush1.msra.mxu0 %v8883_v59  ;;  %508 = vmatprep.mubr.f32.mxu1 %v12562_v0  ;;  %12932 = vst [vmem:[#allocation49_spill] sm:$0xff] %v8999_v33  ;;  %12933 = vst [vmem:[#allocation50_spill] sm:$0xff] %v9001_v39  ;;  %v9005_v48 = vld [vmem:[#allocation10 + $0x20] sm:$0xff] }
  0xbc   :  { %672 = vmatprep.subr.mxu0 %v8887_v60  ;;  %742 = vmatpush1.msra.mxu1 %v8889_v61  ;;  %12934 = vst [vmem:[#allocation51_spill] sm:$0xff] %v9005_v48 }
  0xbd   :  { %7306 = vmatmul.mubr.msk.f32.gmra.mxu1 %vm288_vm0, %v229_v57  ;;  %673 = vmatpush1.msra.mxu0 %v8893_v62  ;;  %v9009_v57 = vld [vmem:[#allocation10 + $0x38] sm:$0xff] }
  0xbe   :  { %743 = vmatprep.subr.mxu1 %v8897_v63  ;;  %401 = vmatprep.mubr.f32.mxu0 %v12562_v0  ;;  %12935 = vst [vmem:[#allocation52_spill] sm:$0xff] %v9009_v57 }
  0xbf   :  { %674 = vmatprep.subr.mxu0 %v8901_v1  ;;  %744 = vmatpush1.msra.mxu1 %v8903_v2 }
  0xc0   :  { %7299 = vmatmul.mubr.msk.f32.gmra.mxu0 %vm288_vm0, %v230_v3  ;;  %745 = vmatprep.subr.mxu1 %v8907_v4 }
  0xc1   :  { %675 = vmatpush1.msra.mxu0 %v8911_v5  ;;  %514 = vmatprep.mubr.f32.mxu1 %v12562_v0 }
  0xc2   :  { %676 = vmatprep.subr.mxu0 %v8915_v6  ;;  %746 = vmatpush1.msra.mxu1 %v8917_v7 }
  0xc3   :  { %7307 = vmatmul.mubr.msk.f32.gmra.mxu1 %vm288_vm0, %v230_v3  ;;  %677 = vmatpush1.msra.mxu0 %v8921_v8  ;;  %v9011_v3 = vld [vmem:[#allocation10 + $0x8] sm:$0xff] }
  0xc4   :  { %747 = vmatprep.subr.mxu1 %v8925_v9  ;;  %407 = vmatprep.mubr.f32.mxu0 %v12562_v0  ;;  %12936 = vst [vmem:[#allocation53_spill] sm:$0xff] %v9011_v3 }
  0xc5   :  { %678 = vmatprep.subr.mxu0 %v8929_v10  ;;  %748 = vmatpush1.msra.mxu1 %v8931_v11 }
  0xc6   :  { %7300 = vmatmul.mubr.msk.f32.gmra.mxu0 %vm288_vm0, %v231_v12  ;;  %749 = vmatprep.subr.mxu1 %v8935_v13 }
  0xc7   :  { %679 = vmatpush1.msra.mxu0 %v8939_v14  ;;  %520 = vmatprep.mubr.f32.mxu1 %v12562_v0 }
  0xc8   :  { %680 = vmatprep.subr.mxu0 %v8943_v15  ;;  %750 = vmatpush1.msra.mxu1 %v8945_v16 }
  0xc9   :  { %7308 = vmatmul.mubr.msk.f32.gmra.mxu1 %vm288_vm0, %v231_v12  ;;  %681 = vmatpush1.msra.mxu0 %v8949_v17  ;;  %v9015_v12 = vld [vmem:[#allocation10 + $0x30] sm:$0xff] }
  0xca   :  { %751 = vmatprep.subr.mxu1 %v8953_v18  ;;  %413 = vmatprep.mubr.f32.mxu0 %v12562_v0  ;;  %12937 = vst [vmem:[#allocation54_spill] sm:$0xff] %v9015_v12 }
  0xcb   :  { %682 = vmatprep.subr.mxu0 %v8957_v19  ;;  %752 = vmatpush1.msra.mxu1 %v8959_v20 }
  0xcc   :  { %7301 = vmatmul.mubr.msk.f32.gmra.mxu0 %vm288_vm0, %v232_v21  ;;  %753 = vmatprep.subr.mxu1 %v8963_v22 }
  0xcd   :  { %683 = vmatpush1.msra.mxu0 %v8967_v23  ;;  %526 = vmatprep.mubr.f32.mxu1 %v12562_v0 }
  0xce   :  { %684 = vmatprep.subr.mxu0 %v8971_v24  ;;  %754 = vmatpush1.msra.mxu1 %v8973_v25 }
  0xcf   :  { %7309 = vmatmul.mubr.msk.f32.gmra.mxu1 %vm288_vm0, %v232_v21  ;;  %685 = vmatpush1.msra.mxu0 %v8977_v26  ;;  %v9017_v21 = vld [vmem:[#allocation10] sm:$0xff] }
  0xd0   :  { %755 = vmatprep.subr.mxu1 %v8981_v27  ;;  %419 = vmatprep.mubr.f32.mxu0 %v12562_v0  ;;  %12938 = vst [vmem:[#allocation55_spill] sm:$0xff] %v9017_v21 }
  0xd1   :  { %686 = vmatprep.subr.mxu0 %v8985_v28  ;;  %756 = vmatpush1.msra.mxu1 %v8987_v29 }
  0xd2   :  { %7302 = vmatmul.mubr.msk.f32.gmra.mxu0 %vm288_vm0, %v233_v30  ;;  %757 = vmatprep.subr.mxu1 %v8991_v31  ;;  %v9021_v31 = vld [vmem:[#allocation10 + $0x18] sm:$0xff] }
  0xd3   :  { %687 = vmatpush1.msra.mxu0 %v8995_v32  ;;  %532 = vmatprep.mubr.f32.mxu1 %v12562_v0  ;;  %12939 = vst [vmem:[#allocation56_spill] sm:$0xff] %v9021_v31  ;;  %v9025_v0 = vld [vmem:[#allocation10 + $0x10] sm:$0xff] }
  0xd4   :  { %688 = vmatprep.subr.mxu0 %v8999_v33  ;;  %758 = vmatpush1.msra.mxu1 %v9001_v39  ;;  %12940 = vst [vmem:[#allocation57_spill] sm:$0xff] %v9025_v0  ;;  %v12941_v33 = vmov 0.0  }
  0xd5   :  { %7310 = vmatmul.mubr.msk.f32.gmra.mxu1 %vm288_vm0, %v233_v30  ;;  %689 = vmatpush1.msra.mxu0 %v9005_v48  ;;  %v268_v30 = vlaneseq }
  0xd6   :  { %759 = vmatprep.subr.mxu1 %v9009_v57  ;;  %690 = vmatprep.subr.mxu0 %v9011_v3 }
  0xd7   :  { %760 = vmatpush1.msra.mxu1 %v9015_v12  ;;  %691 = vmatpush1.msra.mxu0 %v9017_v21  ;;  %v9035_v3 = vshrl.u32 %v268_v30, 7  ;;  %v9043_v21 = vld [vmem:[%s12944_s28] sm:$0xf] }
  0xd8   :  { %761 = vmatprep.subr.mxu1 %v9021_v31  ;;  %724 = vmatprep.mubr.f32.mxu0 %v12941_v33 }
  0xd9   :  { %762 = vmatpush1.msra.mxu1 %v9025_v0  ;;  %795 = vmatprep.mubr.f32.mxu1 %v12941_v33  ;;  %12942 = vst [vmem:[#allocation58_spill] sm:$0xff] %v9035_v3  ;;  %v9038_v48 = vsub.s32 0, %v9035_v3  ;;  %v9058_v32 = vsub.s32 2, %v9035_v3 }
  0xda   :  { %837 = vmatprep.subr.mxu0 %v8813_v34  ;;  %908 = vmatprep.subr.mxu1 %v8815_v35  ;;  %v9050_v34 = vsub.s32 3, %v9035_v3 }
  0xdb   :  { %12943 = vst [vmem:[#allocation59_spill] sm:$0xff] %v9038_v48  ;;  %v9047_v0 = vrot.slane %v9043_v21, %v9038_v48  ;;  %12948 = vst [vmem:[#allocation63_spill] sm:$0xff] %v9058_v32  ;;  %v9063_v28 = vrot.slane %v9043_v21, %v9058_v32 }
  0xdc   :  { %12946 = vst [vmem:[#allocation61_spill] sm:$0xff] %v9050_v34  ;;  %v9055_v57 = vrot.slane %v9043_v21, %v9050_v34 }
  0xdd   :  { %12945 = vst [vmem:[#allocation60_spill] sm:$0xff] %v9047_v0 }
  0xde   :  { %12947 = vst [vmem:[#allocation62_spill] sm:$0xff] %v9055_v57 }
 0x16a   :  { %v379_v33 = vpop.f32.mrf.mxu0  ;;  %v492_v12 = vpop.f32.mrf.mxu1 }
 0x16b   :  { %v380_v35 = vadd.f32 %v379_v33, %v9047_v0  ;;  %v493_v33 = vadd.f32 %v492_v12, %v9063_v28  ;;  %v12956_v12 = vld [vmem:[#allocation49_spill] sm:$0xff] }
 0x16c   :  { %v381_v30 = vpop.f32.mrf.mxu0  ;;  %v494_v39 = vpop.f32.mrf.mxu1 }
 0x16d   :  { %v7311_v31 = vmul.f32 -1.442695, %v380_v35  ;;  %v495_v48 = vadd.f32 %v494_v39, %v9055_v57 }
 0x16f   :  { %7580 = vpow2.f32 %v7311_v31  ;;  %v7312_v29 = vmul.f32 -1.442695, %v495_v48  ;;  %v12955_v48 = vld [vmem:[#allocation50_spill] sm:$0xff] }
 0x171   :  { %7582 = vpow2.f32 %v7312_v29  ;;  %v12953_v29 = vld [vmem:[#allocation47_spill] sm:$0xff] }
 0x172   :  { %7584 = vtanh.f32 %v493_v33  ;;  %v12957_v33 = vld [vmem:[#allocation52_spill] sm:$0xff] }
 0x17c   :  { %v7581_v35 = vpop.eup %7580 }
 0x17d   :  { %v641_v30 = vadd.f32 1.0, %v7581_v35  ;;  %v12958_v35 = vld [vmem:[#allocation51_spill] sm:$0xff] }
 0x17e   :  { %v7583_v34 = vpop.eup %7582 }
 0x17f   :  { %7586 = vrcp.f32 %v641_v30  ;;  %v648_v31 = vadd.f32 1.0, %v7583_v34  ;;  %v7585_v0 = vpop.eup %7584  ;;  %v12951_v34 = vld [vmem:[#allocation46_spill] sm:$0xff] }
 0x180   :  { %v12959_v30 = vld [vmem:[#allocation54_spill] sm:$0xff] }
 0x181   :  { %7588 = vrcp.f32 %v648_v31  ;;  %v12960_v31 = vld [vmem:[#allocation53_spill] sm:$0xff] }
 0x18c   :  { %v7587_v26 = vpop.eup %7586 }
 0x18d   :  { %v9066_v3 = vmul.f32 %v7587_v26, %v7585_v0  ;;  %v12950_v0 = vld [vmem:[#allocation43_spill] sm:$0xff]  ;;  %v12952_v26 = vld [vmem:[#allocation45_spill] sm:$0xff] }
 0x18e   :  { %v7589_v39 = vpop.eup %7588 }
 0x18f   :  { %7590 = vtanh.f32 %v9066_v3 }
 0x19c   :  { %v7591_v32 = vpop.eup %7590 }
 0x19d   :  { %v9069_v57 = vmul.f32 %v7591_v32, %v7589_v39  ;;  %v12954_v32 = vld [vmem:[#allocation48_spill] sm:$0xff] }
 0x19e   :  { %v12961_v39 = vld [vmem:[#allocation56_spill] sm:$0xff] }
 0x19f   :  { %12949 = vst [vmem:[#allocation64_spill] sm:$0xff] %v9069_v57  ;;  %725 = vmatmul.mubr.f32.vlgmr.msra.gmra.mxu0 %v9069_v57  ;;  %796 = vmatmul.mubr.f32.vlgmr.msra.gmra.mxu1 %v9069_v57  ;;  %v12962_v57 = vld [vmem:[#allocation55_spill] sm:$0xff] }
 0x1a0   :  { %838 = vmatpush1.msra.mxu0 %v8818_v36  ;;  %909 = vmatpush1.msra.mxu1 %v8821_v37 }
 0x1a1   :  { %839 = vmatprep.subr.mxu0 %v8824_v38  ;;  %910 = vmatprep.subr.mxu1 %v8827_v40 }
 0x1a2   :  { %840 = vmatpush1.msra.mxu0 %v8831_v41  ;;  %911 = vmatpush1.msra.mxu1 %v8833_v42 }
 0x1a3   :  { %841 = vmatprep.subr.mxu0 %v8837_v43  ;;  %912 = vmatprep.subr.mxu1 %v8839_v44 }
 0x1a4   :  { %842 = vmatpush1.msra.mxu0 %v8843_v45  ;;  %913 = vmatpush1.msra.mxu1 %v8845_v46 }
 0x1a5   :  { %843 = vmatprep.subr.mxu0 %v8849_v47  ;;  %914 = vmatprep.subr.mxu1 %v8851_v49 }
 0x1a6   :  { %844 = vmatpush1.msra.mxu0 %v8855_v50  ;;  %915 = vmatpush1.msra.mxu1 %v8861_v52 }
 0x1a7   :  { %845 = vmatprep.subr.mxu0 %v8859_v51  ;;  %916 = vmatprep.subr.mxu1 %v8869_v54 }
 0x1a8   :  { %846 = vmatpush1.msra.mxu0 %v8865_v53  ;;  %917 = vmatpush1.msra.mxu1 %v8875_v56 }
 0x1a9   :  { %847 = vmatprep.subr.mxu0 %v8873_v55  ;;  %918 = vmatprep.subr.mxu1 %v8879_v58 }
 0x1aa   :  { %848 = vmatpush1.msra.mxu0 %v8883_v59  ;;  %919 = vmatpush1.msra.mxu1 %v8889_v61 }
 0x1ab   :  { %849 = vmatprep.subr.mxu0 %v8887_v60  ;;  %920 = vmatprep.subr.mxu1 %v8897_v63 }
 0x1ac   :  { %850 = vmatpush1.msra.mxu0 %v8893_v62  ;;  %921 = vmatpush1.msra.mxu1 %v8903_v2 }
 0x1ad   :  { %851 = vmatprep.subr.mxu0 %v8901_v1  ;;  %922 = vmatprep.subr.mxu1 %v8907_v4 }
 0x1ae   :  { %852 = vmatpush1.msra.mxu0 %v8911_v5  ;;  %923 = vmatpush1.msra.mxu1 %v8917_v7 }
 0x1af   :  { %853 = vmatprep.subr.mxu0 %v8915_v6  ;;  %924 = vmatprep.subr.mxu1 %v8925_v9 }
 0x1b0   :  { %854 = vmatpush1.msra.mxu0 %v8921_v8  ;;  %925 = vmatpush1.msra.mxu1 %v8931_v11 }
 0x1b1   :  { %855 = vmatprep.subr.mxu0 %v8929_v10  ;;  %926 = vmatprep.subr.mxu1 %v8935_v13 }
 0x1b2   :  { %856 = vmatpush1.msra.mxu0 %v8939_v14  ;;  %927 = vmatpush1.msra.mxu1 %v8945_v16 }
 0x1b3   :  { %857 = vmatprep.subr.mxu0 %v8943_v15  ;;  %928 = vmatprep.subr.mxu1 %v8953_v18 }
 0x1b4   :  { %858 = vmatpush1.msra.mxu0 %v8949_v17  ;;  %929 = vmatpush1.msra.mxu1 %v8959_v20 }
 0x1b5   :  { %859 = vmatprep.subr.mxu0 %v8957_v19  ;;  %930 = vmatprep.subr.mxu1 %v8963_v22  ;;  %v12995_v19 = vld [vmem:[#allocation62_spill] sm:$0xff] }
 0x1b6   :  { %860 = vmatpush1.msra.mxu0 %v8967_v23  ;;  %931 = vmatpush1.msra.mxu1 %v8973_v25 }
 0x1b7   :  { %861 = vmatprep.subr.mxu0 %v8971_v24  ;;  %932 = vmatprep.subr.mxu1 %v8981_v27 }
 0x1b8   :  { %862 = vmatpush1.msra.mxu0 %v12950_v0  ;;  %933 = vmatpush1.msra.mxu1 %v12951_v34 }
 0x1b9   :  { %863 = vmatprep.subr.mxu0 %v12952_v26  ;;  %934 = vmatprep.subr.mxu1 %v12953_v29  ;;  %v12963_v26 = vmov 0.0   ;;  %v12964_v29 = vld [vmem:[#allocation57_spill] sm:$0xff] }
 0x1ba   :  { %864 = vmatpush1.msra.mxu0 %v12954_v32  ;;  %935 = vmatpush1.msra.mxu1 %v12955_v48  ;;  %v12965_v48 = vld [vmem:[#allocation34_spill] sm:$0xff] }
 0x1bb   :  { %865 = vmatprep.subr.mxu0 %v12956_v12  ;;  %936 = vmatprep.subr.mxu1 %v12957_v33  ;;  %v12966_v12 = vld [vmem:[#allocation35_spill] sm:$0xff]  ;;  %v385_v33 = vpop.f32.mrf.mxu0 }
 0x1bc   :  { %866 = vmatpush1.msra.mxu0 %v12958_v35  ;;  %937 = vmatpush1.msra.mxu1 %v12959_v30 }
 0x1bd   :  { %867 = vmatprep.subr.mxu0 %v12960_v31  ;;  %938 = vmatprep.subr.mxu1 %v12961_v39  ;;  %v387_v35 = vpop.f32.mrf.mxu0 }
 0x1be   :  { %868 = vmatpush1.msra.mxu0 %v12962_v57  ;;  %901 = vmatprep.mubr.f32.mxu0 %v12963_v26 }
 0x1bf   :  { %939 = vmatpush1.msra.mxu1 %v12964_v29  ;;  %972 = vmatprep.mubr.f32.mxu1 %v12963_v26  ;;  %v9139_v32 = vpop.f32.mrf.mxu0 }
 0x1c0   :  { %1014 = vmatprep.subr.mxu0 %v12965_v48  ;;  %1085 = vmatprep.subr.mxu1 %v12966_v12  ;;  %12967 = vst [vmem:[#allocation65_spill] sm:$0xff] %v9139_v32  ;;  %v12975_v48 = vld [vmem:[#allocation58_spill] sm:$0xff] }
 0x1c1   :  { %v9141_v30 = vpop.f32.mrf.mxu0  ;;  %v9156_v12 = vsub.s32 1, %v12975_v48 }
 0x1c2   :  { %12968 = vst [vmem:[#allocation66_spill] sm:$0xff] %v9141_v30 }
 0x1c3   :  { %v9143_v31 = vpop.f32.mrf.mxu0  ;;  %12976 = vst [vmem:[#allocation58_spill] sm:$0xff] %v9156_v12  ;;  %v9162_v30 = vrot.slane %v9043_v21, %v9156_v12 }
 0x1c4   :  { %12969 = vst [vmem:[#allocation67_spill] sm:$0xff] %v9143_v31 }
 0x1c5   :  { %v9145_v39 = vpop.f32.mrf.mxu0  ;;  %12978 = vst [vmem:[#allocation74_spill] sm:$0xff] %v9162_v30 }
 0x1c6   :  { %12970 = vst [vmem:[#allocation68_spill] sm:$0xff] %v9145_v39 }
 0x1c7   :  { %v9147_v57 = vpop.f32.mrf.mxu0 }
 0x1c8   :  { %12971 = vst [vmem:[#allocation69_spill] sm:$0xff] %v9147_v57  ;;  %v498_v57 = vpop.f32.mrf.mxu1 }
 0x1c9   :  { %v9149_v34 = vpop.f32.mrf.mxu0 }
 0x1ca   :  { %12972 = vst [vmem:[#allocation70_spill] sm:$0xff] %v9149_v34  ;;  %v500_v32 = vpop.f32.mrf.mxu1 }
 0x1cb   :  { %v9151_v29 = vpop.f32.mrf.mxu0 }
 0x1cc   :  { %12973 = vst [vmem:[#allocation71_spill] sm:$0xff] %v9151_v29  ;;  %v9167_v34 = vpop.f32.mrf.mxu1 }
 0x1cd   :  { %v9153_v26 = vpop.f32.mrf.mxu0  ;;  %12980 = vst [vmem:[#allocation76_spill] sm:$0xff] %v9167_v34 }
 0x1ce   :  { %12974 = vst [vmem:[#allocation72_spill] sm:$0xff] %v9153_v26  ;;  %v9169_v29 = vpop.f32.mrf.mxu1 }
 0x1cf   :  { %v9158_v0 = vpop.f32.mrf.mxu0  ;;  %12981 = vst [vmem:[#allocation77_spill] sm:$0xff] %v9169_v29 }
 0x1d0   :  { %12977 = vst [vmem:[#allocation73_spill] sm:$0xff] %v9158_v0  ;;  %v9171_v26 = vpop.f32.mrf.mxu1 }
 0x1d1   :  { %v417_v31 = vpop.f32.mrf.mxu0  ;;  %12982 = vst [vmem:[#allocation78_spill] sm:$0xff] %v9171_v26  ;;  %v12993_v26 = vld [vmem:[#allocation60_spill] sm:$0xff] }
 0x1d2   :  { %v9165_v39 = vadd.f32 %v417_v31, %v9162_v30  ;;  %v9173_v48 = vpop.f32.mrf.mxu1 }
 0x1d3   :  { %12983 = vst [vmem:[#allocation79_spill] sm:$0xff] %v9173_v48  ;;  %v9187_v24 = vpop.f32.mrf.mxu0  ;;  %v386_v48 = vadd.f32 %v385_v33, %v12993_v26 }
 0x1d4   :  { %12979 = vst [vmem:[#allocation75_spill] sm:$0xff] %v9165_v39  ;;  %v9175_v27 = vpop.f32.mrf.mxu1  ;;  %12990 = vst [vmem:[#allocation86_spill] sm:$0xff] %v9187_v24 }
 0x1d5   :  { %12984 = vst [vmem:[#allocation80_spill] sm:$0xff] %v9175_v27  ;;  %v9191_v29 = vpop.f32.mrf.mxu0  ;;  %v388_v27 = vadd.f32 %v387_v35, %v9162_v30 }
 0x1d6   :  { %v9177_v0 = vpop.f32.mrf.mxu1  ;;  %12992 = vst [vmem:[#allocation88_spill] sm:$0xff] %v9191_v29  ;;  %v499_v29 = vadd.f32 %v498_v57, %v9063_v28 }
 0x1d7   :  { %12985 = vst [vmem:[#allocation81_spill] sm:$0xff] %v9177_v0 }
 0x1d8   :  { %v9179_v21 = vpop.f32.mrf.mxu1 }
 0x1d9   :  { %12986 = vst [vmem:[#allocation82_spill] sm:$0xff] %v9179_v21 }
 0x1da   :  { %v9181_v12 = vpop.f32.mrf.mxu1 }
 0x1db   :  { %12987 = vst [vmem:[#allocation83_spill] sm:$0xff] %v9181_v12 }
 0x1dc   :  { %v9183_v31 = vpop.f32.mrf.mxu1 }
 0x1dd   :  { %12988 = vst [vmem:[#allocation84_spill] sm:$0xff] %v9183_v31 }
 0x1de   :  { %v9185_v39 = vpop.f32.mrf.mxu1 }
 0x1df   :  { %12989 = vst [vmem:[#allocation85_spill] sm:$0xff] %v9185_v39 }
 0x1e0   :  { %v9189_v34 = vpop.f32.mrf.mxu1 }
 0x1e1   :  { %12991 = vst [vmem:[#allocation87_spill] sm:$0xff] %v9189_v34  ;;  %v501_v34 = vadd.f32 %v500_v32, %v12995_v19  ;;  %v13000_v32 = vld [vmem:[#allocation39_spill] sm:$0xff] }
 0x1e2   :  { %v9195_v0 = vpop.f32.mrf.mxu1 }
 0x1e3   :  { %12994 = vst [vmem:[#allocation89_spill] sm:$0xff] %v9195_v0  ;;  %v13017_v0 = vld [vmem:[#allocation55_spill] sm:$0xff] }
 0x25f   :  { %v726_v25 = vpop.f32.mrf.mxu0  ;;  %v797_v31 = vpop.f32.mrf.mxu1 }
 0x260   :  { %v802_v21 = vadd.f32 %v726_v25, %v386_v48  ;;  %v804_v17 = vadd.f32 %v797_v31, %v499_v29  ;;  %v12999_v29 = vld [vmem:[#allocation37_spill] sm:$0xff] }
 0x261   :  { %v728_v23 = vpop.f32.mrf.mxu0  ;;  %v799_v24 = vpop.f32.mrf.mxu1  ;;  %v13003_v31 = vld [vmem:[#allocation41_spill] sm:$0xff] }
 0x262   :  { %v7313_v12 = vmul.f32 -1.442695, %v802_v21  ;;  %v803_v22 = vadd.f32 %v728_v23, %v388_v27  ;;  %v805_v20 = vadd.f32 %v799_v24, %v501_v34  ;;  %v13002_v21 = vld [vmem:[#allocation42_spill] sm:$0xff] }
 0x264   :  { %7592 = vpow2.f32 %v7313_v12  ;;  %v7314_v39 = vmul.f32 -1.442695, %v803_v22  ;;  %v7315_v33 = vmul.f32 -1.442695, %v805_v20 }
 0x266   :  { %7594 = vpow2.f32 %v7314_v39 }
 0x267   :  { %7596 = vpow2.f32 %v7315_v33  ;;  %v13004_v33 = vld [vmem:[#allocation44_spill] sm:$0xff] }
 0x271   :  { %v7593_v26 = vpop.eup %7592 }
 0x272   :  { %v809_v35 = vadd.f32 1.0, %v7593_v26 }
 0x273   :  { %v7595_v30 = vpop.eup %7594 }
 0x274   :  { %7598 = vrcp.f32 %v809_v35  ;;  %v815_v25 = vadd.f32 1.0, %v7595_v30  ;;  %v7597_v23 = vpop.eup %7596  ;;  %v13001_v30 = vld [vmem:[#allocation40_spill] sm:$0xff]  ;;  %v13005_v35 = vld [vmem:[#allocation43_spill] sm:$0xff] }
 0x275   :  { %7600 = vtanh.f32 %v804_v17  ;;  %v822_v39 = vadd.f32 1.0, %v7597_v23  ;;  %v12997_v17 = vld [vmem:[#allocation36_spill] sm:$0xff]  ;;  %v13007_v23 = vld [vmem:[#allocation45_spill] sm:$0xff] }
 0x276   :  { %7602 = vrcp.f32 %v815_v25  ;;  %v13006_v25 = vld [vmem:[#allocation46_spill] sm:$0xff] }
 0x277   :  { %7604 = vrcp.f32 %v822_v39  ;;  %v13011_v39 = vld [vmem:[#allocation49_spill] sm:$0xff] }
 0x281   :  { %v7599_v27 = vpop.eup %7598 }
 0x282   :  { %v7601_v22 = vpop.eup %7600 }
 0x283   :  { %v7603_v12 = vpop.eup %7602  ;;  %v826_v48 = vmul.f32 %v7601_v22, %v7599_v27  ;;  %v13008_v27 = vld [vmem:[#allocation47_spill] sm:$0xff]  ;;  %v13009_v22 = vld [vmem:[#allocation48_spill] sm:$0xff] }
 0x284   :  { %v825_v24 = vmul.f32 %v7603_v12, %v9066_v3  ;;  %v7605_v20 = vpop.eup %7604  ;;  %v12998_v3 = vld [vmem:[#allocation38_spill] sm:$0xff] }
 0x285   :  { %v13010_v12 = vld [vmem:[#allocation50_spill] sm:$0xff] }
 0x286   :  { %v9200_v34 = vadd.f32 %v826_v48, %v825_v24  ;;  %v13012_v48 = vld [vmem:[#allocation52_spill] sm:$0xff]  ;;  %v13013_v24 = vld [vmem:[#allocation51_spill] sm:$0xff] }
 0x288   :  { %7606 = vtanh.f32 %v9200_v34 }
 0x295   :  { %v7607_v57 = vpop.eup %7606 }
 0x296   :  { %v9203_v26 = vmul.f32 %v7607_v57, %v7605_v20  ;;  %v13014_v20 = vld [vmem:[#allocation54_spill] sm:$0xff]  ;;  %v13015_v57 = vld [vmem:[#allocation53_spill] sm:$0xff] }
 0x298   :  { %12996 = vst [vmem:[#allocation62_spill] sm:$0xff] %v9203_v26  ;;  %902 = vmatmul.mubr.f32.vlgmr.msra.gmra.mxu0 %v9203_v26  ;;  %973 = vmatmul.mubr.f32.vlgmr.msra.gmra.mxu1 %v9203_v26  ;;  %v13016_v26 = vld [vmem:[#allocation56_spill] sm:$0xff] }
 0x299   :  { %1015 = vmatpush1.msra.mxu0 %v8818_v36  ;;  %1086 = vmatpush1.msra.mxu1 %v8821_v37 }
 0x29a   :  { %1016 = vmatprep.subr.mxu0 %v8824_v38  ;;  %1087 = vmatprep.subr.mxu1 %v8827_v40 }
 0x29b   :  { %1017 = vmatpush1.msra.mxu0 %v8831_v41  ;;  %1088 = vmatpush1.msra.mxu1 %v8833_v42 }
 0x29c   :  { %1018 = vmatprep.subr.mxu0 %v8837_v43  ;;  %1089 = vmatprep.subr.mxu1 %v8839_v44 }
 0x29d   :  { %1019 = vmatpush1.msra.mxu0 %v8843_v45  ;;  %1090 = vmatpush1.msra.mxu1 %v8845_v46 }
 0x29e   :  { %1020 = vmatprep.subr.mxu0 %v8849_v47  ;;  %1091 = vmatprep.subr.mxu1 %v8851_v49 }
 0x29f   :  { %1021 = vmatpush1.msra.mxu0 %v8855_v50  ;;  %1092 = vmatpush1.msra.mxu1 %v8861_v52 }
 0x2a0   :  { %1022 = vmatprep.subr.mxu0 %v8859_v51  ;;  %1093 = vmatprep.subr.mxu1 %v8869_v54 }
 0x2a1   :  { %1023 = vmatpush1.msra.mxu0 %v8865_v53  ;;  %1094 = vmatpush1.msra.mxu1 %v8875_v56 }
 0x2a2   :  { %1024 = vmatprep.subr.mxu0 %v8873_v55  ;;  %1095 = vmatprep.subr.mxu1 %v8879_v58 }
 0x2a3   :  { %1025 = vmatpush1.msra.mxu0 %v8883_v59  ;;  %1096 = vmatpush1.msra.mxu1 %v8889_v61 }
 0x2a4   :  { %1026 = vmatprep.subr.mxu0 %v8887_v60  ;;  %1097 = vmatprep.subr.mxu1 %v8897_v63 }
 0x2a5   :  { %1027 = vmatpush1.msra.mxu0 %v8893_v62  ;;  %1098 = vmatpush1.msra.mxu1 %v8903_v2 }
 0x2a6   :  { %1028 = vmatprep.subr.mxu0 %v8901_v1  ;;  %1099 = vmatprep.subr.mxu1 %v8907_v4 }
 0x2a7   :  { %1029 = vmatpush1.msra.mxu0 %v8911_v5  ;;  %1100 = vmatpush1.msra.mxu1 %v8917_v7 }
 0x2a8   :  { %1030 = vmatprep.subr.mxu0 %v8915_v6  ;;  %1101 = vmatprep.subr.mxu1 %v8925_v9 }
 0x2a9   :  { %1031 = vmatpush1.msra.mxu0 %v8921_v8  ;;  %1102 = vmatpush1.msra.mxu1 %v8931_v11 }
 0x2aa   :  { %1032 = vmatprep.subr.mxu0 %v8929_v10  ;;  %1103 = vmatprep.subr.mxu1 %v8935_v13 }
 0x2ab   :  { %1033 = vmatpush1.msra.mxu0 %v8939_v14  ;;  %1104 = vmatpush1.msra.mxu1 %v8945_v16 }
 0x2ac   :  { %1034 = vmatprep.subr.mxu0 %v8943_v15  ;;  %1105 = vmatprep.subr.mxu1 %v8953_v18 }
 0x2ad   :  { %1035 = vmatpush1.msra.mxu0 %v12997_v17  ;;  %1106 = vmatpush1.msra.mxu1 %v12998_v3 }
 0x2ae   :  { %1036 = vmatprep.subr.mxu0 %v12999_v29  ;;  %1107 = vmatprep.subr.mxu1 %v13000_v32  ;;  %v13027_v32 = vld [vmem:[#allocation76_spill] sm:$0xff] }
 0x2af   :  { %1037 = vmatpush1.msra.mxu0 %v13001_v30  ;;  %1108 = vmatpush1.msra.mxu1 %v13002_v21 }
 0x2b0   :  { %1038 = vmatprep.subr.mxu0 %v13003_v31  ;;  %1109 = vmatprep.subr.mxu1 %v13004_v33 }
 0x2b1   :  { %1039 = vmatpush1.msra.mxu0 %v13005_v35  ;;  %1110 = vmatpush1.msra.mxu1 %v13006_v25  ;;  %v13024_v25 = vld [vmem:[#allocation74_spill] sm:$0xff] }
 0x2b2   :  { %1040 = vmatprep.subr.mxu0 %v13007_v23  ;;  %1111 = vmatprep.subr.mxu1 %v13008_v27  ;;  %v13018_v23 = vmov 0.0   ;;  %v13019_v27 = vld [vmem:[#allocation57_spill] sm:$0xff] }
 0x2b3   :  { %1041 = vmatpush1.msra.mxu0 %v13009_v22  ;;  %1112 = vmatpush1.msra.mxu1 %v13010_v12  ;;  %v13020_v12 = vld [vmem:[#allocation34_spill] sm:$0xff] }
 0x2b4   :  { %1042 = vmatprep.subr.mxu0 %v13011_v39  ;;  %1113 = vmatprep.subr.mxu1 %v13012_v48  ;;  %v13021_v39 = vld [vmem:[#allocation35_spill] sm:$0xff]  ;;  %v13022_v48 = vld [vmem:[#allocation60_spill] sm:$0xff] }
 0x2b5   :  { %1043 = vmatpush1.msra.mxu0 %v13013_v24  ;;  %1114 = vmatpush1.msra.mxu1 %v13014_v20  ;;  %v13023_v24 = vld [vmem:[#allocation65_spill] sm:$0xff] }
 0x2b6   :  { %1044 = vmatprep.subr.mxu0 %v13015_v57  ;;  %1115 = vmatprep.subr.mxu1 %v13016_v26  ;;  %v392_v22 = vadd.f32 %v13023_v24, %v13022_v48  ;;  %v13025_v57 = vld [vmem:[#allocation66_spill] sm:$0xff]  ;;  %v505_v24 = vadd.f32 %v13027_v32, %v9063_v28 }
 0x2b7   :  { %1045 = vmatpush1.msra.mxu0 %v13017_v0  ;;  %1078 = vmatprep.mubr.f32.mxu0 %v13018_v23  ;;  %v394_v35 = vadd.f32 %v13025_v57, %v13024_v25 }
 0x2b8   :  { %1116 = vmatpush1.msra.mxu1 %v13019_v27  ;;  %1149 = vmatprep.mubr.f32.mxu1 %v13018_v23 }
 0x2b9   :  { %1191 = vmatprep.subr.mxu0 %v13020_v12  ;;  %1262 = vmatprep.subr.mxu1 %v13021_v39  ;;  %v13026_v12 = vld [vmem:[#allocation77_spill] sm:$0xff] }
 0x2ba   :  { %v507_v30 = vadd.f32 %v13026_v12, %v12995_v19 }
 0x358   :  { %v903_v20 = vpop.f32.mrf.mxu0  ;;  %v974_v21 = vpop.f32.mrf.mxu1 }
 0x359   :  { %v979_v26 = vadd.f32 %v903_v20, %v392_v22  ;;  %v981_v48 = vadd.f32 %v974_v21, %v505_v24 }
 0x35a   :  { %v905_v33 = vpop.f32.mrf.mxu0  ;;  %v976_v23 = vpop.f32.mrf.mxu1 }
 0x35b   :  { %v7316_v0 = vmul.f32 -1.442695, %v979_v26  ;;  %v980_v31 = vadd.f32 %v905_v33, %v394_v35  ;;  %v982_v39 = vadd.f32 %v976_v23, %v507_v30 }
 0x35d   :  { %7608 = vpow2.f32 %v7316_v0  ;;  %v7317_v27 = vmul.f32 -1.442695, %v980_v31  ;;  %v7318_v29 = vmul.f32 -1.442695, %v982_v39  ;;  %v13055_v39 = vld [vmem:[#allocation68_spill] sm:$0xff] }
 0x35f   :  { %7610 = vpow2.f32 %v7317_v27 }
 0x360   :  { %7612 = vtanh.f32 %v981_v48  ;;  %v400_v48 = vadd.f32 %v13055_v39, %v13024_v25 }
 0x361   :  { %7614 = vpow2.f32 %v7318_v29 }
 0x36a   :  { %v7609_v3 = vpop.eup %7608 }
 0x36b   :  { %v986_v57 = vadd.f32 1.0, %v7609_v3 }
 0x36c   :  { %v7611_v22 = vpop.eup %7610 }
 0x36d   :  { %7616 = vrcp.f32 %v986_v57  ;;  %v992_v0 = vadd.f32 1.0, %v7611_v22  ;;  %v7613_v26 = vpop.eup %7612 }
 0x36e   :  { %v7615_v31 = vpop.eup %7614 }
 0x36f   :  { %7618 = vrcp.f32 %v992_v0  ;;  %v999_v12 = vadd.f32 1.0, %v7615_v31 }
 0x371   :  { %7620 = vrcp.f32 %v999_v12  ;;  %v13057_v12 = vld [vmem:[#allocation78_spill] sm:$0xff] }
 0x37a   :  { %v7617_v33 = vpop.eup %7616 }
 0x37b   :  { %v1003_v35 = vmul.f32 %v7617_v33, %v7613_v26  ;;  %v13056_v33 = vld [vmem:[#allocation79_spill] sm:$0xff] }
 0x37c   :  { %v7619_v27 = vpop.eup %7618 }
 0x37d   :  { %v1002_v30 = vmul.f32 %v7619_v27, %v9200_v34 }
 0x37e   :  { %v7621_v3 = vpop.eup %7620 }
 0x37f   :  { %v9282_v23 = vadd.f32 %v1003_v35, %v1002_v30  ;;  %v513_v35 = vadd.f32 %v13056_v33, %v12995_v19  ;;  %v511_v30 = vadd.f32 %v13057_v12, %v9063_v28  ;;  %v9380_v12 = vld [vmem:[#allocation10 + $0x1d8] sm:$0xff] }
 0x381   :  { %7622 = vtanh.f32 %v9282_v23 }
 0x38e   :  { %v7623_v32 = vpop.eup %7622 }
 0x38f   :  { %v9285_v21 = vmul.f32 %v7623_v32, %v7621_v3 }
 0x391   :  { %13028 = vst [vmem:[#allocation36_spill] sm:$0xff] %v9285_v21  ;;  %1079 = vmatmul.mubr.f32.vlgmr.msra.gmra.mxu0 %v9285_v21  ;;  %1150 = vmatmul.mubr.f32.vlgmr.msra.gmra.mxu1 %v9285_v21  ;;  %v9434_v21 = vld [vmem:[#allocation10 + $0x150] sm:$0xff] }
 0x392   :  { %1192 = vmatpush1.msra.mxu0 %v8818_v36  ;;  %1263 = vmatpush1.msra.mxu1 %v8821_v37  ;;  %v13029_v36 = vld [vmem:[#allocation38_spill] sm:$0xff]  ;;  %v13030_v37 = vld [vmem:[#allocation37_spill] sm:$0xff] }
 0x393   :  { %1193 = vmatprep.subr.mxu0 %v8824_v38  ;;  %1264 = vmatprep.subr.mxu1 %v8827_v40  ;;  %v13031_v38 = vld [vmem:[#allocation39_spill] sm:$0xff]  ;;  %v13032_v40 = vld [vmem:[#allocation40_spill] sm:$0xff] }
 0x394   :  { %1194 = vmatpush1.msra.mxu0 %v8831_v41  ;;  %1265 = vmatpush1.msra.mxu1 %v8833_v42  ;;  %v13033_v41 = vld [vmem:[#allocation42_spill] sm:$0xff]  ;;  %v13034_v42 = vld [vmem:[#allocation41_spill] sm:$0xff] }
 0x395   :  { %1195 = vmatprep.subr.mxu0 %v8837_v43  ;;  %1266 = vmatprep.subr.mxu1 %v8839_v44  ;;  %v13035_v43 = vld [vmem:[#allocation44_spill] sm:$0xff]  ;;  %v13036_v44 = vld [vmem:[#allocation43_spill] sm:$0xff] }
 0x396   :  { %1196 = vmatpush1.msra.mxu0 %v8843_v45  ;;  %1267 = vmatpush1.msra.mxu1 %v8845_v46  ;;  %v13037_v45 = vld [vmem:[#allocation46_spill] sm:$0xff]  ;;  %v13038_v46 = vld [vmem:[#allocation45_spill] sm:$0xff] }
 0x397   :  { %1197 = vmatprep.subr.mxu0 %v8849_v47  ;;  %1268 = vmatprep.subr.mxu1 %v8851_v49  ;;  %v13039_v47 = vld [vmem:[#allocation47_spill] sm:$0xff]  ;;  %v13040_v49 = vld [vmem:[#allocation48_spill] sm:$0xff] }
 0x398   :  { %1198 = vmatpush1.msra.mxu0 %v8855_v50  ;;  %1269 = vmatpush1.msra.mxu1 %v8861_v52  ;;  %v13041_v50 = vld [vmem:[#allocation50_spill] sm:$0xff]  ;;  %v13043_v52 = vld [vmem:[#allocation52_spill] sm:$0xff] }
 0x399   :  { %1199 = vmatprep.subr.mxu0 %v8859_v51  ;;  %1270 = vmatprep.subr.mxu1 %v8869_v54  ;;  %v13042_v51 = vld [vmem:[#allocation49_spill] sm:$0xff]  ;;  %v13045_v54 = vld [vmem:[#allocation54_spill] sm:$0xff] }
 0x39a   :  { %1200 = vmatpush1.msra.mxu0 %v8865_v53  ;;  %1271 = vmatpush1.msra.mxu1 %v8875_v56  ;;  %v13044_v53 = vld [vmem:[#allocation51_spill] sm:$0xff]  ;;  %v13047_v56 = vld [vmem:[#allocation56_spill] sm:$0xff] }
 0x39b   :  { %1201 = vmatprep.subr.mxu0 %v8873_v55  ;;  %1272 = vmatprep.subr.mxu1 %v8879_v58  ;;  %v13046_v55 = vld [vmem:[#allocation53_spill] sm:$0xff]  ;;  %v13048_v58 = vld [vmem:[#allocation55_spill] sm:$0xff] }
 0x39c   :  { %1202 = vmatpush1.msra.mxu0 %v8883_v59  ;;  %1273 = vmatpush1.msra.mxu1 %v8889_v61  ;;  %v13049_v59 = vmov 0.0   ;;  %v13051_v61 = vld [vmem:[#allocation34_spill] sm:$0xff] }
 0x39d   :  { %1203 = vmatprep.subr.mxu0 %v8887_v60  ;;  %1274 = vmatprep.subr.mxu1 %v8897_v63  ;;  %v13050_v60 = vld [vmem:[#allocation57_spill] sm:$0xff]  ;;  %v13053_v63 = vld [vmem:[#allocation60_spill] sm:$0xff] }
 0x39e   :  { %1204 = vmatpush1.msra.mxu0 %v8893_v62  ;;  %1275 = vmatpush1.msra.mxu1 %v8903_v2  ;;  %v13052_v62 = vld [vmem:[#allocation35_spill] sm:$0xff] }
 0x39f   :  { %1205 = vmatprep.subr.mxu0 %v8901_v1  ;;  %1276 = vmatprep.subr.mxu1 %v8907_v4  ;;  %v13054_v1 = vld [vmem:[#allocation67_spill] sm:$0xff] }
 0x3a0   :  { %1206 = vmatpush1.msra.mxu0 %v8911_v5  ;;  %1277 = vmatpush1.msra.mxu1 %v8917_v7  ;;  %v398_v34 = vadd.f32 %v13054_v1, %v13053_v63 }
 0x3a1   :  { %1207 = vmatprep.subr.mxu0 %v8915_v6  ;;  %1278 = vmatprep.subr.mxu1 %v8925_v9 }
 0x3a2   :  { %1208 = vmatpush1.msra.mxu0 %v8921_v8  ;;  %1279 = vmatpush1.msra.mxu1 %v8931_v11 }
 0x3a3   :  { %1209 = vmatprep.subr.mxu0 %v8929_v10  ;;  %1280 = vmatprep.subr.mxu1 %v8935_v13 }
 0x3a4   :  { %1210 = vmatpush1.msra.mxu0 %v8939_v14  ;;  %1281 = vmatpush1.msra.mxu1 %v8945_v16 }
 0x3a5   :  { %1211 = vmatprep.subr.mxu0 %v8943_v15  ;;  %1282 = vmatprep.subr.mxu1 %v8953_v18 }
 0x3a6   :  { %1212 = vmatpush1.msra.mxu0 %v12997_v17  ;;  %1283 = vmatpush1.msra.mxu1 %v13029_v36 }
 0x3a7   :  { %1213 = vmatprep.subr.mxu0 %v13030_v37  ;;  %1284 = vmatprep.subr.mxu1 %v13031_v38 }
 0x3a8   :  { %1214 = vmatpush1.msra.mxu0 %v13032_v40  ;;  %1285 = vmatpush1.msra.mxu1 %v13033_v41 }
 0x3a9   :  { %1215 = vmatprep.subr.mxu0 %v13034_v42  ;;  %1286 = vmatprep.subr.mxu1 %v13035_v43 }
 0x3aa   :  { %1216 = vmatpush1.msra.mxu0 %v13036_v44  ;;  %1287 = vmatpush1.msra.mxu1 %v13037_v45 }
 0x3ab   :  { %1217 = vmatprep.subr.mxu0 %v13038_v46  ;;  %1288 = vmatprep.subr.mxu1 %v13039_v47 }
 0x3ac   :  { %1218 = vmatpush1.msra.mxu0 %v13040_v49  ;;  %1289 = vmatpush1.msra.mxu1 %v13041_v50 }
 0x3ad   :  { %1219 = vmatprep.subr.mxu0 %v13042_v51  ;;  %1290 = vmatprep.subr.mxu1 %v13043_v52 }
 0x3ae   :  { %1220 = vmatpush1.msra.mxu0 %v13044_v53  ;;  %1291 = vmatpush1.msra.mxu1 %v13045_v54 }
 0x3af   :  { %1221 = vmatprep.subr.mxu0 %v13046_v55  ;;  %1292 = vmatprep.subr.mxu1 %v13047_v56 }
 0x3b0   :  { %1222 = vmatpush1.msra.mxu0 %v13048_v58  ;;  %1255 = vmatprep.mubr.f32.mxu0 %v13049_v59 }
 0x3b1   :  { %1293 = vmatpush1.msra.mxu1 %v13050_v60  ;;  %1326 = vmatprep.mubr.f32.mxu1 %v13049_v59 }
 0x3b2   :  { %1368 = vmatprep.subr.mxu0 %v13051_v61  ;;  %1439 = vmatprep.subr.mxu1 %v13052_v62 }
 0x451   :  { %v1080_v29 = vpop.f32.mrf.mxu0  ;;  %v1151_v0 = vpop.f32.mrf.mxu1 }
 0x452   :  { %v1156_v20 = vadd.f32 %v1080_v29, %v398_v34  ;;  %v1158_v3 = vadd.f32 %v1151_v0, %v511_v30  ;;  %v9383_v30 = vld [vmem:[#allocation10 + $0x1c0] sm:$0xff] }
 0x453   :  { %v1082_v24 = vpop.f32.mrf.mxu0  ;;  %v1153_v31 = vpop.f32.mrf.mxu1 }
 0x454   :  { %v7319_v57 = vmul.f32 -1.442695, %v1156_v20  ;;  %v1157_v22 = vadd.f32 %v1082_v24, %v400_v48  ;;  %v1159_v27 = vadd.f32 %v1153_v31, %v513_v35  ;;  %v9371_v35 = vld [vmem:[#allocation10 + $0x1e0] sm:$0xff] }
 0x456   :  { %7624 = vpow2.f32 %v7319_v57  ;;  %v7320_v26 = vmul.f32 -1.442695, %v1157_v22  ;;  %v7321_v32 = vmul.f32 -1.442695, %v1159_v27  ;;  %v9374_v27 = vld [vmem:[#allocation10 + $0x1f0] sm:$0xff] }
 0x458   :  { %7626 = vpow2.f32 %v7320_v26 }
 0x459   :  { %7628 = vtanh.f32 %v1158_v3  ;;  %v9386_v3 = vld [vmem:[#allocation10 + $0x1d0] sm:$0xff] }
 0x45a   :  { %7630 = vpow2.f32 %v7321_v32  ;;  %v9389_v32 = vld [vmem:[#allocation10 + $0x1a8] sm:$0xff] }
 0x463   :  { %v7625_v61 = vpop.eup %7624 }
 0x464   :  { %v1163_v62 = vadd.f32 1.0, %v7625_v61  ;;  %v9392_v61 = vld [vmem:[#allocation10 + $0x1b8] sm:$0xff] }
 0x465   :  { %v7627_v1 = vpop.eup %7626 }
 0x466   :  { %7632 = vrcp.f32 %v1163_v62  ;;  %v1169_v34 = vadd.f32 1.0, %v7627_v1  ;;  %v7629_v29 = vpop.eup %7628  ;;  %v9395_v62 = vld [vmem:[#allocation10 + $0x1a0] sm:$0xff]  ;;  %v9398_v1 = vld [vmem:[#allocation10 + $0x1b0] sm:$0xff] }
 0x467   :  { %v7631_v39 = vpop.eup %7630 }
 0x468   :  { %7634 = vrcp.f32 %v1169_v34  ;;  %v1176_v57 = vadd.f32 1.0, %v7631_v39  ;;  %v9401_v34 = vld [vmem:[#allocation10 + $0x188] sm:$0xff]  ;;  %v9407_v39 = vld [vmem:[#allocation10 + $0x180] sm:$0xff] }
 0x46a   :  { %7636 = vrcp.f32 %v1176_v57  ;;  %v9419_v57 = vld [vmem:[#allocation10 + $0x160] sm:$0xff] }
 0x46b   :  { %13059 = vst [vmem:[#allocation74_spill] sm:$0xff] %v9419_v57 }
 0x473   :  { %v7633_v48 = vpop.eup %7632 }
 0x474   :  { %v1180_v20 = vmul.f32 %v7633_v48, %v7629_v29  ;;  %v9404_v29 = vld [vmem:[#allocation10 + $0x198] sm:$0xff]  ;;  %v9410_v48 = vld [vmem:[#allocation10 + $0x190] sm:$0xff] }
 0x475   :  { %v7635_v24 = vpop.eup %7634 }
 0x476   :  { %v1179_v22 = vmul.f32 %v7635_v24, %v9282_v23  ;;  %v9377_v23 = vld [vmem:[#allocation10 + $0x1c8] sm:$0xff]  ;;  %v9416_v24 = vld [vmem:[#allocation10 + $0x178] sm:$0xff] }
 0x477   :  { %v7637_v0 = vpop.eup %7636 }
 0x478   :  { %v9364_v26 = vadd.f32 %v1180_v20, %v1179_v22  ;;  %v9413_v20 = vld [vmem:[#allocation10 + $0x168] sm:$0xff]  ;;  %v9422_v22 = vld [vmem:[#allocation10 + $0x170] sm:$0xff] }
 0x479   :  { %13060 = vst [vmem:[#allocation66_spill] sm:$0xff] %v9422_v22 }
 0x47a   :  { %7638 = vtanh.f32 %v9364_v26 }
 0x487   :  { %v7639_v31 = vpop.eup %7638 }
 0x488   :  { %v9367_v33 = vmul.f32 %v7639_v31, %v7637_v0  ;;  %v9425_v0 = vld [vmem:[#allocation10 + $0x148] sm:$0xff]  ;;  %v9428_v31 = vld [vmem:[#allocation10 + $0x158] sm:$0xff] }
 0x489   :  { %13061 = vst [vmem:[#allocation77_spill] sm:$0xff] %v9425_v0  ;;  %13062 = vst [vmem:[#allocation76_spill] sm:$0xff] %v9428_v31 }
 0x48a   :  { %13058 = vst [vmem:[#allocation65_spill] sm:$0xff] %v9367_v33  ;;  %1256 = vmatmul.mubr.f32.vlgmr.msra.gmra.mxu0 %v9367_v33  ;;  %1327 = vmatmul.mubr.f32.vlgmr.msra.gmra.mxu1 %v9367_v33  ;;  %v9431_v33 = vld [vmem:[#allocation10 + $0x140] sm:$0xff] }
 0x48b   :  { %1369 = vmatpush1.msra.mxu0 %v9371_v35  ;;  %1440 = vmatpush1.msra.mxu1 %v9374_v27 }
 0x48c   :  { %1370 = vmatprep.subr.mxu0 %v9377_v23  ;;  %1441 = vmatprep.subr.mxu1 %v9380_v12 }
 0x48d   :  { %1371 = vmatpush1.msra.mxu0 %v9383_v30  ;;  %1442 = vmatpush1.msra.mxu1 %v9386_v3 }
 0x48e   :  { %1372 = vmatprep.subr.mxu0 %v9389_v32  ;;  %1443 = vmatprep.subr.mxu1 %v9392_v61 }
 0x48f   :  { %1373 = vmatpush1.msra.mxu0 %v9395_v62  ;;  %1444 = vmatpush1.msra.mxu1 %v9398_v1 }
 0x490   :  { %1374 = vmatprep.subr.mxu0 %v9401_v34  ;;  %1445 = vmatprep.subr.mxu1 %v9404_v29 }
 0x491   :  { %1375 = vmatpush1.msra.mxu0 %v9407_v39  ;;  %1446 = vmatpush1.msra.mxu1 %v9410_v48 }
 0x492   :  { %1376 = vmatprep.subr.mxu0 %v9413_v20  ;;  %1447 = vmatprep.subr.mxu1 %v9416_v24 }
 0x493   :  { %1377 = vmatpush1.msra.mxu0 %v9419_v57  ;;  %1448 = vmatpush1.msra.mxu1 %v9422_v22  ;;  %v9437_v57 = vld [vmem:[#allocation10 + $0x128] sm:$0xff]  ;;  %v9440_v22 = vld [vmem:[#allocation10 + $0x138] sm:$0xff] }
 0x494   :  { %1378 = vmatprep.subr.mxu0 %v9425_v0  ;;  %1449 = vmatprep.subr.mxu1 %v9428_v31  ;;  %v9443_v0 = vld [vmem:[#allocation10 + $0x120] sm:$0xff]  ;;  %v9447_v31 = vld [vmem:[#allocation10 + $0x108] sm:$0xff] }
 0x495   :  { %1379 = vmatpush1.msra.mxu0 %v9431_v33  ;;  %1450 = vmatpush1.msra.mxu1 %v9434_v21 }
 0x496   :  { %1380 = vmatprep.subr.mxu0 %v9437_v57  ;;  %1451 = vmatprep.subr.mxu1 %v9440_v22 }
 0x497   :  { %1381 = vmatpush1.msra.mxu0 %v9443_v0  ;;  %1452 = vmatpush1.msra.mxu1 %v8903_v2  ;;  %v9487_v2 = vld [vmem:[#allocation10 + $0x1e8] sm:$0xff] }
 0x498   :  { %1382 = vmatprep.subr.mxu0 %v9447_v31  ;;  %1453 = vmatprep.subr.mxu1 %v8907_v4  ;;  %v9490_v4 = vld [vmem:[#allocation10 + $0x1f8] sm:$0xff] }
 0x499   :  { %1383 = vmatpush1.msra.mxu0 %v8911_v5  ;;  %1454 = vmatpush1.msra.mxu1 %v8917_v7  ;;  %v13063_v5 = vld [vmem:[#allocation69_spill] sm:$0xff] }
 0x49a   :  { %1384 = vmatprep.subr.mxu0 %v8915_v6  ;;  %1455 = vmatprep.subr.mxu1 %v8925_v9  ;;  %v404_v6 = vadd.f32 %v13063_v5, %v13053_v63  ;;  %v13069_v5 = vld [vmem:[#allocation66_spill] sm:$0xff] }
 0x49b   :  { %1385 = vmatpush1.msra.mxu0 %v8921_v8  ;;  %1456 = vmatpush1.msra.mxu1 %v8931_v11  ;;  %v13064_v8 = vld [vmem:[#allocation70_spill] sm:$0xff] }
 0x49c   :  { %1386 = vmatprep.subr.mxu0 %v8929_v10  ;;  %1457 = vmatprep.subr.mxu1 %v8935_v13  ;;  %v406_v9 = vadd.f32 %v13064_v8, %v13024_v25  ;;  %v9534_v8 = vld [vmem:[#allocation10 + $0x130] sm:$0xff] }
 0x49d   :  { %1387 = vmatpush1.msra.mxu0 %v8939_v14  ;;  %1458 = vmatpush1.msra.mxu1 %v8945_v16 }
 0x49e   :  { %1388 = vmatprep.subr.mxu0 %v8943_v15  ;;  %1459 = vmatprep.subr.mxu1 %v8953_v18 }
 0x49f   :  { %1389 = vmatpush1.msra.mxu0 %v12997_v17  ;;  %1460 = vmatpush1.msra.mxu1 %v13029_v36  ;;  %v13065_v17 = vld [vmem:[#allocation81_spill] sm:$0xff] }
 0x4a0   :  { %1390 = vmatprep.subr.mxu0 %v13030_v37  ;;  %1461 = vmatprep.subr.mxu1 %v13031_v38  ;;  %v519_v36 = vadd.f32 %v13065_v17, %v12995_v19  ;;  %v13066_v38 = vld [vmem:[#allocation80_spill] sm:$0xff] }
 0x4a1   :  { %1391 = vmatpush1.msra.mxu0 %v13032_v40  ;;  %1462 = vmatpush1.msra.mxu1 %v13033_v41  ;;  %v517_v40 = vadd.f32 %v13066_v38, %v9063_v28  ;;  %v9562_v17 = vld [vmem:[#allocation10 + $0xd8] sm:$0xff]  ;;  %v9571_v38 = vld [vmem:[#allocation10 + $0xa8] sm:$0xff] }
 0x4a2   :  { %1392 = vmatprep.subr.mxu0 %v13034_v42  ;;  %1463 = vmatprep.subr.mxu1 %v13035_v43 }
 0x4a3   :  { %1393 = vmatpush1.msra.mxu0 %v13036_v44  ;;  %1464 = vmatpush1.msra.mxu1 %v13037_v45 }
 0x4a4   :  { %1394 = vmatprep.subr.mxu0 %v13038_v46  ;;  %1465 = vmatprep.subr.mxu1 %v13039_v47 }
 0x4a5   :  { %1395 = vmatpush1.msra.mxu0 %v13040_v49  ;;  %1466 = vmatpush1.msra.mxu1 %v13041_v50 }
 0x4a6   :  { %1396 = vmatprep.subr.mxu0 %v13042_v51  ;;  %1467 = vmatprep.subr.mxu1 %v13043_v52 }
 0x4a7   :  { %1397 = vmatpush1.msra.mxu0 %v13044_v53  ;;  %1468 = vmatpush1.msra.mxu1 %v13045_v54 }
 0x4a8   :  { %1398 = vmatprep.subr.mxu0 %v13046_v55  ;;  %1469 = vmatprep.subr.mxu1 %v13047_v56 }
 0x4a9   :  { %1399 = vmatpush1.msra.mxu0 %v13048_v58  ;;  %1432 = vmatprep.mubr.f32.mxu0 %v13049_v59 }
 0x4aa   :  { %1470 = vmatpush1.msra.mxu1 %v13050_v60  ;;  %1503 = vmatprep.mubr.f32.mxu1 %v13049_v59 }
 0x4ab   :  { %1545 = vmatprep.subr.mxu0 %v9487_v2  ;;  %1616 = vmatprep.subr.mxu1 %v9490_v4 }
 0x54a   :  { %v1257_v7 = vpop.f32.mrf.mxu0  ;;  %v1328_v15 = vpop.f32.mrf.mxu1 }
 0x54b   :  { %v1333_v10 = vadd.f32 %v1257_v7, %v404_v6  ;;  %v1335_v41 = vadd.f32 %v1328_v15, %v517_v40  ;;  %v13070_v6 = vld [vmem:[#allocation77_spill] sm:$0xff]  ;;  %v13071_v7 = vld [vmem:[#allocation76_spill] sm:$0xff] }
 0x54c   :  { %v1259_v11 = vpop.f32.mrf.mxu0  ;;  %v1330_v18 = vpop.f32.mrf.mxu1  ;;  %v9553_v15 = vld [vmem:[#allocation10 + $0xe0] sm:$0xff]  ;;  %v9574_v40 = vld [vmem:[#allocation10 + $0xb8] sm:$0xff] }
 0x54d   :  { %v7322_v13 = vmul.f32 -1.442695, %v1333_v10  ;;  %v1334_v14 = vadd.f32 %v1259_v11, %v406_v9  ;;  %v1336_v37 = vadd.f32 %v1330_v18, %v519_v36  ;;  %v9538_v9 = vld [vmem:[#allocation10 + $0x118] sm:$0xff]  ;;  %v9541_v10 = vld [vmem:[#allocation10 + $0x100] sm:$0xff]  ;;  %v9544_v11 = vld [vmem:[#allocation10 + $0x110] sm:$0xff] }
 0x54e   :  { %v9559_v18 = vld [vmem:[#allocation10 + $0xc8] sm:$0xff]  ;;  %v9565_v36 = vld [vmem:[#allocation10 + $0xc0] sm:$0xff] }
 0x54f   :  { %7640 = vpow2.f32 %v7322_v13  ;;  %v7323_v16 = vmul.f32 -1.442695, %v1334_v14  ;;  %v7324_v42 = vmul.f32 -1.442695, %v1336_v37  ;;  %v9547_v13 = vld [vmem:[#allocation10 + $0xe8] sm:$0xff]  ;;  %v9550_v14 = vld [vmem:[#allocation10 + $0xf8] sm:$0xff] }
 0x550   :  { %v9568_v37 = vld [vmem:[#allocation10 + $0xd0] sm:$0xff] }
 0x551   :  { %7642 = vpow2.f32 %v7323_v16  ;;  %v9556_v16 = vld [vmem:[#allocation10 + $0xf0] sm:$0xff] }
 0x552   :  { %7644 = vtanh.f32 %v1335_v41  ;;  %v9577_v41 = vld [vmem:[#allocation10 + $0xa0] sm:$0xff] }
 0x553   :  { %7646 = vpow2.f32 %v7324_v42  ;;  %v9580_v42 = vld [vmem:[#allocation10 + $0xb0] sm:$0xff] }
 0x554   :  { %13072 = vst [vmem:[#allocation37_spill] sm:$0xff] %v9580_v42 }
 0x55c   :  { %v7641_v43 = vpop.eup %7640 }
 0x55d   :  { %v1340_v44 = vadd.f32 1.0, %v7641_v43  ;;  %v9583_v43 = vld [vmem:[#allocation10 + $0x88] sm:$0xff] }
 0x55e   :  { %v7643_v45 = vpop.eup %7642  ;;  %13073 = vst [vmem:[#allocation39_spill] sm:$0xff] %v9583_v43 }
 0x55f   :  { %7648 = vrcp.f32 %v1340_v44  ;;  %v1346_v46 = vadd.f32 1.0, %v7643_v45  ;;  %v7645_v47 = vpop.eup %7644  ;;  %v9586_v44 = vld [vmem:[#allocation10 + $0x98] sm:$0xff]  ;;  %v9589_v45 = vld [vmem:[#allocation10 + $0x80] sm:$0xff] }
 0x560   :  { %v7647_v49 = vpop.eup %7646  ;;  %13074 = vst [vmem:[#allocation40_spill] sm:$0xff] %v9586_v44  ;;  %13075 = vst [vmem:[#allocation42_spill] sm:$0xff] %v9589_v45 }
 0x561   :  { %7650 = vrcp.f32 %v1346_v46  ;;  %v1353_v53 = vadd.f32 1.0, %v7647_v49  ;;  %v9592_v46 = vld [vmem:[#allocation10 + $0x90] sm:$0xff]  ;;  %v9598_v49 = vld [vmem:[#allocation10 + $0x78] sm:$0xff] }
 0x562   :  { %13076 = vst [vmem:[#allocation41_spill] sm:$0xff] %v9592_v46  ;;  %13078 = vst [vmem:[#allocation43_spill] sm:$0xff] %v9598_v49 }
 0x563   :  { %7652 = vrcp.f32 %v1353_v53  ;;  %v9610_v53 = vld [vmem:[#allocation10 + $0x58] sm:$0xff] }
 0x564   :  { %13082 = vst [vmem:[#allocation48_spill] sm:$0xff] %v9610_v53 }
 0x56c   :  { %v7649_v50 = vpop.eup %7648 }
 0x56d   :  { %v1357_v51 = vmul.f32 %v7649_v50, %v7645_v47  ;;  %v9595_v47 = vld [vmem:[#allocation10 + $0x68] sm:$0xff]  ;;  %v9601_v50 = vld [vmem:[#allocation10 + $0x60] sm:$0xff] }
 0x56e   :  { %v7651_v52 = vpop.eup %7650  ;;  %13077 = vst [vmem:[#allocation44_spill] sm:$0xff] %v9595_v47  ;;  %13079 = vst [vmem:[#allocation46_spill] sm:$0xff] %v9601_v50 }
 0x56f   :  { %v1356_v54 = vmul.f32 %v7651_v52, %v9364_v26  ;;  %v13068_v26 = vld [vmem:[#allocation74_spill] sm:$0xff] }
 0x570   :  { %v7653_v56 = vpop.eup %7652  ;;  %v9607_v52 = vld [vmem:[#allocation10 + $0x48] sm:$0xff] }
 0x571   :  { %v9502_v55 = vadd.f32 %v1357_v51, %v1356_v54  ;;  %v9604_v51 = vld [vmem:[#allocation10 + $0x70] sm:$0xff]  ;;  %13081 = vst [vmem:[#allocation47_spill] sm:$0xff] %v9607_v52  ;;  %v9613_v54 = vld [vmem:[#allocation10 + $0x40] sm:$0xff] }
 0x572   :  { %13080 = vst [vmem:[#allocation45_spill] sm:$0xff] %v9604_v51  ;;  %13083 = vst [vmem:[#allocation50_spill] sm:$0xff] %v9613_v54 }
 0x573   :  { %7654 = vtanh.f32 %v9502_v55 }
 0x580   :  { %v7655_v58 = vpop.eup %7654 }
 0x581   :  { %v9505_v60 = vmul.f32 %v7655_v58, %v7653_v56  ;;  %v9616_v56 = vld [vmem:[#allocation10 + $0x50] sm:$0xff]  ;;  %v9619_v58 = vld [vmem:[#allocation10 + $0x28] sm:$0xff] }
 0x582   :  { %13084 = vst [vmem:[#allocation49_spill] sm:$0xff] %v9616_v56  ;;  %13085 = vst [vmem:[#allocation52_spill] sm:$0xff] %v9619_v58 }
 0x583   :  { %13067 = vst [vmem:[#allocation38_spill] sm:$0xff] %v9505_v60  ;;  %1433 = vmatmul.mubr.f32.vlgmr.msra.gmra.mxu0 %v9505_v60  ;;  %1504 = vmatmul.mubr.f32.vlgmr.msra.gmra.mxu1 %v9505_v60  ;;  %v9622_v60 = vld [vmem:[#allocation10 + $0x38] sm:$0xff] }
 0x584   :  { %1546 = vmatpush1.msra.mxu0 %v9371_v35  ;;  %1617 = vmatpush1.msra.mxu1 %v9374_v27  ;;  %13086 = vst [vmem:[#allocation51_spill] sm:$0xff] %v9622_v60 }
 0x585   :  { %1547 = vmatprep.subr.mxu0 %v9377_v23  ;;  %1618 = vmatprep.subr.mxu1 %v9380_v12 }
 0x586   :  { %1548 = vmatpush1.msra.mxu0 %v9383_v30  ;;  %1619 = vmatpush1.msra.mxu1 %v9386_v3 }
 0x587   :  { %1549 = vmatprep.subr.mxu0 %v9389_v32  ;;  %1620 = vmatprep.subr.mxu1 %v9392_v61 }
 0x588   :  { %1550 = vmatpush1.msra.mxu0 %v9395_v62  ;;  %1621 = vmatpush1.msra.mxu1 %v9398_v1 }
 0x589   :  { %1551 = vmatprep.subr.mxu0 %v9401_v34  ;;  %1622 = vmatprep.subr.mxu1 %v9404_v29 }
 0x58a   :  { %1552 = vmatpush1.msra.mxu0 %v9407_v39  ;;  %1623 = vmatpush1.msra.mxu1 %v9410_v48 }
 0x58b   :  { %1553 = vmatprep.subr.mxu0 %v9413_v20  ;;  %1624 = vmatprep.subr.mxu1 %v9416_v24 }
 0x58c   :  { %1554 = vmatpush1.msra.mxu0 %v13068_v26  ;;  %1625 = vmatpush1.msra.mxu1 %v13069_v5 }
 0x58d   :  { %1555 = vmatprep.subr.mxu0 %v13070_v6  ;;  %1626 = vmatprep.subr.mxu1 %v13071_v7 }
 0x58e   :  { %1556 = vmatpush1.msra.mxu0 %v9431_v33  ;;  %1627 = vmatpush1.msra.mxu1 %v9434_v21 }
 0x58f   :  { %1557 = vmatprep.subr.mxu0 %v9437_v57  ;;  %1628 = vmatprep.subr.mxu1 %v9440_v22 }
 0x590   :  { %1558 = vmatpush1.msra.mxu0 %v9443_v0  ;;  %1629 = vmatpush1.msra.mxu1 %v9534_v8 }
 0x591   :  { %1559 = vmatprep.subr.mxu0 %v9447_v31  ;;  %1630 = vmatprep.subr.mxu1 %v9538_v9 }
 0x592   :  { %1560 = vmatpush1.msra.mxu0 %v9541_v10  ;;  %1631 = vmatpush1.msra.mxu1 %v9544_v11 }
 0x593   :  { %1561 = vmatprep.subr.mxu0 %v9547_v13  ;;  %1632 = vmatprep.subr.mxu1 %v9550_v14 }
 0x594   :  { %1562 = vmatpush1.msra.mxu0 %v9553_v15  ;;  %1633 = vmatpush1.msra.mxu1 %v9556_v16 }
 0x595   :  { %1563 = vmatprep.subr.mxu0 %v9559_v18  ;;  %1634 = vmatprep.subr.mxu1 %v9562_v17 }
 0x596   :  { %1564 = vmatpush1.msra.mxu0 %v9565_v36  ;;  %1635 = vmatpush1.msra.mxu1 %v9568_v37 }
 0x597   :  { %1565 = vmatprep.subr.mxu0 %v9571_v38  ;;  %1636 = vmatprep.subr.mxu1 %v9574_v40 }
 0x598   :  { %1566 = vmatpush1.msra.mxu0 %v9577_v41  ;;  %1637 = vmatpush1.msra.mxu1 %v9580_v42 }
 0x599   :  { %1567 = vmatprep.subr.mxu0 %v9583_v43  ;;  %1638 = vmatprep.subr.mxu1 %v9586_v44  ;;  %v13096_v44 = vld [vmem:[#allocation82_spill] sm:$0xff] }
 0x59a   :  { %1568 = vmatpush1.msra.mxu0 %v9589_v45  ;;  %1639 = vmatpush1.msra.mxu1 %v9592_v46 }
 0x59b   :  { %1569 = vmatprep.subr.mxu0 %v9595_v47  ;;  %1640 = vmatprep.subr.mxu1 %v9598_v49 }
 0x59c   :  { %1570 = vmatpush1.msra.mxu0 %v9601_v50  ;;  %1641 = vmatpush1.msra.mxu1 %v9604_v51 }
 0x59d   :  { %1571 = vmatprep.subr.mxu0 %v9607_v52  ;;  %1642 = vmatprep.subr.mxu1 %v9610_v53  ;;  %v9625_v52 = vld [vmem:[#allocation10 + $0x20] sm:$0xff]  ;;  %v9628_v53 = vld [vmem:[#allocation10 + $0x30] sm:$0xff] }
 0x59e   :  { %1572 = vmatpush1.msra.mxu0 %v9613_v54  ;;  %1643 = vmatpush1.msra.mxu1 %v9616_v56  ;;  %13087 = vst [vmem:[#allocation54_spill] sm:$0xff] %v9625_v52  ;;  %13088 = vst [vmem:[#allocation53_spill] sm:$0xff] %v9628_v53  ;;  %v9631_v54 = vld [vmem:[#allocation10 + $0x8] sm:$0xff]  ;;  %v9634_v56 = vld [vmem:[#allocation10 + $0x18] sm:$0xff] }
 0x59f   :  { %1573 = vmatprep.subr.mxu0 %v9619_v58  ;;  %1644 = vmatprep.subr.mxu1 %v9622_v60  ;;  %13089 = vst [vmem:[#allocation56_spill] sm:$0xff] %v9631_v54  ;;  %13090 = vst [vmem:[#allocation55_spill] sm:$0xff] %v9634_v56  ;;  %v9637_v58 = vld [vmem:[#allocation10] sm:$0xff]  ;;  %v9641_v60 = vld [vmem:[#allocation10 + $0x10] sm:$0xff] }
 0x5a0   :  { %1574 = vmatpush1.msra.mxu0 %v9625_v52  ;;  %1645 = vmatpush1.msra.mxu1 %v9628_v53  ;;  %13091 = vst [vmem:[#allocation57_spill] sm:$0xff] %v9637_v58  ;;  %13092 = vst [vmem:[#allocation34_spill] sm:$0xff] %v9641_v60  ;;  %v13094_v52 = vld [vmem:[#allocation72_spill] sm:$0xff] }
 0x5a1   :  { %1575 = vmatprep.subr.mxu0 %v9631_v54  ;;  %1646 = vmatprep.subr.mxu1 %v9634_v56  ;;  %v13093_v54 = vld [vmem:[#allocation71_spill] sm:$0xff]  ;;  %v412_v51 = vadd.f32 %v13094_v52, %v13024_v25 }
 0x5a2   :  { %1576 = vmatpush1.msra.mxu0 %v9637_v58  ;;  %1609 = vmatprep.mubr.f32.mxu0 %v13049_v59  ;;  %v410_v53 = vadd.f32 %v13093_v54, %v13053_v63  ;;  %v523_v54 = vadd.f32 %v13096_v44, %v9063_v28 }
 0x5a3   :  { %1647 = vmatpush1.msra.mxu1 %v9641_v60  ;;  %1680 = vmatprep.mubr.f32.mxu1 %v13049_v59 }
 0x5a4   :  { %1722 = vmatprep.subr.mxu0 %v9487_v2  ;;  %1793 = vmatprep.subr.mxu1 %v9490_v4  ;;  %v13095_v2 = vld [vmem:[#allocation83_spill] sm:$0xff] }
 0x5a5   :  { %v525_v45 = vadd.f32 %v13095_v2, %v12995_v19 }
 0x643   :  { %v1434_v56 = vpop.f32.mrf.mxu0  ;;  %v1505_v46 = vpop.f32.mrf.mxu1 }
 0x644   :  { %v1510_v58 = vadd.f32 %v1434_v56, %v410_v53  ;;  %v1512_v63 = vadd.f32 %v1505_v46, %v523_v54 }
 0x645   :  { %v1436_v50 = vpop.f32.mrf.mxu0  ;;  %v1507_v59 = vpop.f32.mrf.mxu1 }
 0x646   :  { %v7325_v49 = vmul.f32 -1.442695, %v1510_v58  ;;  %v1511_v47 = vadd.f32 %v1436_v50, %v412_v51  ;;  %v1513_v4 = vadd.f32 %v1507_v59, %v525_v45 }
 0x648   :  { %7656 = vpow2.f32 %v7325_v49  ;;  %v7326_v60 = vmul.f32 -1.442695, %v1511_v47  ;;  %v7327_v43 = vmul.f32 -1.442695, %v1513_v4 }
 0x64a   :  { %7658 = vpow2.f32 %v7326_v60 }
 0x64b   :  { %7660 = vtanh.f32 %v1512_v63 }
 0x64c   :  { %7662 = vpow2.f32 %v7327_v43 }
 0x655   :  { %v7657_v42 = vpop.eup %7656 }
 0x656   :  { %v1517_v52 = vadd.f32 1.0, %v7657_v42 }
 0x657   :  { %v7659_v53 = vpop.eup %7658 }
 0x658   :  { %7664 = vrcp.f32 %v1517_v52  ;;  %v1523_v49 = vadd.f32 1.0, %v7659_v53  ;;  %v7661_v47 = vpop.eup %7660 }
 0x659   :  { %v7663_v60 = vpop.eup %7662 }
 0x65a   :  { %7666 = vrcp.f32 %v1523_v49  ;;  %v1530_v58 = vadd.f32 1.0, %v7663_v60 }
 0x65c   :  { %7668 = vrcp.f32 %v1530_v58 }
 0x665   :  { %v7665_v50 = vpop.eup %7664 }
 0x666   :  { %v1534_v51 = vmul.f32 %v7665_v50, %v7661_v47 }
 0x667   :  { %v7667_v56 = vpop.eup %7666 }
 0x668   :  { %v1533_v59 = vmul.f32 %v7667_v56, %v9502_v55  ;;  %v1923_v55 = vld [vmem:[#allocation11 + $0xe8] sm:$0xff] }
 0x669   :  { %v7669_v42 = vpop.eup %7668 }
 0x66a   :  { %v9656_v45 = vadd.f32 %v1534_v51, %v1533_v59 }
 0x66c   :  { %7670 = vtanh.f32 %v9656_v45 }
 0x679   :  { %v7671_v63 = vpop.eup %7670 }
 0x67a   :  { %v9659_v44 = vmul.f32 %v7671_v63, %v7669_v42  ;;  %v1922_v63 = vld [vmem:[#allocation11 + $0xe0] sm:$0xff] }
 0x67c   :  { %13097 = vst [vmem:[#allocation35_spill] sm:$0xff] %v9659_v44  ;;  %1610 = vmatmul.mubr.f32.vlgmr.msra.gmra.mxu0 %v9659_v44  ;;  %1681 = vmatmul.mubr.f32.vlgmr.msra.gmra.mxu1 %v9659_v44  ;;  %v9942_v44 = vld [vmem:[#allocation13 + $0x38] sm:$0xff] }
 0x67d   :  { %1723 = vmatpush1.msra.mxu0 %v9371_v35  ;;  %1794 = vmatpush1.msra.mxu1 %v9374_v27  ;;  %v13100_v35 = vld [vmem:[#allocation40_spill] sm:$0xff]  ;;  %v13101_v27 = vld [vmem:[#allocation42_spill] sm:$0xff] }
 0x67e   :  { %1724 = vmatprep.subr.mxu0 %v9377_v23  ;;  %1795 = vmatprep.subr.mxu1 %v9380_v12  ;;  %v13102_v23 = vld [vmem:[#allocation41_spill] sm:$0xff]  ;;  %v13103_v12 = vld [vmem:[#allocation44_spill] sm:$0xff] }
 0x67f   :  { %1725 = vmatpush1.msra.mxu0 %v9383_v30  ;;  %1796 = vmatpush1.msra.mxu1 %v9386_v3  ;;  %v13104_v30 = vld [vmem:[#allocation43_spill] sm:$0xff]  ;;  %v13105_v3 = vld [vmem:[#allocation46_spill] sm:$0xff] }
 0x680   :  { %1726 = vmatprep.subr.mxu0 %v9389_v32  ;;  %1797 = vmatprep.subr.mxu1 %v9392_v61  ;;  %v13106_v32 = vld [vmem:[#allocation45_spill] sm:$0xff]  ;;  %v13107_v61 = vld [vmem:[#allocation47_spill] sm:$0xff] }
 0x681   :  { %1727 = vmatpush1.msra.mxu0 %v9395_v62  ;;  %1798 = vmatpush1.msra.mxu1 %v9398_v1  ;;  %v13108_v62 = vld [vmem:[#allocation48_spill] sm:$0xff]  ;;  %v13109_v1 = vld [vmem:[#allocation50_spill] sm:$0xff] }
 0x682   :  { %1728 = vmatprep.subr.mxu0 %v9401_v34  ;;  %1799 = vmatprep.subr.mxu1 %v9404_v29  ;;  %v13110_v34 = vld [vmem:[#allocation49_spill] sm:$0xff]  ;;  %v13111_v29 = vld [vmem:[#allocation52_spill] sm:$0xff] }
 0x683   :  { %1729 = vmatpush1.msra.mxu0 %v9407_v39  ;;  %1800 = vmatpush1.msra.mxu1 %v9410_v48  ;;  %v13112_v39 = vld [vmem:[#allocation51_spill] sm:$0xff]  ;;  %v13113_v48 = vld [vmem:[#allocation54_spill] sm:$0xff] }
 0x684   :  { %1730 = vmatprep.subr.mxu0 %v9413_v20  ;;  %1801 = vmatprep.subr.mxu1 %v9416_v24  ;;  %v13114_v20 = vld [vmem:[#allocation53_spill] sm:$0xff]  ;;  %v13115_v24 = vld [vmem:[#allocation56_spill] sm:$0xff] }
 0x685   :  { %1731 = vmatpush1.msra.mxu0 %v13068_v26  ;;  %1802 = vmatpush1.msra.mxu1 %v13069_v5  ;;  %v1925_v26 = vld [vmem:[#allocation11 + $0xf8] sm:$0xff] }
 0x686   :  { %1732 = vmatprep.subr.mxu0 %v13070_v6  ;;  %1803 = vmatprep.subr.mxu1 %v13071_v7  ;;  %v13120_v5 = vld [vmem:[#allocation60_spill] sm:$0xff]  ;;  %v13121_v6 = vld [vmem:[#allocation73_spill] sm:$0xff] }
 0x687   :  { %1733 = vmatpush1.msra.mxu0 %v9431_v33  ;;  %1804 = vmatpush1.msra.mxu1 %v9434_v21  ;;  %v13098_v21 = vld [vmem:[#allocation37_spill] sm:$0xff]  ;;  %v13099_v33 = vld [vmem:[#allocation39_spill] sm:$0xff]  ;;  %v416_v7 = vadd.f32 %v13121_v6, %v13120_v5  ;;  %v1895_v6 = vld [vmem:[#allocation11 + $0x8] sm:$0xff] }
 0x688   :  { %1734 = vmatprep.subr.mxu0 %v9437_v57  ;;  %1805 = vmatprep.subr.mxu1 %v9440_v22  ;;  %v13116_v57 = vld [vmem:[#allocation55_spill] sm:$0xff]  ;;  %v13117_v22 = vld [vmem:[#allocation57_spill] sm:$0xff]  ;;  %13141 = vst [vmem:[#allocation37_spill] sm:$0xff] %v9942_v44 }
 0x689   :  { %1735 = vmatpush1.msra.mxu0 %v9443_v0  ;;  %1806 = vmatpush1.msra.mxu1 %v9534_v8  ;;  %v13118_v0 = vmov 0.0  }
 0x68a   :  { %1736 = vmatprep.subr.mxu0 %v9447_v31  ;;  %1807 = vmatprep.subr.mxu1 %v9538_v9  ;;  %v13119_v31 = vld [vmem:[#allocation34_spill] sm:$0xff] }
 0x68b   :  { %1737 = vmatpush1.msra.mxu0 %v9541_v10  ;;  %1808 = vmatpush1.msra.mxu1 %v9544_v11 }
 0x68c   :  { %1738 = vmatprep.subr.mxu0 %v9547_v13  ;;  %1809 = vmatprep.subr.mxu1 %v9550_v14  ;;  %v13122_v13 = vld [vmem:[#allocation75_spill] sm:$0xff] }
 0x68d   :  { %1739 = vmatpush1.msra.mxu0 %v9553_v15  ;;  %1810 = vmatpush1.msra.mxu1 %v9556_v16 }
 0x68e   :  { %1740 = vmatprep.subr.mxu0 %v9559_v18  ;;  %1811 = vmatprep.subr.mxu1 %v9562_v17  ;;  %v13123_v17 = vld [vmem:[#allocation85_spill] sm:$0xff] }
 0x68f   :  { %1741 = vmatpush1.msra.mxu0 %v9565_v36  ;;  %1812 = vmatpush1.msra.mxu1 %v9568_v37  ;;  %v531_v36 = vadd.f32 %v13123_v17, %v12995_v19  ;;  %v8146_v17 = vld [vmem:[#allocation5 + $0x30] sm:$0xff] }
 0x690   :  { %1742 = vmatprep.subr.mxu0 %v9571_v38  ;;  %1813 = vmatprep.subr.mxu1 %v9574_v40  ;;  %v13124_v38 = vld [vmem:[#allocation84_spill] sm:$0xff] }
 0x691   :  { %1743 = vmatpush1.msra.mxu0 %v9577_v41  ;;  %1814 = vmatpush1.msra.mxu1 %v13098_v21  ;;  %v529_v40 = vadd.f32 %v13124_v38, %v9063_v28  ;;  %v1924_v21 = vld [vmem:[#allocation11 + $0xf0] sm:$0xff]  ;;  %v9778_v38 = vld [vmem:[#allocation13 + $0x1f8] sm:$0xff] }
 0x692   :  { %1744 = vmatprep.subr.mxu0 %v13099_v33  ;;  %1815 = vmatprep.subr.mxu1 %v13100_v35  ;;  %v1919_v33 = vld [vmem:[#allocation11 + $0xc8] sm:$0xff]  ;;  %v1921_v35 = vld [vmem:[#allocation11 + $0xd8] sm:$0xff]  ;;  %13127 = vst [vmem:[#allocation79_spill] sm:$0xff] %v9778_v38 }
 0x693   :  { %1745 = vmatpush1.msra.mxu0 %v13101_v27  ;;  %1816 = vmatpush1.msra.mxu1 %v13102_v23  ;;  %v1918_v27 = vld [vmem:[#allocation11 + $0xc0] sm:$0xff]  ;;  %v1920_v23 = vld [vmem:[#allocation11 + $0xd0] sm:$0xff] }
 0x694   :  { %1746 = vmatprep.subr.mxu0 %v13103_v12  ;;  %1817 = vmatprep.subr.mxu1 %v13104_v30  ;;  %v1914_v12 = vld [vmem:[#allocation11 + $0xa0] sm:$0xff]  ;;  %v1917_v30 = vld [vmem:[#allocation11 + $0xb8] sm:$0xff] }
 0x695   :  { %1747 = vmatpush1.msra.mxu0 %v13105_v3  ;;  %1818 = vmatpush1.msra.mxu1 %v13106_v32  ;;  %v1911_v3 = vld [vmem:[#allocation11 + $0x88] sm:$0xff]  ;;  %v1916_v32 = vld [vmem:[#allocation11 + $0xb0] sm:$0xff] }
 0x696   :  { %1748 = vmatprep.subr.mxu0 %v13107_v61  ;;  %1819 = vmatprep.subr.mxu1 %v13108_v62  ;;  %v1910_v61 = vld [vmem:[#allocation11 + $0x80] sm:$0xff]  ;;  %v1913_v62 = vld [vmem:[#allocation11 + $0x98] sm:$0xff] }
 0x697   :  { %1749 = vmatpush1.msra.mxu0 %v13109_v1  ;;  %1820 = vmatpush1.msra.mxu1 %v13110_v34  ;;  %v1907_v1 = vld [vmem:[#allocation11 + $0x68] sm:$0xff]  ;;  %v1912_v34 = vld [vmem:[#allocation11 + $0x90] sm:$0xff] }
 0x698   :  { %1750 = vmatprep.subr.mxu0 %v13111_v29  ;;  %1821 = vmatprep.subr.mxu1 %v13112_v39  ;;  %v1906_v29 = vld [vmem:[#allocation11 + $0x60] sm:$0xff]  ;;  %v1909_v39 = vld [vmem:[#allocation11 + $0x78] sm:$0xff] }
 0x699   :  { %1751 = vmatpush1.msra.mxu0 %v13113_v48  ;;  %1822 = vmatpush1.msra.mxu1 %v13114_v20  ;;  %v1903_v48 = vld [vmem:[#allocation11 + $0x48] sm:$0xff]  ;;  %v1908_v20 = vld [vmem:[#allocation11 + $0x70] sm:$0xff] }
 0x69a   :  { %1752 = vmatprep.subr.mxu0 %v13115_v24  ;;  %1823 = vmatprep.subr.mxu1 %v13116_v57  ;;  %v1902_v24 = vld [vmem:[#allocation11 + $0x40] sm:$0xff]  ;;  %v1905_v57 = vld [vmem:[#allocation11 + $0x58] sm:$0xff] }
 0x69b   :  { %1753 = vmatpush1.msra.mxu0 %v13117_v22  ;;  %1786 = vmatprep.mubr.f32.mxu0 %v13118_v0  ;;  %v1899_v22 = vld [vmem:[#allocation11 + $0x28] sm:$0xff] }
 0x69c   :  { %1824 = vmatpush1.msra.mxu1 %v13119_v31  ;;  %1857 = vmatprep.mubr.f32.mxu1 %v13118_v0  ;;  %v1904_v31 = vld [vmem:[#allocation11 + $0x50] sm:$0xff] }
 0x69d   :  { %1964 = vmatprep.subr.mxu0 %v1923_v55  ;;  %2077 = vmatprep.subr.mxu1 %v1925_v26  ;;  %v1898_v55 = vld [vmem:[#allocation11 + $0x20] sm:$0xff]  ;;  %v1901_v26 = vld [vmem:[#allocation11 + $0x38] sm:$0xff] }
 0x73c   :  { %v1611_v8 = vpop.f32.mrf.mxu0  ;;  %v1682_v15 = vpop.f32.mrf.mxu1 }
 0x73d   :  { %v1687_v9 = vadd.f32 %v1611_v8, %v416_v7  ;;  %v1689_v41 = vadd.f32 %v1682_v15, %v529_v40  ;;  %v1900_v7 = vld [vmem:[#allocation11 + $0x30] sm:$0xff]  ;;  %v1894_v8 = vld [vmem:[#allocation11] sm:$0xff]  ;;  %v8143_v15 = vld [vmem:[#allocation5 + $0x18] sm:$0xff] }
 0x73e   :  { %v1613_v10 = vpop.f32.mrf.mxu0  ;;  %v1684_v18 = vpop.f32.mrf.mxu1  ;;  %v9781_v40 = vld [vmem:[#allocation13 + $0x1e0] sm:$0xff] }
 0x73f   :  { %v7328_v11 = vmul.f32 -1.442695, %v1687_v9  ;;  %v1688_v14 = vadd.f32 %v1613_v10, %v13122_v13  ;;  %v1690_v37 = vadd.f32 %v1684_v18, %v531_v36  ;;  %v1897_v9 = vld [vmem:[#allocation11 + $0x18] sm:$0xff]  ;;  %v1896_v10 = vld [vmem:[#allocation11 + $0x10] sm:$0xff]  ;;  %v8141_v13 = vld [vmem:[#allocation5 + $0x8] sm:$0xff] }
 0x740   :  { %v8145_v18 = vld [vmem:[#allocation5 + $0x28] sm:$0xff]  ;;  %v8147_v36 = vld [vmem:[#allocation5 + $0x38] sm:$0xff] }
 0x741   :  { %7672 = vpow2.f32 %v7328_v11  ;;  %v7329_v16 = vmul.f32 -1.442695, %v1688_v14  ;;  %v7330_v43 = vmul.f32 -1.442695, %v1690_v37  ;;  %v8140_v11 = vld [vmem:[#allocation5] sm:$0xff]  ;;  %v8142_v14 = vld [vmem:[#allocation5 + $0x10] sm:$0xff] }
 0x742   :  { %v9776_v37 = vld [vmem:[#allocation13 + $0x1e8] sm:$0xff] }
 0x743   :  { %7674 = vpow2.f32 %v7329_v16  ;;  %v8144_v16 = vld [vmem:[#allocation5 + $0x20] sm:$0xff]  ;;  %13126 = vst [vmem:[#allocation68_spill] sm:$0xff] %v9776_v37 }
 0x744   :  { %7676 = vtanh.f32 %v1689_v41  ;;  %v9784_v41 = vld [vmem:[#allocation13 + $0x1f0] sm:$0xff] }
 0x745   :  { %7678 = vpow2.f32 %v7330_v43  ;;  %v9787_v43 = vld [vmem:[#allocation13 + $0x1c8] sm:$0xff] }
 0x74e   :  { %v7673_v46 = vpop.eup %7672 }
 0x74f   :  { %v1694_v2 = vadd.f32 1.0, %v7673_v46  ;;  %v9790_v46 = vld [vmem:[#allocation13 + $0x1d8] sm:$0xff] }
 0x750   :  { %v7675_v4 = vpop.eup %7674 }
 0x751   :  { %7680 = vrcp.f32 %v1694_v2  ;;  %v1700_v54 = vadd.f32 1.0, %v7675_v4  ;;  %v7677_v52 = vpop.eup %7676  ;;  %v9793_v2 = vld [vmem:[#allocation13 + $0x1c0] sm:$0xff]  ;;  %v9796_v4 = vld [vmem:[#allocation13 + $0x1d0] sm:$0xff] }
 0x752   :  { %v7679_v53 = vpop.eup %7678 }
 0x753   :  { %7682 = vrcp.f32 %v1700_v54  ;;  %v1707_v50 = vadd.f32 1.0, %v7679_v53  ;;  %v9799_v54 = vld [vmem:[#allocation13 + $0x1a8] sm:$0xff]  ;;  %v9805_v53 = vld [vmem:[#allocation13 + $0x1a0] sm:$0xff] }
 0x755   :  { %7684 = vrcp.f32 %v1707_v50  ;;  %v9817_v50 = vld [vmem:[#allocation13 + $0x180] sm:$0xff] }
 0x75e   :  { %v7681_v49 = vpop.eup %7680 }
 0x75f   :  { %v1711_v47 = vmul.f32 %v7681_v49, %v7677_v52  ;;  %v9802_v52 = vld [vmem:[#allocation13 + $0x1b8] sm:$0xff]  ;;  %v9808_v49 = vld [vmem:[#allocation13 + $0x1b0] sm:$0xff] }
 0x760   :  { %v7683_v60 = vpop.eup %7682 }
 0x761   :  { %v1710_v51 = vmul.f32 %v7683_v60, %v9656_v45  ;;  %v1915_v45 = vld [vmem:[#allocation11 + $0xa8] sm:$0xff]  ;;  %v9814_v60 = vld [vmem:[#allocation13 + $0x198] sm:$0xff] }
 0x762   :  { %v7685_v58 = vpop.eup %7684 }
 0x763   :  { %v9735_v56 = vadd.f32 %v1711_v47, %v1710_v51  ;;  %v9811_v47 = vld [vmem:[#allocation13 + $0x188] sm:$0xff]  ;;  %v9820_v51 = vld [vmem:[#allocation13 + $0x190] sm:$0xff] }
 0x765   :  { %7686 = vtanh.f32 %v9735_v56 }
 0x772   :  { %v7687_v59 = vpop.eup %7686 }
 0x773   :  { %v9738_v42 = vmul.f32 %v7687_v59, %v7685_v58  ;;  %v9823_v58 = vld [vmem:[#allocation13 + $0x168] sm:$0xff]  ;;  %v9826_v59 = vld [vmem:[#allocation13 + $0x178] sm:$0xff] }
 0x775   :  { %13125 = vst [vmem:[#allocation67_spill] sm:$0xff] %v9738_v42  ;;  %1787 = vmatmul.mubr.f32.vlgmr.msra.gmra.mxu0 %v9738_v42  ;;  %1858 = vmatmul.mubr.f32.vlgmr.msra.gmra.mxu1 %v9738_v42  ;;  %v9940_v42 = vld [vmem:[#allocation13 + $0x28] sm:$0xff] }
 0x776   :  { %1965 = vmatpush1.msra.mxu0 %v1922_v63  ;;  %2078 = vmatpush1.msra.mxu1 %v1924_v21  ;;  %v9829_v63 = vld [vmem:[#allocation13 + $0x160] sm:$0xff]  ;;  %v9832_v21 = vld [vmem:[#allocation13 + $0x170] sm:$0xff]  ;;  %13140 = vst [vmem:[#allocation82_spill] sm:$0xff] %v9940_v42 }
 0x777   :  { %1966 = vmatprep.subr.mxu0 %v1919_v33  ;;  %2079 = vmatprep.subr.mxu1 %v1921_v35  ;;  %v9835_v33 = vld [vmem:[#allocation13 + $0x148] sm:$0xff]  ;;  %v9838_v35 = vld [vmem:[#allocation13 + $0x158] sm:$0xff] }
 0x778   :  { %1967 = vmatpush1.msra.mxu0 %v1918_v27  ;;  %2012 = vmatprep.mubr.f32.mxu0 %v13118_v0  ;;  %v9841_v27 = vld [vmem:[#allocation13 + $0x140] sm:$0xff] }
 0x779   :  { %1968 = vmatprep.subr.mxu0 %v1915_v45  ;;  %2080 = vmatpush1.msra.mxu1 %v1920_v23  ;;  %v9844_v45 = vld [vmem:[#allocation13 + $0x150] sm:$0xff]  ;;  %v9847_v23 = vld [vmem:[#allocation13 + $0x128] sm:$0xff] }
 0x77a   :  { %1969 = vmatpush1.msra.mxu0 %v1914_v12  ;;  %2081 = vmatprep.subr.mxu1 %v1917_v30  ;;  %v9850_v12 = vld [vmem:[#allocation13 + $0x138] sm:$0xff]  ;;  %v9853_v30 = vld [vmem:[#allocation13 + $0x120] sm:$0xff] }
 0x77b   :  { %1970 = vmatprep.subr.mxu0 %v1911_v3  ;;  %2082 = vmatpush1.msra.mxu1 %v1916_v32  ;;  %v9856_v3 = vld [vmem:[#allocation13 + $0x130] sm:$0xff]  ;;  %v9859_v32 = vld [vmem:[#allocation13 + $0x108] sm:$0xff] }
 0x77c   :  { %1971 = vmatpush1.msra.mxu0 %v1910_v61  ;;  %2083 = vmatprep.subr.mxu1 %v1913_v62  ;;  %v9862_v61 = vld [vmem:[#allocation13 + $0x118] sm:$0xff]  ;;  %v9865_v62 = vld [vmem:[#allocation13 + $0x100] sm:$0xff] }
 0x77d   :  { %1972 = vmatprep.subr.mxu0 %v1907_v1  ;;  %2084 = vmatpush1.msra.mxu1 %v1912_v34  ;;  %v9868_v1 = vld [vmem:[#allocation13 + $0x110] sm:$0xff]  ;;  %v9871_v34 = vld [vmem:[#allocation13 + $0xe8] sm:$0xff] }
 0x77e   :  { %1973 = vmatpush1.msra.mxu0 %v1906_v29  ;;  %2085 = vmatprep.subr.mxu1 %v1909_v39  ;;  %v9874_v29 = vld [vmem:[#allocation13 + $0xf8] sm:$0xff]  ;;  %v9877_v39 = vld [vmem:[#allocation13 + $0xe0] sm:$0xff] }
 0x77f   :  { %1974 = vmatprep.subr.mxu0 %v1903_v48  ;;  %2086 = vmatpush1.msra.mxu1 %v1908_v20  ;;  %v9880_v48 = vld [vmem:[#allocation13 + $0xc8] sm:$0xff]  ;;  %v9882_v20 = vld [vmem:[#allocation13 + $0xf0] sm:$0xff] }
 0x780   :  { %1975 = vmatpush1.msra.mxu0 %v1902_v24  ;;  %2087 = vmatprep.subr.mxu1 %v1905_v57  ;;  %v9886_v24 = vld [vmem:[#allocation13 + $0xc0] sm:$0xff]  ;;  %v9888_v57 = vld [vmem:[#allocation13 + $0xd8] sm:$0xff] }
 0x781   :  { %1976 = vmatprep.subr.mxu0 %v1899_v22  ;;  %2088 = vmatpush1.msra.mxu1 %v1904_v31  ;;  %v9890_v22 = vld [vmem:[#allocation13 + $0xa8] sm:$0xff]  ;;  %v9894_v31 = vld [vmem:[#allocation13 + $0xd0] sm:$0xff] }
 0x782   :  { %1977 = vmatpush1.msra.mxu0 %v1898_v55  ;;  %2089 = vmatprep.subr.mxu1 %v1901_v26  ;;  %v9896_v55 = vld [vmem:[#allocation13 + $0xa0] sm:$0xff]  ;;  %v9898_v26 = vld [vmem:[#allocation13 + $0xb8] sm:$0xff] }
 0x783   :  { %1978 = vmatprep.subr.mxu0 %v1895_v6  ;;  %2090 = vmatpush1.msra.mxu1 %v1900_v7  ;;  %v9902_v6 = vld [vmem:[#allocation13 + $0x88] sm:$0xff]  ;;  %v9904_v7 = vld [vmem:[#allocation13 + $0xb0] sm:$0xff] }
 0x784   :  { %1979 = vmatpush1.msra.mxu0 %v1894_v8  ;;  %2091 = vmatprep.subr.mxu1 %v1897_v9  ;;  %13128 = vst [vmem:[#allocation78_spill] sm:$0xff] %v9902_v6  ;;  %v9908_v8 = vld [vmem:[#allocation13 + $0x80] sm:$0xff]  ;;  %v9910_v9 = vld [vmem:[#allocation13 + $0x98] sm:$0xff] }
 0x785   :  { %7334 = vmatmul.mubr.msk.f32.vlgmr.msra.gmra.mxu0 %vm288_vm0, %v8140_v11  ;;  %2092 = vmatpush1.msra.mxu1 %v1896_v10  ;;  %13129 = vst [vmem:[#allocation69_spill] sm:$0xff] %v9908_v8  ;;  %13130 = vst [vmem:[#allocation70_spill] sm:$0xff] %v9910_v9  ;;  %v9912_v10 = vld [vmem:[#allocation13 + $0x90] sm:$0xff] }
 0x786   :  { %2018 = vmatprep.mubr.f32.mxu0 %v13118_v0  ;;  %2125 = vmatprep.mubr.f32.mxu1 %v13118_v0  ;;  %13131 = vst [vmem:[#allocation81_spill] sm:$0xff] %v9912_v10 }
 0x787   :  { %7342 = vmatmul.mubr.msk.f32.vlgmr.msra.gmra.mxu1 %vm288_vm0, %v8140_v11  ;;  %2294 = vmatprep.subr.mxu0 %v9776_v37  ;;  %v9916_v11 = vld [vmem:[#allocation13 + $0x68] sm:$0xff] }
 0x788   :  { %2131 = vmatprep.mubr.f32.mxu1 %v13118_v0  ;;  %2365 = vmatprep.subr.mxu1 %v9778_v38  ;;  %13132 = vst [vmem:[#allocation80_spill] sm:$0xff] %v9916_v11 }
 0x789   :  { %7335 = vmatmul.mubr.msk.f32.gmra.mxu0 %vm288_vm0, %v8141_v13  ;;  %2366 = vmatpush1.msra.mxu1 %v9784_v41 }
 0x78a   :  { %2024 = vmatprep.mubr.f32.mxu0 %v13118_v0  ;;  %2295 = vmatpush1.msra.mxu0 %v9781_v40 }
 0x78b   :  { %7343 = vmatmul.mubr.msk.f32.gmra.mxu1 %vm288_vm0, %v8141_v13  ;;  %2296 = vmatprep.subr.mxu0 %v9787_v43  ;;  %v9918_v13 = vld [vmem:[#allocation13 + $0x78] sm:$0xff] }
 0x78c   :  { %2137 = vmatprep.mubr.f32.mxu1 %v13118_v0  ;;  %2367 = vmatprep.subr.mxu1 %v9790_v46  ;;  %13133 = vst [vmem:[#allocation74_spill] sm:$0xff] %v9918_v13 }
 0x78d   :  { %7336 = vmatmul.mubr.msk.f32.gmra.mxu0 %vm288_vm0, %v8142_v14  ;;  %2368 = vmatpush1.msra.mxu1 %v9796_v4 }
 0x78e   :  { %2030 = vmatprep.mubr.f32.mxu0 %v13118_v0  ;;  %2297 = vmatpush1.msra.mxu0 %v9793_v2 }
 0x78f   :  { %7344 = vmatmul.mubr.msk.f32.gmra.mxu1 %vm288_vm0, %v8142_v14  ;;  %2298 = vmatprep.subr.mxu0 %v9799_v54  ;;  %v9922_v14 = vld [vmem:[#allocation13 + $0x60] sm:$0xff] }
 0x790   :  { %2143 = vmatprep.mubr.f32.mxu1 %v13118_v0  ;;  %2369 = vmatprep.subr.mxu1 %v9802_v52  ;;  %13134 = vst [vmem:[#allocation66_spill] sm:$0xff] %v9922_v14 }
 0x791   :  { %7337 = vmatmul.mubr.msk.f32.gmra.mxu0 %vm288_vm0, %v8143_v15  ;;  %2370 = vmatpush1.msra.mxu1 %v9808_v49 }
 0x792   :  { %2036 = vmatprep.mubr.f32.mxu0 %v13118_v0  ;;  %2299 = vmatpush1.msra.mxu0 %v9805_v53 }
 0x793   :  { %7345 = vmatmul.mubr.msk.f32.gmra.mxu1 %vm288_vm0, %v8143_v15  ;;  %2300 = vmatprep.subr.mxu0 %v9811_v47  ;;  %v9924_v15 = vld [vmem:[#allocation13 + $0x70] sm:$0xff] }
 0x794   :  { %2149 = vmatprep.mubr.f32.mxu1 %v13118_v0  ;;  %2371 = vmatprep.subr.mxu1 %v9814_v60  ;;  %13135 = vst [vmem:[#allocation77_spill] sm:$0xff] %v9924_v15 }
 0x795   :  { %7338 = vmatmul.mubr.msk.f32.gmra.mxu0 %vm288_vm0, %v8144_v16  ;;  %2372 = vmatpush1.msra.mxu1 %v9820_v51 }
 0x796   :  { %2042 = vmatprep.mubr.f32.mxu0 %v13118_v0  ;;  %2301 = vmatpush1.msra.mxu0 %v9817_v50 }
 0x797   :  { %7346 = vmatmul.mubr.msk.f32.gmra.mxu1 %vm288_vm0, %v8144_v16  ;;  %2302 = vmatprep.subr.mxu0 %v9823_v58  ;;  %v9928_v16 = vld [vmem:[#allocation13 + $0x48] sm:$0xff] }
 0x798   :  { %2155 = vmatprep.mubr.f32.mxu1 %v13118_v0  ;;  %2373 = vmatprep.subr.mxu1 %v9826_v59  ;;  %13136 = vst [vmem:[#allocation76_spill] sm:$0xff] %v9928_v16 }
 0x799   :  { %7339 = vmatmul.mubr.msk.f32.gmra.mxu0 %vm288_vm0, %v8145_v18  ;;  %2374 = vmatpush1.msra.mxu1 %v9832_v21 }
 0x79a   :  { %2048 = vmatprep.mubr.f32.mxu0 %v13118_v0  ;;  %2303 = vmatpush1.msra.mxu0 %v9829_v63 }
 0x79b   :  { %7347 = vmatmul.mubr.msk.f32.gmra.mxu1 %vm288_vm0, %v8145_v18  ;;  %2304 = vmatprep.subr.mxu0 %v9835_v33  ;;  %v9930_v18 = vld [vmem:[#allocation13 + $0x58] sm:$0xff] }
 0x79c   :  { %2161 = vmatprep.mubr.f32.mxu1 %v13118_v0  ;;  %2375 = vmatprep.subr.mxu1 %v9838_v35  ;;  %13137 = vst [vmem:[#allocation71_spill] sm:$0xff] %v9930_v18 }
 0x79d   :  { %7340 = vmatmul.mubr.msk.f32.gmra.mxu0 %vm288_vm0, %v8146_v17  ;;  %2376 = vmatpush1.msra.mxu1 %v9844_v45 }
 0x79e   :  { %2054 = vmatprep.mubr.f32.mxu0 %v13118_v0  ;;  %2305 = vmatpush1.msra.mxu0 %v9841_v27 }
 0x79f   :  { %7348 = vmatmul.mubr.msk.f32.gmra.mxu1 %vm288_vm0, %v8146_v17  ;;  %2306 = vmatprep.subr.mxu0 %v9847_v23  ;;  %v9934_v17 = vld [vmem:[#allocation13 + $0x40] sm:$0xff] }
 0x7a0   :  { %2167 = vmatprep.mubr.f32.mxu1 %v13118_v0  ;;  %2377 = vmatprep.subr.mxu1 %v9850_v12  ;;  %13138 = vst [vmem:[#allocation72_spill] sm:$0xff] %v9934_v17 }
 0x7a1   :  { %7341 = vmatmul.mubr.msk.f32.gmra.mxu0 %vm288_vm0, %v8147_v36  ;;  %2378 = vmatpush1.msra.mxu1 %v9856_v3 }
 0x7a2   :  { %2358 = vmatprep.mubr.f32.mxu0 %v13118_v0  ;;  %2307 = vmatpush1.msra.mxu0 %v9853_v30 }
 0x7a3   :  { %7349 = vmatmul.mubr.msk.f32.gmra.mxu1 %vm288_vm0, %v8147_v36  ;;  %2308 = vmatprep.subr.mxu0 %v9859_v32  ;;  %v9936_v36 = vld [vmem:[#allocation13 + $0x50] sm:$0xff] }
 0x7a4   :  { %2429 = vmatprep.mubr.f32.mxu1 %v13118_v0  ;;  %2379 = vmatprep.subr.mxu1 %v9862_v61  ;;  %13139 = vst [vmem:[#allocation83_spill] sm:$0xff] %v9936_v36  ;;  %v9946_v0 = vld [vmem:[#allocation13 + $0x20] sm:$0xff] }
 0x7a5   :  { %2309 = vmatpush1.msra.mxu0 %v9865_v62  ;;  %2380 = vmatpush1.msra.mxu1 %v9868_v1  ;;  %13142 = vst [vmem:[#allocation39_spill] sm:$0xff] %v9946_v0 }
 0x7a6   :  { %2310 = vmatprep.subr.mxu0 %v9871_v34  ;;  %2381 = vmatprep.subr.mxu1 %v9874_v29 }
 0x7a7   :  { %2311 = vmatpush1.msra.mxu0 %v9877_v39  ;;  %2382 = vmatpush1.msra.mxu1 %v9882_v20 }
 0x7a8   :  { %2312 = vmatprep.subr.mxu0 %v9880_v48  ;;  %2383 = vmatprep.subr.mxu1 %v9888_v57 }
 0x7a9   :  { %2313 = vmatpush1.msra.mxu0 %v9886_v24  ;;  %2384 = vmatpush1.msra.mxu1 %v9894_v31 }
 0x7aa   :  { %2314 = vmatprep.subr.mxu0 %v9890_v22  ;;  %2385 = vmatprep.subr.mxu1 %v9898_v26 }
 0x7ab   :  { %2315 = vmatpush1.msra.mxu0 %v9896_v55  ;;  %2386 = vmatpush1.msra.mxu1 %v9904_v7 }
 0x7ac   :  { %2316 = vmatprep.subr.mxu0 %v9902_v6  ;;  %2387 = vmatprep.subr.mxu1 %v9910_v9  ;;  %v13151_v9 = vld [vmem:[#allocation89_spill] sm:$0xff] }
 0x7ad   :  { %2317 = vmatpush1.msra.mxu0 %v9908_v8  ;;  %2388 = vmatpush1.msra.mxu1 %v9912_v10 }
 0x7ae   :  { %2318 = vmatprep.subr.mxu0 %v9916_v11  ;;  %2389 = vmatprep.subr.mxu1 %v9918_v13  ;;  %v9948_v11 = vld [vmem:[#allocation13 + $0x30] sm:$0xff]  ;;  %v9952_v13 = vld [vmem:[#allocation13 + $0x8] sm:$0xff] }
 0x7af   :  { %2319 = vmatpush1.msra.mxu0 %v9922_v14  ;;  %2390 = vmatpush1.msra.mxu1 %v9924_v15  ;;  %13143 = vst [vmem:[#allocation40_spill] sm:$0xff] %v9948_v11  ;;  %13144 = vst [vmem:[#allocation42_spill] sm:$0xff] %v9952_v13  ;;  %v9954_v14 = vld [vmem:[#allocation13 + $0x18] sm:$0xff]  ;;  %v9958_v15 = vld [vmem:[#allocation13] sm:$0xff] }
 0x7b0   :  { %2320 = vmatprep.subr.mxu0 %v9928_v16  ;;  %2391 = vmatprep.subr.mxu1 %v9930_v18  ;;  %13145 = vst [vmem:[#allocation41_spill] sm:$0xff] %v9954_v14  ;;  %13146 = vst [vmem:[#allocation44_spill] sm:$0xff] %v9958_v15  ;;  %v9960_v16 = vld [vmem:[#allocation13 + $0x10] sm:$0xff] }
 0x7b1   :  { %2321 = vmatpush1.msra.mxu0 %v9934_v17  ;;  %2392 = vmatpush1.msra.mxu1 %v9936_v36  ;;  %13147 = vst [vmem:[#allocation43_spill] sm:$0xff] %v9960_v16  ;;  %v13149_v36 = vld [vmem:[#allocation87_spill] sm:$0xff] }
 0x7b2   :  { %2322 = vmatprep.subr.mxu0 %v9940_v42  ;;  %2393 = vmatprep.subr.mxu1 %v9942_v44  ;;  %v13148_v44 = vld [vmem:[#allocation86_spill] sm:$0xff] }
 0x7b3   :  { %2323 = vmatpush1.msra.mxu0 %v9946_v0  ;;  %2394 = vmatpush1.msra.mxu1 %v9948_v11  ;;  %v422_v42 = vadd.f32 %v13148_v44, %v13120_v5  ;;  %v535_v0 = vadd.f32 %v13149_v36, %v9063_v28  ;;  %v537_v44 = vadd.f32 %v13151_v9, %v12995_v19  ;;  %v1926_v28 = vld [vmem:[%s12546_s6] sm:$0xf]  ;;  %v13152_v36 = vld [vmem:[#allocation59_spill] sm:$0xff] }
 0x7b4   :  { %2324 = vmatprep.subr.mxu0 %v9952_v13  ;;  %2395 = vmatprep.subr.mxu1 %v9954_v14  ;;  %v13150_v13 = vld [vmem:[#allocation88_spill] sm:$0xff]  ;;  %v9982_v6 = vrot.slane %v1926_v28, %v13152_v36  ;;  %v13156_v19 = vld [vmem:[#allocation61_spill] sm:$0xff] }
 0x7b5   :  { %2325 = vmatpush1.msra.mxu0 %v9958_v15  ;;  %2396 = vmatpush1.msra.mxu1 %v9960_v16  ;;  %v424_v18 = vadd.f32 %v13150_v13, %v13024_v25  ;;  %v13153_v25 = vld [vmem:[#allocation58_spill] sm:$0xff]  ;;  %v9994_v9 = vrot.slane %v1926_v28, %v13156_v19 }
 0x7b6   :  { %2469 = vmatprep.subr.mxu0 %v9776_v37  ;;  %2540 = vmatprep.subr.mxu1 %v9778_v38 }
 0x835   :  { %v1788_v17 = vpop.f32.mrf.mxu0  ;;  %v1859_v11 = vpop.f32.mrf.mxu1 }
 0x836   :  { %v1864_v14 = vadd.f32 %v1788_v17, %v422_v42  ;;  %v1866_v10 = vadd.f32 %v1859_v11, %v535_v0  ;;  %v9985_v0 = vrot.slane %v1926_v28, %v13153_v25  ;;  %v13154_v42 = vld [vmem:[#allocation63_spill] sm:$0xff] }
 0x837   :  { %v1790_v15 = vpop.f32.mrf.mxu0  ;;  %v1861_v38 = vpop.f32.mrf.mxu1  ;;  %v9988_v11 = vrot.slane %v1926_v28, %v13154_v42 }
 0x838   :  { %v7331_v8 = vmul.f32 -1.442695, %v1864_v14  ;;  %v1865_v16 = vadd.f32 %v1790_v15, %v424_v18  ;;  %v1867_v5 = vadd.f32 %v1861_v38, %v537_v44 }
 0x83a   :  { %7688 = vpow2.f32 %v7331_v8  ;;  %v7332_v37 = vmul.f32 -1.442695, %v1865_v16  ;;  %v7333_v8 = vmul.f32 -1.442695, %v1867_v5 }
 0x83c   :  { %7690 = vpow2.f32 %v7332_v37 }
 0x83d   :  { %7692 = vtanh.f32 %v1866_v10 }
 0x83e   :  { %7694 = vpow2.f32 %v7333_v8 }
 0x845   :  { %v2014_v37 = vpop.f32.mrf.mxu0 }
 0x846   :  { %v9991_v13 = vadd.f32 %v2014_v37, %v9982_v6 }
 0x847   :  { %v7689_v14 = vpop.eup %7688  ;;  %v2016_v15 = vpop.f32.mrf.mxu0 }
 0x848   :  { %13155 = vst [vmem:[#allocation46_spill] sm:$0xff] %v9991_v13  ;;  %v2127_v38 = vpop.f32.mrf.mxu1  ;;  %v1871_v16 = vadd.f32 1.0, %v7689_v14  ;;  %v9997_v18 = vadd.f32 %v2016_v15, %v9985_v0 }
 0x849   :  { %v10000_v17 = vadd.f32 %v2127_v38, %v9988_v11  ;;  %v7691_v44 = vpop.eup %7690  ;;  %v2020_v5 = vpop.f32.mrf.mxu0 }
 0x84a   :  { %13157 = vst [vmem:[#allocation45_spill] sm:$0xff] %v9997_v18  ;;  %v2129_v25 = vpop.f32.mrf.mxu1  ;;  %7696 = vrcp.f32 %v1871_v16  ;;  %v1877_v37 = vadd.f32 1.0, %v7691_v44  ;;  %v10003_v28 = vadd.f32 %v2020_v5, %v9982_v6 }
 0x84b   :  { %13158 = vst [vmem:[#allocation47_spill] sm:$0xff] %v10000_v17  ;;  %v10006_v42 = vadd.f32 %v2129_v25, %v9994_v9  ;;  %v2022_v14 = vpop.f32.mrf.mxu0 }
 0x84c   :  { %13159 = vst [vmem:[#allocation48_spill] sm:$0xff] %v10003_v28  ;;  %v2133_v10 = vpop.f32.mrf.mxu1  ;;  %7698 = vrcp.f32 %v1877_v37  ;;  %v10009_v15 = vadd.f32 %v2022_v14, %v9985_v0 }
 0x84d   :  { %13160 = vst [vmem:[#allocation50_spill] sm:$0xff] %v10006_v42  ;;  %v10012_v38 = vadd.f32 %v2133_v10, %v9988_v11  ;;  %v2026_v8 = vpop.f32.mrf.mxu0 }
 0x84e   :  { %13161 = vst [vmem:[#allocation49_spill] sm:$0xff] %v10009_v15  ;;  %v2135_v19 = vpop.f32.mrf.mxu1  ;;  %v10015_v16 = vadd.f32 %v2026_v8, %v9982_v6 }
 0x84f   :  { %13162 = vst [vmem:[#allocation52_spill] sm:$0xff] %v10012_v38  ;;  %v10018_v44 = vadd.f32 %v2135_v19, %v9994_v9  ;;  %v2028_v5 = vpop.f32.mrf.mxu0 }
 0x850   :  { %13163 = vst [vmem:[#allocation51_spill] sm:$0xff] %v10015_v16  ;;  %v2139_v25 = vpop.f32.mrf.mxu1  ;;  %v10021_v36 = vadd.f32 %v2028_v5, %v9985_v0  ;;  %v7693_v5 = vpop.eup %7692 }
 0x851   :  { %13164 = vst [vmem:[#allocation54_spill] sm:$0xff] %v10018_v44  ;;  %v10024_v37 = vadd.f32 %v2139_v25, %v9988_v11  ;;  %v2032_v14 = vpop.f32.mrf.mxu0  ;;  %v7695_v44 = vpop.eup %7694 }
 0x852   :  { %13165 = vst [vmem:[#allocation53_spill] sm:$0xff] %v10021_v36  ;;  %v2141_v17 = vpop.f32.mrf.mxu1  ;;  %v10027_v10 = vadd.f32 %v2032_v14, %v9982_v6  ;;  %v1884_v16 = vadd.f32 1.0, %v7695_v44 }
 0x853   :  { %13166 = vst [vmem:[#allocation56_spill] sm:$0xff] %v10024_v37  ;;  %v10030_v42 = vadd.f32 %v2141_v17, %v9994_v9  ;;  %v2034_v8 = vpop.f32.mrf.mxu0 }
 0x854   :  { %13167 = vst [vmem:[#allocation55_spill] sm:$0xff] %v10027_v10  ;;  %v2145_v18 = vpop.f32.mrf.mxu1  ;;  %v10033_v19 = vadd.f32 %v2034_v8, %v9985_v0  ;;  %7700 = vrcp.f32 %v1884_v16 }
 0x855   :  { %13168 = vst [vmem:[#allocation57_spill] sm:$0xff] %v10030_v42  ;;  %v10036_v13 = vadd.f32 %v2145_v18, %v9988_v11  ;;  %v2038_v38 = vpop.f32.mrf.mxu0 }
 0x856   :  { %13169 = vst [vmem:[#allocation34_spill] sm:$0xff] %v10033_v19  ;;  %v2147_v25 = vpop.f32.mrf.mxu1  ;;  %v10039_v15 = vadd.f32 %v2038_v38, %v9982_v6 }
 0x857   :  { %13170 = vst [vmem:[#allocation60_spill] sm:$0xff] %v10036_v13  ;;  %v10042_v14 = vadd.f32 %v2147_v25, %v9994_v9  ;;  %v7697_v17 = vpop.eup %7696  ;;  %v2040_v28 = vpop.f32.mrf.mxu0 }
 0x858   :  { %13171 = vst [vmem:[#allocation73_spill] sm:$0xff] %v10039_v15  ;;  %v2151_v37 = vpop.f32.mrf.mxu1  ;;  %v1888_v42 = vmul.f32 %v7697_v17, %v7693_v5  ;;  %v10045_v8 = vadd.f32 %v2040_v28, %v9985_v0 }
 0x859   :  { %13172 = vst [vmem:[#allocation75_spill] sm:$0xff] %v10042_v14  ;;  %v10048_v18 = vadd.f32 %v2151_v37, %v9988_v11  ;;  %v7699_v36 = vpop.eup %7698  ;;  %v2044_v13 = vpop.f32.mrf.mxu0 }
 0x85a   :  { %13173 = vst [vmem:[#allocation85_spill] sm:$0xff] %v10045_v8  ;;  %v2153_v19 = vpop.f32.mrf.mxu1  ;;  %v1887_v38 = vmul.f32 %v7699_v36, %v9735_v56  ;;  %v10052_v10 = vadd.f32 %v2044_v13, %v9982_v6 }
 0x85b   :  { %13174 = vst [vmem:[#allocation84_spill] sm:$0xff] %v10048_v18  ;;  %v10055_v25 = vadd.f32 %v2153_v19, %v9994_v9  ;;  %v2046_v14 = vpop.f32.mrf.mxu0 }
 0x85c   :  { %13175 = vst [vmem:[#allocation86_spill] sm:$0xff] %v10052_v10  ;;  %v2157_v5 = vpop.f32.mrf.mxu1  ;;  %v1889_v17 = vadd.f32 %v1888_v42, %v1887_v38  ;;  %v10058_v28 = vadd.f32 %v2046_v14, %v9985_v0  ;;  %v13198_v10 = vld [vmem:[#allocation42_spill] sm:$0xff] }
 0x85d   :  { %13176 = vst [vmem:[#allocation87_spill] sm:$0xff] %v10055_v25  ;;  %v10061_v37 = vadd.f32 %v2157_v5, %v9988_v11  ;;  %v2050_v44 = vpop.f32.mrf.mxu0 }
 0x85e   :  { %13177 = vst [vmem:[#allocation88_spill] sm:$0xff] %v10058_v28  ;;  %v2159_v18 = vpop.f32.mrf.mxu1  ;;  %v10064_v56 = vadd.f32 %v2050_v44, %v9982_v6  ;;  %7702 = vtanh.f32 %v1889_v17 }
 0x85f   :  { %13178 = vst [vmem:[#allocation89_spill] sm:$0xff] %v10061_v37  ;;  %v10067_v36 = vadd.f32 %v2159_v18, %v9994_v9  ;;  %v2052_v13 = vpop.f32.mrf.mxu0 }
 0x860   :  { %v2163_v19 = vpop.f32.mrf.mxu1  ;;  %v10070_v42 = vadd.f32 %v2052_v13, %v9985_v0 }
 0x861   :  { %13179 = vst [vmem:[#allocation90_spill] sm:$0xff] %v10067_v36  ;;  %v10073_v14 = vadd.f32 %v2163_v19, %v9988_v11  ;;  %v2056_v38 = vpop.f32.mrf.mxu0  ;;  %v7701_v37 = vpop.eup %7700 }
 0x862   :  { %v2165_v5 = vpop.f32.mrf.mxu1  ;;  %v2057_v16 = vadd.f32 %v2056_v38, %v9982_v6 }
 0x863   :  { %v10077_v25 = vadd.f32 %v2165_v5, %v9994_v9  ;;  %v2058_v44 = vpop.f32.mrf.mxu0 }
 0x864   :  { %v2169_v8 = vpop.f32.mrf.mxu1  ;;  %v7350_v18 = vmul.f32 -1.442695, %v2057_v16 }
 0x865   :  { %v2170_v36 = vadd.f32 %v2169_v8, %v9988_v11  ;;  %v13182_v11 = vld [vmem:[#allocation78_spill] sm:$0xff]  ;;  %v13184_v8 = vld [vmem:[#allocation69_spill] sm:$0xff] }
 0x866   :  { %7704 = vpow2.f32 %v7350_v18  ;;  %v2171_v17 = vpop.f32.mrf.mxu1 }
 0x867   :  { %v2172_v15 = vadd.f32 %v2171_v17, %v9994_v9 }
 0x869   :  { %v7351_v19 = vmul.f32 -1.442695, %v2172_v15  ;;  %v13183_v15 = vld [vmem:[#allocation70_spill] sm:$0xff] }
 0x86b   :  { %v7703_v0 = vpop.eup %7702  ;;  %7706 = vpow2.f32 %v7351_v19  ;;  %v13188_v19 = vld [vmem:[#allocation66_spill] sm:$0xff] }
 0x86c   :  { %v10080_v13 = vmul.f32 %v7703_v0, %v7701_v37  ;;  %7708 = vtanh.f32 %v2170_v36  ;;  %v13186_v36 = vld [vmem:[#allocation80_spill] sm:$0xff]  ;;  %v13187_v0 = vld [vmem:[#allocation74_spill] sm:$0xff] }
 0x86e   :  { %13180 = vst [vmem:[#allocation91_spill] sm:$0xff] %v10080_v13  ;;  %v13196_v13 = vld [vmem:[#allocation39_spill] sm:$0xff] }
 0x873   :  { %v7705_v28 = vpop.eup %7704 }
 0x874   :  { %v2276_v6 = vadd.f32 1.0, %v7705_v28  ;;  %v13185_v28 = vld [vmem:[#allocation81_spill] sm:$0xff] }
 0x876   :  { %7710 = vrcp.f32 %v2276_v6  ;;  %v13189_v6 = vld [vmem:[#allocation77_spill] sm:$0xff] }
 0x878   :  { %v7707_v38 = vpop.eup %7706 }
 0x879   :  { %v2283_v5 = vadd.f32 1.0, %v7707_v38  ;;  %v7709_v44 = vpop.eup %7708  ;;  %v13190_v38 = vld [vmem:[#allocation76_spill] sm:$0xff] }
 0x87b   :  { %7712 = vrcp.f32 %v2283_v5  ;;  %v13191_v5 = vld [vmem:[#allocation71_spill] sm:$0xff] }
 0x883   :  { %v7711_v16 = vpop.eup %7710 }
 0x884   :  { %v10083_v18 = vmul.f32 %v7711_v16, %v7709_v44  ;;  %v13192_v44 = vld [vmem:[#allocation72_spill] sm:$0xff]  ;;  %v13193_v16 = vld [vmem:[#allocation83_spill] sm:$0xff] }
 0x886   :  { %7714 = vtanh.f32 %v10083_v18 }
 0x888   :  { %v7713_v9 = vpop.eup %7712 }
 0x893   :  { %v7715_v37 = vpop.eup %7714 }
 0x894   :  { %v10086_v17 = vmul.f32 %v7715_v37, %v7713_v9  ;;  %v13194_v9 = vld [vmem:[#allocation82_spill] sm:$0xff]  ;;  %v13195_v37 = vld [vmem:[#allocation37_spill] sm:$0xff] }
 0x896   :  { %13181 = vst [vmem:[#allocation92_spill] sm:$0xff] %v10086_v17  ;;  %2359 = vmatmul.mubr.f32.vlgmr.msra.gmra.mxu0 %v10086_v17  ;;  %2430 = vmatmul.mubr.f32.vlgmr.msra.gmra.mxu1 %v10086_v17  ;;  %v13197_v17 = vld [vmem:[#allocation40_spill] sm:$0xff] }
 0x897   :  { %2470 = vmatpush1.msra.mxu0 %v9781_v40  ;;  %2541 = vmatpush1.msra.mxu1 %v9784_v41 }
 0x898   :  { %2471 = vmatprep.subr.mxu0 %v9787_v43  ;;  %2542 = vmatprep.subr.mxu1 %v9790_v46 }
 0x899   :  { %2472 = vmatpush1.msra.mxu0 %v9793_v2  ;;  %2543 = vmatpush1.msra.mxu1 %v9796_v4 }
 0x89a   :  { %2473 = vmatprep.subr.mxu0 %v9799_v54  ;;  %2544 = vmatprep.subr.mxu1 %v9802_v52 }
 0x89b   :  { %2474 = vmatpush1.msra.mxu0 %v9805_v53  ;;  %2545 = vmatpush1.msra.mxu1 %v9808_v49 }
 0x89c   :  { %2475 = vmatprep.subr.mxu0 %v9811_v47  ;;  %2546 = vmatprep.subr.mxu1 %v9814_v60 }
 0x89d   :  { %2476 = vmatpush1.msra.mxu0 %v9817_v50  ;;  %2547 = vmatpush1.msra.mxu1 %v9820_v51 }
 0x89e   :  { %2477 = vmatprep.subr.mxu0 %v9823_v58  ;;  %2548 = vmatprep.subr.mxu1 %v9826_v59 }
 0x89f   :  { %2478 = vmatpush1.msra.mxu0 %v9829_v63  ;;  %2549 = vmatpush1.msra.mxu1 %v9832_v21 }
 0x8a0   :  { %2479 = vmatprep.subr.mxu0 %v9835_v33  ;;  %2550 = vmatprep.subr.mxu1 %v9838_v35 }
 0x8a1   :  { %2480 = vmatpush1.msra.mxu0 %v9841_v27  ;;  %2551 = vmatpush1.msra.mxu1 %v9844_v45 }
 0x8a2   :  { %2481 = vmatprep.subr.mxu0 %v9847_v23  ;;  %2552 = vmatprep.subr.mxu1 %v9850_v12 }
 0x8a3   :  { %2482 = vmatpush1.msra.mxu0 %v9853_v30  ;;  %2553 = vmatpush1.msra.mxu1 %v9856_v3 }
 0x8a4   :  { %2483 = vmatprep.subr.mxu0 %v9859_v32  ;;  %2554 = vmatprep.subr.mxu1 %v9862_v61 }
 0x8a5   :  { %2484 = vmatpush1.msra.mxu0 %v9865_v62  ;;  %2555 = vmatpush1.msra.mxu1 %v9868_v1 }
 0x8a6   :  { %2485 = vmatprep.subr.mxu0 %v9871_v34  ;;  %2556 = vmatprep.subr.mxu1 %v9874_v29 }
 0x8a7   :  { %2486 = vmatpush1.msra.mxu0 %v9877_v39  ;;  %2557 = vmatpush1.msra.mxu1 %v9882_v20 }
 0x8a8   :  { %2487 = vmatprep.subr.mxu0 %v9880_v48  ;;  %2558 = vmatprep.subr.mxu1 %v9888_v57 }
 0x8a9   :  { %2488 = vmatpush1.msra.mxu0 %v9886_v24  ;;  %2559 = vmatpush1.msra.mxu1 %v9894_v31 }
 0x8aa   :  { %2489 = vmatprep.subr.mxu0 %v9890_v22  ;;  %2560 = vmatprep.subr.mxu1 %v9898_v26 }
 0x8ab   :  { %2490 = vmatpush1.msra.mxu0 %v9896_v55  ;;  %2561 = vmatpush1.msra.mxu1 %v9904_v7 }
 0x8ac   :  { %2491 = vmatprep.subr.mxu0 %v13182_v11  ;;  %2562 = vmatprep.subr.mxu1 %v13183_v15 }
 0x8ad   :  { %2492 = vmatpush1.msra.mxu0 %v13184_v8  ;;  %2563 = vmatpush1.msra.mxu1 %v13185_v28 }
 0x8ae   :  { %2493 = vmatprep.subr.mxu0 %v13186_v36  ;;  %2564 = vmatprep.subr.mxu1 %v13187_v0 }
 0x8af   :  { %2494 = vmatpush1.msra.mxu0 %v13188_v19  ;;  %2565 = vmatpush1.msra.mxu1 %v13189_v6  ;;  %v13199_v19 = vld [vmem:[#allocation41_spill] sm:$0xff]  ;;  %v13200_v6 = vld [vmem:[#allocation44_spill] sm:$0xff] }
 0x8b0   :  { %2495 = vmatprep.subr.mxu0 %v13190_v38  ;;  %2566 = vmatprep.subr.mxu1 %v13191_v5  ;;  %v13201_v38 = vmov 0.0   ;;  %v13202_v5 = vld [vmem:[#allocation43_spill] sm:$0xff] }
 0x8b1   :  { %2496 = vmatpush1.msra.mxu0 %v13192_v44  ;;  %2567 = vmatpush1.msra.mxu1 %v13193_v16  ;;  %v13203_v16 = vld [vmem:[#allocation68_spill] sm:$0xff] }
 0x8b2   :  { %2497 = vmatprep.subr.mxu0 %v13194_v9  ;;  %2568 = vmatprep.subr.mxu1 %v13195_v37  ;;  %v13204_v9 = vld [vmem:[#allocation79_spill] sm:$0xff] }
 0x8b3   :  { %2498 = vmatpush1.msra.mxu0 %v13196_v13  ;;  %2569 = vmatpush1.msra.mxu1 %v13197_v17 }
 0x8b4   :  { %2499 = vmatprep.subr.mxu0 %v13198_v10  ;;  %2570 = vmatprep.subr.mxu1 %v13199_v19 }
 0x8b5   :  { %2500 = vmatpush1.msra.mxu0 %v13200_v6  ;;  %2533 = vmatprep.mubr.f32.mxu0 %v13201_v38 }
 0x8b6   :  { %2571 = vmatpush1.msra.mxu1 %v13202_v5  ;;  %2604 = vmatprep.mubr.f32.mxu1 %v13201_v38 }
 0x8b7   :  { %2644 = vmatprep.subr.mxu0 %v13203_v16  ;;  %2715 = vmatprep.subr.mxu1 %v13204_v9 }
 0x956   :  { %v2360_v37 = vpop.f32.mrf.mxu0  ;;  %v2431_v19 = vpop.f32.mrf.mxu1 }
 0x957   :  { %v2436_v13 = vadd.f32 %v2360_v37, %v10064_v56  ;;  %v2438_v38 = vadd.f32 %v2431_v19, %v10073_v14 }
 0x958   :  { %v2362_v17 = vpop.f32.mrf.mxu0  ;;  %v2433_v0 = vpop.f32.mrf.mxu1 }
 0x959   :  { %v7352_v44 = vmul.f32 -1.442695, %v2436_v13  ;;  %v2437_v10 = vadd.f32 %v2362_v17, %v10070_v42  ;;  %v2439_v5 = vadd.f32 %v2433_v0, %v10077_v25 }
 0x95b   :  { %7716 = vpow2.f32 %v7352_v44  ;;  %v7353_v6 = vmul.f32 -1.442695, %v2437_v10  ;;  %v7354_v36 = vmul.f32 -1.442695, %v2439_v5  ;;  %v13210_v5 = vld [vmem:[#allocation77_spill] sm:$0xff] }
 0x95d   :  { %7718 = vpow2.f32 %v7353_v6 }
 0x95e   :  { %7720 = vtanh.f32 %v2438_v38  ;;  %v13209_v38 = vld [vmem:[#allocation66_spill] sm:$0xff] }
 0x95f   :  { %7722 = vpow2.f32 %v7354_v36  ;;  %v13208_v36 = vld [vmem:[#allocation74_spill] sm:$0xff] }
 0x968   :  { %v7717_v16 = vpop.eup %7716 }
 0x969   :  { %v2443_v28 = vadd.f32 1.0, %v7717_v16  ;;  %v13211_v16 = vld [vmem:[#allocation76_spill] sm:$0xff] }
 0x96a   :  { %v7719_v9 = vpop.eup %7718 }
 0x96b   :  { %7724 = vrcp.f32 %v2443_v28  ;;  %v2449_v56 = vadd.f32 1.0, %v7719_v9  ;;  %v7721_v13 = vpop.eup %7720  ;;  %v13207_v28 = vld [vmem:[#allocation80_spill] sm:$0xff]  ;;  %v13212_v9 = vld [vmem:[#allocation71_spill] sm:$0xff] }
 0x96c   :  { %v7723_v42 = vpop.eup %7722 }
 0x96d   :  { %7726 = vrcp.f32 %v2449_v56  ;;  %v2456_v6 = vadd.f32 1.0, %v7723_v42  ;;  %v13213_v56 = vld [vmem:[#allocation72_spill] sm:$0xff]  ;;  %v13215_v42 = vld [vmem:[#allocation82_spill] sm:$0xff] }
 0x96f   :  { %7728 = vrcp.f32 %v2456_v6  ;;  %v13219_v6 = vld [vmem:[#allocation42_spill] sm:$0xff] }
 0x978   :  { %v7725_v17 = vpop.eup %7724 }
 0x979   :  { %v2460_v44 = vmul.f32 %v7725_v17, %v7721_v13  ;;  %v13214_v13 = vld [vmem:[#allocation83_spill] sm:$0xff]  ;;  %v13216_v17 = vld [vmem:[#allocation37_spill] sm:$0xff] }
 0x97a   :  { %v7727_v10 = vpop.eup %7726 }
 0x97b   :  { %v2459_v37 = vmul.f32 %v7727_v10, %v10083_v18  ;;  %v13206_v18 = vld [vmem:[#allocation81_spill] sm:$0xff]  ;;  %v13218_v10 = vld [vmem:[#allocation40_spill] sm:$0xff] }
 0x97c   :  { %v7729_v14 = vpop.eup %7728 }
 0x97d   :  { %v10161_v25 = vadd.f32 %v2460_v44, %v2459_v37  ;;  %v13217_v44 = vld [vmem:[#allocation39_spill] sm:$0xff]  ;;  %v13220_v37 = vld [vmem:[#allocation41_spill] sm:$0xff] }
 0x97f   :  { %7730 = vtanh.f32 %v10161_v25 }
 0x98c   :  { %v7731_v0 = vpop.eup %7730 }
 0x98d   :  { %v10164_v19 = vmul.f32 %v7731_v0, %v7729_v14  ;;  %v13221_v14 = vld [vmem:[#allocation44_spill] sm:$0xff]  ;;  %v13222_v0 = vmov 0.0  }
 0x98f   :  { %13205 = vst [vmem:[#allocation78_spill] sm:$0xff] %v10164_v19  ;;  %2534 = vmatmul.mubr.f32.vlgmr.msra.gmra.mxu0 %v10164_v19  ;;  %2605 = vmatmul.mubr.f32.vlgmr.msra.gmra.mxu1 %v10164_v19  ;;  %v13223_v19 = vld [vmem:[#allocation43_spill] sm:$0xff] }
 0x990   :  { %2645 = vmatpush1.msra.mxu0 %v9781_v40  ;;  %2716 = vmatpush1.msra.mxu1 %v9784_v41 }
 0x991   :  { %2646 = vmatprep.subr.mxu0 %v9787_v43  ;;  %2717 = vmatprep.subr.mxu1 %v9790_v46 }
 0x992   :  { %2647 = vmatpush1.msra.mxu0 %v9793_v2  ;;  %2718 = vmatpush1.msra.mxu1 %v9796_v4 }
 0x993   :  { %2648 = vmatprep.subr.mxu0 %v9799_v54  ;;  %2719 = vmatprep.subr.mxu1 %v9802_v52 }
 0x994   :  { %2649 = vmatpush1.msra.mxu0 %v9805_v53  ;;  %2720 = vmatpush1.msra.mxu1 %v9808_v49 }
 0x995   :  { %2650 = vmatprep.subr.mxu0 %v9811_v47  ;;  %2721 = vmatprep.subr.mxu1 %v9814_v60 }
 0x996   :  { %2651 = vmatpush1.msra.mxu0 %v9817_v50  ;;  %2722 = vmatpush1.msra.mxu1 %v9820_v51 }
 0x997   :  { %2652 = vmatprep.subr.mxu0 %v9823_v58  ;;  %2723 = vmatprep.subr.mxu1 %v9826_v59 }
 0x998   :  { %2653 = vmatpush1.msra.mxu0 %v9829_v63  ;;  %2724 = vmatpush1.msra.mxu1 %v9832_v21 }
 0x999   :  { %2654 = vmatprep.subr.mxu0 %v9835_v33  ;;  %2725 = vmatprep.subr.mxu1 %v9838_v35 }
 0x99a   :  { %2655 = vmatpush1.msra.mxu0 %v9841_v27  ;;  %2726 = vmatpush1.msra.mxu1 %v9844_v45 }
 0x99b   :  { %2656 = vmatprep.subr.mxu0 %v9847_v23  ;;  %2727 = vmatprep.subr.mxu1 %v9850_v12 }
 0x99c   :  { %2657 = vmatpush1.msra.mxu0 %v9853_v30  ;;  %2728 = vmatpush1.msra.mxu1 %v9856_v3 }
 0x99d   :  { %2658 = vmatprep.subr.mxu0 %v9859_v32  ;;  %2729 = vmatprep.subr.mxu1 %v9862_v61 }
 0x99e   :  { %2659 = vmatpush1.msra.mxu0 %v9865_v62  ;;  %2730 = vmatpush1.msra.mxu1 %v9868_v1 }
 0x99f   :  { %2660 = vmatprep.subr.mxu0 %v9871_v34  ;;  %2731 = vmatprep.subr.mxu1 %v9874_v29 }
 0x9a0   :  { %2661 = vmatpush1.msra.mxu0 %v9877_v39  ;;  %2732 = vmatpush1.msra.mxu1 %v9882_v20 }
 0x9a1   :  { %2662 = vmatprep.subr.mxu0 %v9880_v48  ;;  %2733 = vmatprep.subr.mxu1 %v9888_v57 }
 0x9a2   :  { %2663 = vmatpush1.msra.mxu0 %v9886_v24  ;;  %2734 = vmatpush1.msra.mxu1 %v9894_v31 }
 0x9a3   :  { %2664 = vmatprep.subr.mxu0 %v9890_v22  ;;  %2735 = vmatprep.subr.mxu1 %v9898_v26 }
 0x9a4   :  { %2665 = vmatpush1.msra.mxu0 %v9896_v55  ;;  %2736 = vmatpush1.msra.mxu1 %v9904_v7 }
 0x9a5   :  { %2666 = vmatprep.subr.mxu0 %v13182_v11  ;;  %2737 = vmatprep.subr.mxu1 %v13183_v15 }
 0x9a6   :  { %2667 = vmatpush1.msra.mxu0 %v13184_v8  ;;  %2738 = vmatpush1.msra.mxu1 %v13206_v18 }
 0x9a7   :  { %2668 = vmatprep.subr.mxu0 %v13207_v28  ;;  %2739 = vmatprep.subr.mxu1 %v13208_v36  ;;  %v13229_v36 = vld [vmem:[#allocation89_spill] sm:$0xff] }
 0x9a8   :  { %2669 = vmatpush1.msra.mxu0 %v13209_v38  ;;  %2740 = vmatpush1.msra.mxu1 %v13210_v5  ;;  %v13228_v38 = vld [vmem:[#allocation90_spill] sm:$0xff] }
 0x9a9   :  { %2670 = vmatprep.subr.mxu0 %v13211_v16  ;;  %2741 = vmatprep.subr.mxu1 %v13212_v9 }
 0x9aa   :  { %2671 = vmatpush1.msra.mxu0 %v13213_v56  ;;  %2742 = vmatpush1.msra.mxu1 %v13214_v13  ;;  %v13224_v13 = vld [vmem:[#allocation68_spill] sm:$0xff] }
 0x9ab   :  { %2672 = vmatprep.subr.mxu0 %v13215_v42  ;;  %2743 = vmatprep.subr.mxu1 %v13216_v17  ;;  %v13225_v42 = vld [vmem:[#allocation79_spill] sm:$0xff] }
 0x9ac   :  { %2673 = vmatpush1.msra.mxu0 %v13217_v44  ;;  %2744 = vmatpush1.msra.mxu1 %v13218_v10  ;;  %v13226_v44 = vld [vmem:[#allocation86_spill] sm:$0xff] }
 0x9ad   :  { %2674 = vmatprep.subr.mxu0 %v13219_v6  ;;  %2745 = vmatprep.subr.mxu1 %v13220_v37  ;;  %v13227_v6 = vld [vmem:[#allocation88_spill] sm:$0xff] }
 0x9ae   :  { %2675 = vmatpush1.msra.mxu0 %v13221_v14  ;;  %2708 = vmatprep.mubr.f32.mxu0 %v13222_v0 }
 0x9af   :  { %2746 = vmatpush1.msra.mxu1 %v13223_v19  ;;  %2779 = vmatprep.mubr.f32.mxu1 %v13222_v0 }
 0x9b0   :  { %2819 = vmatprep.subr.mxu0 %v13224_v13  ;;  %2890 = vmatprep.subr.mxu1 %v13225_v42 }
 0xa4f   :  { %v2535_v17 = vpop.f32.mrf.mxu0  ;;  %v2606_v37 = vpop.f32.mrf.mxu1 }
 0xa50   :  { %v2611_v56 = vadd.f32 %v2535_v17, %v13226_v44  ;;  %v2613_v0 = vadd.f32 %v2606_v37, %v13229_v36 }
 0xa51   :  { %v2537_v10 = vpop.f32.mrf.mxu0  ;;  %v2608_v5 = vpop.f32.mrf.mxu1 }
 0xa52   :  { %v7355_v9 = vmul.f32 -1.442695, %v2611_v56  ;;  %v2612_v16 = vadd.f32 %v2537_v10, %v13227_v6  ;;  %v2614_v19 = vadd.f32 %v2608_v5, %v13228_v38 }
 0xa54   :  { %7732 = vpow2.f32 %v7355_v9  ;;  %v7356_v14 = vmul.f32 -1.442695, %v2612_v16  ;;  %v7357_v28 = vmul.f32 -1.442695, %v2614_v19 }
 0xa56   :  { %7734 = vpow2.f32 %v7356_v14 }
 0xa57   :  { %7736 = vtanh.f32 %v2613_v0 }
 0xa58   :  { %7738 = vpow2.f32 %v7357_v28 }
 0xa61   :  { %v7733_v13 = vpop.eup %7732 }
 0xa62   :  { %v2618_v18 = vadd.f32 1.0, %v7733_v13  ;;  %v10328_v13 = vld [vmem:[#allocation13 + $0x1e0] sm:$0xff] }
 0xa63   :  { %v7735_v42 = vpop.eup %7734 }
 0xa64   :  { %7740 = vrcp.f32 %v2618_v18  ;;  %v2624_v17 = vadd.f32 1.0, %v7735_v42  ;;  %v7737_v56 = vpop.eup %7736  ;;  %v10331_v42 = vld [vmem:[#allocation13 + $0x1f0] sm:$0xff] }
 0xa65   :  { %v7739_v44 = vpop.eup %7738 }
 0xa66   :  { %7742 = vrcp.f32 %v2624_v17  ;;  %v2631_v6 = vadd.f32 1.0, %v7739_v44  ;;  %v10334_v17 = vld [vmem:[#allocation13 + $0x1c8] sm:$0xff]  ;;  %v10340_v44 = vld [vmem:[#allocation13 + $0x1c0] sm:$0xff] }
 0xa68   :  { %7744 = vrcp.f32 %v2631_v6  ;;  %v10352_v6 = vld [vmem:[#allocation13 + $0x1a0] sm:$0xff] }
 0xa71   :  { %v7741_v9 = vpop.eup %7740 }
 0xa72   :  { %v2635_v10 = vmul.f32 %v7741_v9, %v7737_v56  ;;  %v10337_v56 = vld [vmem:[#allocation13 + $0x1d8] sm:$0xff]  ;;  %v10343_v9 = vld [vmem:[#allocation13 + $0x1d0] sm:$0xff] }
 0xa73   :  { %v7743_v16 = vpop.eup %7742 }
 0xa74   :  { %v2634_v14 = vmul.f32 %v7743_v16, %v10161_v25  ;;  %v10349_v16 = vld [vmem:[#allocation13 + $0x1b8] sm:$0xff] }
 0xa75   :  { %v7745_v19 = vpop.eup %7744 }
 0xa76   :  { %v10239_v38 = vadd.f32 %v2635_v10, %v2634_v14  ;;  %v10346_v10 = vld [vmem:[#allocation13 + $0x1a8] sm:$0xff]  ;;  %v10355_v14 = vld [vmem:[#allocation13 + $0x1b0] sm:$0xff] }
 0xa78   :  { %7746 = vtanh.f32 %v10239_v38 }
 0xa85   :  { %v7747_v36 = vpop.eup %7746 }
 0xa86   :  { %v10242_v5 = vmul.f32 %v7747_v36, %v7745_v19  ;;  %v10361_v19 = vld [vmem:[#allocation13 + $0x198] sm:$0xff]  ;;  %v10364_v36 = vld [vmem:[#allocation13 + $0x180] sm:$0xff] }
 0xa88   :  { %13230 = vst [vmem:[#allocation70_spill] sm:$0xff] %v10242_v5  ;;  %2709 = vmatmul.mubr.f32.vlgmr.msra.gmra.mxu0 %v10242_v5  ;;  %2780 = vmatmul.mubr.f32.vlgmr.msra.gmra.mxu1 %v10242_v5  ;;  %v10472_v5 = vld [vmem:[#allocation13 + $0x60] sm:$0xff] }
 0xa89   :  { %2820 = vmatpush1.msra.mxu0 %v9781_v40  ;;  %2891 = vmatpush1.msra.mxu1 %v9784_v41  ;;  %v13231_v40 = vld [vmem:[#allocation81_spill] sm:$0xff]  ;;  %v13232_v41 = vld [vmem:[#allocation80_spill] sm:$0xff] }
 0xa8a   :  { %2821 = vmatprep.subr.mxu0 %v9787_v43  ;;  %2892 = vmatprep.subr.mxu1 %v9790_v46  ;;  %v13233_v43 = vld [vmem:[#allocation74_spill] sm:$0xff]  ;;  %13260 = vst [vmem:[#allocation81_spill] sm:$0xff] %v10472_v5 }
 0xa8b   :  { %2822 = vmatpush1.msra.mxu0 %v9793_v2  ;;  %2893 = vmatpush1.msra.mxu1 %v9796_v4  ;;  %v13234_v46 = vld [vmem:[#allocation66_spill] sm:$0xff]  ;;  %v13235_v2 = vld [vmem:[#allocation77_spill] sm:$0xff]  ;;  %v13236_v4 = vld [vmem:[#allocation76_spill] sm:$0xff] }
 0xa8c   :  { %2823 = vmatprep.subr.mxu0 %v9799_v54  ;;  %2894 = vmatprep.subr.mxu1 %v9802_v52  ;;  %v13237_v54 = vld [vmem:[#allocation71_spill] sm:$0xff]  ;;  %v13238_v52 = vld [vmem:[#allocation72_spill] sm:$0xff] }
 0xa8d   :  { %2824 = vmatpush1.msra.mxu0 %v9805_v53  ;;  %2895 = vmatpush1.msra.mxu1 %v9808_v49  ;;  %v13239_v53 = vld [vmem:[#allocation83_spill] sm:$0xff]  ;;  %v13240_v49 = vld [vmem:[#allocation82_spill] sm:$0xff] }
 0xa8e   :  { %2825 = vmatprep.subr.mxu0 %v9811_v47  ;;  %2896 = vmatprep.subr.mxu1 %v9814_v60  ;;  %v13241_v47 = vld [vmem:[#allocation37_spill] sm:$0xff]  ;;  %v13242_v60 = vld [vmem:[#allocation39_spill] sm:$0xff] }
 0xa8f   :  { %2826 = vmatpush1.msra.mxu0 %v9817_v50  ;;  %2897 = vmatpush1.msra.mxu1 %v9820_v51  ;;  %v13243_v50 = vld [vmem:[#allocation40_spill] sm:$0xff]  ;;  %v13244_v51 = vld [vmem:[#allocation42_spill] sm:$0xff] }
 0xa90   :  { %2827 = vmatprep.subr.mxu0 %v9823_v58  ;;  %2898 = vmatprep.subr.mxu1 %v9826_v59  ;;  %v13245_v58 = vld [vmem:[#allocation41_spill] sm:$0xff]  ;;  %v13246_v59 = vld [vmem:[#allocation44_spill] sm:$0xff] }
 0xa91   :  { %2828 = vmatpush1.msra.mxu0 %v9829_v63  ;;  %2899 = vmatpush1.msra.mxu1 %v9832_v21  ;;  %v13247_v63 = vmov 0.0   ;;  %v13248_v21 = vld [vmem:[#allocation43_spill] sm:$0xff] }
 0xa92   :  { %2829 = vmatprep.subr.mxu0 %v9835_v33  ;;  %2900 = vmatprep.subr.mxu1 %v9838_v35  ;;  %v10310_v33 = vld [vmem:[#allocation13 + $0x1e8] sm:$0xff]  ;;  %v10313_v35 = vld [vmem:[#allocation13 + $0x1f8] sm:$0xff] }
 0xa93   :  { %2830 = vmatpush1.msra.mxu0 %v9841_v27  ;;  %2901 = vmatpush1.msra.mxu1 %v9844_v45  ;;  %13249 = vst [vmem:[#allocation69_spill] sm:$0xff] %v10310_v33  ;;  %13250 = vst [vmem:[#allocation68_spill] sm:$0xff] %v10313_v35  ;;  %v13251_v45 = vld [vmem:[#allocation73_spill] sm:$0xff] }
 0xa94   :  { %2831 = vmatprep.subr.mxu0 %v9847_v23  ;;  %2902 = vmatprep.subr.mxu1 %v9850_v12 }
 0xa95   :  { %2832 = vmatpush1.msra.mxu0 %v9853_v30  ;;  %2903 = vmatpush1.msra.mxu1 %v9856_v3  ;;  %v13252_v3 = vld [vmem:[#allocation85_spill] sm:$0xff] }
 0xa96   :  { %2833 = vmatprep.subr.mxu0 %v9859_v32  ;;  %2904 = vmatprep.subr.mxu1 %v9862_v61 }
 0xa97   :  { %2834 = vmatpush1.msra.mxu0 %v9865_v62  ;;  %2905 = vmatpush1.msra.mxu1 %v9868_v1 }
 0xa98   :  { %2835 = vmatprep.subr.mxu0 %v9871_v34  ;;  %2906 = vmatprep.subr.mxu1 %v9874_v29  ;;  %v13253_v34 = vld [vmem:[#allocation87_spill] sm:$0xff] }
 0xa99   :  { %2836 = vmatpush1.msra.mxu0 %v9877_v39  ;;  %2907 = vmatpush1.msra.mxu1 %v9882_v20  ;;  %v13254_v39 = vld [vmem:[#allocation84_spill] sm:$0xff] }
 0xa9a   :  { %2837 = vmatprep.subr.mxu0 %v9880_v48  ;;  %2908 = vmatprep.subr.mxu1 %v9888_v57 }
 0xa9b   :  { %2838 = vmatpush1.msra.mxu0 %v9886_v24  ;;  %2909 = vmatpush1.msra.mxu1 %v9894_v31 }
 0xa9c   :  { %2839 = vmatprep.subr.mxu0 %v9890_v22  ;;  %2910 = vmatprep.subr.mxu1 %v9898_v26 }
 0xa9d   :  { %2840 = vmatpush1.msra.mxu0 %v9896_v55  ;;  %2911 = vmatpush1.msra.mxu1 %v9904_v7 }
 0xa9e   :  { %2841 = vmatprep.subr.mxu0 %v13182_v11  ;;  %2912 = vmatprep.subr.mxu1 %v13183_v15 }
 0xa9f   :  { %2842 = vmatpush1.msra.mxu0 %v13184_v8  ;;  %2913 = vmatpush1.msra.mxu1 %v13231_v40  ;;  %v10367_v40 = vld [vmem:[#allocation13 + $0x190] sm:$0xff] }
 0xaa0   :  { %2843 = vmatprep.subr.mxu0 %v13232_v41  ;;  %2914 = vmatprep.subr.mxu1 %v13233_v43  ;;  %v10370_v41 = vld [vmem:[#allocation13 + $0x168] sm:$0xff]  ;;  %v10373_v43 = vld [vmem:[#allocation13 + $0x178] sm:$0xff] }
 0xaa1   :  { %2844 = vmatpush1.msra.mxu0 %v13234_v46  ;;  %2915 = vmatpush1.msra.mxu1 %v13235_v2  ;;  %v10376_v46 = vld [vmem:[#allocation13 + $0x160] sm:$0xff]  ;;  %v10379_v2 = vld [vmem:[#allocation13 + $0x170] sm:$0xff] }
 0xaa2   :  { %2845 = vmatprep.subr.mxu0 %v13236_v4  ;;  %2916 = vmatprep.subr.mxu1 %v13237_v54  ;;  %v10382_v4 = vld [vmem:[#allocation13 + $0x148] sm:$0xff]  ;;  %v10385_v54 = vld [vmem:[#allocation13 + $0x158] sm:$0xff] }
 0xaa3   :  { %2846 = vmatpush1.msra.mxu0 %v13238_v52  ;;  %2917 = vmatpush1.msra.mxu1 %v13239_v53 }
 0xaa4   :  { %2847 = vmatprep.subr.mxu0 %v13240_v49  ;;  %2918 = vmatprep.subr.mxu1 %v13241_v47 }
 0xaa5   :  { %2848 = vmatpush1.msra.mxu0 %v13242_v60  ;;  %2919 = vmatpush1.msra.mxu1 %v13243_v50 }
 0xaa6   :  { %2849 = vmatprep.subr.mxu0 %v13244_v51  ;;  %2920 = vmatprep.subr.mxu1 %v13245_v58 }
 0xaa7   :  { %2850 = vmatpush1.msra.mxu0 %v13246_v59  ;;  %2883 = vmatprep.mubr.f32.mxu0 %v13247_v63 }
 0xaa8   :  { %2921 = vmatpush1.msra.mxu1 %v13248_v21  ;;  %2954 = vmatprep.mubr.f32.mxu1 %v13247_v63 }
 0xaa9   :  { %2994 = vmatprep.subr.mxu0 %v10310_v33  ;;  %3065 = vmatprep.subr.mxu1 %v10313_v35 }
 0xb48   :  { %v2710_v27 = vpop.f32.mrf.mxu0  ;;  %v2781_v61 = vpop.f32.mrf.mxu1 }
 0xb49   :  { %v2786_v23 = vadd.f32 %v2710_v27, %v13251_v45  ;;  %v2788_v48 = vadd.f32 %v2781_v61, %v13254_v39  ;;  %v10388_v27 = vld [vmem:[#allocation13 + $0x140] sm:$0xff]  ;;  %v10391_v45 = vld [vmem:[#allocation13 + $0x150] sm:$0xff]  ;;  %v10409_v61 = vld [vmem:[#allocation13 + $0x118] sm:$0xff] }
 0xb4a   :  { %v2712_v12 = vpop.f32.mrf.mxu0  ;;  %v2783_v1 = vpop.f32.mrf.mxu1  ;;  %v10424_v39 = vld [vmem:[#allocation13 + $0xe0] sm:$0xff] }
 0xb4b   :  { %v7358_v30 = vmul.f32 -1.442695, %v2786_v23  ;;  %v2787_v32 = vadd.f32 %v2712_v12, %v13252_v3  ;;  %v2789_v29 = vadd.f32 %v2783_v1, %v13253_v34  ;;  %v10394_v23 = vld [vmem:[#allocation13 + $0x128] sm:$0xff]  ;;  %v10397_v12 = vld [vmem:[#allocation13 + $0x138] sm:$0xff]  ;;  %v10403_v3 = vld [vmem:[#allocation13 + $0x130] sm:$0xff] }
 0xb4c   :  { %v10415_v1 = vld [vmem:[#allocation13 + $0x110] sm:$0xff]  ;;  %v10418_v34 = vld [vmem:[#allocation13 + $0xe8] sm:$0xff] }
 0xb4d   :  { %7748 = vpow2.f32 %v7358_v30  ;;  %v7359_v62 = vmul.f32 -1.442695, %v2787_v32  ;;  %v7360_v20 = vmul.f32 -1.442695, %v2789_v29  ;;  %v10400_v30 = vld [vmem:[#allocation13 + $0x120] sm:$0xff]  ;;  %v10406_v32 = vld [vmem:[#allocation13 + $0x108] sm:$0xff] }
 0xb4e   :  { %v10421_v29 = vld [vmem:[#allocation13 + $0xf8] sm:$0xff] }
 0xb4f   :  { %7750 = vpow2.f32 %v7359_v62  ;;  %v10412_v62 = vld [vmem:[#allocation13 + $0x100] sm:$0xff] }
 0xb50   :  { %7752 = vtanh.f32 %v2788_v48  ;;  %v10427_v48 = vld [vmem:[#allocation13 + $0xf0] sm:$0xff] }
 0xb51   :  { %7754 = vpow2.f32 %v7360_v20  ;;  %v10430_v20 = vld [vmem:[#allocation13 + $0xc8] sm:$0xff] }
 0xb5a   :  { %v7749_v24 = vpop.eup %7748 }
 0xb5b   :  { %v2793_v57 = vadd.f32 1.0, %v7749_v24  ;;  %v10433_v24 = vld [vmem:[#allocation13 + $0xd8] sm:$0xff] }
 0xb5c   :  { %v7751_v22 = vpop.eup %7750 }
 0xb5d   :  { %7756 = vrcp.f32 %v2793_v57  ;;  %v2799_v31 = vadd.f32 1.0, %v7751_v22  ;;  %v7753_v55 = vpop.eup %7752  ;;  %v10436_v57 = vld [vmem:[#allocation13 + $0xc0] sm:$0xff]  ;;  %v10439_v22 = vld [vmem:[#allocation13 + $0xd0] sm:$0xff] }
 0xb5e   :  { %v7755_v26 = vpop.eup %7754 }
 0xb5f   :  { %7758 = vrcp.f32 %v2799_v31  ;;  %v2806_v8 = vadd.f32 1.0, %v7755_v26  ;;  %v10442_v31 = vld [vmem:[#allocation13 + $0xa8] sm:$0xff]  ;;  %v10448_v26 = vld [vmem:[#allocation13 + $0xa0] sm:$0xff] }
 0xb61   :  { %7760 = vrcp.f32 %v2806_v8  ;;  %v10460_v8 = vld [vmem:[#allocation13 + $0x80] sm:$0xff] }
 0xb62   :  { %13256 = vst [vmem:[#allocation86_spill] sm:$0xff] %v10460_v8 }
 0xb6a   :  { %v7757_v7 = vpop.eup %7756 }
 0xb6b   :  { %v2810_v11 = vmul.f32 %v7757_v7, %v7753_v55  ;;  %v10445_v55 = vld [vmem:[#allocation13 + $0xb8] sm:$0xff]  ;;  %v10451_v7 = vld [vmem:[#allocation13 + $0xb0] sm:$0xff] }
 0xb6c   :  { %v7759_v15 = vpop.eup %7758 }
 0xb6d   :  { %v2809_v25 = vmul.f32 %v7759_v15, %v10239_v38  ;;  %v10358_v38 = vld [vmem:[#allocation13 + $0x188] sm:$0xff]  ;;  %v10457_v15 = vld [vmem:[#allocation13 + $0x98] sm:$0xff] }
 0xb6e   :  { %v7761_v28 = vpop.eup %7760 }
 0xb6f   :  { %v10321_v18 = vadd.f32 %v2810_v11, %v2809_v25  ;;  %v10454_v11 = vld [vmem:[#allocation13 + $0x88] sm:$0xff]  ;;  %v10463_v25 = vld [vmem:[#allocation13 + $0x90] sm:$0xff] }
 0xb70   :  { %13257 = vst [vmem:[#allocation88_spill] sm:$0xff] %v10463_v25 }
 0xb71   :  { %7762 = vtanh.f32 %v10321_v18 }
 0xb7e   :  { %v7763_v37 = vpop.eup %7762 }
 0xb7f   :  { %v10324_v0 = vmul.f32 %v7763_v37, %v7761_v28  ;;  %v10466_v28 = vld [vmem:[#allocation13 + $0x68] sm:$0xff]  ;;  %v10469_v37 = vld [vmem:[#allocation13 + $0x78] sm:$0xff] }
 0xb80   :  { %13258 = vst [vmem:[#allocation90_spill] sm:$0xff] %v10466_v28  ;;  %13259 = vst [vmem:[#allocation89_spill] sm:$0xff] %v10469_v37 }
 0xb81   :  { %13255 = vst [vmem:[#allocation79_spill] sm:$0xff] %v10324_v0  ;;  %2884 = vmatmul.mubr.f32.vlgmr.msra.gmra.mxu0 %v10324_v0  ;;  %2955 = vmatmul.mubr.f32.vlgmr.msra.gmra.mxu1 %v10324_v0  ;;  %v10475_v0 = vld [vmem:[#allocation13 + $0x70] sm:$0xff] }
 0xb82   :  { %2995 = vmatpush1.msra.mxu0 %v10328_v13  ;;  %3066 = vmatpush1.msra.mxu1 %v10331_v42  ;;  %13261 = vst [vmem:[#allocation80_spill] sm:$0xff] %v10475_v0 }
 0xb83   :  { %2996 = vmatprep.subr.mxu0 %v10334_v17  ;;  %3067 = vmatprep.subr.mxu1 %v10337_v56 }
 0xb84   :  { %2997 = vmatpush1.msra.mxu0 %v10340_v44  ;;  %3068 = vmatpush1.msra.mxu1 %v10343_v9 }
 0xb85   :  { %2998 = vmatprep.subr.mxu0 %v10346_v10  ;;  %3069 = vmatprep.subr.mxu1 %v10349_v16 }
 0xb86   :  { %2999 = vmatpush1.msra.mxu0 %v10352_v6  ;;  %3070 = vmatpush1.msra.mxu1 %v10355_v14 }
 0xb87   :  { %3000 = vmatprep.subr.mxu0 %v10358_v38  ;;  %3071 = vmatprep.subr.mxu1 %v10361_v19 }
 0xb88   :  { %3001 = vmatpush1.msra.mxu0 %v10364_v36  ;;  %3072 = vmatpush1.msra.mxu1 %v10367_v40 }
 0xb89   :  { %3002 = vmatprep.subr.mxu0 %v10370_v41  ;;  %3073 = vmatprep.subr.mxu1 %v10373_v43 }
 0xb8a   :  { %3003 = vmatpush1.msra.mxu0 %v10376_v46  ;;  %3074 = vmatpush1.msra.mxu1 %v10379_v2 }
 0xb8b   :  { %3004 = vmatprep.subr.mxu0 %v10382_v4  ;;  %3075 = vmatprep.subr.mxu1 %v10385_v54 }
 0xb8c   :  { %3005 = vmatpush1.msra.mxu0 %v10388_v27  ;;  %3076 = vmatpush1.msra.mxu1 %v10391_v45 }
 0xb8d   :  { %3006 = vmatprep.subr.mxu0 %v10394_v23  ;;  %3077 = vmatprep.subr.mxu1 %v10397_v12 }
 0xb8e   :  { %3007 = vmatpush1.msra.mxu0 %v10400_v30  ;;  %3078 = vmatpush1.msra.mxu1 %v10403_v3 }
 0xb8f   :  { %3008 = vmatprep.subr.mxu0 %v10406_v32  ;;  %3079 = vmatprep.subr.mxu1 %v10409_v61 }
 0xb90   :  { %3009 = vmatpush1.msra.mxu0 %v10412_v62  ;;  %3080 = vmatpush1.msra.mxu1 %v10415_v1 }
 0xb91   :  { %3010 = vmatprep.subr.mxu0 %v10418_v34  ;;  %3081 = vmatprep.subr.mxu1 %v10421_v29 }
 0xb92   :  { %3011 = vmatpush1.msra.mxu0 %v10424_v39  ;;  %3082 = vmatpush1.msra.mxu1 %v10427_v48 }
 0xb93   :  { %3012 = vmatprep.subr.mxu0 %v10430_v20  ;;  %3083 = vmatprep.subr.mxu1 %v10433_v24 }
 0xb94   :  { %3013 = vmatpush1.msra.mxu0 %v10436_v57  ;;  %3084 = vmatpush1.msra.mxu1 %v10439_v22 }
 0xb95   :  { %3014 = vmatprep.subr.mxu0 %v10442_v31  ;;  %3085 = vmatprep.subr.mxu1 %v10445_v55 }
 0xb96   :  { %3015 = vmatpush1.msra.mxu0 %v10448_v26  ;;  %3086 = vmatpush1.msra.mxu1 %v10451_v7 }
 0xb97   :  { %3016 = vmatprep.subr.mxu0 %v10454_v11  ;;  %3087 = vmatprep.subr.mxu1 %v10457_v15 }
 0xb98   :  { %3017 = vmatpush1.msra.mxu0 %v10460_v8  ;;  %3088 = vmatpush1.msra.mxu1 %v10463_v25  ;;  %v10478_v8 = vld [vmem:[#allocation13 + $0x48] sm:$0xff]  ;;  %v10481_v25 = vld [vmem:[#allocation13 + $0x58] sm:$0xff] }
 0xb99   :  { %3018 = vmatprep.subr.mxu0 %v10466_v28  ;;  %3089 = vmatprep.subr.mxu1 %v10469_v37  ;;  %13262 = vst [vmem:[#allocation74_spill] sm:$0xff] %v10478_v8  ;;  %13263 = vst [vmem:[#allocation66_spill] sm:$0xff] %v10481_v25 }
 0xb9a   :  { %3019 = vmatpush1.msra.mxu0 %v10472_v5  ;;  %3090 = vmatpush1.msra.mxu1 %v10475_v0  ;;  %v13267_v0 = vld [vmem:[#allocation60_spill] sm:$0xff] }
 0xb9b   :  { %3020 = vmatprep.subr.mxu0 %v10478_v8  ;;  %3091 = vmatprep.subr.mxu1 %v10481_v25  ;;  %v13266_v8 = vld [vmem:[#allocation75_spill] sm:$0xff] }
 0xb9c   :  { %3021 = vmatpush1.msra.mxu0 %v13238_v52  ;;  %3092 = vmatpush1.msra.mxu1 %v13239_v53  ;;  %v13264_v53 = vld [vmem:[#allocation55_spill] sm:$0xff] }
 0xb9d   :  { %3022 = vmatprep.subr.mxu0 %v13240_v49  ;;  %3093 = vmatprep.subr.mxu1 %v13241_v47 }
 0xb9e   :  { %3023 = vmatpush1.msra.mxu0 %v13242_v60  ;;  %3094 = vmatpush1.msra.mxu1 %v13243_v50  ;;  %v13265_v50 = vld [vmem:[#allocation34_spill] sm:$0xff] }
 0xb9f   :  { %3024 = vmatprep.subr.mxu0 %v13244_v51  ;;  %3095 = vmatprep.subr.mxu1 %v13245_v58 }
 0xba0   :  { %3025 = vmatpush1.msra.mxu0 %v13246_v59  ;;  %3058 = vmatprep.mubr.f32.mxu0 %v13247_v63 }
 0xba1   :  { %3096 = vmatpush1.msra.mxu1 %v13248_v21  ;;  %3129 = vmatprep.mubr.f32.mxu1 %v13247_v63 }
 0xba2   :  { %3169 = vmatprep.subr.mxu0 %v10310_v33  ;;  %3240 = vmatprep.subr.mxu1 %v10313_v35 }
 0xc41   :  { %v2885_v52 = vpop.f32.mrf.mxu0  ;;  %v2956_v58 = vpop.f32.mrf.mxu1 }
 0xc42   :  { %v2961_v49 = vadd.f32 %v2885_v52, %v13264_v53  ;;  %v2963_v63 = vadd.f32 %v2956_v58, %v13267_v0  ;;  %v13274_v58 = vld [vmem:[#allocation74_spill] sm:$0xff] }
 0xc43   :  { %v2887_v47 = vpop.f32.mrf.mxu0  ;;  %v2958_v25 = vpop.f32.mrf.mxu1 }
 0xc44   :  { %v7361_v60 = vmul.f32 -1.442695, %v2961_v49  ;;  %v2962_v51 = vadd.f32 %v2887_v47, %v13265_v50  ;;  %v2964_v21 = vadd.f32 %v2958_v25, %v13266_v8  ;;  %v13272_v25 = vld [vmem:[#allocation81_spill] sm:$0xff] }
 0xc46   :  { %7764 = vpow2.f32 %v7361_v60  ;;  %v7362_v59 = vmul.f32 -1.442695, %v2962_v51  ;;  %v7363_v5 = vmul.f32 -1.442695, %v2964_v21  ;;  %v13275_v21 = vld [vmem:[#allocation66_spill] sm:$0xff] }
 0xc48   :  { %7766 = vpow2.f32 %v7362_v59 }
 0xc49   :  { %7768 = vtanh.f32 %v2963_v63 }
 0xc4a   :  { %7770 = vpow2.f32 %v7363_v5  ;;  %v13269_v5 = vld [vmem:[#allocation86_spill] sm:$0xff] }
 0xc53   :  { %v7765_v33 = vpop.eup %7764 }
 0xc54   :  { %v2968_v37 = vadd.f32 1.0, %v7765_v33 }
 0xc55   :  { %v7767_v35 = vpop.eup %7766 }
 0xc56   :  { %7772 = vrcp.f32 %v2968_v37  ;;  %v2974_v52 = vadd.f32 1.0, %v7767_v35  ;;  %v7769_v53 = vpop.eup %7768  ;;  %v13270_v35 = vld [vmem:[#allocation88_spill] sm:$0xff] }
 0xc57   :  { %v7771_v49 = vpop.eup %7770  ;;  %v13273_v37 = vld [vmem:[#allocation80_spill] sm:$0xff] }
 0xc58   :  { %7774 = vrcp.f32 %v2974_v52  ;;  %v2981_v51 = vadd.f32 1.0, %v7771_v49  ;;  %v10562_v52 = vld [vmem:[#allocation13 + $0x40] sm:$0xff]  ;;  %v10568_v49 = vld [vmem:[#allocation13 + $0x28] sm:$0xff] }
 0xc59   :  { %13276 = vst [vmem:[#allocation76_spill] sm:$0xff] %v10562_v52  ;;  %13278 = vst [vmem:[#allocation72_spill] sm:$0xff] %v10568_v49 }
 0xc5a   :  { %7776 = vrcp.f32 %v2981_v51  ;;  %v10580_v51 = vld [vmem:[#allocation13 + $0x8] sm:$0xff] }
 0xc5b   :  { %13282 = vst [vmem:[#allocation39_spill] sm:$0xff] %v10580_v51 }
 0xc63   :  { %v7773_v47 = vpop.eup %7772 }
 0xc64   :  { %v2985_v60 = vmul.f32 %v7773_v47, %v7769_v53  ;;  %v10565_v53 = vld [vmem:[#allocation13 + $0x50] sm:$0xff]  ;;  %v10571_v47 = vld [vmem:[#allocation13 + $0x38] sm:$0xff] }
 0xc65   :  { %v7775_v50 = vpop.eup %7774  ;;  %13277 = vst [vmem:[#allocation71_spill] sm:$0xff] %v10565_v53  ;;  %13279 = vst [vmem:[#allocation83_spill] sm:$0xff] %v10571_v47 }
 0xc66   :  { %v2984_v59 = vmul.f32 %v7775_v50, %v10321_v18  ;;  %v13271_v18 = vld [vmem:[#allocation89_spill] sm:$0xff]  ;;  %v10577_v50 = vld [vmem:[#allocation13 + $0x30] sm:$0xff] }
 0xc67   :  { %v7777_v33 = vpop.eup %7776  ;;  %13281 = vst [vmem:[#allocation37_spill] sm:$0xff] %v10577_v50 }
 0xc68   :  { %v10503_v8 = vadd.f32 %v2985_v60, %v2984_v59  ;;  %v10574_v60 = vld [vmem:[#allocation13 + $0x20] sm:$0xff]  ;;  %v10583_v59 = vld [vmem:[#allocation13 + $0x18] sm:$0xff] }
 0xc69   :  { %13280 = vst [vmem:[#allocation82_spill] sm:$0xff] %v10574_v60  ;;  %13283 = vst [vmem:[#allocation40_spill] sm:$0xff] %v10583_v59 }
 0xc6a   :  { %7778 = vtanh.f32 %v10503_v8 }
 0xc77   :  { %v7779_v63 = vpop.eup %7778 }
 0xc78   :  { %v10506_v0 = vmul.f32 %v7779_v63, %v7777_v33  ;;  %v10586_v33 = vld [vmem:[#allocation13] sm:$0xff]  ;;  %v13285_v63 = vmov 0.0  }
 0xc79   :  { %13284 = vst [vmem:[#allocation42_spill] sm:$0xff] %v10586_v33 }
 0xc7a   :  { %13268 = vst [vmem:[#allocation77_spill] sm:$0xff] %v10506_v0  ;;  %3059 = vmatmul.mubr.f32.vlgmr.msra.gmra.mxu0 %v10506_v0  ;;  %3130 = vmatmul.mubr.f32.vlgmr.msra.gmra.mxu1 %v10506_v0  ;;  %v10590_v0 = vld [vmem:[#allocation13 + $0x10] sm:$0xff] }
 0xc7b   :  { %3170 = vmatpush1.msra.mxu0 %v10328_v13  ;;  %3241 = vmatpush1.msra.mxu1 %v10331_v42  ;;  %13286 = vst [vmem:[#allocation41_spill] sm:$0xff] %v10590_v0 }
 0xc7c   :  { %3171 = vmatprep.subr.mxu0 %v10334_v17  ;;  %3242 = vmatprep.subr.mxu1 %v10337_v56 }
 0xc7d   :  { %3172 = vmatpush1.msra.mxu0 %v10340_v44  ;;  %3243 = vmatpush1.msra.mxu1 %v10343_v9 }
 0xc7e   :  { %3173 = vmatprep.subr.mxu0 %v10346_v10  ;;  %3244 = vmatprep.subr.mxu1 %v10349_v16 }
 0xc7f   :  { %3174 = vmatpush1.msra.mxu0 %v10352_v6  ;;  %3245 = vmatpush1.msra.mxu1 %v10355_v14 }
 0xc80   :  { %3175 = vmatprep.subr.mxu0 %v10358_v38  ;;  %3246 = vmatprep.subr.mxu1 %v10361_v19 }
 0xc81   :  { %3176 = vmatpush1.msra.mxu0 %v10364_v36  ;;  %3247 = vmatpush1.msra.mxu1 %v10367_v40 }
 0xc82   :  { %3177 = vmatprep.subr.mxu0 %v10370_v41  ;;  %3248 = vmatprep.subr.mxu1 %v10373_v43 }
 0xc83   :  { %3178 = vmatpush1.msra.mxu0 %v10376_v46  ;;  %3249 = vmatpush1.msra.mxu1 %v10379_v2 }
 0xc84   :  { %3179 = vmatprep.subr.mxu0 %v10382_v4  ;;  %3250 = vmatprep.subr.mxu1 %v10385_v54 }
 0xc85   :  { %3180 = vmatpush1.msra.mxu0 %v10388_v27  ;;  %3251 = vmatpush1.msra.mxu1 %v10391_v45 }
 0xc86   :  { %3181 = vmatprep.subr.mxu0 %v10394_v23  ;;  %3252 = vmatprep.subr.mxu1 %v10397_v12 }
 0xc87   :  { %3182 = vmatpush1.msra.mxu0 %v10400_v30  ;;  %3253 = vmatpush1.msra.mxu1 %v10403_v3 }
 0xc88   :  { %3183 = vmatprep.subr.mxu0 %v10406_v32  ;;  %3254 = vmatprep.subr.mxu1 %v10409_v61 }
 0xc89   :  { %3184 = vmatpush1.msra.mxu0 %v10412_v62  ;;  %3255 = vmatpush1.msra.mxu1 %v10415_v1 }
 0xc8a   :  { %3185 = vmatprep.subr.mxu0 %v10418_v34  ;;  %3256 = vmatprep.subr.mxu1 %v10421_v29 }
 0xc8b   :  { %3186 = vmatpush1.msra.mxu0 %v10424_v39  ;;  %3257 = vmatpush1.msra.mxu1 %v10427_v48 }
 0xc8c   :  { %3187 = vmatprep.subr.mxu0 %v10430_v20  ;;  %3258 = vmatprep.subr.mxu1 %v10433_v24 }
 0xc8d   :  { %3188 = vmatpush1.msra.mxu0 %v10436_v57  ;;  %3259 = vmatpush1.msra.mxu1 %v10439_v22 }
 0xc8e   :  { %3189 = vmatprep.subr.mxu0 %v10442_v31  ;;  %3260 = vmatprep.subr.mxu1 %v10445_v55 }
 0xc8f   :  { %3190 = vmatpush1.msra.mxu0 %v10448_v26  ;;  %3261 = vmatpush1.msra.mxu1 %v10451_v7 }
 0xc90   :  { %3191 = vmatprep.subr.mxu0 %v10454_v11  ;;  %3262 = vmatprep.subr.mxu1 %v10457_v15 }
 0xc91   :  { %3192 = vmatpush1.msra.mxu0 %v13269_v5  ;;  %3263 = vmatpush1.msra.mxu1 %v13270_v35 }
 0xc92   :  { %3193 = vmatprep.subr.mxu0 %v10466_v28  ;;  %3264 = vmatprep.subr.mxu1 %v13271_v18  ;;  %v13292_v18 = vld [vmem:[#allocation56_spill] sm:$0xff] }
 0xc93   :  { %3194 = vmatpush1.msra.mxu0 %v13272_v25  ;;  %3265 = vmatpush1.msra.mxu1 %v13273_v37  ;;  %v13291_v25 = vld [vmem:[#allocation57_spill] sm:$0xff] }
 0xc94   :  { %3195 = vmatprep.subr.mxu0 %v13274_v58  ;;  %3266 = vmatprep.subr.mxu1 %v13275_v21 }
 0xc95   :  { %3196 = vmatpush1.msra.mxu0 %v10562_v52  ;;  %3267 = vmatpush1.msra.mxu1 %v10565_v53  ;;  %v13290_v52 = vld [vmem:[#allocation53_spill] sm:$0xff] }
 0xc96   :  { %3197 = vmatprep.subr.mxu0 %v10568_v49  ;;  %3268 = vmatprep.subr.mxu1 %v10571_v47  ;;  %v13289_v47 = vld [vmem:[#allocation51_spill] sm:$0xff] }
 0xc97   :  { %3198 = vmatpush1.msra.mxu0 %v10574_v60  ;;  %3269 = vmatpush1.msra.mxu1 %v10577_v50  ;;  %v13287_v50 = vld [vmem:[#allocation69_spill] sm:$0xff]  ;;  %v13288_v60 = vld [vmem:[#allocation68_spill] sm:$0xff] }
 0xc98   :  { %3199 = vmatprep.subr.mxu0 %v10580_v51  ;;  %3270 = vmatprep.subr.mxu1 %v10583_v59 }
 0xc99   :  { %3200 = vmatpush1.msra.mxu0 %v10586_v33  ;;  %3233 = vmatprep.mubr.f32.mxu0 %v13285_v63 }
 0xc9a   :  { %3271 = vmatpush1.msra.mxu1 %v10590_v0  ;;  %3304 = vmatprep.mubr.f32.mxu1 %v13285_v63 }
 0xc9b   :  { %3344 = vmatprep.subr.mxu0 %v13287_v50  ;;  %3415 = vmatprep.subr.mxu1 %v13288_v60 }
 0xd3a   :  { %v3060_v51 = vpop.f32.mrf.mxu0  ;;  %v3131_v33 = vpop.f32.mrf.mxu1 }
 0xd3b   :  { %v3136_v49 = vadd.f32 %v3060_v51, %v13289_v47  ;;  %v3138_v63 = vadd.f32 %v3131_v33, %v13292_v18 }
 0xd3c   :  { %v3062_v59 = vpop.f32.mrf.mxu0  ;;  %v3133_v37 = vpop.f32.mrf.mxu1 }
 0xd3d   :  { %v7364_v53 = vmul.f32 -1.442695, %v3136_v49  ;;  %v3137_v21 = vadd.f32 %v3062_v59, %v13290_v52  ;;  %v3139_v0 = vadd.f32 %v3133_v37, %v13291_v25 }
 0xd3f   :  { %7780 = vpow2.f32 %v7364_v53  ;;  %v7365_v58 = vmul.f32 -1.442695, %v3137_v21  ;;  %v7366_v28 = vmul.f32 -1.442695, %v3139_v0 }
 0xd41   :  { %7782 = vpow2.f32 %v7365_v58 }
 0xd42   :  { %7784 = vtanh.f32 %v3138_v63 }
 0xd43   :  { %7786 = vpow2.f32 %v7366_v28 }
 0xd4c   :  { %v7781_v50 = vpop.eup %7780 }
 0xd4d   :  { %v3143_v35 = vadd.f32 1.0, %v7781_v50  ;;  %v3591_v50 = vld [vmem:[#allocation14 + $0x1e0] sm:$0xff] }
 0xd4e   :  { %v7783_v60 = vpop.eup %7782 }
 0xd4f   :  { %7788 = vrcp.f32 %v3143_v35  ;;  %v3149_v47 = vadd.f32 1.0, %v7783_v60  ;;  %v7785_v49 = vpop.eup %7784  ;;  %v3593_v60 = vld [vmem:[#allocation14 + $0x1f0] sm:$0xff] }
 0xd50   :  { %v7787_v52 = vpop.eup %7786 }
 0xd51   :  { %7790 = vrcp.f32 %v3149_v47  ;;  %v3156_v58 = vadd.f32 1.0, %v7787_v52  ;;  %v3588_v47 = vld [vmem:[#allocation14 + $0x1c8] sm:$0xff]  ;;  %v3587_v52 = vld [vmem:[#allocation14 + $0x1c0] sm:$0xff] }
 0xd53   :  { %7792 = vrcp.f32 %v3156_v58  ;;  %v3583_v58 = vld [vmem:[#allocation14 + $0x1a0] sm:$0xff] }
 0xd5c   :  { %v7789_v53 = vpop.eup %7788 }
 0xd5d   :  { %v3160_v51 = vmul.f32 %v7789_v53, %v7785_v49  ;;  %v3590_v49 = vld [vmem:[#allocation14 + $0x1d8] sm:$0xff]  ;;  %v3589_v53 = vld [vmem:[#allocation14 + $0x1d0] sm:$0xff] }
 0xd5e   :  { %v7791_v21 = vpop.eup %7790 }
 0xd5f   :  { %v3159_v59 = vmul.f32 %v7791_v21, %v10503_v8  ;;  %v3586_v21 = vld [vmem:[#allocation14 + $0x1b8] sm:$0xff] }
 0xd60   :  { %v7793_v0 = vpop.eup %7792 }
 0xd61   :  { %v10601_v25 = vadd.f32 %v3160_v51, %v3159_v59  ;;  %v3584_v51 = vld [vmem:[#allocation14 + $0x1a8] sm:$0xff]  ;;  %v3585_v59 = vld [vmem:[#allocation14 + $0x1b0] sm:$0xff] }
 0xd63   :  { %7794 = vtanh.f32 %v10601_v25 }
 0xd70   :  { %v7795_v18 = vpop.eup %7794 }
 0xd71   :  { %v10604_v37 = vmul.f32 %v7795_v18, %v7793_v0  ;;  %v3582_v0 = vld [vmem:[#allocation14 + $0x198] sm:$0xff]  ;;  %v3579_v18 = vld [vmem:[#allocation14 + $0x180] sm:$0xff] }
 0xd73   :  { %13293 = vst [vmem:[#allocation44_spill] sm:$0xff] %v10604_v37  ;;  %3234 = vmatmul.mubr.f32.vlgmr.msra.gmra.mxu0 %v10604_v37  ;;  %3305 = vmatmul.mubr.f32.vlgmr.msra.gmra.mxu1 %v10604_v37 }
 0xd74   :  { %3345 = vmatpush1.msra.mxu0 %v10328_v13  ;;  %3416 = vmatpush1.msra.mxu1 %v10331_v42  ;;  %v13294_v13 = vld [vmem:[#allocation88_spill] sm:$0xff]  ;;  %v13295_v42 = vld [vmem:[#allocation90_spill] sm:$0xff] }
 0xd75   :  { %3346 = vmatprep.subr.mxu0 %v10334_v17  ;;  %3417 = vmatprep.subr.mxu1 %v10337_v56  ;;  %v13296_v17 = vld [vmem:[#allocation89_spill] sm:$0xff] }
 0xd76   :  { %3347 = vmatpush1.msra.mxu0 %v10340_v44  ;;  %3418 = vmatpush1.msra.mxu1 %v10343_v9  ;;  %v13297_v56 = vld [vmem:[#allocation81_spill] sm:$0xff]  ;;  %v13298_v44 = vld [vmem:[#allocation80_spill] sm:$0xff]  ;;  %v13299_v9 = vld [vmem:[#allocation74_spill] sm:$0xff] }
 0xd77   :  { %3348 = vmatprep.subr.mxu0 %v10346_v10  ;;  %3419 = vmatprep.subr.mxu1 %v10349_v16  ;;  %v13300_v10 = vld [vmem:[#allocation66_spill] sm:$0xff]  ;;  %v13301_v16 = vld [vmem:[#allocation76_spill] sm:$0xff] }
 0xd78   :  { %3349 = vmatpush1.msra.mxu0 %v10352_v6  ;;  %3420 = vmatpush1.msra.mxu1 %v10355_v14  ;;  %v13302_v6 = vld [vmem:[#allocation71_spill] sm:$0xff]  ;;  %v13303_v14 = vld [vmem:[#allocation72_spill] sm:$0xff] }
 0xd79   :  { %3350 = vmatprep.subr.mxu0 %v10358_v38  ;;  %3421 = vmatprep.subr.mxu1 %v10361_v19  ;;  %v13304_v38 = vld [vmem:[#allocation83_spill] sm:$0xff]  ;;  %v13305_v19 = vld [vmem:[#allocation82_spill] sm:$0xff] }
 0xd7a   :  { %3351 = vmatpush1.msra.mxu0 %v10364_v36  ;;  %3422 = vmatpush1.msra.mxu1 %v10367_v40  ;;  %v13306_v36 = vld [vmem:[#allocation37_spill] sm:$0xff]  ;;  %v13307_v40 = vld [vmem:[#allocation39_spill] sm:$0xff] }
 0xd7b   :  { %3352 = vmatprep.subr.mxu0 %v10370_v41  ;;  %3423 = vmatprep.subr.mxu1 %v10373_v43  ;;  %v13308_v41 = vld [vmem:[#allocation40_spill] sm:$0xff]  ;;  %v13309_v43 = vld [vmem:[#allocation42_spill] sm:$0xff] }
 0xd7c   :  { %3353 = vmatpush1.msra.mxu0 %v10376_v46  ;;  %3424 = vmatpush1.msra.mxu1 %v10379_v2  ;;  %v13310_v46 = vmov 0.0   ;;  %v13311_v2 = vld [vmem:[#allocation41_spill] sm:$0xff] }
 0xd7d   :  { %3354 = vmatprep.subr.mxu0 %v10382_v4  ;;  %3425 = vmatprep.subr.mxu1 %v10385_v54  ;;  %v3592_v4 = vld [vmem:[#allocation14 + $0x1e8] sm:$0xff]  ;;  %v3594_v54 = vld [vmem:[#allocation14 + $0x1f8] sm:$0xff] }
 0xd7e   :  { %3355 = vmatpush1.msra.mxu0 %v10388_v27  ;;  %3426 = vmatpush1.msra.mxu1 %v10391_v45  ;;  %v13312_v45 = vld [vmem:[#allocation48_spill] sm:$0xff] }
 0xd7f   :  { %3356 = vmatprep.subr.mxu0 %v10394_v23  ;;  %3427 = vmatprep.subr.mxu1 %v10397_v12 }
 0xd80   :  { %3357 = vmatpush1.msra.mxu0 %v10400_v30  ;;  %3428 = vmatpush1.msra.mxu1 %v10403_v3  ;;  %v13313_v3 = vld [vmem:[#allocation49_spill] sm:$0xff] }
 0xd81   :  { %3358 = vmatprep.subr.mxu0 %v10406_v32  ;;  %3429 = vmatprep.subr.mxu1 %v10409_v61 }
 0xd82   :  { %3359 = vmatpush1.msra.mxu0 %v10412_v62  ;;  %3430 = vmatpush1.msra.mxu1 %v10415_v1 }
 0xd83   :  { %3360 = vmatprep.subr.mxu0 %v10418_v34  ;;  %3431 = vmatprep.subr.mxu1 %v10421_v29  ;;  %v13314_v34 = vld [vmem:[#allocation54_spill] sm:$0xff] }
 0xd84   :  { %3361 = vmatpush1.msra.mxu0 %v10424_v39  ;;  %3432 = vmatpush1.msra.mxu1 %v10427_v48  ;;  %v13315_v39 = vld [vmem:[#allocation52_spill] sm:$0xff] }
 0xd85   :  { %3362 = vmatprep.subr.mxu0 %v10430_v20  ;;  %3433 = vmatprep.subr.mxu1 %v10433_v24 }
 0xd86   :  { %3363 = vmatpush1.msra.mxu0 %v10436_v57  ;;  %3434 = vmatpush1.msra.mxu1 %v10439_v22 }
 0xd87   :  { %3364 = vmatprep.subr.mxu0 %v10442_v31  ;;  %3435 = vmatprep.subr.mxu1 %v10445_v55 }
 0xd88   :  { %3365 = vmatpush1.msra.mxu0 %v10448_v26  ;;  %3436 = vmatpush1.msra.mxu1 %v10451_v7 }
 0xd89   :  { %3366 = vmatprep.subr.mxu0 %v10454_v11  ;;  %3437 = vmatprep.subr.mxu1 %v10457_v15 }
 0xd8a   :  { %3367 = vmatpush1.msra.mxu0 %v13269_v5  ;;  %3438 = vmatpush1.msra.mxu1 %v13294_v13  ;;  %v3581_v13 = vld [vmem:[#allocation14 + $0x190] sm:$0xff] }
 0xd8b   :  { %3368 = vmatprep.subr.mxu0 %v13295_v42  ;;  %3439 = vmatprep.subr.mxu1 %v13296_v17  ;;  %v3576_v42 = vld [vmem:[#allocation14 + $0x168] sm:$0xff]  ;;  %v3578_v17 = vld [vmem:[#allocation14 + $0x178] sm:$0xff] }
 0xd8c   :  { %3369 = vmatpush1.msra.mxu0 %v13297_v56  ;;  %3440 = vmatpush1.msra.mxu1 %v13298_v44  ;;  %v3575_v56 = vld [vmem:[#allocation14 + $0x160] sm:$0xff]  ;;  %v3577_v44 = vld [vmem:[#allocation14 + $0x170] sm:$0xff] }
 0xd8d   :  { %3370 = vmatprep.subr.mxu0 %v13299_v9  ;;  %3441 = vmatprep.subr.mxu1 %v13300_v10  ;;  %v3572_v9 = vld [vmem:[#allocation14 + $0x148] sm:$0xff]  ;;  %v3574_v10 = vld [vmem:[#allocation14 + $0x158] sm:$0xff] }
 0xd8e   :  { %3371 = vmatpush1.msra.mxu0 %v13301_v16  ;;  %3442 = vmatpush1.msra.mxu1 %v13302_v6  ;;  %v3571_v16 = vld [vmem:[#allocation14 + $0x140] sm:$0xff]  ;;  %v3573_v6 = vld [vmem:[#allocation14 + $0x150] sm:$0xff] }
 0xd8f   :  { %3372 = vmatprep.subr.mxu0 %v13303_v14  ;;  %3443 = vmatprep.subr.mxu1 %v13304_v38  ;;  %v3568_v14 = vld [vmem:[#allocation14 + $0x128] sm:$0xff]  ;;  %v3570_v38 = vld [vmem:[#allocation14 + $0x138] sm:$0xff] }
 0xd90   :  { %3373 = vmatpush1.msra.mxu0 %v13305_v19  ;;  %3444 = vmatpush1.msra.mxu1 %v13306_v36  ;;  %v3567_v19 = vld [vmem:[#allocation14 + $0x120] sm:$0xff]  ;;  %v3569_v36 = vld [vmem:[#allocation14 + $0x130] sm:$0xff] }
 0xd91   :  { %3374 = vmatprep.subr.mxu0 %v13307_v40  ;;  %3445 = vmatprep.subr.mxu1 %v13308_v41  ;;  %v3564_v40 = vld [vmem:[#allocation14 + $0x108] sm:$0xff]  ;;  %v3566_v41 = vld [vmem:[#allocation14 + $0x118] sm:$0xff] }
 0xd92   :  { %3375 = vmatpush1.msra.mxu0 %v13309_v43  ;;  %3408 = vmatprep.mubr.f32.mxu0 %v13310_v46  ;;  %v3563_v43 = vld [vmem:[#allocation14 + $0x100] sm:$0xff] }
 0xd93   :  { %3446 = vmatpush1.msra.mxu1 %v13311_v2  ;;  %3479 = vmatprep.mubr.f32.mxu1 %v13310_v46  ;;  %v3565_v2 = vld [vmem:[#allocation14 + $0x110] sm:$0xff] }
 0xd94   :  { %3681 = vmatprep.subr.mxu0 %v3592_v4  ;;  %3794 = vmatprep.subr.mxu1 %v3594_v54  ;;  %v3560_v4 = vld [vmem:[#allocation14 + $0xe8] sm:$0xff]  ;;  %v3562_v54 = vld [vmem:[#allocation14 + $0xf8] sm:$0xff] }
 0xe33   :  { %v3235_v27 = vpop.f32.mrf.mxu0  ;;  %v3306_v61 = vpop.f32.mrf.mxu1 }
 0xe34   :  { %v3311_v23 = vadd.f32 %v3235_v27, %v13312_v45  ;;  %v3313_v48 = vadd.f32 %v3306_v61, %v13315_v39  ;;  %v3559_v27 = vld [vmem:[#allocation14 + $0xe0] sm:$0xff]  ;;  %v3561_v45 = vld [vmem:[#allocation14 + $0xf0] sm:$0xff]  ;;  %v3554_v61 = vld [vmem:[#allocation14 + $0xb8] sm:$0xff] }
 0xe35   :  { %v3237_v12 = vpop.f32.mrf.mxu0  ;;  %v3308_v1 = vpop.f32.mrf.mxu1  ;;  %v3547_v39 = vld [vmem:[#allocation14 + $0x80] sm:$0xff] }
 0xe36   :  { %v7367_v30 = vmul.f32 -1.442695, %v3311_v23  ;;  %v3312_v32 = vadd.f32 %v3237_v12, %v13313_v3  ;;  %v3314_v29 = vadd.f32 %v3308_v1, %v13314_v34  ;;  %v3556_v23 = vld [vmem:[#allocation14 + $0xc8] sm:$0xff]  ;;  %v3558_v12 = vld [vmem:[#allocation14 + $0xd8] sm:$0xff]  ;;  %v3557_v3 = vld [vmem:[#allocation14 + $0xd0] sm:$0xff] }
 0xe37   :  { %v3553_v1 = vld [vmem:[#allocation14 + $0xb0] sm:$0xff]  ;;  %v3548_v34 = vld [vmem:[#allocation14 + $0x88] sm:$0xff] }
 0xe38   :  { %7796 = vpow2.f32 %v7367_v30  ;;  %v7368_v62 = vmul.f32 -1.442695, %v3312_v32  ;;  %v7369_v20 = vmul.f32 -1.442695, %v3314_v29  ;;  %v3555_v30 = vld [vmem:[#allocation14 + $0xc0] sm:$0xff]  ;;  %v3552_v32 = vld [vmem:[#allocation14 + $0xa8] sm:$0xff] }
 0xe39   :  { %v3550_v29 = vld [vmem:[#allocation14 + $0x98] sm:$0xff] }
 0xe3a   :  { %7798 = vpow2.f32 %v7368_v62  ;;  %v3551_v62 = vld [vmem:[#allocation14 + $0xa0] sm:$0xff] }
 0xe3b   :  { %7800 = vtanh.f32 %v3313_v48  ;;  %v3549_v48 = vld [vmem:[#allocation14 + $0x90] sm:$0xff] }
 0xe3c   :  { %7802 = vpow2.f32 %v7369_v20  ;;  %v3544_v20 = vld [vmem:[#allocation14 + $0x68] sm:$0xff] }
 0xe45   :  { %v7797_v24 = vpop.eup %7796 }
 0xe46   :  { %v3318_v57 = vadd.f32 1.0, %v7797_v24  ;;  %v3546_v24 = vld [vmem:[#allocation14 + $0x78] sm:$0xff] }
 0xe47   :  { %v7799_v22 = vpop.eup %7798 }
 0xe48   :  { %7804 = vrcp.f32 %v3318_v57  ;;  %v3324_v31 = vadd.f32 1.0, %v7799_v22  ;;  %v7801_v55 = vpop.eup %7800  ;;  %v3543_v57 = vld [vmem:[#allocation14 + $0x60] sm:$0xff]  ;;  %v3545_v22 = vld [vmem:[#allocation14 + $0x70] sm:$0xff] }
 0xe49   :  { %v7803_v26 = vpop.eup %7802 }
 0xe4a   :  { %7806 = vrcp.f32 %v3324_v31  ;;  %v3331_v28 = vadd.f32 1.0, %v7803_v26  ;;  %v3540_v31 = vld [vmem:[#allocation14 + $0x48] sm:$0xff]  ;;  %v3539_v26 = vld [vmem:[#allocation14 + $0x40] sm:$0xff] }
 0xe4c   :  { %7808 = vrcp.f32 %v3331_v28  ;;  %v3535_v28 = vld [vmem:[#allocation14 + $0x20] sm:$0xff] }
 0xe55   :  { %v7805_v7 = vpop.eup %7804 }
 0xe56   :  { %v3335_v11 = vmul.f32 %v7805_v7, %v7801_v55  ;;  %v3542_v55 = vld [vmem:[#allocation14 + $0x58] sm:$0xff]  ;;  %v3541_v7 = vld [vmem:[#allocation14 + $0x50] sm:$0xff] }
 0xe57   :  { %v7807_v15 = vpop.eup %7806 }
 0xe58   :  { %v3334_v8 = vmul.f32 %v7807_v15, %v10601_v25  ;;  %v3580_v25 = vld [vmem:[#allocation14 + $0x188] sm:$0xff]  ;;  %v3538_v15 = vld [vmem:[#allocation14 + $0x38] sm:$0xff] }
 0xe59   :  { %v7809_v35 = vpop.eup %7808 }
 0xe5a   :  { %v10677_v5 = vadd.f32 %v3335_v11, %v3334_v8  ;;  %v3536_v11 = vld [vmem:[#allocation14 + $0x28] sm:$0xff]  ;;  %v3537_v8 = vld [vmem:[#allocation14 + $0x30] sm:$0xff] }
 0xe5c   :  { %7810 = vtanh.f32 %v10677_v5 }
 0xe69   :  { %v7811_v33 = vpop.eup %7810 }
 0xe6a   :  { %v10680_v63 = vmul.f32 %v7811_v33, %v7809_v35  ;;  %v3532_v35 = vld [vmem:[#allocation14 + $0x8] sm:$0xff]  ;;  %v3534_v33 = vld [vmem:[#allocation14 + $0x18] sm:$0xff] }
 0xe6c   :  { %13316 = vst [vmem:[#allocation43_spill] sm:$0xff] %v10680_v63  ;;  %3409 = vmatmul.mubr.f32.vlgmr.msra.gmra.mxu0 %v10680_v63  ;;  %3480 = vmatmul.mubr.f32.vlgmr.msra.gmra.mxu1 %v10680_v63 }
 0xe6d   :  { %3682 = vmatpush1.msra.mxu0 %v3591_v50  ;;  %3795 = vmatpush1.msra.mxu1 %v3593_v60  ;;  %v3531_v50 = vld [vmem:[#allocation14] sm:$0xff]  ;;  %v3533_v60 = vld [vmem:[#allocation14 + $0x10] sm:$0xff] }
 0xe6e   :  { %3683 = vmatprep.subr.mxu0 %v3588_v47  ;;  %3796 = vmatprep.subr.mxu1 %v3590_v49  ;;  %v3656_v47 = vld [vmem:[#allocation14 + $0x3e8] sm:$0xff]  ;;  %v3658_v49 = vld [vmem:[#allocation14 + $0x3f8] sm:$0xff] }
 0xe6f   :  { %3684 = vmatpush1.msra.mxu0 %v3587_v52  ;;  %3797 = vmatpush1.msra.mxu1 %v3589_v53  ;;  %v3655_v52 = vld [vmem:[#allocation14 + $0x3e0] sm:$0xff]  ;;  %v3657_v53 = vld [vmem:[#allocation14 + $0x3f0] sm:$0xff] }
 0xe70   :  { %3685 = vmatprep.subr.mxu0 %v3584_v51  ;;  %3798 = vmatprep.subr.mxu1 %v3586_v21  ;;  %v3652_v51 = vld [vmem:[#allocation14 + $0x3c8] sm:$0xff]  ;;  %v3654_v21 = vld [vmem:[#allocation14 + $0x3d8] sm:$0xff] }
 0xe71   :  { %3686 = vmatpush1.msra.mxu0 %v3583_v58  ;;  %3799 = vmatpush1.msra.mxu1 %v3585_v59  ;;  %v3651_v58 = vld [vmem:[#allocation14 + $0x3c0] sm:$0xff]  ;;  %v3653_v59 = vld [vmem:[#allocation14 + $0x3d0] sm:$0xff] }
 0xe72   :  { %3687 = vmatprep.subr.mxu0 %v3580_v25  ;;  %3800 = vmatprep.subr.mxu1 %v3582_v0  ;;  %v3648_v25 = vld [vmem:[#allocation14 + $0x3a8] sm:$0xff]  ;;  %v3650_v0 = vld [vmem:[#allocation14 + $0x3b8] sm:$0xff] }
 0xe73   :  { %3688 = vmatpush1.msra.mxu0 %v3579_v18  ;;  %3801 = vmatpush1.msra.mxu1 %v3581_v13  ;;  %v3647_v18 = vld [vmem:[#allocation14 + $0x3a0] sm:$0xff]  ;;  %v3649_v13 = vld [vmem:[#allocation14 + $0x3b0] sm:$0xff] }
 0xe74   :  { %3689 = vmatprep.subr.mxu0 %v3576_v42  ;;  %3802 = vmatprep.subr.mxu1 %v3578_v17  ;;  %v3644_v42 = vld [vmem:[#allocation14 + $0x388] sm:$0xff]  ;;  %v3646_v17 = vld [vmem:[#allocation14 + $0x398] sm:$0xff] }
 0xe75   :  { %3690 = vmatpush1.msra.mxu0 %v3575_v56  ;;  %3803 = vmatpush1.msra.mxu1 %v3577_v44  ;;  %v3643_v56 = vld [vmem:[#allocation14 + $0x380] sm:$0xff]  ;;  %v3645_v44 = vld [vmem:[#allocation14 + $0x390] sm:$0xff] }
 0xe76   :  { %3691 = vmatprep.subr.mxu0 %v3572_v9  ;;  %3804 = vmatprep.subr.mxu1 %v3574_v10  ;;  %v3640_v9 = vld [vmem:[#allocation14 + $0x368] sm:$0xff]  ;;  %v3642_v10 = vld [vmem:[#allocation14 + $0x378] sm:$0xff] }
 0xe77   :  { %3692 = vmatpush1.msra.mxu0 %v3571_v16  ;;  %3805 = vmatpush1.msra.mxu1 %v3573_v6  ;;  %v3639_v16 = vld [vmem:[#allocation14 + $0x360] sm:$0xff]  ;;  %v3641_v6 = vld [vmem:[#allocation14 + $0x370] sm:$0xff] }
 0xe78   :  { %3693 = vmatprep.subr.mxu0 %v3568_v14  ;;  %3806 = vmatprep.subr.mxu1 %v3570_v38  ;;  %v3636_v14 = vld [vmem:[#allocation14 + $0x348] sm:$0xff]  ;;  %v3638_v38 = vld [vmem:[#allocation14 + $0x358] sm:$0xff] }
 0xe79   :  { %3694 = vmatpush1.msra.mxu0 %v3567_v19  ;;  %3807 = vmatpush1.msra.mxu1 %v3569_v36  ;;  %v3635_v19 = vld [vmem:[#allocation14 + $0x340] sm:$0xff]  ;;  %v3637_v36 = vld [vmem:[#allocation14 + $0x350] sm:$0xff] }
 0xe7a   :  { %3695 = vmatprep.subr.mxu0 %v3564_v40  ;;  %3808 = vmatprep.subr.mxu1 %v3566_v41  ;;  %v3632_v40 = vld [vmem:[#allocation14 + $0x328] sm:$0xff]  ;;  %v3634_v41 = vld [vmem:[#allocation14 + $0x338] sm:$0xff] }
 0xe7b   :  { %3696 = vmatpush1.msra.mxu0 %v3563_v43  ;;  %3809 = vmatpush1.msra.mxu1 %v3565_v2  ;;  %v3631_v43 = vld [vmem:[#allocation14 + $0x320] sm:$0xff]  ;;  %v3633_v2 = vld [vmem:[#allocation14 + $0x330] sm:$0xff] }
 0xe7c   :  { %3697 = vmatprep.subr.mxu0 %v3560_v4  ;;  %3810 = vmatprep.subr.mxu1 %v3562_v54  ;;  %v3628_v4 = vld [vmem:[#allocation14 + $0x308] sm:$0xff]  ;;  %v3630_v54 = vld [vmem:[#allocation14 + $0x318] sm:$0xff] }
 0xe7d   :  { %3698 = vmatpush1.msra.mxu0 %v3559_v27  ;;  %3811 = vmatpush1.msra.mxu1 %v3561_v45  ;;  %v3627_v27 = vld [vmem:[#allocation14 + $0x300] sm:$0xff]  ;;  %v3629_v45 = vld [vmem:[#allocation14 + $0x310] sm:$0xff] }
 0xe7e   :  { %3699 = vmatprep.subr.mxu0 %v3556_v23  ;;  %3812 = vmatprep.subr.mxu1 %v3558_v12  ;;  %v3624_v23 = vld [vmem:[#allocation14 + $0x2e8] sm:$0xff]  ;;  %v3626_v12 = vld [vmem:[#allocation14 + $0x2f8] sm:$0xff] }
 0xe7f   :  { %3700 = vmatpush1.msra.mxu0 %v3555_v30  ;;  %3813 = vmatpush1.msra.mxu1 %v3557_v3  ;;  %v3623_v30 = vld [vmem:[#allocation14 + $0x2e0] sm:$0xff]  ;;  %v3625_v3 = vld [vmem:[#allocation14 + $0x2f0] sm:$0xff] }
 0xe80   :  { %3701 = vmatprep.subr.mxu0 %v3552_v32  ;;  %3814 = vmatprep.subr.mxu1 %v3554_v61  ;;  %v3620_v32 = vld [vmem:[#allocation14 + $0x2c8] sm:$0xff]  ;;  %v3622_v61 = vld [vmem:[#allocation14 + $0x2d8] sm:$0xff] }
 0xe81   :  { %3702 = vmatpush1.msra.mxu0 %v3551_v62  ;;  %3815 = vmatpush1.msra.mxu1 %v3553_v1  ;;  %v3619_v62 = vld [vmem:[#allocation14 + $0x2c0] sm:$0xff]  ;;  %v3621_v1 = vld [vmem:[#allocation14 + $0x2d0] sm:$0xff] }
 0xe82   :  { %3703 = vmatprep.subr.mxu0 %v3548_v34  ;;  %3816 = vmatprep.subr.mxu1 %v3550_v29  ;;  %v3616_v34 = vld [vmem:[#allocation14 + $0x2a8] sm:$0xff]  ;;  %v3618_v29 = vld [vmem:[#allocation14 + $0x2b8] sm:$0xff] }
 0xe83   :  { %3704 = vmatpush1.msra.mxu0 %v3547_v39  ;;  %3817 = vmatpush1.msra.mxu1 %v3549_v48  ;;  %v3615_v39 = vld [vmem:[#allocation14 + $0x2a0] sm:$0xff]  ;;  %v3617_v48 = vld [vmem:[#allocation14 + $0x2b0] sm:$0xff] }
 0xe84   :  { %3705 = vmatprep.subr.mxu0 %v3544_v20  ;;  %3818 = vmatprep.subr.mxu1 %v3546_v24  ;;  %v3612_v20 = vld [vmem:[#allocation14 + $0x288] sm:$0xff]  ;;  %v3614_v24 = vld [vmem:[#allocation14 + $0x298] sm:$0xff] }
 0xe85   :  { %3706 = vmatpush1.msra.mxu0 %v3543_v57  ;;  %3819 = vmatpush1.msra.mxu1 %v3545_v22  ;;  %v3611_v57 = vld [vmem:[#allocation14 + $0x280] sm:$0xff]  ;;  %v3613_v22 = vld [vmem:[#allocation14 + $0x290] sm:$0xff] }
 0xe86   :  { %3707 = vmatprep.subr.mxu0 %v3540_v31  ;;  %3820 = vmatprep.subr.mxu1 %v3542_v55  ;;  %v3608_v31 = vld [vmem:[#allocation14 + $0x268] sm:$0xff]  ;;  %v3610_v55 = vld [vmem:[#allocation14 + $0x278] sm:$0xff] }
 0xe87   :  { %3708 = vmatpush1.msra.mxu0 %v3539_v26  ;;  %3821 = vmatpush1.msra.mxu1 %v3541_v7  ;;  %v3607_v26 = vld [vmem:[#allocation14 + $0x260] sm:$0xff]  ;;  %v3609_v7 = vld [vmem:[#allocation14 + $0x270] sm:$0xff] }
 0xe88   :  { %3709 = vmatprep.subr.mxu0 %v3536_v11  ;;  %3822 = vmatprep.subr.mxu1 %v3538_v15  ;;  %v3604_v11 = vld [vmem:[#allocation14 + $0x248] sm:$0xff]  ;;  %v3606_v15 = vld [vmem:[#allocation14 + $0x258] sm:$0xff] }
 0xe89   :  { %3710 = vmatpush1.msra.mxu0 %v3535_v28  ;;  %3823 = vmatpush1.msra.mxu1 %v3537_v8  ;;  %v3603_v28 = vld [vmem:[#allocation14 + $0x240] sm:$0xff]  ;;  %v3605_v8 = vld [vmem:[#allocation14 + $0x250] sm:$0xff] }
 0xe8a   :  { %3711 = vmatprep.subr.mxu0 %v3532_v35  ;;  %3824 = vmatprep.subr.mxu1 %v3534_v33  ;;  %v3600_v35 = vld [vmem:[#allocation14 + $0x228] sm:$0xff]  ;;  %v3602_v33 = vld [vmem:[#allocation14 + $0x238] sm:$0xff] }
 0xe8b   :  { %3712 = vmatpush1.msra.mxu0 %v3531_v50  ;;  %3825 = vmatpush1.msra.mxu1 %v3533_v60  ;;  %v3599_v50 = vld [vmem:[#allocation14 + $0x220] sm:$0xff]  ;;  %v3601_v60 = vld [vmem:[#allocation14 + $0x230] sm:$0xff] }
 0xe8c   :  { %3713 = vmatprep.subr.mxu0 %v3656_v47  ;;  %3826 = vmatprep.subr.mxu1 %v3658_v49  ;;  %v3596_v47 = vld [vmem:[#allocation14 + $0x208] sm:$0xff]  ;;  %v3598_v49 = vld [vmem:[#allocation14 + $0x218] sm:$0xff] }
 0xe8d   :  { %3714 = vmatpush2.msra.mxu0 %v3655_v52  ;;  %3827 = vmatpush2.msra.mxu1 %v3657_v53  ;;  %v3595_v52 = vld [vmem:[#allocation14 + $0x200] sm:$0xff]  ;;  %v3597_v53 = vld [vmem:[#allocation14 + $0x210] sm:$0xff] }
 0xe8e   :  { %3715 = vmatprep.subr.mxu0 %v3652_v51  ;;  %3828 = vmatprep.subr.mxu1 %v3654_v21  ;;  %v13317_v21 = vld [vmem:[#allocation46_spill] sm:$0xff] }
 0xe8f   :  { %3716 = vmatpush2.msra.mxu0 %v3651_v58  ;;  %3829 = vmatpush2.msra.mxu1 %v3653_v59 }
 0xe90   :  { %3717 = vmatprep.subr.mxu0 %v3648_v25  ;;  %3830 = vmatprep.subr.mxu1 %v3650_v0  ;;  %v13318_v0 = vld [vmem:[#allocation45_spill] sm:$0xff] }
 0xe91   :  { %3718 = vmatpush2.msra.mxu0 %v3647_v18  ;;  %3831 = vmatpush2.msra.mxu1 %v3649_v13 }
 0xe92   :  { %3719 = vmatprep.subr.mxu0 %v3644_v42  ;;  %3832 = vmatprep.subr.mxu1 %v3646_v17 }
 0xe93   :  { %3720 = vmatpush2.msra.mxu0 %v3643_v56  ;;  %3833 = vmatpush2.msra.mxu1 %v3645_v44  ;;  %v13319_v56 = vld [vmem:[#allocation50_spill] sm:$0xff] }
 0xe94   :  { %3721 = vmatprep.subr.mxu0 %v3640_v9  ;;  %3834 = vmatprep.subr.mxu1 %v3642_v10  ;;  %v13320_v9 = vld [vmem:[#allocation47_spill] sm:$0xff] }
 0xe95   :  { %3722 = vmatpush2.msra.mxu0 %v3639_v16  ;;  %3835 = vmatpush2.msra.mxu1 %v3641_v6 }
 0xe96   :  { %3723 = vmatprep.subr.mxu0 %v3636_v14  ;;  %3836 = vmatprep.subr.mxu1 %v3638_v38 }
 0xe97   :  { %3724 = vmatpush2.msra.mxu0 %v3635_v19  ;;  %3837 = vmatpush2.msra.mxu1 %v3637_v36 }
 0xe98   :  { %3725 = vmatprep.subr.mxu0 %v3632_v40  ;;  %3838 = vmatprep.subr.mxu1 %v3634_v41 }
 0xe99   :  { %3726 = vmatpush2.msra.mxu0 %v3631_v43  ;;  %3839 = vmatpush2.msra.mxu1 %v3633_v2 }
 0xe9a   :  { %3727 = vmatprep.subr.mxu0 %v3628_v4  ;;  %3840 = vmatprep.subr.mxu1 %v3630_v54 }
 0xe9b   :  { %3728 = vmatpush2.msra.mxu0 %v3627_v27  ;;  %3841 = vmatpush2.msra.mxu1 %v3629_v45 }
 0xe9c   :  { %3729 = vmatprep.subr.mxu0 %v3624_v23  ;;  %3842 = vmatprep.subr.mxu1 %v3626_v12 }
 0xe9d   :  { %3730 = vmatpush2.msra.mxu0 %v3623_v30  ;;  %3843 = vmatpush2.msra.mxu1 %v3625_v3  ;;  %v13322_v30 = vld [vmem:[#allocation64_spill] sm:$0xff] }
 0xe9e   :  { %3731 = vmatprep.subr.mxu0 %v3620_v32  ;;  %3844 = vmatprep.subr.mxu1 %v3622_v61  ;;  %v13324_v3 = vld [vmem:[#allocation36_spill] sm:$0xff]  ;;  %v13325_v32 = vld [vmem:[#allocation77_spill] sm:$0xff] }
 0xe9f   :  { %3732 = vmatpush2.msra.mxu0 %v3619_v62  ;;  %3845 = vmatpush2.msra.mxu1 %v3621_v1  ;;  %v13326_v61 = vld [vmem:[#allocation65_spill] sm:$0xff]  ;;  %v13327_v62 = vld [vmem:[#allocation79_spill] sm:$0xff]  ;;  %v13328_v1 = vld [vmem:[#allocation38_spill] sm:$0xff] }
 0xea0   :  { %3733 = vmatprep.subr.mxu0 %v3616_v34  ;;  %3846 = vmatprep.subr.mxu1 %v3618_v29  ;;  %v13329_v34 = vld [vmem:[#allocation70_spill] sm:$0xff]  ;;  %v13330_v29 = vld [vmem:[#allocation35_spill] sm:$0xff] }
 0xea1   :  { %3734 = vmatpush2.msra.mxu0 %v3615_v39  ;;  %3847 = vmatpush2.msra.mxu1 %v3617_v48  ;;  %v13331_v39 = vld [vmem:[#allocation78_spill] sm:$0xff]  ;;  %v13332_v48 = vld [vmem:[#allocation67_spill] sm:$0xff] }
 0xea2   :  { %3735 = vmatprep.subr.mxu0 %v3612_v20  ;;  %3848 = vmatprep.subr.mxu1 %v3614_v24  ;;  %v13333_v20 = vld [vmem:[#allocation92_spill] sm:$0xff]  ;;  %v13334_v24 = vld [vmem:[#allocation91_spill] sm:$0xff] }
 0xea3   :  { %3736 = vmatpush2.msra.mxu0 %v3611_v57  ;;  %3849 = vmatpush2.msra.mxu1 %v3613_v22  ;;  %v10725_v57 = vld [vmem:[#allocation16 + $0x1e8] sm:$0xff]  ;;  %v10727_v22 = vld [vmem:[#allocation16 + $0x1f8] sm:$0xff] }
 0xea4   :  { %3737 = vmatprep.subr.mxu0 %v3608_v31  ;;  %3850 = vmatprep.subr.mxu1 %v3610_v55  ;;  %13335 = vst [vmem:[#allocation85_spill] sm:$0xff] %v10725_v57  ;;  %13336 = vst [vmem:[#allocation87_spill] sm:$0xff] %v10727_v22  ;;  %v10730_v31 = vld [vmem:[#allocation16 + $0x1e0] sm:$0xff]  ;;  %v10733_v55 = vld [vmem:[#allocation16 + $0x1f0] sm:$0xff] }
 0xea5   :  { %3738 = vmatpush2.msra.mxu0 %v3607_v26  ;;  %3851 = vmatpush2.msra.mxu1 %v3609_v7  ;;  %v10736_v26 = vld [vmem:[#allocation16 + $0x1c8] sm:$0xff]  ;;  %v10739_v7 = vld [vmem:[#allocation16 + $0x1d8] sm:$0xff] }
 0xea6   :  { %3739 = vmatprep.subr.mxu0 %v3604_v11  ;;  %3852 = vmatprep.subr.mxu1 %v3606_v15  ;;  %v10742_v11 = vld [vmem:[#allocation16 + $0x1c0] sm:$0xff]  ;;  %v10745_v15 = vld [vmem:[#allocation16 + $0x1d0] sm:$0xff] }
 0xea7   :  { %3740 = vmatpush2.msra.mxu0 %v3603_v28  ;;  %3853 = vmatpush2.msra.mxu1 %v3605_v8  ;;  %v10748_v28 = vld [vmem:[#allocation16 + $0x1a8] sm:$0xff]  ;;  %v10751_v8 = vld [vmem:[#allocation16 + $0x1b8] sm:$0xff] }
 0xea8   :  { %3741 = vmatprep.subr.mxu0 %v3600_v35  ;;  %3854 = vmatprep.subr.mxu1 %v3602_v33  ;;  %v10754_v35 = vld [vmem:[#allocation16 + $0x1a0] sm:$0xff]  ;;  %v10757_v33 = vld [vmem:[#allocation16 + $0x1b0] sm:$0xff] }
 0xea9   :  { %3742 = vmatpush2.msra.mxu0 %v3599_v50  ;;  %3855 = vmatpush2.msra.mxu1 %v3601_v60  ;;  %v10760_v50 = vld [vmem:[#allocation16 + $0x188] sm:$0xff]  ;;  %v10763_v60 = vld [vmem:[#allocation16 + $0x198] sm:$0xff] }
 0xeaa   :  { %3743 = vmatprep.subr.mxu0 %v3596_v47  ;;  %3856 = vmatprep.subr.mxu1 %v3598_v49  ;;  %v10766_v47 = vld [vmem:[#allocation16 + $0x180] sm:$0xff]  ;;  %v10769_v49 = vld [vmem:[#allocation16 + $0x190] sm:$0xff] }
 0xeab   :  { %3744 = vmatpush2.msra.mxu0 %v3595_v52  ;;  %3857 = vmatpush2.msra.mxu1 %v3597_v53  ;;  %v10772_v52 = vld [vmem:[#allocation16 + $0x168] sm:$0xff]  ;;  %v10775_v53 = vld [vmem:[#allocation16 + $0x178] sm:$0xff] }
 0xeac   :  { %4027 = vmatprep.subr.mxu0 %v10725_v57  ;;  %4098 = vmatprep.subr.mxu1 %v10727_v22 }
 0xf2c   :  { %v3410_v51 = vpop.f32.mrf.mxu0  ;;  %v3481_v13 = vpop.f32.mrf.mxu1 }
 0xf2d   :  { %v3486_v58 = vadd.f32 %v3410_v51, %v13317_v21  ;;  %v3488_v10 = vadd.f32 %v3481_v13, %v13320_v9  ;;  %v10778_v51 = vld [vmem:[#allocation16 + $0x160] sm:$0xff]  ;;  %v10781_v21 = vld [vmem:[#allocation16 + $0x170] sm:$0xff]  ;;  %v10799_v13 = vld [vmem:[#allocation16 + $0x138] sm:$0xff] }
 0xf2e   :  { %v3412_v59 = vpop.f32.mrf.mxu0  ;;  %v3483_v17 = vpop.f32.mrf.mxu1  ;;  %v10814_v9 = vld [vmem:[#allocation16 + $0x100] sm:$0xff] }
 0xf2f   :  { %v7370_v25 = vmul.f32 -1.442695, %v3486_v58  ;;  %v3487_v18 = vadd.f32 %v3412_v59, %v13318_v0  ;;  %v3489_v44 = vadd.f32 %v3483_v17, %v13319_v56  ;;  %v10784_v58 = vld [vmem:[#allocation16 + $0x148] sm:$0xff]  ;;  %v10787_v59 = vld [vmem:[#allocation16 + $0x158] sm:$0xff]  ;;  %v10793_v0 = vld [vmem:[#allocation16 + $0x150] sm:$0xff] }
 0xf30   :  { %v10805_v17 = vld [vmem:[#allocation16 + $0x130] sm:$0xff]  ;;  %v10808_v56 = vld [vmem:[#allocation16 + $0x108] sm:$0xff] }
 0xf31   :  { %7812 = vpow2.f32 %v7370_v25  ;;  %v7371_v42 = vmul.f32 -1.442695, %v3487_v18  ;;  %v7372_v16 = vmul.f32 -1.442695, %v3489_v44  ;;  %v10790_v25 = vld [vmem:[#allocation16 + $0x140] sm:$0xff]  ;;  %v10796_v18 = vld [vmem:[#allocation16 + $0x128] sm:$0xff] }
 0xf32   :  { %v10811_v44 = vld [vmem:[#allocation16 + $0x118] sm:$0xff] }
 0xf33   :  { %7814 = vpow2.f32 %v7371_v42  ;;  %v10802_v42 = vld [vmem:[#allocation16 + $0x120] sm:$0xff] }
 0xf34   :  { %7816 = vtanh.f32 %v3488_v10  ;;  %v10817_v10 = vld [vmem:[#allocation16 + $0x110] sm:$0xff] }
 0xf35   :  { %7818 = vpow2.f32 %v7372_v16  ;;  %v10820_v16 = vld [vmem:[#allocation16 + $0xe8] sm:$0xff] }
 0xf3e   :  { %v7813_v6 = vpop.eup %7812 }
 0xf3f   :  { %v3493_v14 = vadd.f32 1.0, %v7813_v6  ;;  %v10823_v6 = vld [vmem:[#allocation16 + $0xe0] sm:$0xff] }
 0xf40   :  { %v7815_v38 = vpop.eup %7814 }
 0xf41   :  { %7820 = vrcp.f32 %v3493_v14  ;;  %v3499_v19 = vadd.f32 1.0, %v7815_v38  ;;  %v7817_v36 = vpop.eup %7816  ;;  %v10825_v14 = vld [vmem:[#allocation16 + $0xf8] sm:$0xff]  ;;  %v10829_v38 = vld [vmem:[#allocation16 + $0xc8] sm:$0xff] }
 0xf42   :  { %v7819_v40 = vpop.eup %7818 }
 0xf43   :  { %7822 = vrcp.f32 %v3499_v19  ;;  %v3506_v4 = vadd.f32 1.0, %v7819_v40  ;;  %v10831_v19 = vld [vmem:[#allocation16 + $0xf0] sm:$0xff]  ;;  %v10837_v40 = vld [vmem:[#allocation16 + $0xd8] sm:$0xff] }
 0xf45   :  { %7824 = vrcp.f32 %v3506_v4  ;;  %v10847_v4 = vld [vmem:[#allocation16 + $0xb8] sm:$0xff] }
 0xf4e   :  { %v7821_v41 = vpop.eup %7820 }
 0xf4f   :  { %v3510_v43 = vmul.f32 %v7821_v41, %v7817_v36  ;;  %v10833_v36 = vld [vmem:[#allocation16 + $0xc0] sm:$0xff]  ;;  %v10839_v41 = vld [vmem:[#allocation16 + $0xa8] sm:$0xff] }
 0xf50   :  { %v7823_v2 = vpop.eup %7822 }
 0xf51   :  { %v3509_v54 = vmul.f32 %v7823_v2, %v10677_v5  ;;  %v13323_v5 = vld [vmem:[#allocation62_spill] sm:$0xff]  ;;  %v10845_v2 = vld [vmem:[#allocation16 + $0xa0] sm:$0xff] }
 0xf52   :  { %v7825_v45 = vpop.eup %7824 }
 0xf53   :  { %v3511_v27 = vadd.f32 %v3510_v43, %v3509_v54  ;;  %v10841_v43 = vld [vmem:[#allocation16 + $0xd0] sm:$0xff]  ;;  %v10851_v54 = vld [vmem:[#allocation16 + $0x88] sm:$0xff] }
 0xf54   :  { %13337 = vst [vmem:[#allocation84_spill] sm:$0xff] %v10851_v54 }
 0xf55   :  { %7826 = vtanh.f32 %v3511_v27  ;;  %v10853_v27 = vld [vmem:[#allocation16 + $0xb0] sm:$0xff] }
 0xf62   :  { %v7827_v23 = vpop.eup %7826 }
 0xf63   :  { %v10689_v12 = vmul.f32 %v7827_v23, %v7825_v45  ;;  %v10855_v45 = vld [vmem:[#allocation16 + $0x98] sm:$0xff]  ;;  %v10859_v23 = vld [vmem:[#allocation16 + $0x80] sm:$0xff] }
 0xf64   :  { %13338 = vst [vmem:[#allocation55_spill] sm:$0xff] %v10855_v45  ;;  %13339 = vst [vmem:[#allocation34_spill] sm:$0xff] %v10859_v23 }
 0xf65   :  { %13321 = vst [vmem:[#allocation73_spill] sm:$0xff] %v10689_v12  ;;  %3745 = vmatprep.mubr.f32.mxu0 %v10689_v12  ;;  %3858 = vmatprep.mubr.f32.mxu1 %v10689_v12  ;;  %v10907_v12 = vld [vmem:[#allocation16] sm:$0xff] }
 0xf66   :  { %3746 = vmatmul.mubr.f32.vlgmr.msra.gmra.mxu0 %v13322_v30  ;;  %3859 = vmatmul.mubr.f32.vlgmr.msra.gmra.mxu1 %v13322_v30  ;;  %v10903_v30 = vld [vmem:[#allocation16 + $0x18] sm:$0xff]  ;;  %13355 = vst [vmem:[#allocation66_spill] sm:$0xff] %v10907_v12 }
 0xf67   :  { %3751 = vmatprep.mubr.f32.mxu0 %v10680_v63  ;;  %3864 = vmatprep.mubr.f32.mxu1 %v10680_v63  ;;  %v10901_v63 = vld [vmem:[#allocation16 + $0x8] sm:$0xff]  ;;  %13354 = vst [vmem:[#allocation74_spill] sm:$0xff] %v10903_v30 }
 0xf68   :  { %4028 = vmatpush1.msra.mxu0 %v10730_v31  ;;  %4099 = vmatpush1.msra.mxu1 %v10733_v55  ;;  %13353 = vst [vmem:[#allocation80_spill] sm:$0xff] %v10901_v63 }
 0xf69   :  { %4029 = vmatprep.subr.mxu0 %v10736_v26  ;;  %4100 = vmatprep.subr.mxu1 %v10739_v7 }
 0xf6a   :  { %3752 = vmatmul.mubr.f32.gmra.mxu0 %v13323_v5  ;;  %3865 = vmatmul.mubr.f32.gmra.mxu1 %v13323_v5  ;;  %v10897_v5 = vld [vmem:[#allocation16 + $0x30] sm:$0xff] }
 0xf6b   :  { %3757 = vmatprep.mubr.f32.mxu0 %v10604_v37  ;;  %3870 = vmatprep.mubr.f32.mxu1 %v10604_v37  ;;  %v10895_v37 = vld [vmem:[#allocation16 + $0x20] sm:$0xff]  ;;  %13352 = vst [vmem:[#allocation81_spill] sm:$0xff] %v10897_v5 }
 0xf6c   :  { %4030 = vmatpush1.msra.mxu0 %v10742_v11  ;;  %4101 = vmatpush1.msra.mxu1 %v10745_v15  ;;  %13351 = vst [vmem:[#allocation89_spill] sm:$0xff] %v10895_v37 }
 0xf6d   :  { %4031 = vmatprep.subr.mxu0 %v10748_v28  ;;  %4102 = vmatprep.subr.mxu1 %v10751_v8 }
 0xf6e   :  { %3758 = vmatmul.mubr.f32.gmra.mxu0 %v13324_v3  ;;  %3871 = vmatmul.mubr.f32.gmra.mxu1 %v13324_v3  ;;  %v10891_v3 = vld [vmem:[#allocation16 + $0x38] sm:$0xff] }
 0xf6f   :  { %3763 = vmatprep.mubr.f32.mxu0 %v13325_v32  ;;  %3876 = vmatprep.mubr.f32.mxu1 %v13325_v32  ;;  %v10889_v32 = vld [vmem:[#allocation16 + $0x28] sm:$0xff]  ;;  %13350 = vst [vmem:[#allocation90_spill] sm:$0xff] %v10891_v3 }
 0xf70   :  { %4032 = vmatpush1.msra.mxu0 %v10754_v35  ;;  %4103 = vmatpush1.msra.mxu1 %v10757_v33  ;;  %13349 = vst [vmem:[#allocation88_spill] sm:$0xff] %v10889_v32 }
 0xf71   :  { %4033 = vmatprep.subr.mxu0 %v10760_v50  ;;  %4104 = vmatprep.subr.mxu1 %v10763_v60 }
 0xf72   :  { %3764 = vmatmul.mubr.f32.gmra.mxu0 %v13326_v61  ;;  %3877 = vmatmul.mubr.f32.gmra.mxu1 %v13326_v61  ;;  %v10885_v61 = vld [vmem:[#allocation16 + $0x50] sm:$0xff] }
 0xf73   :  { %3769 = vmatprep.mubr.f32.mxu0 %v13327_v62  ;;  %3882 = vmatprep.mubr.f32.mxu1 %v13327_v62  ;;  %v10883_v62 = vld [vmem:[#allocation16 + $0x40] sm:$0xff]  ;;  %13348 = vst [vmem:[#allocation56_spill] sm:$0xff] %v10885_v61 }
 0xf74   :  { %4034 = vmatpush1.msra.mxu0 %v10766_v47  ;;  %4105 = vmatpush1.msra.mxu1 %v10769_v49  ;;  %13347 = vst [vmem:[#allocation57_spill] sm:$0xff] %v10883_v62 }
 0xf75   :  { %4035 = vmatprep.subr.mxu0 %v10772_v52  ;;  %4106 = vmatprep.subr.mxu1 %v10775_v53 }
 0xf76   :  { %3770 = vmatmul.mubr.f32.gmra.mxu0 %v13328_v1  ;;  %3883 = vmatmul.mubr.f32.gmra.mxu1 %v13328_v1  ;;  %v10879_v1 = vld [vmem:[#allocation16 + $0x58] sm:$0xff] }
 0xf77   :  { %3775 = vmatprep.mubr.f32.mxu0 %v13329_v34  ;;  %3888 = vmatprep.mubr.f32.mxu1 %v13329_v34  ;;  %v10877_v34 = vld [vmem:[#allocation16 + $0x48] sm:$0xff]  ;;  %13346 = vst [vmem:[#allocation53_spill] sm:$0xff] %v10879_v1 }
 0xf78   :  { %4036 = vmatpush1.msra.mxu0 %v10778_v51  ;;  %4107 = vmatpush1.msra.mxu1 %v10781_v21  ;;  %13345 = vst [vmem:[#allocation51_spill] sm:$0xff] %v10877_v34 }
 0xf79   :  { %4037 = vmatprep.subr.mxu0 %v10784_v58  ;;  %4108 = vmatprep.subr.mxu1 %v10787_v59 }
 0xf7a   :  { %3776 = vmatmul.mubr.f32.gmra.mxu0 %v13330_v29  ;;  %3889 = vmatmul.mubr.f32.gmra.mxu1 %v13330_v29  ;;  %v10873_v29 = vld [vmem:[#allocation16 + $0x70] sm:$0xff] }
 0xf7b   :  { %3781 = vmatprep.mubr.f32.mxu0 %v13331_v39  ;;  %3894 = vmatprep.mubr.f32.mxu1 %v13331_v39  ;;  %v10871_v39 = vld [vmem:[#allocation16 + $0x60] sm:$0xff]  ;;  %13344 = vst [vmem:[#allocation68_spill] sm:$0xff] %v10873_v29 }
 0xf7c   :  { %4038 = vmatpush1.msra.mxu0 %v10790_v25  ;;  %4109 = vmatpush1.msra.mxu1 %v10793_v0  ;;  %13343 = vst [vmem:[#allocation69_spill] sm:$0xff] %v10871_v39 }
 0xf7d   :  { %4039 = vmatprep.subr.mxu0 %v10796_v18  ;;  %4110 = vmatprep.subr.mxu1 %v10799_v13 }
 0xf7e   :  { %3782 = vmatmul.mubr.f32.gmra.mxu0 %v13332_v48  ;;  %3895 = vmatmul.mubr.f32.gmra.mxu1 %v13332_v48  ;;  %v10867_v48 = vld [vmem:[#allocation16 + $0x78] sm:$0xff] }
 0xf7f   :  { %3787 = vmatprep.mubr.f32.mxu0 %v13333_v20  ;;  %3900 = vmatprep.mubr.f32.mxu1 %v13333_v20  ;;  %v10865_v20 = vld [vmem:[#allocation16 + $0x68] sm:$0xff]  ;;  %13342 = vst [vmem:[#allocation86_spill] sm:$0xff] %v10867_v48 }
 0xf80   :  { %4040 = vmatpush1.msra.mxu0 %v10802_v42  ;;  %4111 = vmatpush1.msra.mxu1 %v10805_v17  ;;  %13341 = vst [vmem:[#allocation60_spill] sm:$0xff] %v10865_v20 }
 0xf81   :  { %4041 = vmatprep.subr.mxu0 %v10808_v56  ;;  %4112 = vmatprep.subr.mxu1 %v10811_v44 }
 0xf82   :  { %3788 = vmatmul.mubr.f32.gmra.mxu0 %v13334_v24  ;;  %3901 = vmatmul.mubr.f32.gmra.mxu1 %v13334_v24  ;;  %v10861_v24 = vld [vmem:[#allocation16 + $0x90] sm:$0xff] }
 0xf83   :  { %4091 = vmatprep.mubr.f32.mxu0 %v13310_v46  ;;  %4162 = vmatprep.mubr.f32.mxu1 %v13310_v46  ;;  %13340 = vst [vmem:[#allocation75_spill] sm:$0xff] %v10861_v24  ;;  %v10909_v46 = vld [vmem:[#allocation16 + $0x10] sm:$0xff] }
 0xf84   :  { %4042 = vmatpush1.msra.mxu0 %v10814_v9  ;;  %4113 = vmatpush1.msra.mxu1 %v10817_v10  ;;  %13356 = vst [vmem:[#allocation76_spill] sm:$0xff] %v10909_v46 }
 0xf85   :  { %4043 = vmatprep.subr.mxu0 %v10820_v16  ;;  %4114 = vmatprep.subr.mxu1 %v10825_v14 }
 0xf86   :  { %4044 = vmatpush1.msra.mxu0 %v10823_v6  ;;  %4115 = vmatpush1.msra.mxu1 %v10831_v19 }
 0xf87   :  { %4045 = vmatprep.subr.mxu0 %v10829_v38  ;;  %4116 = vmatprep.subr.mxu1 %v10837_v40 }
 0xf88   :  { %4046 = vmatpush1.msra.mxu0 %v10833_v36  ;;  %4117 = vmatpush1.msra.mxu1 %v10841_v43 }
 0xf89   :  { %4047 = vmatprep.subr.mxu0 %v10839_v41  ;;  %4118 = vmatprep.subr.mxu1 %v10847_v4 }
 0xf8a   :  { %4048 = vmatpush1.msra.mxu0 %v10845_v2  ;;  %4119 = vmatpush1.msra.mxu1 %v10853_v27 }
 0xf8b   :  { %4049 = vmatprep.subr.mxu0 %v10851_v54  ;;  %4120 = vmatprep.subr.mxu1 %v10855_v45 }
 0xf8c   :  { %4050 = vmatpush1.msra.mxu0 %v10859_v23  ;;  %4121 = vmatpush1.msra.mxu1 %v10861_v24 }
 0xf8d   :  { %4051 = vmatprep.subr.mxu0 %v10865_v20  ;;  %4122 = vmatprep.subr.mxu1 %v10867_v48 }
 0xf8e   :  { %4052 = vmatpush1.msra.mxu0 %v10871_v39  ;;  %4123 = vmatpush1.msra.mxu1 %v10873_v29 }
 0xf8f   :  { %4053 = vmatprep.subr.mxu0 %v10877_v34  ;;  %4124 = vmatprep.subr.mxu1 %v10879_v1  ;;  %v13358_v1 = vld [vmem:[#allocation61_spill] sm:$0xff] }
 0xf90   :  { %4054 = vmatpush1.msra.mxu0 %v10883_v62  ;;  %4125 = vmatpush1.msra.mxu1 %v10885_v61 }
 0xf91   :  { %4055 = vmatprep.subr.mxu0 %v10889_v32  ;;  %4126 = vmatprep.subr.mxu1 %v10891_v3  ;;  %v3659_v3 = vld [vmem:[%s12549_s9] sm:$0xf]  ;;  %v13357_v32 = vld [vmem:[#allocation59_spill] sm:$0xff] }
 0xf92   :  { %4056 = vmatpush1.msra.mxu0 %v10895_v37  ;;  %4127 = vmatpush1.msra.mxu1 %v10897_v5  ;;  %v10923_v37 = vrot.slane %v3659_v3, %v13357_v32  ;;  %v13364_v32 = vld [vmem:[#allocation63_spill] sm:$0xff] }
 0xf93   :  { %4057 = vmatprep.subr.mxu0 %v10901_v63  ;;  %4128 = vmatprep.subr.mxu1 %v10903_v30  ;;  %v10938_v39 = vrot.slane %v3659_v3, %v13364_v32 }
 0xf94   :  { %4058 = vmatpush1.msra.mxu0 %v10907_v12  ;;  %4129 = vmatpush1.msra.mxu1 %v10909_v46  ;;  %v10927_v46 = vrot.slane %v3659_v3, %v13358_v1 }
 0xf95   :  { %4203 = vmatprep.subr.mxu0 %v10725_v57  ;;  %4274 = vmatprep.subr.mxu1 %v10727_v22 }
 0xf96   :  { %13359 = vst [vmem:[#allocation71_spill] sm:$0xff] %v10927_v46 }
0x1026   :  { %v3747_v5 = vpop.f32.mrf.mxu0  ;;  %v3860_v61 = vpop.f32.mrf.mxu1 }
0x1027   :  { %v3748_v63 = vadd.f32 %v3747_v5, %v10923_v37 }
0x1028   :  { %v3749_v30 = vpop.f32.mrf.mxu0  ;;  %v3862_v62 = vpop.f32.mrf.mxu1 }
0x1029   :  { %v7373_v12 = vmul.f32 -1.442695, %v3748_v63  ;;  %v3863_v5 = vadd.f32 %v3862_v62, %v10927_v46  ;;  %v13365_v63 = vld [vmem:[#allocation58_spill] sm:$0xff] }
0x102a   :  { %v10929_v57 = vpop.f32.mrf.mxu0  ;;  %v10931_v22 = vpop.f32.mrf.mxu1  ;;  %v10942_v20 = vrot.slane %v3659_v3, %v13365_v63 }
0x102b   :  { %13360 = vst [vmem:[#allocation72_spill] sm:$0xff] %v10929_v57  ;;  %13361 = vst [vmem:[#allocation83_spill] sm:$0xff] %v10931_v22  ;;  %7828 = vpow2.f32 %v7373_v12  ;;  %v7374_v62 = vmul.f32 -1.442695, %v3863_v5 }
0x102c   :  { %v10933_v34 = vpop.f32.mrf.mxu0  ;;  %v10935_v29 = vpop.f32.mrf.mxu1  ;;  %13366 = vst [vmem:[#allocation39_spill] sm:$0xff] %v10942_v20 }
0x102d   :  { %13362 = vst [vmem:[#allocation82_spill] sm:$0xff] %v10933_v34  ;;  %13363 = vst [vmem:[#allocation37_spill] sm:$0xff] %v10935_v29  ;;  %7830 = vpow2.f32 %v7374_v62 }
0x102e   :  { %v3759_v30 = vpop.f32.mrf.mxu0  ;;  %v3872_v48 = vpop.f32.mrf.mxu1 }
0x102f   :  { %v10945_v1 = vadd.f32 %v3759_v30, %v10923_v37  ;;  %v10948_v22 = vadd.f32 %v3872_v48, %v10938_v39 }
0x1030   :  { %v3761_v12 = vpop.f32.mrf.mxu0  ;;  %v3874_v34 = vpop.f32.mrf.mxu1 }
0x1031   :  { %13367 = vst [vmem:[#allocation40_spill] sm:$0xff] %v10945_v1  ;;  %13368 = vst [vmem:[#allocation42_spill] sm:$0xff] %v10948_v22  ;;  %v10951_v29 = vadd.f32 %v3761_v12, %v10942_v20  ;;  %v10954_v32 = vadd.f32 %v3874_v34, %v10927_v46  ;;  %v3861_v34 = vadd.f32 %v3860_v61, %v10938_v39 }
0x1032   :  { %v3765_v57 = vpop.f32.mrf.mxu0  ;;  %v3878_v24 = vpop.f32.mrf.mxu1 }
0x1033   :  { %13369 = vst [vmem:[#allocation41_spill] sm:$0xff] %v10951_v29  ;;  %13370 = vst [vmem:[#allocation48_spill] sm:$0xff] %v10954_v32  ;;  %v10957_v3 = vadd.f32 %v3765_v57, %v10923_v37  ;;  %v10960_v30 = vadd.f32 %v3878_v24, %v10938_v39  ;;  %7832 = vtanh.f32 %v3861_v34 }
0x1034   :  { %v3767_v63 = vpop.f32.mrf.mxu0  ;;  %v3880_v48 = vpop.f32.mrf.mxu1 }
0x1035   :  { %13371 = vst [vmem:[#allocation49_spill] sm:$0xff] %v10957_v3  ;;  %13372 = vst [vmem:[#allocation54_spill] sm:$0xff] %v10960_v30  ;;  %v10963_v22 = vadd.f32 %v3767_v63, %v10942_v20  ;;  %v10966_v12 = vadd.f32 %v3880_v48, %v10927_v46 }
0x1036   :  { %v3771_v5 = vpop.f32.mrf.mxu0  ;;  %v3884_v32 = vpop.f32.mrf.mxu1 }
0x1037   :  { %13373 = vst [vmem:[#allocation52_spill] sm:$0xff] %v10963_v22  ;;  %13374 = vst [vmem:[#allocation46_spill] sm:$0xff] %v10966_v12  ;;  %v10970_v29 = vadd.f32 %v3771_v5, %v10923_v37  ;;  %v10973_v57 = vadd.f32 %v3884_v32, %v10938_v39  ;;  %v13401_v12 = vld [vmem:[#allocation81_spill] sm:$0xff]  ;;  %v13402_v22 = vld [vmem:[#allocation80_spill] sm:$0xff] }
0x1038   :  { %v7829_v24 = vpop.eup %7828  ;;  %v3773_v30 = vpop.f32.mrf.mxu0 }
0x1039   :  { %13375 = vst [vmem:[#allocation45_spill] sm:$0xff] %v10970_v29  ;;  %13376 = vst [vmem:[#allocation50_spill] sm:$0xff] %v10973_v57  ;;  %v3886_v3 = vpop.f32.mrf.mxu1  ;;  %v4009_v1 = vadd.f32 1.0, %v7829_v24  ;;  %v10976_v63 = vadd.f32 %v3773_v30, %v10942_v20 }
0x103a   :  { %v10979_v48 = vadd.f32 %v3886_v3, %v10927_v46  ;;  %v3777_v61 = vpop.f32.mrf.mxu0 }
0x103b   :  { %13377 = vst [vmem:[#allocation47_spill] sm:$0xff] %v10976_v63  ;;  %v3890_v62 = vpop.f32.mrf.mxu1  ;;  %7834 = vrcp.f32 %v4009_v1  ;;  %v10982_v5 = vadd.f32 %v3777_v61, %v10923_v37 }
0x103c   :  { %13378 = vst [vmem:[#allocation93_spill] sm:$0xff] %v10979_v48  ;;  %v10985_v32 = vadd.f32 %v3890_v62, %v10938_v39  ;;  %v3779_v57 = vpop.f32.mrf.mxu0 }
0x103d   :  { %13379 = vst [vmem:[#allocation94_spill] sm:$0xff] %v10982_v5  ;;  %v3892_v29 = vpop.f32.mrf.mxu1  ;;  %v10988_v24 = vadd.f32 %v3779_v57, %v10942_v20 }
0x103e   :  { %13380 = vst [vmem:[#allocation95_spill] sm:$0xff] %v10985_v32  ;;  %v10991_v30 = vadd.f32 %v3892_v29, %v10927_v46  ;;  %v3783_v3 = vpop.f32.mrf.mxu0  ;;  %v7831_v29 = vpop.eup %7830 }
0x103f   :  { %13381 = vst [vmem:[#allocation96_spill] sm:$0xff] %v10988_v24  ;;  %v3896_v48 = vpop.f32.mrf.mxu1  ;;  %v10994_v34 = vadd.f32 %v3783_v3, %v10923_v37 }
0x1040   :  { %13382 = vst [vmem:[#allocation97_spill] sm:$0xff] %v10991_v30  ;;  %v10997_v1 = vadd.f32 %v3896_v48, %v10938_v39  ;;  %v3785_v61 = vpop.f32.mrf.mxu0  ;;  %v7833_v48 = vpop.eup %7832 }
0x1041   :  { %13383 = vst [vmem:[#allocation98_spill] sm:$0xff] %v10994_v34  ;;  %v3898_v5 = vpop.f32.mrf.mxu1  ;;  %v11000_v62 = vadd.f32 %v3785_v61, %v10942_v20  ;;  %v4016_v34 = vadd.f32 1.0, %v7831_v29  ;;  %v13394_v29 = vld [vmem:[#allocation51_spill] sm:$0xff] }
0x1042   :  { %13384 = vst [vmem:[#allocation99_spill] sm:$0xff] %v10997_v1  ;;  %v11003_v32 = vadd.f32 %v3898_v5, %v10927_v46  ;;  %v3789_v57 = vpop.f32.mrf.mxu0 }
0x1043   :  { %13385 = vst [vmem:[#allocation100_spill] sm:$0xff] %v11000_v62  ;;  %v3902_v24 = vpop.f32.mrf.mxu1  ;;  %v11006_v30 = vadd.f32 %v3789_v57, %v10923_v37  ;;  %7836 = vrcp.f32 %v4016_v34  ;;  %v13391_v34 = vld [vmem:[#allocation86_spill] sm:$0xff]  ;;  %v13393_v57 = vld [vmem:[#allocation68_spill] sm:$0xff]  ;;  %v13400_v62 = vld [vmem:[#allocation89_spill] sm:$0xff] }
0x1044   :  { %13386 = vst [vmem:[#allocation101_spill] sm:$0xff] %v11003_v32  ;;  %v11009_v3 = vadd.f32 %v3902_v24, %v10938_v39  ;;  %v13390_v24 = vld [vmem:[#allocation60_spill] sm:$0xff] }
0x1045   :  { %13387 = vst [vmem:[#allocation102_spill] sm:$0xff] %v11006_v30  ;;  %v13399_v30 = vld [vmem:[#allocation90_spill] sm:$0xff] }
0x1046   :  { %13388 = vst [vmem:[#allocation103_spill] sm:$0xff] %v11009_v3  ;;  %v13398_v3 = vld [vmem:[#allocation88_spill] sm:$0xff] }
0x1048   :  { %v7835_v1 = vpop.eup %7834 }
0x1049   :  { %v11011_v63 = vmul.f32 %v7835_v1, %v7833_v48  ;;  %v13392_v1 = vld [vmem:[#allocation69_spill] sm:$0xff] }
0x104a   :  { %v13395_v48 = vld [vmem:[#allocation53_spill] sm:$0xff] }
0x104b   :  { %7838 = vtanh.f32 %v11011_v63 }
0x1050   :  { %v7837_v61 = vpop.eup %7836 }
0x1058   :  { %v7839_v5 = vpop.eup %7838 }
0x1059   :  { %v4021_v32 = vmul.f32 %v7839_v5, %v7837_v61  ;;  %v13396_v61 = vld [vmem:[#allocation57_spill] sm:$0xff]  ;;  %v13397_v5 = vld [vmem:[#allocation56_spill] sm:$0xff] }
0x105b   :  { %4092 = vmatmul.mubr.f32.vlgmr.msra.gmra.mxu0 %v4021_v32  ;;  %4163 = vmatmul.mubr.f32.vlgmr.msra.gmra.mxu1 %v4021_v32  ;;  %v13389_v32 = vld [vmem:[#allocation75_spill] sm:$0xff] }
0x105c   :  { %4204 = vmatpush1.msra.mxu0 %v10730_v31  ;;  %4275 = vmatpush1.msra.mxu1 %v10733_v55 }
0x105d   :  { %4205 = vmatprep.subr.mxu0 %v10736_v26  ;;  %4276 = vmatprep.subr.mxu1 %v10739_v7 }
0x105e   :  { %4206 = vmatpush1.msra.mxu0 %v10742_v11  ;;  %4277 = vmatpush1.msra.mxu1 %v10745_v15 }
0x105f   :  { %4207 = vmatprep.subr.mxu0 %v10748_v28  ;;  %4278 = vmatprep.subr.mxu1 %v10751_v8 }
0x1060   :  { %4208 = vmatpush1.msra.mxu0 %v10754_v35  ;;  %4279 = vmatpush1.msra.mxu1 %v10757_v33 }
0x1061   :  { %4209 = vmatprep.subr.mxu0 %v10760_v50  ;;  %4280 = vmatprep.subr.mxu1 %v10763_v60 }
0x1062   :  { %4210 = vmatpush1.msra.mxu0 %v10766_v47  ;;  %4281 = vmatpush1.msra.mxu1 %v10769_v49 }
0x1063   :  { %4211 = vmatprep.subr.mxu0 %v10772_v52  ;;  %4282 = vmatprep.subr.mxu1 %v10775_v53 }
0x1064   :  { %4212 = vmatpush1.msra.mxu0 %v10778_v51  ;;  %4283 = vmatpush1.msra.mxu1 %v10781_v21 }
0x1065   :  { %4213 = vmatprep.subr.mxu0 %v10784_v58  ;;  %4284 = vmatprep.subr.mxu1 %v10787_v59 }
0x1066   :  { %4214 = vmatpush1.msra.mxu0 %v10790_v25  ;;  %4285 = vmatpush1.msra.mxu1 %v10793_v0 }
0x1067   :  { %4215 = vmatprep.subr.mxu0 %v10796_v18  ;;  %4286 = vmatprep.subr.mxu1 %v10799_v13 }
0x1068   :  { %4216 = vmatpush1.msra.mxu0 %v10802_v42  ;;  %4287 = vmatpush1.msra.mxu1 %v10805_v17 }
0x1069   :  { %4217 = vmatprep.subr.mxu0 %v10808_v56  ;;  %4288 = vmatprep.subr.mxu1 %v10811_v44 }
0x106a   :  { %4218 = vmatpush1.msra.mxu0 %v10814_v9  ;;  %4289 = vmatpush1.msra.mxu1 %v10817_v10 }
0x106b   :  { %4219 = vmatprep.subr.mxu0 %v10820_v16  ;;  %4290 = vmatprep.subr.mxu1 %v10825_v14 }
0x106c   :  { %4220 = vmatpush1.msra.mxu0 %v10823_v6  ;;  %4291 = vmatpush1.msra.mxu1 %v10831_v19 }
0x106d   :  { %4221 = vmatprep.subr.mxu0 %v10829_v38  ;;  %4292 = vmatprep.subr.mxu1 %v10837_v40 }
0x106e   :  { %4222 = vmatpush1.msra.mxu0 %v10833_v36  ;;  %4293 = vmatpush1.msra.mxu1 %v10841_v43 }
0x106f   :  { %4223 = vmatprep.subr.mxu0 %v10839_v41  ;;  %4294 = vmatprep.subr.mxu1 %v10847_v4 }
0x1070   :  { %4224 = vmatpush1.msra.mxu0 %v10845_v2  ;;  %4295 = vmatpush1.msra.mxu1 %v10853_v27 }
0x1071   :  { %4225 = vmatprep.subr.mxu0 %v10851_v54  ;;  %4296 = vmatprep.subr.mxu1 %v10855_v45 }
0x1072   :  { %4226 = vmatpush1.msra.mxu0 %v10859_v23  ;;  %4297 = vmatpush1.msra.mxu1 %v13389_v32 }
0x1073   :  { %4227 = vmatprep.subr.mxu0 %v13390_v24  ;;  %4298 = vmatprep.subr.mxu1 %v13391_v34  ;;  %v11086_v24 = vpop.f32.mrf.mxu1 }
0x1074   :  { %4228 = vmatpush1.msra.mxu0 %v13392_v1  ;;  %4299 = vmatpush1.msra.mxu1 %v13393_v57  ;;  %v13403_v1 = vld [vmem:[#allocation74_spill] sm:$0xff] }
0x1075   :  { %4229 = vmatprep.subr.mxu0 %v13394_v29  ;;  %4300 = vmatprep.subr.mxu1 %v13395_v48  ;;  %v13404_v57 = vld [vmem:[#allocation66_spill] sm:$0xff]  ;;  %v13405_v29 = vmov 0.0   ;;  %v13406_v48 = vld [vmem:[#allocation76_spill] sm:$0xff] }
0x1076   :  { %4230 = vmatpush1.msra.mxu0 %v13396_v61  ;;  %4301 = vmatpush1.msra.mxu1 %v13397_v5  ;;  %v13407_v5 = vld [vmem:[#allocation85_spill] sm:$0xff] }
0x1077   :  { %4231 = vmatprep.subr.mxu0 %v13398_v3  ;;  %4302 = vmatprep.subr.mxu1 %v13399_v30  ;;  %v13408_v3 = vld [vmem:[#allocation87_spill] sm:$0xff]  ;;  %v11080_v30 = vpop.f32.mrf.mxu0 }
0x1078   :  { %4232 = vmatpush1.msra.mxu0 %v13400_v62  ;;  %4303 = vmatpush1.msra.mxu1 %v13401_v12  ;;  %13409 = vst [vmem:[#allocation104_spill] sm:$0xff] %v11080_v30  ;;  %v13410_v12 = vld [vmem:[#allocation72_spill] sm:$0xff]  ;;  %v13413_v30 = vld [vmem:[#allocation37_spill] sm:$0xff] }
0x1079   :  { %4233 = vmatprep.subr.mxu0 %v13402_v22  ;;  %4304 = vmatprep.subr.mxu1 %v13403_v1  ;;  %v3754_v62 = vadd.f32 %v13410_v12, %v10923_v37  ;;  %v13411_v1 = vld [vmem:[#allocation82_spill] sm:$0xff]  ;;  %13412 = vst [vmem:[#allocation72_spill] sm:$0xff] %v11086_v24  ;;  %v3869_v23 = vadd.f32 %v13413_v30, %v10927_v46  ;;  %v13414_v37 = vld [vmem:[#allocation83_spill] sm:$0xff]  ;;  %v13434_v46 = vmov 0.0  }
0x107a   :  { %4234 = vmatpush1.msra.mxu0 %v13404_v57  ;;  %4267 = vmatprep.mubr.f32.mxu0 %v13405_v29  ;;  %v3756_v61 = vadd.f32 %v13411_v1, %v10942_v20  ;;  %v3867_v12 = vadd.f32 %v13414_v37, %v10938_v39  ;;  %v13418_v37 = vld [vmem:[#allocation75_spill] sm:$0xff]  ;;  %v13435_v20 = vld [vmem:[#allocation76_spill] sm:$0xff] }
0x107b   :  { %4305 = vmatpush1.msra.mxu1 %v13406_v48  ;;  %4338 = vmatprep.mubr.f32.mxu1 %v13405_v29 }
0x107c   :  { %4379 = vmatprep.subr.mxu0 %v13407_v5  ;;  %4450 = vmatprep.subr.mxu1 %v13408_v3 }
0x111b   :  { %v4093_v22 = vpop.f32.mrf.mxu0  ;;  %v4164_v29 = vpop.f32.mrf.mxu1 }
0x111c   :  { %v4169_v57 = vadd.f32 %v4093_v22, %v3754_v62  ;;  %v4171_v54 = vadd.f32 %v4164_v29, %v3867_v12  ;;  %v13417_v29 = vld [vmem:[#allocation34_spill] sm:$0xff]  ;;  %v13419_v12 = vld [vmem:[#allocation60_spill] sm:$0xff] }
0x111d   :  { %v4095_v34 = vpop.f32.mrf.mxu0  ;;  %v4166_v3 = vpop.f32.mrf.mxu1 }
0x111e   :  { %v7375_v48 = vmul.f32 -1.442695, %v4169_v57  ;;  %v4170_v32 = vadd.f32 %v4095_v34, %v3756_v61  ;;  %v4172_v45 = vadd.f32 %v4166_v3, %v3869_v23 }
0x1120   :  { %7840 = vpow2.f32 %v7375_v48  ;;  %v7376_v5 = vmul.f32 -1.442695, %v4170_v32  ;;  %v7377_v1 = vmul.f32 -1.442695, %v4172_v45 }
0x1122   :  { %7842 = vpow2.f32 %v7376_v5 }
0x1123   :  { %7844 = vtanh.f32 %v4171_v54 }
0x1124   :  { %7846 = vpow2.f32 %v7377_v1  ;;  %v13420_v1 = vld [vmem:[#allocation86_spill] sm:$0xff] }
0x112d   :  { %v7841_v22 = vpop.eup %7840 }
0x112e   :  { %v4176_v62 = vadd.f32 1.0, %v7841_v22  ;;  %v13421_v22 = vld [vmem:[#allocation69_spill] sm:$0xff] }
0x112f   :  { %v7843_v24 = vpop.eup %7842 }
0x1130   :  { %7848 = vrcp.f32 %v4176_v62  ;;  %v4182_v34 = vadd.f32 1.0, %v7843_v24  ;;  %v7845_v32 = vpop.eup %7844  ;;  %v13416_v24 = vld [vmem:[#allocation55_spill] sm:$0xff]  ;;  %v13422_v62 = vld [vmem:[#allocation68_spill] sm:$0xff] }
0x1131   :  { %v7847_v57 = vpop.eup %7846 }
0x1132   :  { %7850 = vrcp.f32 %v4182_v34  ;;  %v4189_v30 = vadd.f32 1.0, %v7847_v57  ;;  %v13423_v34 = vld [vmem:[#allocation51_spill] sm:$0xff]  ;;  %v13425_v57 = vld [vmem:[#allocation57_spill] sm:$0xff] }
0x1134   :  { %7852 = vrcp.f32 %v4189_v30  ;;  %v13429_v30 = vld [vmem:[#allocation89_spill] sm:$0xff] }
0x113d   :  { %v7849_v48 = vpop.eup %7848 }
0x113e   :  { %v4193_v61 = vmul.f32 %v7849_v48, %v7845_v32  ;;  %v13424_v32 = vld [vmem:[#allocation53_spill] sm:$0xff]  ;;  %v13426_v48 = vld [vmem:[#allocation56_spill] sm:$0xff] }
0x113f   :  { %v7851_v5 = vpop.eup %7850 }
0x1140   :  { %v4192_v23 = vmul.f32 %v7851_v5, %v11011_v63  ;;  %v13415_v63 = vld [vmem:[#allocation84_spill] sm:$0xff]  ;;  %v13428_v5 = vld [vmem:[#allocation90_spill] sm:$0xff] }
0x1141   :  { %v7853_v39 = vpop.eup %7852 }
0x1142   :  { %v11093_v3 = vadd.f32 %v4193_v61, %v4192_v23  ;;  %v13427_v61 = vld [vmem:[#allocation88_spill] sm:$0xff]  ;;  %v13430_v23 = vld [vmem:[#allocation81_spill] sm:$0xff] }
0x1144   :  { %7854 = vtanh.f32 %v11093_v3 }
0x1151   :  { %v7855_v54 = vpop.eup %7854 }
0x1152   :  { %v4196_v45 = vmul.f32 %v7855_v54, %v7853_v39  ;;  %v13431_v39 = vld [vmem:[#allocation80_spill] sm:$0xff]  ;;  %v13432_v54 = vld [vmem:[#allocation74_spill] sm:$0xff] }
0x1154   :  { %4268 = vmatmul.mubr.f32.vlgmr.msra.gmra.mxu0 %v4196_v45  ;;  %4339 = vmatmul.mubr.f32.vlgmr.msra.gmra.mxu1 %v4196_v45  ;;  %v13433_v45 = vld [vmem:[#allocation66_spill] sm:$0xff] }
0x1155   :  { %4380 = vmatpush1.msra.mxu0 %v10730_v31  ;;  %4451 = vmatpush1.msra.mxu1 %v10733_v55 }
0x1156   :  { %4381 = vmatprep.subr.mxu0 %v10736_v26  ;;  %4452 = vmatprep.subr.mxu1 %v10739_v7 }
0x1157   :  { %4382 = vmatpush1.msra.mxu0 %v10742_v11  ;;  %4453 = vmatpush1.msra.mxu1 %v10745_v15 }
0x1158   :  { %4383 = vmatprep.subr.mxu0 %v10748_v28  ;;  %4454 = vmatprep.subr.mxu1 %v10751_v8 }
0x1159   :  { %4384 = vmatpush1.msra.mxu0 %v10754_v35  ;;  %4455 = vmatpush1.msra.mxu1 %v10757_v33 }
0x115a   :  { %4385 = vmatprep.subr.mxu0 %v10760_v50  ;;  %4456 = vmatprep.subr.mxu1 %v10763_v60 }
0x115b   :  { %4386 = vmatpush1.msra.mxu0 %v10766_v47  ;;  %4457 = vmatpush1.msra.mxu1 %v10769_v49 }
0x115c   :  { %4387 = vmatprep.subr.mxu0 %v10772_v52  ;;  %4458 = vmatprep.subr.mxu1 %v10775_v53 }
0x115d   :  { %4388 = vmatpush1.msra.mxu0 %v10778_v51  ;;  %4459 = vmatpush1.msra.mxu1 %v10781_v21 }
0x115e   :  { %4389 = vmatprep.subr.mxu0 %v10784_v58  ;;  %4460 = vmatprep.subr.mxu1 %v10787_v59 }
0x115f   :  { %4390 = vmatpush1.msra.mxu0 %v10790_v25  ;;  %4461 = vmatpush1.msra.mxu1 %v10793_v0 }
0x1160   :  { %4391 = vmatprep.subr.mxu0 %v10796_v18  ;;  %4462 = vmatprep.subr.mxu1 %v10799_v13 }
0x1161   :  { %4392 = vmatpush1.msra.mxu0 %v10802_v42  ;;  %4463 = vmatpush1.msra.mxu1 %v10805_v17 }
0x1162   :  { %4393 = vmatprep.subr.mxu0 %v10808_v56  ;;  %4464 = vmatprep.subr.mxu1 %v10811_v44 }
0x1163   :  { %4394 = vmatpush1.msra.mxu0 %v10814_v9  ;;  %4465 = vmatpush1.msra.mxu1 %v10817_v10 }
0x1164   :  { %4395 = vmatprep.subr.mxu0 %v10820_v16  ;;  %4466 = vmatprep.subr.mxu1 %v10825_v14 }
0x1165   :  { %4396 = vmatpush1.msra.mxu0 %v10823_v6  ;;  %4467 = vmatpush1.msra.mxu1 %v10831_v19 }
0x1166   :  { %4397 = vmatprep.subr.mxu0 %v10829_v38  ;;  %4468 = vmatprep.subr.mxu1 %v10837_v40 }
0x1167   :  { %4398 = vmatpush1.msra.mxu0 %v10833_v36  ;;  %4469 = vmatpush1.msra.mxu1 %v10841_v43 }
0x1168   :  { %4399 = vmatprep.subr.mxu0 %v10839_v41  ;;  %4470 = vmatprep.subr.mxu1 %v10847_v4 }
0x1169   :  { %4400 = vmatpush1.msra.mxu0 %v10845_v2  ;;  %4471 = vmatpush1.msra.mxu1 %v10853_v27 }
0x116a   :  { %4401 = vmatprep.subr.mxu0 %v13415_v63  ;;  %4472 = vmatprep.subr.mxu1 %v13416_v24 }
0x116b   :  { %4402 = vmatpush1.msra.mxu0 %v13417_v29  ;;  %4473 = vmatpush1.msra.mxu1 %v13418_v37 }
0x116c   :  { %4403 = vmatprep.subr.mxu0 %v13419_v12  ;;  %4474 = vmatprep.subr.mxu1 %v13420_v1  ;;  %v13441_v1 = vld [vmem:[#allocation42_spill] sm:$0xff] }
0x116d   :  { %4404 = vmatpush1.msra.mxu0 %v13421_v22  ;;  %4475 = vmatpush1.msra.mxu1 %v13422_v62  ;;  %v13440_v22 = vld [vmem:[#allocation48_spill] sm:$0xff] }
0x116e   :  { %4405 = vmatprep.subr.mxu0 %v13423_v34  ;;  %4476 = vmatprep.subr.mxu1 %v13424_v32 }
0x116f   :  { %4406 = vmatpush1.msra.mxu0 %v13425_v57  ;;  %4477 = vmatpush1.msra.mxu1 %v13426_v48  ;;  %v13436_v48 = vld [vmem:[#allocation85_spill] sm:$0xff] }
0x1170   :  { %4407 = vmatprep.subr.mxu0 %v13427_v61  ;;  %4478 = vmatprep.subr.mxu1 %v13428_v5  ;;  %v13437_v61 = vld [vmem:[#allocation87_spill] sm:$0xff] }
0x1171   :  { %4408 = vmatpush1.msra.mxu0 %v13429_v30  ;;  %4479 = vmatpush1.msra.mxu1 %v13430_v23  ;;  %v13438_v30 = vld [vmem:[#allocation40_spill] sm:$0xff] }
0x1172   :  { %4409 = vmatprep.subr.mxu0 %v13431_v39  ;;  %4480 = vmatprep.subr.mxu1 %v13432_v54  ;;  %v13439_v39 = vld [vmem:[#allocation41_spill] sm:$0xff] }
0x1173   :  { %4410 = vmatpush1.msra.mxu0 %v13433_v45  ;;  %4443 = vmatprep.mubr.f32.mxu0 %v13434_v46 }
0x1174   :  { %4481 = vmatpush1.msra.mxu1 %v13435_v20  ;;  %4514 = vmatprep.mubr.f32.mxu1 %v13434_v46 }
0x1175   :  { %4555 = vmatprep.subr.mxu0 %v13436_v48  ;;  %4626 = vmatprep.subr.mxu1 %v13437_v61 }
0x1214   :  { %v4269_v5 = vpop.f32.mrf.mxu0  ;;  %v4340_v54 = vpop.f32.mrf.mxu1 }
0x1215   :  { %v4345_v57 = vadd.f32 %v4269_v5, %v13438_v30  ;;  %v4347_v46 = vadd.f32 %v4340_v54, %v13441_v1  ;;  %v13456_v54 = vld [vmem:[#allocation74_spill] sm:$0xff] }
0x1216   :  { %v4271_v23 = vpop.f32.mrf.mxu0  ;;  %v4342_v62 = vpop.f32.mrf.mxu1 }
0x1217   :  { %v7378_v32 = vmul.f32 -1.442695, %v4345_v57  ;;  %v4346_v34 = vadd.f32 %v4271_v23, %v13439_v39  ;;  %v4348_v20 = vadd.f32 %v4342_v62, %v13440_v22  ;;  %v13453_v62 = vld [vmem:[#allocation89_spill] sm:$0xff] }
0x1219   :  { %7856 = vpow2.f32 %v7378_v32  ;;  %v7379_v45 = vmul.f32 -1.442695, %v4346_v34  ;;  %v7380_v12 = vmul.f32 -1.442695, %v4348_v20 }
0x121b   :  { %7858 = vpow2.f32 %v7379_v45 }
0x121c   :  { %7860 = vtanh.f32 %v4347_v46 }
0x121d   :  { %7862 = vpow2.f32 %v7380_v12  ;;  %v13452_v12 = vld [vmem:[#allocation90_spill] sm:$0xff] }
0x1226   :  { %v7857_v48 = vpop.eup %7856 }
0x1227   :  { %v4352_v37 = vadd.f32 1.0, %v7857_v48  ;;  %v13454_v48 = vld [vmem:[#allocation81_spill] sm:$0xff] }
0x1228   :  { %v7859_v61 = vpop.eup %7858 }
0x1229   :  { %7864 = vrcp.f32 %v4352_v37  ;;  %v4358_v5 = vadd.f32 1.0, %v7859_v61  ;;  %v7861_v57 = vpop.eup %7860  ;;  %v13451_v37 = vld [vmem:[#allocation88_spill] sm:$0xff] }
0x122a   :  { %v7863_v30 = vpop.eup %7862  ;;  %v13455_v61 = vld [vmem:[#allocation80_spill] sm:$0xff] }
0x122b   :  { %7866 = vrcp.f32 %v4358_v5  ;;  %v4365_v39 = vadd.f32 1.0, %v7863_v30  ;;  %v13457_v5 = vld [vmem:[#allocation66_spill] sm:$0xff]  ;;  %v13459_v30 = vld [vmem:[#allocation76_spill] sm:$0xff] }
0x122d   :  { %7868 = vrcp.f32 %v4365_v39  ;;  %v13462_v39 = vld [vmem:[#allocation49_spill] sm:$0xff] }
0x1236   :  { %v7865_v32 = vpop.eup %7864 }
0x1237   :  { %v4369_v23 = vmul.f32 %v7865_v32, %v7861_v57  ;;  %v13458_v57 = vmov 0.0   ;;  %v13460_v32 = vld [vmem:[#allocation85_spill] sm:$0xff] }
0x1238   :  { %v7867_v34 = vpop.eup %7866 }
0x1239   :  { %v4368_v45 = vmul.f32 %v7867_v34, %v11093_v3  ;;  %v13450_v3 = vld [vmem:[#allocation56_spill] sm:$0xff] }
0x123a   :  { %v7869_v20 = vpop.eup %7868 }
0x123b   :  { %v11167_v22 = vadd.f32 %v4369_v23, %v4368_v45  ;;  %v13461_v23 = vld [vmem:[#allocation87_spill] sm:$0xff] }
0x123d   :  { %7870 = vtanh.f32 %v11167_v22 }
0x124a   :  { %v7871_v46 = vpop.eup %7870 }
0x124b   :  { %v4372_v1 = vmul.f32 %v7871_v46, %v7869_v20 }
0x124d   :  { %4444 = vmatmul.mubr.f32.vlgmr.msra.gmra.mxu0 %v4372_v1  ;;  %4515 = vmatmul.mubr.f32.vlgmr.msra.gmra.mxu1 %v4372_v1  ;;  %v13463_v1 = vld [vmem:[#allocation52_spill] sm:$0xff] }
0x124e   :  { %4556 = vmatpush1.msra.mxu0 %v10730_v31  ;;  %4627 = vmatpush1.msra.mxu1 %v10733_v55  ;;  %v13442_v31 = vld [vmem:[#allocation75_spill] sm:$0xff]  ;;  %v13443_v55 = vld [vmem:[#allocation60_spill] sm:$0xff] }
0x124f   :  { %4557 = vmatprep.subr.mxu0 %v10736_v26  ;;  %4628 = vmatprep.subr.mxu1 %v10739_v7  ;;  %v13444_v26 = vld [vmem:[#allocation86_spill] sm:$0xff]  ;;  %v13445_v7 = vld [vmem:[#allocation69_spill] sm:$0xff] }
0x1250   :  { %4558 = vmatpush1.msra.mxu0 %v10742_v11  ;;  %4629 = vmatpush1.msra.mxu1 %v10745_v15  ;;  %v13446_v11 = vld [vmem:[#allocation68_spill] sm:$0xff]  ;;  %v13447_v15 = vld [vmem:[#allocation51_spill] sm:$0xff] }
0x1251   :  { %4559 = vmatprep.subr.mxu0 %v10748_v28  ;;  %4630 = vmatprep.subr.mxu1 %v10751_v8  ;;  %v13448_v28 = vld [vmem:[#allocation53_spill] sm:$0xff] }
0x1252   :  { %4560 = vmatpush1.msra.mxu0 %v10754_v35  ;;  %4631 = vmatpush1.msra.mxu1 %v10757_v33  ;;  %v13449_v8 = vld [vmem:[#allocation57_spill] sm:$0xff] }
0x1253   :  { %4561 = vmatprep.subr.mxu0 %v10760_v50  ;;  %4632 = vmatprep.subr.mxu1 %v10763_v60 }
0x1254   :  { %4562 = vmatpush1.msra.mxu0 %v10766_v47  ;;  %4633 = vmatpush1.msra.mxu1 %v10769_v49 }
0x1255   :  { %4563 = vmatprep.subr.mxu0 %v10772_v52  ;;  %4634 = vmatprep.subr.mxu1 %v10775_v53 }
0x1256   :  { %4564 = vmatpush1.msra.mxu0 %v10778_v51  ;;  %4635 = vmatpush1.msra.mxu1 %v10781_v21 }
0x1257   :  { %4565 = vmatprep.subr.mxu0 %v10784_v58  ;;  %4636 = vmatprep.subr.mxu1 %v10787_v59 }
0x1258   :  { %4566 = vmatpush1.msra.mxu0 %v10790_v25  ;;  %4637 = vmatpush1.msra.mxu1 %v10793_v0 }
0x1259   :  { %4567 = vmatprep.subr.mxu0 %v10796_v18  ;;  %4638 = vmatprep.subr.mxu1 %v10799_v13 }
0x125a   :  { %4568 = vmatpush1.msra.mxu0 %v10802_v42  ;;  %4639 = vmatpush1.msra.mxu1 %v10805_v17 }
0x125b   :  { %4569 = vmatprep.subr.mxu0 %v10808_v56  ;;  %4640 = vmatprep.subr.mxu1 %v10811_v44 }
0x125c   :  { %4570 = vmatpush1.msra.mxu0 %v10814_v9  ;;  %4641 = vmatpush1.msra.mxu1 %v10817_v10 }
0x125d   :  { %4571 = vmatprep.subr.mxu0 %v10820_v16  ;;  %4642 = vmatprep.subr.mxu1 %v10825_v14 }
0x125e   :  { %4572 = vmatpush1.msra.mxu0 %v10823_v6  ;;  %4643 = vmatpush1.msra.mxu1 %v10831_v19 }
0x125f   :  { %4573 = vmatprep.subr.mxu0 %v10829_v38  ;;  %4644 = vmatprep.subr.mxu1 %v10837_v40 }
0x1260   :  { %4574 = vmatpush1.msra.mxu0 %v10833_v36  ;;  %4645 = vmatpush1.msra.mxu1 %v10841_v43 }
0x1261   :  { %4575 = vmatprep.subr.mxu0 %v10839_v41  ;;  %4646 = vmatprep.subr.mxu1 %v10847_v4 }
0x1262   :  { %4576 = vmatpush1.msra.mxu0 %v10845_v2  ;;  %4647 = vmatpush1.msra.mxu1 %v10853_v27 }
0x1263   :  { %4577 = vmatprep.subr.mxu0 %v13415_v63  ;;  %4648 = vmatprep.subr.mxu1 %v13416_v24 }
0x1264   :  { %4578 = vmatpush1.msra.mxu0 %v13417_v29  ;;  %4649 = vmatpush1.msra.mxu1 %v13442_v31 }
0x1265   :  { %4579 = vmatprep.subr.mxu0 %v13443_v55  ;;  %4650 = vmatprep.subr.mxu1 %v13444_v26 }
0x1266   :  { %4580 = vmatpush1.msra.mxu0 %v13445_v7  ;;  %4651 = vmatpush1.msra.mxu1 %v13446_v11 }
0x1267   :  { %4581 = vmatprep.subr.mxu0 %v13447_v15  ;;  %4652 = vmatprep.subr.mxu1 %v13448_v28 }
0x1268   :  { %4582 = vmatpush1.msra.mxu0 %v13449_v8  ;;  %4653 = vmatpush1.msra.mxu1 %v13450_v3 }
0x1269   :  { %4583 = vmatprep.subr.mxu0 %v13451_v37  ;;  %4654 = vmatprep.subr.mxu1 %v13452_v12  ;;  %v13465_v12 = vld [vmem:[#allocation54_spill] sm:$0xff] }
0x126a   :  { %4584 = vmatpush1.msra.mxu0 %v13453_v62  ;;  %4655 = vmatpush1.msra.mxu1 %v13454_v48  ;;  %v13464_v62 = vld [vmem:[#allocation46_spill] sm:$0xff] }
0x126b   :  { %4585 = vmatprep.subr.mxu0 %v13455_v61  ;;  %4656 = vmatprep.subr.mxu1 %v13456_v54 }
0x126c   :  { %4586 = vmatpush1.msra.mxu0 %v13457_v5  ;;  %4619 = vmatprep.mubr.f32.mxu0 %v13458_v57 }
0x126d   :  { %4657 = vmatpush1.msra.mxu1 %v13459_v30  ;;  %4690 = vmatprep.mubr.f32.mxu1 %v13458_v57 }
0x126e   :  { %4731 = vmatprep.subr.mxu0 %v13460_v32  ;;  %4802 = vmatprep.subr.mxu1 %v13461_v23 }
0x130d   :  { %v4445_v34 = vpop.f32.mrf.mxu0  ;;  %v4516_v54 = vpop.f32.mrf.mxu1 }
0x130e   :  { %v4521_v45 = vadd.f32 %v4445_v34, %v13462_v39  ;;  %v4523_v57 = vadd.f32 %v4516_v54, %v13465_v12 }
0x130f   :  { %v4447_v20 = vpop.f32.mrf.mxu0  ;;  %v4518_v48 = vpop.f32.mrf.mxu1 }
0x1310   :  { %v7381_v46 = vmul.f32 -1.442695, %v4521_v45  ;;  %v4522_v61 = vadd.f32 %v4447_v20, %v13463_v1  ;;  %v4524_v30 = vadd.f32 %v4518_v48, %v13464_v62 }
0x1312   :  { %7872 = vpow2.f32 %v7381_v46  ;;  %v7382_v5 = vmul.f32 -1.442695, %v4522_v61  ;;  %v7383_v37 = vmul.f32 -1.442695, %v4524_v30  ;;  %v11256_v30 = vld [vmem:[#allocation16 + $0x1c0] sm:$0xff] }
0x1314   :  { %7874 = vpow2.f32 %v7382_v5 }
0x1315   :  { %7876 = vtanh.f32 %v4523_v57  ;;  %v11250_v57 = vld [vmem:[#allocation16 + $0x1c8] sm:$0xff] }
0x1316   :  { %7878 = vpow2.f32 %v7383_v37  ;;  %v11247_v37 = vld [vmem:[#allocation16 + $0x1f0] sm:$0xff] }
0x131f   :  { %v7873_v32 = vpop.eup %7872 }
0x1320   :  { %v4528_v3 = vadd.f32 1.0, %v7873_v32  ;;  %v11259_v32 = vld [vmem:[#allocation16 + $0x1d0] sm:$0xff] }
0x1321   :  { %v7875_v23 = vpop.eup %7874 }
0x1322   :  { %7880 = vrcp.f32 %v4528_v3  ;;  %v4534_v34 = vadd.f32 1.0, %v7875_v23  ;;  %v7877_v39 = vpop.eup %7876  ;;  %v11244_v3 = vld [vmem:[#allocation16 + $0x1e0] sm:$0xff]  ;;  %v11262_v23 = vld [vmem:[#allocation16 + $0x1a8] sm:$0xff] }
0x1323   :  { %v7879_v45 = vpop.eup %7878 }
0x1324   :  { %7882 = vrcp.f32 %v4534_v34  ;;  %v4541_v5 = vadd.f32 1.0, %v7879_v45  ;;  %v11265_v34 = vld [vmem:[#allocation16 + $0x1b8] sm:$0xff]  ;;  %v11358_v45 = vld [vmem:[#allocation16 + $0x180] sm:$0xff] }
0x1326   :  { %7884 = vrcp.f32 %v4541_v5  ;;  %v11370_v5 = vld [vmem:[#allocation16 + $0x160] sm:$0xff] }
0x132f   :  { %v7881_v20 = vpop.eup %7880 }
0x1330   :  { %v4545_v46 = vmul.f32 %v7881_v20, %v7877_v39  ;;  %v11355_v39 = vld [vmem:[#allocation16 + $0x198] sm:$0xff]  ;;  %v11361_v20 = vld [vmem:[#allocation16 + $0x190] sm:$0xff] }
0x1331   :  { %v7883_v61 = vpop.eup %7882 }
0x1332   :  { %v4544_v1 = vmul.f32 %v7883_v61, %v11167_v22  ;;  %v11253_v22 = vld [vmem:[#allocation16 + $0x1d8] sm:$0xff] }
0x1333   :  { %v7885_v12 = vpop.eup %7884  ;;  %v11367_v61 = vld [vmem:[#allocation16 + $0x178] sm:$0xff] }
0x1334   :  { %v11241_v62 = vadd.f32 %v4545_v46, %v4544_v1  ;;  %v11364_v46 = vld [vmem:[#allocation16 + $0x168] sm:$0xff]  ;;  %v11373_v1 = vld [vmem:[#allocation16 + $0x170] sm:$0xff] }
0x1336   :  { %7886 = vtanh.f32 %v11241_v62 }
0x1343   :  { %v7887_v48 = vpop.eup %7886 }
0x1344   :  { %v4548_v54 = vmul.f32 %v7887_v48, %v7885_v12  ;;  %v11379_v12 = vld [vmem:[#allocation16 + $0x158] sm:$0xff]  ;;  %v11382_v48 = vld [vmem:[#allocation16 + $0x140] sm:$0xff] }
0x1346   :  { %4620 = vmatmul.mubr.f32.vlgmr.msra.gmra.mxu0 %v4548_v54  ;;  %4691 = vmatmul.mubr.f32.vlgmr.msra.gmra.mxu1 %v4548_v54  ;;  %v11385_v54 = vld [vmem:[#allocation16 + $0x150] sm:$0xff] }
0x1347   :  { %4732 = vmatpush1.msra.mxu0 %v11244_v3  ;;  %4803 = vmatpush1.msra.mxu1 %v11247_v37 }
0x1348   :  { %4733 = vmatprep.subr.mxu0 %v11250_v57  ;;  %4804 = vmatprep.subr.mxu1 %v11253_v22 }
0x1349   :  { %4734 = vmatpush1.msra.mxu0 %v11256_v30  ;;  %4805 = vmatpush1.msra.mxu1 %v11259_v32 }
0x134a   :  { %4735 = vmatprep.subr.mxu0 %v11262_v23  ;;  %4806 = vmatprep.subr.mxu1 %v11265_v34 }
0x134b   :  { %4736 = vmatpush1.msra.mxu0 %v10754_v35  ;;  %4807 = vmatpush1.msra.mxu1 %v10757_v33  ;;  %v13466_v35 = vld [vmem:[#allocation56_spill] sm:$0xff] }
0x134c   :  { %4737 = vmatprep.subr.mxu0 %v10760_v50  ;;  %4808 = vmatprep.subr.mxu1 %v10763_v60  ;;  %v13467_v33 = vld [vmem:[#allocation88_spill] sm:$0xff]  ;;  %v13468_v50 = vld [vmem:[#allocation90_spill] sm:$0xff]  ;;  %v13469_v60 = vld [vmem:[#allocation89_spill] sm:$0xff] }
0x134d   :  { %4738 = vmatpush1.msra.mxu0 %v10766_v47  ;;  %4809 = vmatpush1.msra.mxu1 %v10769_v49  ;;  %v13470_v47 = vld [vmem:[#allocation81_spill] sm:$0xff]  ;;  %v13471_v49 = vld [vmem:[#allocation80_spill] sm:$0xff] }
0x134e   :  { %4739 = vmatprep.subr.mxu0 %v10772_v52  ;;  %4810 = vmatprep.subr.mxu1 %v10775_v53  ;;  %v13472_v52 = vld [vmem:[#allocation74_spill] sm:$0xff] }
0x134f   :  { %4740 = vmatpush1.msra.mxu0 %v10778_v51  ;;  %4811 = vmatpush1.msra.mxu1 %v10781_v21  ;;  %v13473_v53 = vld [vmem:[#allocation66_spill] sm:$0xff]  ;;  %v13474_v51 = vmov 0.0   ;;  %v13475_v21 = vld [vmem:[#allocation76_spill] sm:$0xff] }
0x1350   :  { %4741 = vmatprep.subr.mxu0 %v10784_v58  ;;  %4812 = vmatprep.subr.mxu1 %v10787_v59  ;;  %v11324_v58 = vld [vmem:[#allocation16 + $0x1e8] sm:$0xff]  ;;  %v11327_v59 = vld [vmem:[#allocation16 + $0x1f8] sm:$0xff] }
0x1351   :  { %4742 = vmatpush1.msra.mxu0 %v10790_v25  ;;  %4813 = vmatpush1.msra.mxu1 %v10793_v0  ;;  %v13476_v0 = vld [vmem:[#allocation45_spill] sm:$0xff] }
0x1352   :  { %4743 = vmatprep.subr.mxu0 %v10796_v18  ;;  %4814 = vmatprep.subr.mxu1 %v10799_v13 }
0x1353   :  { %4744 = vmatpush1.msra.mxu0 %v10802_v42  ;;  %4815 = vmatpush1.msra.mxu1 %v10805_v17  ;;  %v13477_v17 = vld [vmem:[#allocation47_spill] sm:$0xff] }
0x1354   :  { %4745 = vmatprep.subr.mxu0 %v10808_v56  ;;  %4816 = vmatprep.subr.mxu1 %v10811_v44 }
0x1355   :  { %4746 = vmatpush1.msra.mxu0 %v10814_v9  ;;  %4817 = vmatpush1.msra.mxu1 %v10817_v10 }
0x1356   :  { %4747 = vmatprep.subr.mxu0 %v10820_v16  ;;  %4818 = vmatprep.subr.mxu1 %v10825_v14  ;;  %v13478_v16 = vld [vmem:[#allocation93_spill] sm:$0xff]  ;;  %v13479_v14 = vld [vmem:[#allocation50_spill] sm:$0xff] }
0x1357   :  { %4748 = vmatpush1.msra.mxu0 %v10823_v6  ;;  %4819 = vmatpush1.msra.mxu1 %v10831_v19 }
0x1358   :  { %4749 = vmatprep.subr.mxu0 %v10829_v38  ;;  %4820 = vmatprep.subr.mxu1 %v10837_v40 }
0x1359   :  { %4750 = vmatpush1.msra.mxu0 %v10833_v36  ;;  %4821 = vmatpush1.msra.mxu1 %v10841_v43 }
0x135a   :  { %4751 = vmatprep.subr.mxu0 %v10839_v41  ;;  %4822 = vmatprep.subr.mxu1 %v10847_v4 }
0x135b   :  { %4752 = vmatpush1.msra.mxu0 %v10845_v2  ;;  %4823 = vmatpush1.msra.mxu1 %v10853_v27 }
0x135c   :  { %4753 = vmatprep.subr.mxu0 %v13415_v63  ;;  %4824 = vmatprep.subr.mxu1 %v13416_v24 }
0x135d   :  { %4754 = vmatpush1.msra.mxu0 %v13417_v29  ;;  %4825 = vmatpush1.msra.mxu1 %v13442_v31 }
0x135e   :  { %4755 = vmatprep.subr.mxu0 %v13443_v55  ;;  %4826 = vmatprep.subr.mxu1 %v13444_v26 }
0x135f   :  { %4756 = vmatpush1.msra.mxu0 %v13445_v7  ;;  %4827 = vmatpush1.msra.mxu1 %v13446_v11 }
0x1360   :  { %4757 = vmatprep.subr.mxu0 %v13447_v15  ;;  %4828 = vmatprep.subr.mxu1 %v13448_v28  ;;  %v11346_v15 = vld [vmem:[#allocation16 + $0x1a0] sm:$0xff]  ;;  %v11349_v28 = vld [vmem:[#allocation16 + $0x1b0] sm:$0xff] }
0x1361   :  { %4758 = vmatpush1.msra.mxu0 %v13449_v8  ;;  %4829 = vmatpush1.msra.mxu1 %v13466_v35  ;;  %v11352_v8 = vld [vmem:[#allocation16 + $0x188] sm:$0xff] }
0x1362   :  { %4759 = vmatprep.subr.mxu0 %v13467_v33  ;;  %4830 = vmatprep.subr.mxu1 %v13468_v50  ;;  %v11388_v35 = vld [vmem:[#allocation16 + $0x128] sm:$0xff]  ;;  %v11391_v33 = vld [vmem:[#allocation16 + $0x138] sm:$0xff]  ;;  %v11394_v50 = vld [vmem:[#allocation16 + $0x120] sm:$0xff] }
0x1363   :  { %4760 = vmatpush1.msra.mxu0 %v13469_v60  ;;  %4831 = vmatpush1.msra.mxu1 %v13470_v47  ;;  %v11397_v60 = vld [vmem:[#allocation16 + $0x130] sm:$0xff]  ;;  %v11400_v47 = vld [vmem:[#allocation16 + $0x108] sm:$0xff] }
0x1364   :  { %4761 = vmatprep.subr.mxu0 %v13471_v49  ;;  %4832 = vmatprep.subr.mxu1 %v13472_v52  ;;  %v11403_v49 = vld [vmem:[#allocation16 + $0x118] sm:$0xff]  ;;  %v11406_v52 = vld [vmem:[#allocation16 + $0x100] sm:$0xff] }
0x1365   :  { %4762 = vmatpush1.msra.mxu0 %v13473_v53  ;;  %4795 = vmatprep.mubr.f32.mxu0 %v13474_v51  ;;  %v11409_v53 = vld [vmem:[#allocation16 + $0x110] sm:$0xff] }
0x1366   :  { %4833 = vmatpush1.msra.mxu1 %v13475_v21  ;;  %4866 = vmatprep.mubr.f32.mxu1 %v13474_v51  ;;  %v11412_v21 = vld [vmem:[#allocation16 + $0xe8] sm:$0xff] }
0x1367   :  { %4907 = vmatprep.subr.mxu0 %v11324_v58  ;;  %4978 = vmatprep.subr.mxu1 %v11327_v59 }
0x1406   :  { %v4621_v25 = vpop.f32.mrf.mxu0  ;;  %v4692_v44 = vpop.f32.mrf.mxu1 }
0x1407   :  { %v4697_v18 = vadd.f32 %v4621_v25, %v13476_v0  ;;  %v4699_v38 = vadd.f32 %v4692_v44, %v13479_v14  ;;  %v11415_v25 = vld [vmem:[#allocation16 + $0xf8] sm:$0xff]  ;;  %v11418_v0 = vld [vmem:[#allocation16 + $0xe0] sm:$0xff]  ;;  %v11436_v44 = vld [vmem:[#allocation16 + $0xa8] sm:$0xff] }
0x1408   :  { %v4623_v13 = vpop.f32.mrf.mxu0  ;;  %v4694_v10 = vpop.f32.mrf.mxu1  ;;  %v11451_v14 = vld [vmem:[#allocation16 + $0x98] sm:$0xff] }
0x1409   :  { %v7384_v42 = vmul.f32 -1.442695, %v4697_v18  ;;  %v4698_v56 = vadd.f32 %v4623_v13, %v13477_v17  ;;  %v4700_v6 = vadd.f32 %v4694_v10, %v13478_v16  ;;  %v11421_v18 = vld [vmem:[#allocation16 + $0xf0] sm:$0xff]  ;;  %v11424_v13 = vld [vmem:[#allocation16 + $0xc8] sm:$0xff]  ;;  %v11430_v17 = vld [vmem:[#allocation16 + $0xc0] sm:$0xff] }
0x140a   :  { %v11442_v10 = vld [vmem:[#allocation16 + $0xa0] sm:$0xff]  ;;  %v11445_v16 = vld [vmem:[#allocation16 + $0xb0] sm:$0xff] }
0x140b   :  { %7888 = vpow2.f32 %v7384_v42  ;;  %v7385_v9 = vmul.f32 -1.442695, %v4698_v56  ;;  %v7386_v19 = vmul.f32 -1.442695, %v4700_v6  ;;  %v11427_v42 = vld [vmem:[#allocation16 + $0xd8] sm:$0xff]  ;;  %v11433_v56 = vld [vmem:[#allocation16 + $0xd0] sm:$0xff] }
0x140c   :  { %v11448_v6 = vld [vmem:[#allocation16 + $0x88] sm:$0xff] }
0x140d   :  { %7890 = vpow2.f32 %v7385_v9  ;;  %v11439_v9 = vld [vmem:[#allocation16 + $0xb8] sm:$0xff] }
0x140e   :  { %7892 = vtanh.f32 %v4699_v38  ;;  %v11454_v38 = vld [vmem:[#allocation16 + $0x80] sm:$0xff] }
0x140f   :  { %7894 = vpow2.f32 %v7386_v19  ;;  %v11457_v19 = vld [vmem:[#allocation16 + $0x90] sm:$0xff] }
0x1410   :  { %13480 = vst [vmem:[#allocation82_spill] sm:$0xff] %v11457_v19 }
0x1418   :  { %v7889_v36 = vpop.eup %7888 }
0x1419   :  { %v4704_v40 = vadd.f32 1.0, %v7889_v36  ;;  %v11460_v36 = vld [vmem:[#allocation16 + $0x68] sm:$0xff] }
0x141a   :  { %v7891_v41 = vpop.eup %7890  ;;  %13481 = vst [vmem:[#allocation37_spill] sm:$0xff] %v11460_v36 }
0x141b   :  { %7896 = vrcp.f32 %v4704_v40  ;;  %v4710_v43 = vadd.f32 1.0, %v7891_v41  ;;  %v7893_v2 = vpop.eup %7892  ;;  %v11463_v40 = vld [vmem:[#allocation16 + $0x78] sm:$0xff]  ;;  %v11466_v41 = vld [vmem:[#allocation16 + $0x60] sm:$0xff] }
0x141c   :  { %v7895_v4 = vpop.eup %7894  ;;  %13482 = vst [vmem:[#allocation83_spill] sm:$0xff] %v11463_v40  ;;  %13483 = vst [vmem:[#allocation84_spill] sm:$0xff] %v11466_v41 }
0x141d   :  { %7898 = vrcp.f32 %v4710_v43  ;;  %v4717_v29 = vadd.f32 1.0, %v7895_v4  ;;  %v11469_v43 = vld [vmem:[#allocation16 + $0x70] sm:$0xff]  ;;  %v11475_v4 = vld [vmem:[#allocation16 + $0x58] sm:$0xff] }
0x141e   :  { %13484 = vst [vmem:[#allocation55_spill] sm:$0xff] %v11469_v43  ;;  %13486 = vst [vmem:[#allocation40_spill] sm:$0xff] %v11475_v4 }
0x141f   :  { %7900 = vrcp.f32 %v4717_v29  ;;  %v11487_v29 = vld [vmem:[#allocation16 + $0x38] sm:$0xff] }
0x1420   :  { %13490 = vst [vmem:[#allocation75_spill] sm:$0xff] %v11487_v29 }
0x1428   :  { %v7897_v27 = vpop.eup %7896 }
0x1429   :  { %v4721_v63 = vmul.f32 %v7897_v27, %v7893_v2  ;;  %v11472_v2 = vld [vmem:[#allocation16 + $0x48] sm:$0xff]  ;;  %v11478_v27 = vld [vmem:[#allocation16 + $0x40] sm:$0xff] }
0x142a   :  { %v7899_v24 = vpop.eup %7898  ;;  %13485 = vst [vmem:[#allocation34_spill] sm:$0xff] %v11472_v2  ;;  %13487 = vst [vmem:[#allocation41_spill] sm:$0xff] %v11478_v27 }
0x142b   :  { %v4720_v31 = vmul.f32 %v7899_v24, %v11241_v62  ;;  %v11376_v62 = vld [vmem:[#allocation16 + $0x148] sm:$0xff] }
0x142c   :  { %v7901_v26 = vpop.eup %7900  ;;  %v11484_v24 = vld [vmem:[#allocation16 + $0x28] sm:$0xff] }
0x142d   :  { %v11335_v55 = vadd.f32 %v4721_v63, %v4720_v31  ;;  %v11481_v63 = vld [vmem:[#allocation16 + $0x50] sm:$0xff]  ;;  %13489 = vst [vmem:[#allocation42_spill] sm:$0xff] %v11484_v24  ;;  %v11490_v31 = vld [vmem:[#allocation16 + $0x20] sm:$0xff] }
0x142e   :  { %13488 = vst [vmem:[#allocation48_spill] sm:$0xff] %v11481_v63  ;;  %13491 = vst [vmem:[#allocation60_spill] sm:$0xff] %v11490_v31 }
0x142f   :  { %7902 = vtanh.f32 %v11335_v55 }
0x143c   :  { %v7903_v7 = vpop.eup %7902 }
0x143d   :  { %v4724_v11 = vmul.f32 %v7903_v7, %v7901_v26  ;;  %v11493_v26 = vld [vmem:[#allocation16 + $0x30] sm:$0xff]  ;;  %v11496_v7 = vld [vmem:[#allocation16 + $0x8] sm:$0xff] }
0x143e   :  { %13492 = vst [vmem:[#allocation86_spill] sm:$0xff] %v11493_v26  ;;  %13493 = vst [vmem:[#allocation69_spill] sm:$0xff] %v11496_v7 }
0x143f   :  { %4796 = vmatmul.mubr.f32.vlgmr.msra.gmra.mxu0 %v4724_v11  ;;  %4867 = vmatmul.mubr.f32.vlgmr.msra.gmra.mxu1 %v4724_v11  ;;  %v11499_v11 = vld [vmem:[#allocation16 + $0x18] sm:$0xff] }
0x1440   :  { %4908 = vmatpush1.msra.mxu0 %v11244_v3  ;;  %4979 = vmatpush1.msra.mxu1 %v11247_v37  ;;  %13494 = vst [vmem:[#allocation68_spill] sm:$0xff] %v11499_v11 }
0x1441   :  { %4909 = vmatprep.subr.mxu0 %v11250_v57  ;;  %4980 = vmatprep.subr.mxu1 %v11253_v22 }
0x1442   :  { %4910 = vmatpush1.msra.mxu0 %v11256_v30  ;;  %4981 = vmatpush1.msra.mxu1 %v11259_v32 }
0x1443   :  { %4911 = vmatprep.subr.mxu0 %v11262_v23  ;;  %4982 = vmatprep.subr.mxu1 %v11265_v34 }
0x1444   :  { %4912 = vmatpush1.msra.mxu0 %v11346_v15  ;;  %4983 = vmatpush1.msra.mxu1 %v11349_v28 }
0x1445   :  { %4913 = vmatprep.subr.mxu0 %v11352_v8  ;;  %4984 = vmatprep.subr.mxu1 %v11355_v39 }
0x1446   :  { %4914 = vmatpush1.msra.mxu0 %v11358_v45  ;;  %4985 = vmatpush1.msra.mxu1 %v11361_v20 }
0x1447   :  { %4915 = vmatprep.subr.mxu0 %v11364_v46  ;;  %4986 = vmatprep.subr.mxu1 %v11367_v61 }
0x1448   :  { %4916 = vmatpush1.msra.mxu0 %v11370_v5  ;;  %4987 = vmatpush1.msra.mxu1 %v11373_v1 }
0x1449   :  { %4917 = vmatprep.subr.mxu0 %v11376_v62  ;;  %4988 = vmatprep.subr.mxu1 %v11379_v12 }
0x144a   :  { %4918 = vmatpush1.msra.mxu0 %v11382_v48  ;;  %4989 = vmatpush1.msra.mxu1 %v11385_v54 }
0x144b   :  { %4919 = vmatprep.subr.mxu0 %v11388_v35  ;;  %4990 = vmatprep.subr.mxu1 %v11391_v33 }
0x144c   :  { %4920 = vmatpush1.msra.mxu0 %v11394_v50  ;;  %4991 = vmatpush1.msra.mxu1 %v11397_v60 }
0x144d   :  { %4921 = vmatprep.subr.mxu0 %v11400_v47  ;;  %4992 = vmatprep.subr.mxu1 %v11403_v49 }
0x144e   :  { %4922 = vmatpush1.msra.mxu0 %v11406_v52  ;;  %4993 = vmatpush1.msra.mxu1 %v11409_v53 }
0x144f   :  { %4923 = vmatprep.subr.mxu0 %v11412_v21  ;;  %4994 = vmatprep.subr.mxu1 %v11415_v25 }
0x1450   :  { %4924 = vmatpush1.msra.mxu0 %v11418_v0  ;;  %4995 = vmatpush1.msra.mxu1 %v11421_v18 }
0x1451   :  { %4925 = vmatprep.subr.mxu0 %v11424_v13  ;;  %4996 = vmatprep.subr.mxu1 %v11427_v42 }
0x1452   :  { %4926 = vmatpush1.msra.mxu0 %v11430_v17  ;;  %4997 = vmatpush1.msra.mxu1 %v11433_v56 }
0x1453   :  { %4927 = vmatprep.subr.mxu0 %v11436_v44  ;;  %4998 = vmatprep.subr.mxu1 %v11439_v9 }
0x1454   :  { %4928 = vmatpush1.msra.mxu0 %v11442_v10  ;;  %4999 = vmatpush1.msra.mxu1 %v11445_v16 }
0x1455   :  { %4929 = vmatprep.subr.mxu0 %v11448_v6  ;;  %5000 = vmatprep.subr.mxu1 %v11451_v14 }
0x1456   :  { %4930 = vmatpush1.msra.mxu0 %v11454_v38  ;;  %5001 = vmatpush1.msra.mxu1 %v11457_v19 }
0x1457   :  { %4931 = vmatprep.subr.mxu0 %v11460_v36  ;;  %5002 = vmatprep.subr.mxu1 %v11463_v40  ;;  %v13500_v40 = vld [vmem:[#allocation95_spill] sm:$0xff] }
0x1458   :  { %4932 = vmatpush1.msra.mxu0 %v11466_v41  ;;  %5003 = vmatpush1.msra.mxu1 %v11469_v43  ;;  %v13499_v41 = vld [vmem:[#allocation97_spill] sm:$0xff] }
0x1459   :  { %4933 = vmatprep.subr.mxu0 %v11472_v2  ;;  %5004 = vmatprep.subr.mxu1 %v11475_v4 }
0x145a   :  { %4934 = vmatpush1.msra.mxu0 %v11478_v27  ;;  %5005 = vmatpush1.msra.mxu1 %v11481_v63  ;;  %v13498_v27 = vld [vmem:[#allocation96_spill] sm:$0xff] }
0x145b   :  { %4935 = vmatprep.subr.mxu0 %v11484_v24  ;;  %5006 = vmatprep.subr.mxu1 %v11487_v29  ;;  %v11502_v24 = vld [vmem:[#allocation16] sm:$0xff]  ;;  %v11506_v29 = vld [vmem:[#allocation16 + $0x10] sm:$0xff] }
0x145c   :  { %4936 = vmatpush1.msra.mxu0 %v11490_v31  ;;  %5007 = vmatpush1.msra.mxu1 %v11493_v26  ;;  %13495 = vst [vmem:[#allocation51_spill] sm:$0xff] %v11502_v24  ;;  %13496 = vst [vmem:[#allocation53_spill] sm:$0xff] %v11506_v29  ;;  %v13497_v26 = vld [vmem:[#allocation94_spill] sm:$0xff] }
0x145d   :  { %4937 = vmatprep.subr.mxu0 %v11496_v7  ;;  %5008 = vmatprep.subr.mxu1 %v11499_v11 }
0x145e   :  { %4938 = vmatpush1.msra.mxu0 %v11502_v24  ;;  %4971 = vmatprep.mubr.f32.mxu0 %v13474_v51 }
0x145f   :  { %5009 = vmatpush1.msra.mxu1 %v11506_v29  ;;  %5042 = vmatprep.mubr.f32.mxu1 %v13474_v51 }
0x1460   :  { %5083 = vmatprep.subr.mxu0 %v11324_v58  ;;  %5154 = vmatprep.subr.mxu1 %v11327_v59 }
0x14ff   :  { %v4797_v7 = vpop.f32.mrf.mxu0  ;;  %v4868_v24 = vpop.f32.mrf.mxu1 }
0x1500   :  { %v4873_v31 = vadd.f32 %v4797_v7, %v13497_v26  ;;  %v4875_v51 = vadd.f32 %v4868_v24, %v13500_v40 }
0x1501   :  { %v4799_v11 = vpop.f32.mrf.mxu0  ;;  %v4870_v43 = vpop.f32.mrf.mxu1 }
0x1502   :  { %v7387_v63 = vmul.f32 -1.442695, %v4873_v31  ;;  %v4874_v4 = vadd.f32 %v4799_v11, %v13498_v27  ;;  %v4876_v29 = vadd.f32 %v4870_v43, %v13499_v41 }
0x1504   :  { %7904 = vpow2.f32 %v7387_v63  ;;  %v7388_v2 = vmul.f32 -1.442695, %v4874_v4  ;;  %v7389_v36 = vmul.f32 -1.442695, %v4876_v29 }
0x1506   :  { %7906 = vpow2.f32 %v7388_v2 }
0x1507   :  { %7908 = vtanh.f32 %v4875_v51 }
0x1508   :  { %7910 = vpow2.f32 %v7389_v36 }
0x1511   :  { %v7905_v58 = vpop.eup %7904 }
0x1512   :  { %v4880_v19 = vadd.f32 1.0, %v7905_v58  ;;  %v5315_v58 = vld [vmem:[#allocation17 + $0x1e0] sm:$0xff] }
0x1513   :  { %v7907_v59 = vpop.eup %7906 }
0x1514   :  { %7912 = vrcp.f32 %v4880_v19  ;;  %v4886_v26 = vadd.f32 1.0, %v7907_v59  ;;  %v7909_v31 = vpop.eup %7908  ;;  %v5317_v59 = vld [vmem:[#allocation17 + $0x1f0] sm:$0xff] }
0x1515   :  { %v7911_v27 = vpop.eup %7910 }
0x1516   :  { %7914 = vrcp.f32 %v4886_v26  ;;  %v4893_v2 = vadd.f32 1.0, %v7911_v27  ;;  %v5312_v26 = vld [vmem:[#allocation17 + $0x1c8] sm:$0xff]  ;;  %v5311_v27 = vld [vmem:[#allocation17 + $0x1c0] sm:$0xff] }
0x1518   :  { %7916 = vrcp.f32 %v4893_v2  ;;  %v5310_v2 = vld [vmem:[#allocation17 + $0x1b8] sm:$0xff] }
0x1521   :  { %v7913_v63 = vpop.eup %7912 }
0x1522   :  { %v4897_v7 = vmul.f32 %v7913_v63, %v7909_v31  ;;  %v5314_v31 = vld [vmem:[#allocation17 + $0x1d8] sm:$0xff]  ;;  %v5313_v63 = vld [vmem:[#allocation17 + $0x1d0] sm:$0xff] }
0x1523   :  { %v7915_v4 = vpop.eup %7914 }
0x1524   :  { %v4896_v11 = vmul.f32 %v7915_v4, %v11335_v55  ;;  %v13509_v55 = vld [vmem:[#allocation48_spill] sm:$0xff]  ;;  %v5308_v4 = vld [vmem:[#allocation17 + $0x1a8] sm:$0xff] }
0x1525   :  { %v7917_v40 = vpop.eup %7916 }
0x1526   :  { %v11517_v41 = vadd.f32 %v4897_v7, %v4896_v11  ;;  %v13523_v7 = vld [vmem:[#allocation73_spill] sm:$0xff] }
0x1527   :  { %v5307_v11 = vld [vmem:[#allocation17 + $0x1a0] sm:$0xff] }
0x1528   :  { %7918 = vtanh.f32 %v11517_v41 }
0x1535   :  { %v7919_v51 = vpop.eup %7918 }
0x1536   :  { %v4900_v43 = vmul.f32 %v7919_v51, %v7917_v40  ;;  %v5304_v40 = vld [vmem:[#allocation17 + $0x188] sm:$0xff]  ;;  %v5306_v51 = vld [vmem:[#allocation17 + $0x198] sm:$0xff] }
0x1538   :  { %4972 = vmatmul.mubr.f32.vlgmr.msra.gmra.mxu0 %v4900_v43  ;;  %5043 = vmatmul.mubr.f32.vlgmr.msra.gmra.mxu1 %v4900_v43  ;;  %v5303_v43 = vld [vmem:[#allocation17 + $0x180] sm:$0xff] }
0x1539   :  { %5084 = vmatpush1.msra.mxu0 %v11244_v3  ;;  %5155 = vmatpush1.msra.mxu1 %v11247_v37  ;;  %v13501_v3 = vld [vmem:[#allocation82_spill] sm:$0xff]  ;;  %v13502_v37 = vld [vmem:[#allocation37_spill] sm:$0xff] }
0x153a   :  { %5085 = vmatprep.subr.mxu0 %v11250_v57  ;;  %5156 = vmatprep.subr.mxu1 %v11253_v22  ;;  %v13503_v57 = vld [vmem:[#allocation83_spill] sm:$0xff]  ;;  %v13504_v22 = vld [vmem:[#allocation84_spill] sm:$0xff] }
0x153b   :  { %5086 = vmatpush1.msra.mxu0 %v11256_v30  ;;  %5157 = vmatpush1.msra.mxu1 %v11259_v32  ;;  %v13505_v30 = vld [vmem:[#allocation55_spill] sm:$0xff]  ;;  %v13506_v32 = vld [vmem:[#allocation34_spill] sm:$0xff] }
0x153c   :  { %5087 = vmatprep.subr.mxu0 %v11262_v23  ;;  %5158 = vmatprep.subr.mxu1 %v11265_v34  ;;  %v13507_v23 = vld [vmem:[#allocation40_spill] sm:$0xff]  ;;  %v13508_v34 = vld [vmem:[#allocation41_spill] sm:$0xff] }
0x153d   :  { %5088 = vmatpush1.msra.mxu0 %v11346_v15  ;;  %5159 = vmatpush1.msra.mxu1 %v11349_v28  ;;  %v13510_v15 = vld [vmem:[#allocation42_spill] sm:$0xff]  ;;  %v13511_v28 = vld [vmem:[#allocation75_spill] sm:$0xff] }
0x153e   :  { %5089 = vmatprep.subr.mxu0 %v11352_v8  ;;  %5160 = vmatprep.subr.mxu1 %v11355_v39  ;;  %v13512_v8 = vld [vmem:[#allocation60_spill] sm:$0xff]  ;;  %v13513_v39 = vld [vmem:[#allocation86_spill] sm:$0xff] }
0x153f   :  { %5090 = vmatpush1.msra.mxu0 %v11358_v45  ;;  %5161 = vmatpush1.msra.mxu1 %v11361_v20  ;;  %v13514_v45 = vld [vmem:[#allocation69_spill] sm:$0xff]  ;;  %v13515_v20 = vld [vmem:[#allocation68_spill] sm:$0xff] }
0x1540   :  { %5091 = vmatprep.subr.mxu0 %v11364_v46  ;;  %5162 = vmatprep.subr.mxu1 %v11367_v61  ;;  %v13516_v46 = vld [vmem:[#allocation51_spill] sm:$0xff]  ;;  %v13517_v61 = vld [vmem:[#allocation53_spill] sm:$0xff] }
0x1541   :  { %5092 = vmatpush1.msra.mxu0 %v11370_v5  ;;  %5163 = vmatpush1.msra.mxu1 %v11373_v1  ;;  %v13518_v5 = vmov 0.0   ;;  %v5316_v1 = vld [vmem:[#allocation17 + $0x1e8] sm:$0xff] }
0x1542   :  { %5093 = vmatprep.subr.mxu0 %v11376_v62  ;;  %5164 = vmatprep.subr.mxu1 %v11379_v12  ;;  %v5318_v62 = vld [vmem:[#allocation17 + $0x1f8] sm:$0xff] }
0x1543   :  { %5094 = vmatpush1.msra.mxu0 %v11382_v48  ;;  %5165 = vmatpush1.msra.mxu1 %v11385_v54  ;;  %v13519_v48 = vld [vmem:[#allocation98_spill] sm:$0xff] }
0x1544   :  { %5095 = vmatprep.subr.mxu0 %v11388_v35  ;;  %5166 = vmatprep.subr.mxu1 %v11391_v33 }
0x1545   :  { %5096 = vmatpush1.msra.mxu0 %v11394_v50  ;;  %5167 = vmatpush1.msra.mxu1 %v11397_v60  ;;  %v13520_v50 = vld [vmem:[#allocation100_spill] sm:$0xff] }
0x1546   :  { %5097 = vmatprep.subr.mxu0 %v11400_v47  ;;  %5168 = vmatprep.subr.mxu1 %v11403_v49 }
0x1547   :  { %5098 = vmatpush1.msra.mxu0 %v11406_v52  ;;  %5169 = vmatpush1.msra.mxu1 %v11409_v53  ;;  %v13521_v53 = vld [vmem:[#allocation101_spill] sm:$0xff] }
0x1548   :  { %5099 = vmatprep.subr.mxu0 %v11412_v21  ;;  %5170 = vmatprep.subr.mxu1 %v11415_v25  ;;  %v13522_v25 = vld [vmem:[#allocation99_spill] sm:$0xff] }
0x1549   :  { %5100 = vmatpush1.msra.mxu0 %v11418_v0  ;;  %5171 = vmatpush1.msra.mxu1 %v11421_v18 }
0x154a   :  { %5101 = vmatprep.subr.mxu0 %v11424_v13  ;;  %5172 = vmatprep.subr.mxu1 %v11427_v42 }
0x154b   :  { %5102 = vmatpush1.msra.mxu0 %v11430_v17  ;;  %5173 = vmatpush1.msra.mxu1 %v11433_v56 }
0x154c   :  { %5103 = vmatprep.subr.mxu0 %v11436_v44  ;;  %5174 = vmatprep.subr.mxu1 %v11439_v9 }
0x154d   :  { %5104 = vmatpush1.msra.mxu0 %v11442_v10  ;;  %5175 = vmatpush1.msra.mxu1 %v11445_v16 }
0x154e   :  { %5105 = vmatprep.subr.mxu0 %v11448_v6  ;;  %5176 = vmatprep.subr.mxu1 %v11451_v14 }
0x154f   :  { %5106 = vmatpush1.msra.mxu0 %v11454_v38  ;;  %5177 = vmatpush1.msra.mxu1 %v13501_v3  ;;  %v5305_v3 = vld [vmem:[#allocation17 + $0x190] sm:$0xff] }
0x1550   :  { %5107 = vmatprep.subr.mxu0 %v13502_v37  ;;  %5178 = vmatprep.subr.mxu1 %v13503_v57  ;;  %v5300_v37 = vld [vmem:[#allocation17 + $0x168] sm:$0xff]  ;;  %v5302_v57 = vld [vmem:[#allocation17 + $0x178] sm:$0xff] }
0x1551   :  { %5108 = vmatpush1.msra.mxu0 %v13504_v22  ;;  %5179 = vmatpush1.msra.mxu1 %v13505_v30  ;;  %v5299_v22 = vld [vmem:[#allocation17 + $0x160] sm:$0xff]  ;;  %v5301_v30 = vld [vmem:[#allocation17 + $0x170] sm:$0xff] }
0x1552   :  { %5109 = vmatprep.subr.mxu0 %v13506_v32  ;;  %5180 = vmatprep.subr.mxu1 %v13507_v23  ;;  %v5296_v32 = vld [vmem:[#allocation17 + $0x148] sm:$0xff]  ;;  %v5298_v23 = vld [vmem:[#allocation17 + $0x158] sm:$0xff] }
0x1553   :  { %5110 = vmatpush1.msra.mxu0 %v13508_v34  ;;  %5181 = vmatpush1.msra.mxu1 %v13509_v55  ;;  %v5295_v34 = vld [vmem:[#allocation17 + $0x140] sm:$0xff]  ;;  %v5297_v55 = vld [vmem:[#allocation17 + $0x150] sm:$0xff] }
0x1554   :  { %5111 = vmatprep.subr.mxu0 %v13510_v15  ;;  %5182 = vmatprep.subr.mxu1 %v13511_v28  ;;  %v5292_v15 = vld [vmem:[#allocation17 + $0x128] sm:$0xff]  ;;  %v5294_v28 = vld [vmem:[#allocation17 + $0x138] sm:$0xff] }
0x1555   :  { %5112 = vmatpush1.msra.mxu0 %v13512_v8  ;;  %5183 = vmatpush1.msra.mxu1 %v13513_v39  ;;  %v5291_v8 = vld [vmem:[#allocation17 + $0x120] sm:$0xff]  ;;  %v5293_v39 = vld [vmem:[#allocation17 + $0x130] sm:$0xff] }
0x1556   :  { %5113 = vmatprep.subr.mxu0 %v13514_v45  ;;  %5184 = vmatprep.subr.mxu1 %v13515_v20  ;;  %v5288_v45 = vld [vmem:[#allocation17 + $0x108] sm:$0xff]  ;;  %v5290_v20 = vld [vmem:[#allocation17 + $0x118] sm:$0xff] }
0x1557   :  { %5114 = vmatpush1.msra.mxu0 %v13516_v46  ;;  %5185 = vmatpush1.msra.mxu1 %v13517_v61  ;;  %v5287_v46 = vld [vmem:[#allocation17 + $0x100] sm:$0xff]  ;;  %v5289_v61 = vld [vmem:[#allocation17 + $0x110] sm:$0xff] }
0x1558   :  { %5147 = vmatprep.mubr.f32.mxu0 %v13518_v5  ;;  %5218 = vmatprep.mubr.f32.mxu1 %v13518_v5 }
0x1559   :  { %5405 = vmatprep.subr.mxu0 %v5316_v1  ;;  %5518 = vmatprep.subr.mxu1 %v5318_v62  ;;  %v5284_v1 = vld [vmem:[#allocation17 + $0xe8] sm:$0xff]  ;;  %v5286_v62 = vld [vmem:[#allocation17 + $0xf8] sm:$0xff] }
0x15f8   :  { %v4973_v12 = vpop.f32.mrf.mxu0  ;;  %v5044_v47 = vpop.f32.mrf.mxu1 }
0x15f9   :  { %v5049_v54 = vadd.f32 %v4973_v12, %v13519_v48  ;;  %v5051_v0 = vadd.f32 %v5044_v47, %v13522_v25  ;;  %v5283_v12 = vld [vmem:[#allocation17 + $0xe0] sm:$0xff]  ;;  %v5285_v48 = vld [vmem:[#allocation17 + $0xf0] sm:$0xff]  ;;  %v5278_v47 = vld [vmem:[#allocation17 + $0xb8] sm:$0xff] }
0x15fa   :  { %v4975_v35 = vpop.f32.mrf.mxu0  ;;  %v5046_v52 = vpop.f32.mrf.mxu1  ;;  %v5271_v25 = vld [vmem:[#allocation17 + $0x80] sm:$0xff] }
0x15fb   :  { %v7390_v33 = vmul.f32 -1.442695, %v5049_v54  ;;  %v5050_v60 = vadd.f32 %v4975_v35, %v13520_v50  ;;  %v5052_v21 = vadd.f32 %v5046_v52, %v13521_v53  ;;  %v5280_v54 = vld [vmem:[#allocation17 + $0xc8] sm:$0xff]  ;;  %v5282_v35 = vld [vmem:[#allocation17 + $0xd8] sm:$0xff]  ;;  %v5281_v50 = vld [vmem:[#allocation17 + $0xd0] sm:$0xff] }
0x15fc   :  { %v5277_v52 = vld [vmem:[#allocation17 + $0xb0] sm:$0xff]  ;;  %v5272_v53 = vld [vmem:[#allocation17 + $0x88] sm:$0xff] }
0x15fd   :  { %7920 = vpow2.f32 %v7390_v33  ;;  %v7391_v49 = vmul.f32 -1.442695, %v5050_v60  ;;  %v7392_v18 = vmul.f32 -1.442695, %v5052_v21  ;;  %v5279_v33 = vld [vmem:[#allocation17 + $0xc0] sm:$0xff]  ;;  %v5276_v60 = vld [vmem:[#allocation17 + $0xa8] sm:$0xff] }
0x15fe   :  { %v5274_v21 = vld [vmem:[#allocation17 + $0x98] sm:$0xff] }
0x15ff   :  { %7922 = vpow2.f32 %v7391_v49  ;;  %v5275_v49 = vld [vmem:[#allocation17 + $0xa0] sm:$0xff] }
0x1600   :  { %7924 = vtanh.f32 %v5051_v0  ;;  %v5273_v0 = vld [vmem:[#allocation17 + $0x90] sm:$0xff] }
0x1601   :  { %7926 = vpow2.f32 %v7392_v18  ;;  %v5268_v18 = vld [vmem:[#allocation17 + $0x68] sm:$0xff] }
0x160a   :  { %v7921_v13 = vpop.eup %7920 }
0x160b   :  { %v5056_v42 = vadd.f32 1.0, %v7921_v13  ;;  %v5270_v13 = vld [vmem:[#allocation17 + $0x78] sm:$0xff] }
0x160c   :  { %v7923_v17 = vpop.eup %7922 }
0x160d   :  { %7928 = vrcp.f32 %v5056_v42  ;;  %v5062_v56 = vadd.f32 1.0, %v7923_v17  ;;  %v7925_v44 = vpop.eup %7924  ;;  %v5267_v42 = vld [vmem:[#allocation17 + $0x60] sm:$0xff]  ;;  %v5269_v17 = vld [vmem:[#allocation17 + $0x70] sm:$0xff] }
0x160e   :  { %v7927_v9 = vpop.eup %7926 }
0x160f   :  { %7930 = vrcp.f32 %v5062_v56  ;;  %v5069_v14 = vadd.f32 1.0, %v7927_v9  ;;  %v5264_v56 = vld [vmem:[#allocation17 + $0x48] sm:$0xff]  ;;  %v5263_v9 = vld [vmem:[#allocation17 + $0x40] sm:$0xff] }
0x1611   :  { %7932 = vrcp.f32 %v5069_v14  ;;  %v5259_v14 = vld [vmem:[#allocation17 + $0x20] sm:$0xff] }
0x161a   :  { %v7929_v10 = vpop.eup %7928 }
0x161b   :  { %v5073_v16 = vmul.f32 %v7929_v10, %v7925_v44  ;;  %v5266_v44 = vld [vmem:[#allocation17 + $0x58] sm:$0xff]  ;;  %v5265_v10 = vld [vmem:[#allocation17 + $0x50] sm:$0xff] }
0x161c   :  { %v7931_v6 = vpop.eup %7930 }
0x161d   :  { %v5072_v38 = vmul.f32 %v7931_v6, %v11517_v41  ;;  %v5309_v41 = vld [vmem:[#allocation17 + $0x1b0] sm:$0xff]  ;;  %v5262_v6 = vld [vmem:[#allocation17 + $0x38] sm:$0xff] }
0x161e   :  { %v7933_v36 = vpop.eup %7932 }
0x161f   :  { %v11589_v19 = vadd.f32 %v5073_v16, %v5072_v38  ;;  %v5260_v16 = vld [vmem:[#allocation17 + $0x28] sm:$0xff]  ;;  %v5261_v38 = vld [vmem:[#allocation17 + $0x30] sm:$0xff] }
0x1621   :  { %7934 = vtanh.f32 %v11589_v19 }
0x162e   :  { %v7935_v24 = vpop.eup %7934 }
0x162f   :  { %v5076_v29 = vmul.f32 %v7935_v24, %v7933_v36  ;;  %v5256_v36 = vld [vmem:[#allocation17 + $0x8] sm:$0xff]  ;;  %v5258_v24 = vld [vmem:[#allocation17 + $0x18] sm:$0xff] }
0x1631   :  { %5148 = vmatmul.mubr.f32.vlgmr.msra.gmra.mxu0 %v5076_v29  ;;  %5219 = vmatmul.mubr.f32.vlgmr.msra.gmra.mxu1 %v5076_v29  ;;  %v5255_v29 = vld [vmem:[#allocation17] sm:$0xff] }
0x1632   :  { %5406 = vmatpush1.msra.mxu0 %v5315_v58  ;;  %5519 = vmatpush1.msra.mxu1 %v5317_v59  ;;  %v5257_v58 = vld [vmem:[#allocation17 + $0x10] sm:$0xff]  ;;  %v5380_v59 = vld [vmem:[#allocation17 + $0x3e8] sm:$0xff] }
0x1633   :  { %5407 = vmatprep.subr.mxu0 %v5312_v26  ;;  %5469 = vmatprep.mubr.f32.mxu0 %v13523_v7  ;;  %v5382_v26 = vld [vmem:[#allocation17 + $0x3f8] sm:$0xff] }
0x1634   :  { %5520 = vmatprep.subr.mxu1 %v5314_v31  ;;  %5582 = vmatprep.mubr.f32.mxu1 %v13523_v7  ;;  %v5379_v31 = vld [vmem:[#allocation17 + $0x3e0] sm:$0xff]  ;;  %v5378_v7 = vld [vmem:[#allocation17 + $0x3d8] sm:$0xff] }
0x1635   :  { %5408 = vmatpush1.msra.mxu0 %v5311_v27  ;;  %5521 = vmatpush1.msra.mxu1 %v5313_v63  ;;  %v5381_v27 = vld [vmem:[#allocation17 + $0x3f0] sm:$0xff]  ;;  %v5376_v63 = vld [vmem:[#allocation17 + $0x3c8] sm:$0xff] }
0x1636   :  { %5409 = vmatprep.subr.mxu0 %v5308_v4  ;;  %5522 = vmatprep.subr.mxu1 %v5310_v2  ;;  %v5375_v4 = vld [vmem:[#allocation17 + $0x3c0] sm:$0xff]  ;;  %v5377_v2 = vld [vmem:[#allocation17 + $0x3d0] sm:$0xff] }
0x1637   :  { %5410 = vmatpush1.msra.mxu0 %v5307_v11  ;;  %5523 = vmatpush1.msra.mxu1 %v5309_v41  ;;  %v5372_v11 = vld [vmem:[#allocation17 + $0x3a8] sm:$0xff]  ;;  %v5374_v41 = vld [vmem:[#allocation17 + $0x3b8] sm:$0xff] }
0x1638   :  { %5411 = vmatprep.subr.mxu0 %v5304_v40  ;;  %5524 = vmatprep.subr.mxu1 %v5306_v51  ;;  %v5371_v40 = vld [vmem:[#allocation17 + $0x3a0] sm:$0xff]  ;;  %v5373_v51 = vld [vmem:[#allocation17 + $0x3b0] sm:$0xff] }
0x1639   :  { %5412 = vmatpush1.msra.mxu0 %v5303_v43  ;;  %5525 = vmatpush1.msra.mxu1 %v5305_v3  ;;  %v5368_v43 = vld [vmem:[#allocation17 + $0x388] sm:$0xff]  ;;  %v5370_v3 = vld [vmem:[#allocation17 + $0x398] sm:$0xff] }
0x163a   :  { %5413 = vmatprep.subr.mxu0 %v5300_v37  ;;  %5526 = vmatprep.subr.mxu1 %v5302_v57  ;;  %v5367_v37 = vld [vmem:[#allocation17 + $0x380] sm:$0xff]  ;;  %v5369_v57 = vld [vmem:[#allocation17 + $0x390] sm:$0xff] }
0x163b   :  { %5414 = vmatpush1.msra.mxu0 %v5299_v22  ;;  %5527 = vmatpush1.msra.mxu1 %v5301_v30  ;;  %v5364_v22 = vld [vmem:[#allocation17 + $0x368] sm:$0xff]  ;;  %v5366_v30 = vld [vmem:[#allocation17 + $0x378] sm:$0xff] }
0x163c   :  { %5415 = vmatprep.subr.mxu0 %v5296_v32  ;;  %5528 = vmatprep.subr.mxu1 %v5298_v23  ;;  %v5363_v32 = vld [vmem:[#allocation17 + $0x360] sm:$0xff]  ;;  %v5365_v23 = vld [vmem:[#allocation17 + $0x370] sm:$0xff] }
0x163d   :  { %5416 = vmatpush1.msra.mxu0 %v5295_v34  ;;  %5529 = vmatpush1.msra.mxu1 %v5297_v55  ;;  %v5360_v34 = vld [vmem:[#allocation17 + $0x348] sm:$0xff]  ;;  %v5362_v55 = vld [vmem:[#allocation17 + $0x358] sm:$0xff] }
0x163e   :  { %5417 = vmatprep.subr.mxu0 %v5292_v15  ;;  %5530 = vmatprep.subr.mxu1 %v5294_v28  ;;  %v5359_v15 = vld [vmem:[#allocation17 + $0x340] sm:$0xff]  ;;  %v5361_v28 = vld [vmem:[#allocation17 + $0x350] sm:$0xff] }
0x163f   :  { %5418 = vmatpush1.msra.mxu0 %v5291_v8  ;;  %5531 = vmatpush1.msra.mxu1 %v5293_v39  ;;  %v5356_v8 = vld [vmem:[#allocation17 + $0x328] sm:$0xff]  ;;  %v5358_v39 = vld [vmem:[#allocation17 + $0x338] sm:$0xff] }
0x1640   :  { %5419 = vmatprep.subr.mxu0 %v5288_v45  ;;  %5532 = vmatprep.subr.mxu1 %v5290_v20  ;;  %v5355_v45 = vld [vmem:[#allocation17 + $0x320] sm:$0xff]  ;;  %v5357_v20 = vld [vmem:[#allocation17 + $0x330] sm:$0xff] }
0x1641   :  { %5420 = vmatpush1.msra.mxu0 %v5287_v46  ;;  %5533 = vmatpush1.msra.mxu1 %v5289_v61  ;;  %v5352_v46 = vld [vmem:[#allocation17 + $0x308] sm:$0xff]  ;;  %v5354_v61 = vld [vmem:[#allocation17 + $0x318] sm:$0xff] }
0x1642   :  { %5421 = vmatprep.subr.mxu0 %v5284_v1  ;;  %5534 = vmatprep.subr.mxu1 %v5286_v62  ;;  %v5351_v1 = vld [vmem:[#allocation17 + $0x300] sm:$0xff]  ;;  %v5353_v62 = vld [vmem:[#allocation17 + $0x310] sm:$0xff] }
0x1643   :  { %5422 = vmatpush1.msra.mxu0 %v5283_v12  ;;  %5535 = vmatpush1.msra.mxu1 %v5285_v48  ;;  %v5348_v12 = vld [vmem:[#allocation17 + $0x2e8] sm:$0xff]  ;;  %v5350_v48 = vld [vmem:[#allocation17 + $0x2f8] sm:$0xff] }
0x1644   :  { %5423 = vmatprep.subr.mxu0 %v5280_v54  ;;  %5536 = vmatprep.subr.mxu1 %v5282_v35  ;;  %v5347_v54 = vld [vmem:[#allocation17 + $0x2e0] sm:$0xff]  ;;  %v5349_v35 = vld [vmem:[#allocation17 + $0x2f0] sm:$0xff] }
0x1645   :  { %5424 = vmatpush1.msra.mxu0 %v5279_v33  ;;  %5537 = vmatpush1.msra.mxu1 %v5281_v50  ;;  %v5344_v33 = vld [vmem:[#allocation17 + $0x2c8] sm:$0xff]  ;;  %v5346_v50 = vld [vmem:[#allocation17 + $0x2d8] sm:$0xff] }
0x1646   :  { %5425 = vmatprep.subr.mxu0 %v5276_v60  ;;  %5538 = vmatprep.subr.mxu1 %v5278_v47  ;;  %v5343_v60 = vld [vmem:[#allocation17 + $0x2c0] sm:$0xff]  ;;  %v5345_v47 = vld [vmem:[#allocation17 + $0x2d0] sm:$0xff] }
0x1647   :  { %5426 = vmatpush1.msra.mxu0 %v5275_v49  ;;  %5539 = vmatpush1.msra.mxu1 %v5277_v52  ;;  %v5340_v49 = vld [vmem:[#allocation17 + $0x2a8] sm:$0xff]  ;;  %v5342_v52 = vld [vmem:[#allocation17 + $0x2b8] sm:$0xff] }
0x1648   :  { %5427 = vmatprep.subr.mxu0 %v5272_v53  ;;  %5540 = vmatprep.subr.mxu1 %v5274_v21  ;;  %v5339_v53 = vld [vmem:[#allocation17 + $0x2a0] sm:$0xff]  ;;  %v5341_v21 = vld [vmem:[#allocation17 + $0x2b0] sm:$0xff] }
0x1649   :  { %5428 = vmatpush1.msra.mxu0 %v5271_v25  ;;  %5541 = vmatpush1.msra.mxu1 %v5273_v0  ;;  %v5336_v25 = vld [vmem:[#allocation17 + $0x288] sm:$0xff]  ;;  %v5338_v0 = vld [vmem:[#allocation17 + $0x298] sm:$0xff] }
0x164a   :  { %5429 = vmatprep.subr.mxu0 %v5268_v18  ;;  %5542 = vmatprep.subr.mxu1 %v5270_v13  ;;  %v5335_v18 = vld [vmem:[#allocation17 + $0x280] sm:$0xff]  ;;  %v5337_v13 = vld [vmem:[#allocation17 + $0x290] sm:$0xff] }
0x164b   :  { %5430 = vmatpush1.msra.mxu0 %v5267_v42  ;;  %5543 = vmatpush1.msra.mxu1 %v5269_v17  ;;  %v5332_v42 = vld [vmem:[#allocation17 + $0x268] sm:$0xff]  ;;  %v5334_v17 = vld [vmem:[#allocation17 + $0x278] sm:$0xff] }
0x164c   :  { %5431 = vmatprep.subr.mxu0 %v5264_v56  ;;  %5544 = vmatprep.subr.mxu1 %v5266_v44  ;;  %v5331_v56 = vld [vmem:[#allocation17 + $0x260] sm:$0xff]  ;;  %v5333_v44 = vld [vmem:[#allocation17 + $0x270] sm:$0xff] }
0x164d   :  { %5432 = vmatpush1.msra.mxu0 %v5263_v9  ;;  %5545 = vmatpush1.msra.mxu1 %v5265_v10  ;;  %v5328_v9 = vld [vmem:[#allocation17 + $0x248] sm:$0xff]  ;;  %v5330_v10 = vld [vmem:[#allocation17 + $0x258] sm:$0xff] }
0x164e   :  { %5433 = vmatprep.subr.mxu0 %v5260_v16  ;;  %5546 = vmatprep.subr.mxu1 %v5262_v6  ;;  %v5327_v16 = vld [vmem:[#allocation17 + $0x240] sm:$0xff]  ;;  %v5329_v6 = vld [vmem:[#allocation17 + $0x250] sm:$0xff] }
0x164f   :  { %5434 = vmatpush1.msra.mxu0 %v5259_v14  ;;  %5547 = vmatpush1.msra.mxu1 %v5261_v38  ;;  %v5324_v14 = vld [vmem:[#allocation17 + $0x228] sm:$0xff]  ;;  %v5326_v38 = vld [vmem:[#allocation17 + $0x238] sm:$0xff] }
0x1650   :  { %5435 = vmatprep.subr.mxu0 %v5256_v36  ;;  %5548 = vmatprep.subr.mxu1 %v5258_v24  ;;  %v5323_v36 = vld [vmem:[#allocation17 + $0x220] sm:$0xff]  ;;  %v5325_v24 = vld [vmem:[#allocation17 + $0x230] sm:$0xff] }
0x1651   :  { %5436 = vmatpush1.msra.mxu0 %v5255_v29  ;;  %5549 = vmatpush1.msra.mxu1 %v5257_v58  ;;  %v5320_v29 = vld [vmem:[#allocation17 + $0x208] sm:$0xff]  ;;  %v5322_v58 = vld [vmem:[#allocation17 + $0x218] sm:$0xff] }
0x1652   :  { %5437 = vmatprep.subr.mxu0 %v5380_v59  ;;  %5550 = vmatprep.subr.mxu1 %v5382_v26  ;;  %v5319_v59 = vld [vmem:[#allocation17 + $0x200] sm:$0xff]  ;;  %v5321_v26 = vld [vmem:[#allocation17 + $0x210] sm:$0xff] }
0x1653   :  { %5438 = vmatpush2.msra.mxu0 %v5379_v31  ;;  %5551 = vmatpush2.msra.mxu1 %v5381_v27  ;;  %v13524_v31 = vld [vmem:[#allocation64_spill] sm:$0xff]  ;;  %v13525_v27 = vld [vmem:[#allocation43_spill] sm:$0xff] }
0x1654   :  { %5439 = vmatprep.subr.mxu0 %v5376_v63  ;;  %5552 = vmatprep.subr.mxu1 %v5378_v7  ;;  %v13526_v63 = vld [vmem:[#allocation62_spill] sm:$0xff]  ;;  %v13527_v7 = vld [vmem:[#allocation44_spill] sm:$0xff] }
0x1655   :  { %5440 = vmatpush2.msra.mxu0 %v5375_v4  ;;  %5553 = vmatpush2.msra.mxu1 %v5377_v2  ;;  %v13528_v4 = vld [vmem:[#allocation36_spill] sm:$0xff]  ;;  %v13529_v2 = vld [vmem:[#allocation77_spill] sm:$0xff] }
0x1656   :  { %5441 = vmatprep.subr.mxu0 %v5372_v11  ;;  %5554 = vmatprep.subr.mxu1 %v5374_v41  ;;  %v13530_v11 = vld [vmem:[#allocation65_spill] sm:$0xff]  ;;  %v13531_v41 = vld [vmem:[#allocation79_spill] sm:$0xff] }
0x1657   :  { %5442 = vmatpush2.msra.mxu0 %v5371_v40  ;;  %5555 = vmatpush2.msra.mxu1 %v5373_v51  ;;  %v13532_v40 = vld [vmem:[#allocation38_spill] sm:$0xff] }
0x1658   :  { %5443 = vmatprep.subr.mxu0 %v5368_v43  ;;  %5556 = vmatprep.subr.mxu1 %v5370_v3  ;;  %v13533_v51 = vld [vmem:[#allocation70_spill] sm:$0xff]  ;;  %v13534_v43 = vld [vmem:[#allocation35_spill] sm:$0xff] }
0x1659   :  { %5444 = vmatpush2.msra.mxu0 %v5367_v37  ;;  %5557 = vmatpush2.msra.mxu1 %v5369_v57  ;;  %v13535_v3 = vld [vmem:[#allocation78_spill] sm:$0xff]  ;;  %v13536_v37 = vld [vmem:[#allocation67_spill] sm:$0xff]  ;;  %v13537_v57 = vld [vmem:[#allocation92_spill] sm:$0xff] }
0x165a   :  { %5445 = vmatprep.subr.mxu0 %v5364_v22  ;;  %5558 = vmatprep.subr.mxu1 %v5366_v30  ;;  %v13538_v22 = vld [vmem:[#allocation91_spill] sm:$0xff]  ;;  %v11626_v30 = vld [vmem:[#allocation19 + $0x1e8] sm:$0xff] }
0x165b   :  { %5446 = vmatpush2.msra.mxu0 %v5363_v32  ;;  %5559 = vmatpush2.msra.mxu1 %v5365_v23  ;;  %13539 = vst [vmem:[#allocation57_spill] sm:$0xff] %v11626_v30  ;;  %v11628_v32 = vld [vmem:[#allocation19 + $0x1f8] sm:$0xff]  ;;  %v11631_v23 = vld [vmem:[#allocation19 + $0x1e0] sm:$0xff] }
0x165c   :  { %5447 = vmatprep.subr.mxu0 %v5360_v34  ;;  %5560 = vmatprep.subr.mxu1 %v5362_v55  ;;  %13540 = vst [vmem:[#allocation85_spill] sm:$0xff] %v11628_v32  ;;  %v11634_v34 = vld [vmem:[#allocation19 + $0x1f0] sm:$0xff]  ;;  %v11637_v55 = vld [vmem:[#allocation19 + $0x1c8] sm:$0xff] }
0x165d   :  { %5448 = vmatpush2.msra.mxu0 %v5359_v15  ;;  %5561 = vmatpush2.msra.mxu1 %v5361_v28  ;;  %v11640_v15 = vld [vmem:[#allocation19 + $0x1d8] sm:$0xff]  ;;  %v11643_v28 = vld [vmem:[#allocation19 + $0x1c0] sm:$0xff] }
0x165e   :  { %5449 = vmatprep.subr.mxu0 %v5356_v8  ;;  %5562 = vmatprep.subr.mxu1 %v5358_v39  ;;  %v11646_v8 = vld [vmem:[#allocation19 + $0x1d0] sm:$0xff]  ;;  %v11649_v39 = vld [vmem:[#allocation19 + $0x1a8] sm:$0xff] }
0x165f   :  { %5450 = vmatpush2.msra.mxu0 %v5355_v45  ;;  %5563 = vmatpush2.msra.mxu1 %v5357_v20  ;;  %v11652_v45 = vld [vmem:[#allocation19 + $0x1b8] sm:$0xff]  ;;  %v11655_v20 = vld [vmem:[#allocation19 + $0x1a0] sm:$0xff] }
0x1660   :  { %5451 = vmatprep.subr.mxu0 %v5352_v46  ;;  %5564 = vmatprep.subr.mxu1 %v5354_v61  ;;  %v11658_v46 = vld [vmem:[#allocation19 + $0x1b0] sm:$0xff]  ;;  %v11661_v61 = vld [vmem:[#allocation19 + $0x188] sm:$0xff] }
0x1661   :  { %5452 = vmatpush2.msra.mxu0 %v5351_v1  ;;  %5565 = vmatpush2.msra.mxu1 %v5353_v62  ;;  %v11664_v1 = vld [vmem:[#allocation19 + $0x198] sm:$0xff]  ;;  %v11667_v62 = vld [vmem:[#allocation19 + $0x180] sm:$0xff] }
0x1662   :  { %5453 = vmatprep.subr.mxu0 %v5348_v12  ;;  %5566 = vmatprep.subr.mxu1 %v5350_v48  ;;  %v11670_v12 = vld [vmem:[#allocation19 + $0x190] sm:$0xff]  ;;  %v11673_v48 = vld [vmem:[#allocation19 + $0x168] sm:$0xff] }
0x1663   :  { %5454 = vmatpush2.msra.mxu0 %v5347_v54  ;;  %5567 = vmatpush2.msra.mxu1 %v5349_v35  ;;  %v11676_v54 = vld [vmem:[#allocation19 + $0x178] sm:$0xff]  ;;  %v11679_v35 = vld [vmem:[#allocation19 + $0x160] sm:$0xff] }
0x1664   :  { %5455 = vmatprep.subr.mxu0 %v5344_v33  ;;  %5568 = vmatprep.subr.mxu1 %v5346_v50  ;;  %v11682_v33 = vld [vmem:[#allocation19 + $0x170] sm:$0xff]  ;;  %v11685_v50 = vld [vmem:[#allocation19 + $0x148] sm:$0xff] }
0x1665   :  { %5456 = vmatpush2.msra.mxu0 %v5343_v60  ;;  %5569 = vmatpush2.msra.mxu1 %v5345_v47  ;;  %v11688_v60 = vld [vmem:[#allocation19 + $0x158] sm:$0xff]  ;;  %v11691_v47 = vld [vmem:[#allocation19 + $0x140] sm:$0xff] }
0x1666   :  { %5457 = vmatprep.subr.mxu0 %v5340_v49  ;;  %5570 = vmatprep.subr.mxu1 %v5342_v52  ;;  %v11694_v49 = vld [vmem:[#allocation19 + $0x150] sm:$0xff]  ;;  %v11697_v52 = vld [vmem:[#allocation19 + $0x128] sm:$0xff] }
0x1667   :  { %5458 = vmatpush2.msra.mxu0 %v5339_v53  ;;  %5571 = vmatpush2.msra.mxu1 %v5341_v21  ;;  %v11700_v53 = vld [vmem:[#allocation19 + $0x138] sm:$0xff]  ;;  %v11703_v21 = vld [vmem:[#allocation19 + $0x120] sm:$0xff] }
0x1668   :  { %5459 = vmatprep.subr.mxu0 %v5336_v25  ;;  %5572 = vmatprep.subr.mxu1 %v5338_v0  ;;  %v11706_v25 = vld [vmem:[#allocation19 + $0x130] sm:$0xff]  ;;  %v11709_v0 = vld [vmem:[#allocation19 + $0x108] sm:$0xff] }
0x1669   :  { %5460 = vmatpush2.msra.mxu0 %v5335_v18  ;;  %5573 = vmatpush2.msra.mxu1 %v5337_v13  ;;  %v11712_v18 = vld [vmem:[#allocation19 + $0x118] sm:$0xff]  ;;  %v13541_v13 = vld [vmem:[#allocation39_spill] sm:$0xff] }
0x166a   :  { %5461 = vmatprep.subr.mxu0 %v5332_v42  ;;  %5574 = vmatprep.subr.mxu1 %v5334_v17  ;;  %v13542_v42 = vld [vmem:[#allocation104_spill] sm:$0xff] }
0x166b   :  { %5462 = vmatpush2.msra.mxu0 %v5331_v56  ;;  %5575 = vmatpush2.msra.mxu1 %v5333_v44  ;;  %v3792_v17 = vadd.f32 %v13542_v42, %v13541_v13  ;;  %v11762_v13 = vld [vmem:[#allocation19 + $0xb0] sm:$0xff]  ;;  %v11766_v42 = vld [vmem:[#allocation19 + $0x80] sm:$0xff] }
0x166c   :  { %5463 = vmatprep.subr.mxu0 %v5328_v9  ;;  %5576 = vmatprep.subr.mxu1 %v5330_v10  ;;  %v11717_v9 = vld [vmem:[#allocation19 + $0x100] sm:$0xff]  ;;  %v11720_v10 = vld [vmem:[#allocation19 + $0x110] sm:$0xff] }
0x166d   :  { %5464 = vmatpush2.msra.mxu0 %v5327_v16  ;;  %5577 = vmatpush2.msra.mxu1 %v5329_v6  ;;  %v13543_v16 = vld [vmem:[#allocation71_spill] sm:$0xff]  ;;  %v13544_v6 = vld [vmem:[#allocation72_spill] sm:$0xff] }
0x166e   :  { %5465 = vmatprep.subr.mxu0 %v5324_v14  ;;  %5578 = vmatprep.subr.mxu1 %v5326_v38  ;;  %v3905_v14 = vadd.f32 %v13544_v6, %v13543_v16  ;;  %v13545_v38 = vld [vmem:[#allocation102_spill] sm:$0xff]  ;;  %v11776_v16 = vld [vmem:[#allocation19 + $0x78] sm:$0xff]  ;;  %v11780_v6 = vld [vmem:[#allocation19 + $0x60] sm:$0xff] }
0x166f   :  { %5466 = vmatpush2.msra.mxu0 %v5323_v36  ;;  %5579 = vmatpush2.msra.mxu1 %v5325_v24  ;;  %v13546_v24 = vld [vmem:[#allocation103_spill] sm:$0xff]  ;;  %13549 = vst [vmem:[#allocation52_spill] sm:$0xff] %v11776_v16  ;;  %13550 = vst [vmem:[#allocation46_spill] sm:$0xff] %v11780_v6 }
0x1670   :  { %5467 = vmatprep.subr.mxu0 %v5320_v29  ;;  %5580 = vmatprep.subr.mxu1 %v5322_v58  ;;  %v11729_v58 = vld [vmem:[#allocation19 + $0xe8] sm:$0xff] }
0x1671   :  { %5468 = vmatpush2.msra.mxu0 %v5319_v59  ;;  %5581 = vmatpush2.msra.mxu1 %v5321_v26  ;;  %v11732_v59 = vld [vmem:[#allocation19 + $0xf8] sm:$0xff] }
0x1672   :  { %5470 = vmatmul.mubr.f32.vlgmr.msra.gmra.mxu0 %v13524_v31  ;;  %5583 = vmatmul.mubr.f32.vlgmr.msra.gmra.mxu1 %v13524_v31 }
0x1673   :  { %5475 = vmatprep.mubr.f32.mxu0 %v13525_v27  ;;  %5588 = vmatprep.mubr.f32.mxu1 %v13525_v27  ;;  %v11735_v27 = vld [vmem:[#allocation19 + $0xe0] sm:$0xff] }
0x1674   :  { %5751 = vmatprep.subr.mxu0 %v11626_v30  ;;  %5822 = vmatprep.subr.mxu1 %v11628_v32 }
0x1675   :  { %5752 = vmatpush1.msra.mxu0 %v11631_v23  ;;  %5823 = vmatpush1.msra.mxu1 %v11634_v34 }
0x1676   :  { %5476 = vmatmul.mubr.f32.gmra.mxu0 %v13526_v63  ;;  %5589 = vmatmul.mubr.f32.gmra.mxu1 %v13526_v63  ;;  %v11738_v63 = vld [vmem:[#allocation19 + $0xc8] sm:$0xff] }
0x1677   :  { %5481 = vmatprep.mubr.f32.mxu0 %v13527_v7  ;;  %5594 = vmatprep.mubr.f32.mxu1 %v13527_v7  ;;  %v11740_v7 = vld [vmem:[#allocation19 + $0xf0] sm:$0xff] }
0x1678   :  { %5753 = vmatprep.subr.mxu0 %v11637_v55  ;;  %5824 = vmatprep.subr.mxu1 %v11640_v15 }
0x1679   :  { %5754 = vmatpush1.msra.mxu0 %v11643_v28  ;;  %5825 = vmatpush1.msra.mxu1 %v11646_v8 }
0x167a   :  { %5482 = vmatmul.mubr.f32.gmra.mxu0 %v13528_v4  ;;  %5595 = vmatmul.mubr.f32.gmra.mxu1 %v13528_v4 }
0x167b   :  { %5487 = vmatprep.mubr.f32.mxu0 %v13529_v2  ;;  %5600 = vmatprep.mubr.f32.mxu1 %v13529_v2 }
0x167c   :  { %5755 = vmatprep.subr.mxu0 %v11649_v39  ;;  %5826 = vmatprep.subr.mxu1 %v11652_v45 }
0x167d   :  { %5756 = vmatpush1.msra.mxu0 %v11655_v20  ;;  %5827 = vmatpush1.msra.mxu1 %v11658_v46 }
0x167e   :  { %5488 = vmatmul.mubr.f32.gmra.mxu0 %v13530_v11  ;;  %5601 = vmatmul.mubr.f32.gmra.mxu1 %v13530_v11 }
0x167f   :  { %5493 = vmatprep.mubr.f32.mxu0 %v13531_v41  ;;  %5606 = vmatprep.mubr.f32.mxu1 %v13531_v41  ;;  %v11744_v41 = vld [vmem:[#allocation19 + $0xc0] sm:$0xff] }
0x1680   :  { %5757 = vmatprep.subr.mxu0 %v11661_v61  ;;  %5828 = vmatprep.subr.mxu1 %v11664_v1 }
0x1681   :  { %5758 = vmatpush1.msra.mxu0 %v11667_v62  ;;  %5829 = vmatpush1.msra.mxu1 %v11670_v12 }
0x1682   :  { %5494 = vmatmul.mubr.f32.gmra.mxu0 %v13532_v40  ;;  %5607 = vmatmul.mubr.f32.gmra.mxu1 %v13532_v40  ;;  %v11746_v40 = vld [vmem:[#allocation19 + $0xd8] sm:$0xff] }
0x1683   :  { %5499 = vmatprep.mubr.f32.mxu0 %v13533_v51  ;;  %5612 = vmatprep.mubr.f32.mxu1 %v13533_v51  ;;  %v11748_v51 = vld [vmem:[#allocation19 + $0xa8] sm:$0xff] }
0x1684   :  { %5759 = vmatprep.subr.mxu0 %v11673_v48  ;;  %5830 = vmatprep.subr.mxu1 %v11676_v54 }
0x1685   :  { %5760 = vmatpush1.msra.mxu0 %v11679_v35  ;;  %5831 = vmatpush1.msra.mxu1 %v11682_v33 }
0x1686   :  { %5500 = vmatmul.mubr.f32.gmra.mxu0 %v13534_v43  ;;  %5613 = vmatmul.mubr.f32.gmra.mxu1 %v13534_v43  ;;  %v11752_v43 = vld [vmem:[#allocation19 + $0xd0] sm:$0xff] }
0x1687   :  { %5505 = vmatprep.mubr.f32.mxu0 %v13535_v3  ;;  %5618 = vmatprep.mubr.f32.mxu1 %v13535_v3  ;;  %v11754_v3 = vld [vmem:[#allocation19 + $0xa0] sm:$0xff] }
0x1688   :  { %5761 = vmatprep.subr.mxu0 %v11685_v50  ;;  %5832 = vmatprep.subr.mxu1 %v11688_v60 }
0x1689   :  { %5762 = vmatpush1.msra.mxu0 %v11691_v47  ;;  %5833 = vmatpush1.msra.mxu1 %v11694_v49 }
0x168a   :  { %5506 = vmatmul.mubr.f32.gmra.mxu0 %v13536_v37  ;;  %5619 = vmatmul.mubr.f32.gmra.mxu1 %v13536_v37  ;;  %v11756_v37 = vld [vmem:[#allocation19 + $0xb8] sm:$0xff] }
0x168b   :  { %5511 = vmatprep.mubr.f32.mxu0 %v13537_v57  ;;  %5624 = vmatprep.mubr.f32.mxu1 %v13537_v57 }
0x168c   :  { %5763 = vmatprep.subr.mxu0 %v11697_v52  ;;  %5834 = vmatprep.subr.mxu1 %v11700_v53 }
0x168d   :  { %5764 = vmatpush1.msra.mxu0 %v11703_v21  ;;  %5835 = vmatpush1.msra.mxu1 %v11706_v25 }
0x168e   :  { %5512 = vmatmul.mubr.f32.gmra.mxu0 %v13538_v22  ;;  %5625 = vmatmul.mubr.f32.gmra.mxu1 %v13538_v22  ;;  %v11760_v22 = vld [vmem:[#allocation19 + $0x88] sm:$0xff] }
0x168f   :  { %5815 = vmatprep.mubr.f32.mxu0 %v13518_v5  ;;  %5886 = vmatprep.mubr.f32.mxu1 %v13518_v5  ;;  %v11810_v5 = vld [vmem:[#allocation19 + $0x8] sm:$0xff] }
0x1690   :  { %5765 = vmatprep.subr.mxu0 %v11709_v0  ;;  %5836 = vmatprep.subr.mxu1 %v11712_v18  ;;  %13560 = vst [vmem:[#allocation76_spill] sm:$0xff] %v11810_v5 }
0x1691   :  { %5766 = vmatpush1.msra.mxu0 %v11717_v9  ;;  %5837 = vmatpush1.msra.mxu1 %v11720_v10 }
0x1692   :  { %5767 = vmatprep.subr.mxu0 %v11729_v58  ;;  %5838 = vmatprep.subr.mxu1 %v11732_v59 }
0x1693   :  { %5768 = vmatpush1.msra.mxu0 %v11735_v27  ;;  %5839 = vmatpush1.msra.mxu1 %v11740_v7 }
0x1694   :  { %5769 = vmatprep.subr.mxu0 %v11738_v63  ;;  %5840 = vmatprep.subr.mxu1 %v11746_v40 }
0x1695   :  { %5770 = vmatpush1.msra.mxu0 %v11744_v41  ;;  %5841 = vmatpush1.msra.mxu1 %v11752_v43 }
0x1696   :  { %5771 = vmatprep.subr.mxu0 %v11748_v51  ;;  %5842 = vmatprep.subr.mxu1 %v11756_v37 }
0x1697   :  { %5772 = vmatpush1.msra.mxu0 %v11754_v3  ;;  %5843 = vmatpush1.msra.mxu1 %v11762_v13 }
0x1698   :  { %5773 = vmatprep.subr.mxu0 %v11760_v22 }
0x1699   :  { %5774 = vmatpush1.msra.mxu0 %v11766_v42 }
0x16f1   :  { %v5149_v56 = vpop.f32.mrf.mxu0  ;;  %v5220_v44 = vpop.f32.mrf.mxu1 }
0x16f2   :  { %v5225_v36 = vadd.f32 %v5149_v56, %v13545_v38  ;;  %v11726_v29 = vadd.f32 %v5220_v44, %v13546_v24  ;;  %v11772_v56 = vld [vmem:[#allocation19 + $0x68] sm:$0xff]  ;;  %v11774_v44 = vld [vmem:[#allocation19 + $0x90] sm:$0xff]  ;;  %v11792_v24 = vld [vmem:[#allocation19 + $0x40] sm:$0xff] }
0x16f3   :  { %v5151_v26 = vpop.f32.mrf.mxu0  ;;  %v5222_v31 = vpop.f32.mrf.mxu1  ;;  %13547 = vst [vmem:[#allocation87_spill] sm:$0xff] %v11772_v56  ;;  %13548 = vst [vmem:[#allocation49_spill] sm:$0xff] %v11774_v44  ;;  %v11786_v38 = vld [vmem:[#allocation19 + $0x48] sm:$0xff]  ;;  %5775 = vmatprep.subr.mxu0 %v11772_v56 }
0x16f4   :  { %v7393_v4 = vmul.f32 -1.442695, %v5225_v36  ;;  %v5226_v2 = vadd.f32 %v5151_v26, %v3792_v17  ;;  %v5228_v11 = vadd.f32 %v5222_v31, %v3905_v14  ;;  %v11768_v17 = vld [vmem:[#allocation19 + $0x98] sm:$0xff]  ;;  %v11782_v14 = vld [vmem:[#allocation19 + $0x70] sm:$0xff]  ;;  %13552 = vst [vmem:[#allocation56_spill] sm:$0xff] %v11786_v38  ;;  %13554 = vst [vmem:[#allocation90_spill] sm:$0xff] %v11792_v24  ;;  %5776 = vmatpush1.msra.mxu0 %v11780_v6 }
0x16f5   :  { %5844 = vmatprep.subr.mxu1 %v11768_v17  ;;  %13551 = vst [vmem:[#allocation54_spill] sm:$0xff] %v11782_v14  ;;  %v11788_v36 = vld [vmem:[#allocation19 + $0x58] sm:$0xff]  ;;  %v11794_v26 = vld [vmem:[#allocation19 + $0x50] sm:$0xff]  ;;  %v11798_v31 = vld [vmem:[#allocation19 + $0x28] sm:$0xff]  ;;  %5777 = vmatprep.subr.mxu0 %v11786_v38 }
0x16f6   :  { %7936 = vpow2.f32 %v7393_v4  ;;  %v7394_v57 = vmul.f32 -1.442695, %v5226_v2  ;;  %5845 = vmatpush1.msra.mxu1 %v11774_v44  ;;  %13553 = vst [vmem:[#allocation88_spill] sm:$0xff] %v11788_v36  ;;  %13555 = vst [vmem:[#allocation89_spill] sm:$0xff] %v11794_v26  ;;  %v11800_v4 = vld [vmem:[#allocation19 + $0x38] sm:$0xff]  ;;  %v11804_v2 = vld [vmem:[#allocation19 + $0x20] sm:$0xff]  ;;  %5778 = vmatpush1.msra.mxu0 %v11792_v24 }
0x16f7   :  { %5846 = vmatprep.subr.mxu1 %v11776_v16  ;;  %13556 = vst [vmem:[#allocation81_spill] sm:$0xff] %v11798_v31  ;;  %13557 = vst [vmem:[#allocation80_spill] sm:$0xff] %v11800_v4  ;;  %v11812_v6 = vld [vmem:[#allocation19 + $0x18] sm:$0xff]  ;;  %5779 = vmatprep.subr.mxu0 %v11798_v31  ;;  %v11818_v38 = vld [vmem:[#allocation19 + $0x10] sm:$0xff] }
0x16f8   :  { %7938 = vpow2.f32 %v7394_v57  ;;  %5847 = vmatpush1.msra.mxu1 %v11782_v14  ;;  %13558 = vst [vmem:[#allocation74_spill] sm:$0xff] %v11804_v2  ;;  %v11806_v57 = vld [vmem:[#allocation19 + $0x30] sm:$0xff]  ;;  %13561 = vst [vmem:[#allocation45_spill] sm:$0xff] %v11812_v6  ;;  %v11816_v14 = vld [vmem:[#allocation19] sm:$0xff]  ;;  %5780 = vmatpush1.msra.mxu0 %v11804_v2 }
0x16f9   :  { %5848 = vmatprep.subr.mxu1 %v11788_v36  ;;  %13559 = vst [vmem:[#allocation66_spill] sm:$0xff] %v11806_v57  ;;  %13562 = vst [vmem:[#allocation47_spill] sm:$0xff] %v11816_v14  ;;  %v7395_v36 = vmul.f32 -1.442695, %v5228_v11  ;;  %5781 = vmatprep.subr.mxu0 %v11810_v5  ;;  %7940 = vtanh.f32 %v11726_v29  ;;  %v5383_v29 = vld [vmem:[%s12552_s12] sm:$0xf] }
0x16fa   :  { %5849 = vmatpush1.msra.mxu1 %v11794_v26  ;;  %13563 = vst [vmem:[#allocation93_spill] sm:$0xff] %v11818_v38  ;;  %5782 = vmatpush1.msra.mxu0 %v11816_v14 }
0x16fb   :  { %5850 = vmatprep.subr.mxu1 %v11800_v4  ;;  %5926 = vmatprep.subr.mxu0 %v11626_v30  ;;  %7942 = vpow2.f32 %v7395_v36  ;;  %v13565_v36 = vld [vmem:[#allocation59_spill] sm:$0xff] }
0x16fc   :  { %5851 = vmatpush1.msra.mxu1 %v11806_v57 }
0x16fd   :  { %5852 = vmatprep.subr.mxu1 %v11812_v6 }
0x16fe   :  { %5853 = vmatpush1.msra.mxu1 %v11818_v38 }
0x16ff   :  { %5997 = vmatprep.subr.mxu1 %v11628_v32 }
0x1703   :  { %v7937_v31 = vpop.eup %7936 }
0x1704   :  { %v5232_v4 = vadd.f32 1.0, %v7937_v31 }
0x1705   :  { %v7939_v2 = vpop.eup %7938 }
0x1706   :  { %7944 = vrcp.f32 %v5232_v4  ;;  %v5238_v11 = vadd.f32 1.0, %v7939_v2  ;;  %v7941_v5 = vpop.eup %7940  ;;  %v5388_v4 = vrot.slane %v5383_v29, %v13565_v36  ;;  %v13566_v2 = vld [vmem:[#allocation63_spill] sm:$0xff] }
0x1708   :  { %7946 = vrcp.f32 %v5238_v11  ;;  %v7943_v57 = vpop.eup %7942  ;;  %v11837_v11 = vrot.slane %v5383_v29, %v13566_v2 }
0x1709   :  { %v5245_v24 = vadd.f32 1.0, %v7943_v57  ;;  %v13568_v57 = vld [vmem:[#allocation61_spill] sm:$0xff] }
0x170b   :  { %7948 = vrcp.f32 %v5245_v24 }
0x1713   :  { %v7945_v6 = vpop.eup %7944 }
0x1714   :  { %v5249_v26 = vmul.f32 %v7945_v6, %v7941_v5  ;;  %v13567_v5 = vld [vmem:[#allocation58_spill] sm:$0xff] }
0x1715   :  { %v7947_v14 = vpop.eup %7946  ;;  %v5392_v6 = vrot.slane %v5383_v29, %v13567_v5 }
0x1716   :  { %v5248_v38 = vmul.f32 %v7947_v14, %v11589_v19  ;;  %v11841_v19 = vrot.slane %v5383_v29, %v13568_v57 }
0x1718   :  { %v5250_v16 = vadd.f32 %v5249_v26, %v5248_v38  ;;  %v7949_v32 = vpop.eup %7948 }
0x171a   :  { %7950 = vtanh.f32 %v5250_v16 }
0x1727   :  { %v7951_v31 = vpop.eup %7950 }
0x1728   :  { %v11830_v30 = vmul.f32 %v7951_v31, %v7949_v32 }
0x172a   :  { %13564 = vst [vmem:[#allocation50_spill] sm:$0xff] %v11830_v30 }
0x1732   :  { %v5471_v14 = vpop.f32.mrf.mxu0  ;;  %v5584_v16 = vpop.f32.mrf.mxu1 }
0x1733   :  { %v11843_v38 = vadd.f32 %v5471_v14, %v5388_v4  ;;  %v11846_v32 = vadd.f32 %v5584_v16, %v11837_v11 }
0x1734   :  { %v5473_v24 = vpop.f32.mrf.mxu0  ;;  %v5586_v26 = vpop.f32.mrf.mxu1 }
0x1735   :  { %13569 = vst [vmem:[#allocation94_spill] sm:$0xff] %v11843_v38  ;;  %13570 = vst [vmem:[#allocation96_spill] sm:$0xff] %v11846_v32  ;;  %v11848_v31 = vadd.f32 %v5473_v24, %v5392_v6  ;;  %v11851_v36 = vadd.f32 %v5586_v26, %v11841_v19 }
0x1736   :  { %v5477_v2 = vpop.f32.mrf.mxu0  ;;  %v5590_v30 = vpop.f32.mrf.mxu1 }
0x1737   :  { %13571 = vst [vmem:[#allocation97_spill] sm:$0xff] %v11848_v31  ;;  %13572 = vst [vmem:[#allocation95_spill] sm:$0xff] %v11851_v36  ;;  %v11853_v5 = vadd.f32 %v5477_v2, %v5388_v4  ;;  %v11856_v29 = vadd.f32 %v5590_v30, %v11837_v11 }
0x1738   :  { %v5479_v57 = vpop.f32.mrf.mxu0  ;;  %v5592_v14 = vpop.f32.mrf.mxu1 }
0x1739   :  { %13573 = vst [vmem:[#allocation82_spill] sm:$0xff] %v11853_v5  ;;  %13574 = vst [vmem:[#allocation37_spill] sm:$0xff] %v11856_v29  ;;  %v11858_v38 = vadd.f32 %v5479_v57, %v5392_v6  ;;  %v11861_v16 = vadd.f32 %v5592_v14, %v11841_v19 }
0x173a   :  { %v5483_v32 = vpop.f32.mrf.mxu0  ;;  %v5596_v24 = vpop.f32.mrf.mxu1 }
0x173b   :  { %13575 = vst [vmem:[#allocation83_spill] sm:$0xff] %v11858_v38  ;;  %13576 = vst [vmem:[#allocation84_spill] sm:$0xff] %v11861_v16  ;;  %v11863_v31 = vadd.f32 %v5483_v32, %v5388_v4  ;;  %v11866_v26 = vadd.f32 %v5596_v24, %v11837_v11 }
0x173c   :  { %v5485_v36 = vpop.f32.mrf.mxu0  ;;  %v5598_v2 = vpop.f32.mrf.mxu1 }
0x173d   :  { %13577 = vst [vmem:[#allocation55_spill] sm:$0xff] %v11863_v31  ;;  %13578 = vst [vmem:[#allocation34_spill] sm:$0xff] %v11866_v26  ;;  %v11868_v5 = vadd.f32 %v5485_v36, %v5392_v6  ;;  %v11871_v30 = vadd.f32 %v5598_v2, %v11841_v19 }
0x173e   :  { %v5489_v29 = vpop.f32.mrf.mxu0  ;;  %v5602_v57 = vpop.f32.mrf.mxu1 }
0x173f   :  { %13579 = vst [vmem:[#allocation40_spill] sm:$0xff] %v11868_v5  ;;  %13580 = vst [vmem:[#allocation41_spill] sm:$0xff] %v11871_v30  ;;  %v11873_v38 = vadd.f32 %v5489_v29, %v5388_v4  ;;  %v11876_v14 = vadd.f32 %v5602_v57, %v11837_v11 }
0x1740   :  { %v5491_v16 = vpop.f32.mrf.mxu0  ;;  %v5604_v32 = vpop.f32.mrf.mxu1 }
0x1741   :  { %13581 = vst [vmem:[#allocation48_spill] sm:$0xff] %v11873_v38  ;;  %13582 = vst [vmem:[#allocation42_spill] sm:$0xff] %v11876_v14  ;;  %v11878_v31 = vadd.f32 %v5491_v16, %v5392_v6  ;;  %v11881_v24 = vadd.f32 %v5604_v32, %v11841_v19 }
0x1742   :  { %v5495_v26 = vpop.f32.mrf.mxu0  ;;  %v5608_v36 = vpop.f32.mrf.mxu1 }
0x1743   :  { %13583 = vst [vmem:[#allocation75_spill] sm:$0xff] %v11878_v31  ;;  %13584 = vst [vmem:[#allocation60_spill] sm:$0xff] %v11881_v24  ;;  %v11883_v5 = vadd.f32 %v5495_v26, %v5388_v4  ;;  %v11886_v2 = vadd.f32 %v5608_v36, %v11837_v11 }
0x1744   :  { %v5497_v30 = vpop.f32.mrf.mxu0  ;;  %v5610_v29 = vpop.f32.mrf.mxu1 }
0x1745   :  { %13585 = vst [vmem:[#allocation86_spill] sm:$0xff] %v11883_v5  ;;  %13586 = vst [vmem:[#allocation69_spill] sm:$0xff] %v11886_v2  ;;  %v11888_v38 = vadd.f32 %v5497_v30, %v5392_v6  ;;  %v11891_v57 = vadd.f32 %v5610_v29, %v11841_v19 }
0x1746   :  { %v5501_v14 = vpop.f32.mrf.mxu0  ;;  %v5614_v16 = vpop.f32.mrf.mxu1 }
0x1747   :  { %13587 = vst [vmem:[#allocation68_spill] sm:$0xff] %v11888_v38  ;;  %13588 = vst [vmem:[#allocation51_spill] sm:$0xff] %v11891_v57  ;;  %v11893_v31 = vadd.f32 %v5501_v14, %v5388_v4  ;;  %v11896_v32 = vadd.f32 %v5614_v16, %v11837_v11 }
0x1748   :  { %v5503_v24 = vpop.f32.mrf.mxu0  ;;  %v5616_v26 = vpop.f32.mrf.mxu1 }
0x1749   :  { %13589 = vst [vmem:[#allocation53_spill] sm:$0xff] %v11893_v31  ;;  %13590 = vst [vmem:[#allocation98_spill] sm:$0xff] %v11896_v32  ;;  %v11898_v5 = vadd.f32 %v5503_v24, %v5392_v6  ;;  %v11901_v36 = vadd.f32 %v5616_v26, %v11841_v19 }
0x174a   :  { %v5507_v2 = vpop.f32.mrf.mxu0  ;;  %v5620_v30 = vpop.f32.mrf.mxu1 }
0x174b   :  { %13591 = vst [vmem:[#allocation100_spill] sm:$0xff] %v11898_v5  ;;  %13592 = vst [vmem:[#allocation101_spill] sm:$0xff] %v11901_v36  ;;  %v11903_v38 = vadd.f32 %v5507_v2, %v5388_v4  ;;  %v11906_v29 = vadd.f32 %v5620_v30, %v11837_v11 }
0x174c   :  { %v5509_v57 = vpop.f32.mrf.mxu0  ;;  %v5622_v14 = vpop.f32.mrf.mxu1 }
0x174d   :  { %13593 = vst [vmem:[#allocation99_spill] sm:$0xff] %v11903_v38  ;;  %13594 = vst [vmem:[#allocation73_spill] sm:$0xff] %v11906_v29  ;;  %v11908_v31 = vadd.f32 %v5509_v57, %v5392_v6  ;;  %v11911_v16 = vadd.f32 %v5622_v14, %v11841_v19 }
0x174e   :  { %v5513_v32 = vpop.f32.mrf.mxu0  ;;  %v5626_v5 = vpop.f32.mrf.mxu1 }
0x174f   :  { %13595 = vst [vmem:[#allocation64_spill] sm:$0xff] %v11911_v16  ;;  %v5514_v24 = vadd.f32 %v5513_v32, %v5388_v4  ;;  %v5627_v30 = vadd.f32 %v5626_v5, %v11837_v11  ;;  %v13597_v11 = vld [vmem:[#allocation87_spill] sm:$0xff]  ;;  %v13599_v5 = vld [vmem:[#allocation46_spill] sm:$0xff] }
0x1750   :  { %v5515_v56 = vpop.f32.mrf.mxu0  ;;  %v5628_v36 = vpop.f32.mrf.mxu1 }
0x1751   :  { %v7396_v26 = vmul.f32 -1.442695, %v5514_v24  ;;  %v5629_v2 = vadd.f32 %v5628_v36, %v11841_v19  ;;  %v13600_v36 = vld [vmem:[#allocation54_spill] sm:$0xff] }
0x1752   :  { %v13603_v24 = vld [vmem:[#allocation90_spill] sm:$0xff] }
0x1753   :  { %7952 = vpow2.f32 %v7396_v26  ;;  %v7397_v38 = vmul.f32 -1.442695, %v5629_v2  ;;  %v13604_v26 = vld [vmem:[#allocation89_spill] sm:$0xff] }
0x1754   :  { %v13605_v2 = vld [vmem:[#allocation81_spill] sm:$0xff] }
0x1755   :  { %7954 = vpow2.f32 %v7397_v38  ;;  %v13598_v38 = vld [vmem:[#allocation52_spill] sm:$0xff] }
0x1756   :  { %7956 = vtanh.f32 %v5627_v30  ;;  %v13606_v30 = vld [vmem:[#allocation80_spill] sm:$0xff] }
0x1760   :  { %v7953_v29 = vpop.eup %7952 }
0x1761   :  { %v5733_v44 = vadd.f32 1.0, %v7953_v29  ;;  %v13601_v29 = vld [vmem:[#allocation56_spill] sm:$0xff] }
0x1762   :  { %v7955_v6 = vpop.eup %7954 }
0x1763   :  { %7958 = vrcp.f32 %v5733_v44  ;;  %v5740_v57 = vadd.f32 1.0, %v7955_v6  ;;  %v7957_v14 = vpop.eup %7956  ;;  %v13596_v44 = vld [vmem:[#allocation49_spill] sm:$0xff]  ;;  %v13607_v6 = vld [vmem:[#allocation74_spill] sm:$0xff] }
0x1765   :  { %7960 = vrcp.f32 %v5740_v57  ;;  %v13608_v57 = vld [vmem:[#allocation66_spill] sm:$0xff] }
0x1770   :  { %v7959_v16 = vpop.eup %7958 }
0x1771   :  { %v11915_v4 = vmul.f32 %v7959_v16, %v7957_v14  ;;  %v13602_v16 = vld [vmem:[#allocation88_spill] sm:$0xff] }
0x1772   :  { %v7961_v56 = vpop.eup %7960  ;;  %v13609_v14 = vld [vmem:[#allocation76_spill] sm:$0xff] }
0x1773   :  { %7962 = vtanh.f32 %v11915_v4 }
0x1780   :  { %v7963_v32 = vpop.eup %7962 }
0x1781   :  { %v5745_v19 = vmul.f32 %v7963_v32, %v7961_v56  ;;  %v13610_v56 = vld [vmem:[#allocation45_spill] sm:$0xff]  ;;  %v13611_v32 = vld [vmem:[#allocation47_spill] sm:$0xff] }
0x1783   :  { %5816 = vmatmul.mubr.f32.vlgmr.msra.gmra.mxu0 %v5745_v19  ;;  %5887 = vmatmul.mubr.f32.vlgmr.msra.gmra.mxu1 %v5745_v19  ;;  %v13612_v19 = vmov 0.0  }
0x1784   :  { %5927 = vmatpush1.msra.mxu0 %v11631_v23  ;;  %5998 = vmatpush1.msra.mxu1 %v11634_v34 }
0x1785   :  { %5928 = vmatprep.subr.mxu0 %v11637_v55  ;;  %5999 = vmatprep.subr.mxu1 %v11640_v15 }
0x1786   :  { %5929 = vmatpush1.msra.mxu0 %v11643_v28  ;;  %6000 = vmatpush1.msra.mxu1 %v11646_v8 }
0x1787   :  { %5930 = vmatprep.subr.mxu0 %v11649_v39  ;;  %6001 = vmatprep.subr.mxu1 %v11652_v45 }
0x1788   :  { %5931 = vmatpush1.msra.mxu0 %v11655_v20  ;;  %6002 = vmatpush1.msra.mxu1 %v11658_v46 }
0x1789   :  { %5932 = vmatprep.subr.mxu0 %v11661_v61  ;;  %6003 = vmatprep.subr.mxu1 %v11664_v1 }
0x178a   :  { %5933 = vmatpush1.msra.mxu0 %v11667_v62  ;;  %6004 = vmatpush1.msra.mxu1 %v11670_v12 }
0x178b   :  { %5934 = vmatprep.subr.mxu0 %v11673_v48  ;;  %6005 = vmatprep.subr.mxu1 %v11676_v54 }
0x178c   :  { %5935 = vmatpush1.msra.mxu0 %v11679_v35  ;;  %6006 = vmatpush1.msra.mxu1 %v11682_v33 }
0x178d   :  { %5936 = vmatprep.subr.mxu0 %v11685_v50  ;;  %6007 = vmatprep.subr.mxu1 %v11688_v60 }
0x178e   :  { %5937 = vmatpush1.msra.mxu0 %v11691_v47  ;;  %6008 = vmatpush1.msra.mxu1 %v11694_v49 }
0x178f   :  { %5938 = vmatprep.subr.mxu0 %v11697_v52  ;;  %6009 = vmatprep.subr.mxu1 %v11700_v53 }
0x1790   :  { %5939 = vmatpush1.msra.mxu0 %v11703_v21  ;;  %6010 = vmatpush1.msra.mxu1 %v11706_v25 }
0x1791   :  { %5940 = vmatprep.subr.mxu0 %v11709_v0  ;;  %6011 = vmatprep.subr.mxu1 %v11712_v18 }
0x1792   :  { %5941 = vmatpush1.msra.mxu0 %v11717_v9  ;;  %6012 = vmatpush1.msra.mxu1 %v11720_v10 }
0x1793   :  { %5942 = vmatprep.subr.mxu0 %v11729_v58  ;;  %6013 = vmatprep.subr.mxu1 %v11732_v59 }
0x1794   :  { %5943 = vmatpush1.msra.mxu0 %v11735_v27  ;;  %6014 = vmatpush1.msra.mxu1 %v11740_v7 }
0x1795   :  { %5944 = vmatprep.subr.mxu0 %v11738_v63  ;;  %6015 = vmatprep.subr.mxu1 %v11746_v40 }
0x1796   :  { %5945 = vmatpush1.msra.mxu0 %v11744_v41  ;;  %6016 = vmatpush1.msra.mxu1 %v11752_v43 }
0x1797   :  { %5946 = vmatprep.subr.mxu0 %v11748_v51  ;;  %6017 = vmatprep.subr.mxu1 %v11756_v37 }
0x1798   :  { %5947 = vmatpush1.msra.mxu0 %v11754_v3  ;;  %6018 = vmatpush1.msra.mxu1 %v11762_v13 }
0x1799   :  { %5948 = vmatprep.subr.mxu0 %v11760_v22  ;;  %6019 = vmatprep.subr.mxu1 %v11768_v17 }
0x179a   :  { %5949 = vmatpush1.msra.mxu0 %v11766_v42  ;;  %6020 = vmatpush1.msra.mxu1 %v13596_v44 }
0x179b   :  { %5950 = vmatprep.subr.mxu0 %v13597_v11  ;;  %6021 = vmatprep.subr.mxu1 %v13598_v38  ;;  %v13618_v38 = vld [vmem:[#allocation73_spill] sm:$0xff] }
0x179c   :  { %5951 = vmatpush1.msra.mxu0 %v13599_v5  ;;  %6022 = vmatpush1.msra.mxu1 %v13600_v36  ;;  %v13617_v5 = vld [vmem:[#allocation64_spill] sm:$0xff] }
0x179d   :  { %5952 = vmatprep.subr.mxu0 %v13601_v29  ;;  %6023 = vmatprep.subr.mxu1 %v13602_v16  ;;  %v13613_v16 = vld [vmem:[#allocation93_spill] sm:$0xff] }
0x179e   :  { %5953 = vmatpush1.msra.mxu0 %v13603_v24  ;;  %6024 = vmatpush1.msra.mxu1 %v13604_v26  ;;  %v13614_v26 = vld [vmem:[#allocation57_spill] sm:$0xff] }
0x179f   :  { %5954 = vmatprep.subr.mxu0 %v13605_v2  ;;  %6025 = vmatprep.subr.mxu1 %v13606_v30  ;;  %v13615_v2 = vld [vmem:[#allocation85_spill] sm:$0xff] }
0x17a0   :  { %5955 = vmatpush1.msra.mxu0 %v13607_v6  ;;  %6026 = vmatpush1.msra.mxu1 %v13608_v57  ;;  %v13616_v6 = vld [vmem:[#allocation99_spill] sm:$0xff] }
0x17a1   :  { %5956 = vmatprep.subr.mxu0 %v13609_v14  ;;  %6027 = vmatprep.subr.mxu1 %v13610_v56 }
0x17a2   :  { %5957 = vmatpush1.msra.mxu0 %v13611_v32  ;;  %5990 = vmatprep.mubr.f32.mxu0 %v13612_v19 }
0x17a3   :  { %6028 = vmatpush1.msra.mxu1 %v13613_v16  ;;  %6061 = vmatprep.mubr.f32.mxu1 %v13612_v19 }
0x17a4   :  { %6101 = vmatprep.subr.mxu0 %v13614_v26  ;;  %6172 = vmatprep.subr.mxu1 %v13615_v2 }
0x1843   :  { %v5817_v30 = vpop.f32.mrf.mxu0  ;;  %v5888_v56 = vpop.f32.mrf.mxu1 }
0x1844   :  { %v5893_v24 = vadd.f32 %v5817_v30, %v13616_v6  ;;  %v5895_v19 = vadd.f32 %v5888_v56, %v13618_v38  ;;  %v13624_v56 = vld [vmem:[#allocation56_spill] sm:$0xff] }
0x1845   :  { %v5819_v57 = vpop.f32.mrf.mxu0  ;;  %v5890_v36 = vpop.f32.mrf.mxu1 }
0x1846   :  { %v7398_v29 = vmul.f32 -1.442695, %v5893_v24  ;;  %v5894_v14 = vadd.f32 %v5819_v57, %v11908_v31  ;;  %v5896_v16 = vadd.f32 %v5890_v36, %v13617_v5 }
0x1848   :  { %7964 = vpow2.f32 %v7398_v29  ;;  %v7399_v32 = vmul.f32 -1.442695, %v5894_v14  ;;  %v7400_v11 = vmul.f32 -1.442695, %v5896_v16 }
0x184a   :  { %7966 = vpow2.f32 %v7399_v32 }
0x184b   :  { %7968 = vtanh.f32 %v5895_v19  ;;  %v13625_v19 = vld [vmem:[#allocation88_spill] sm:$0xff] }
0x184c   :  { %7970 = vpow2.f32 %v7400_v11  ;;  %v13621_v11 = vld [vmem:[#allocation52_spill] sm:$0xff] }
0x1855   :  { %v7965_v26 = vpop.eup %7964 }
0x1856   :  { %v5900_v44 = vadd.f32 1.0, %v7965_v26  ;;  %v13622_v26 = vld [vmem:[#allocation46_spill] sm:$0xff] }
0x1857   :  { %v7967_v2 = vpop.eup %7966 }
0x1858   :  { %7972 = vrcp.f32 %v5900_v44  ;;  %v5906_v30 = vadd.f32 1.0, %v7967_v2  ;;  %v7969_v24 = vpop.eup %7968  ;;  %v13620_v44 = vld [vmem:[#allocation87_spill] sm:$0xff]  ;;  %v13623_v2 = vld [vmem:[#allocation54_spill] sm:$0xff] }
0x1859   :  { %v7971_v31 = vpop.eup %7970 }
0x185a   :  { %7974 = vrcp.f32 %v5906_v30  ;;  %v5913_v14 = vadd.f32 1.0, %v7971_v31  ;;  %v13626_v30 = vld [vmem:[#allocation90_spill] sm:$0xff]  ;;  %v13628_v31 = vld [vmem:[#allocation81_spill] sm:$0xff] }
0x185c   :  { %7976 = vrcp.f32 %v5913_v14  ;;  %v13632_v14 = vld [vmem:[#allocation76_spill] sm:$0xff] }
0x1865   :  { %v7973_v29 = vpop.eup %7972 }
0x1866   :  { %v5917_v6 = vmul.f32 %v7973_v29, %v7969_v24  ;;  %v13627_v24 = vld [vmem:[#allocation89_spill] sm:$0xff]  ;;  %v13629_v29 = vld [vmem:[#allocation80_spill] sm:$0xff] }
0x1867   :  { %v7975_v57 = vpop.eup %7974 }
0x1868   :  { %v5916_v32 = vmul.f32 %v7975_v57, %v11915_v4  ;;  %v13619_v4 = vld [vmem:[#allocation49_spill] sm:$0xff]  ;;  %v13631_v57 = vld [vmem:[#allocation66_spill] sm:$0xff] }
0x1869   :  { %v7977_v38 = vpop.eup %7976 }
0x186a   :  { %v11989_v5 = vadd.f32 %v5917_v6, %v5916_v32  ;;  %v13630_v6 = vld [vmem:[#allocation74_spill] sm:$0xff]  ;;  %v13633_v32 = vld [vmem:[#allocation45_spill] sm:$0xff] }
0x186c   :  { %7978 = vtanh.f32 %v11989_v5 }
0x1879   :  { %v7979_v36 = vpop.eup %7978 }
0x187a   :  { %v5920_v16 = vmul.f32 %v7979_v36, %v7977_v38  ;;  %v13634_v38 = vld [vmem:[#allocation47_spill] sm:$0xff]  ;;  %v13635_v36 = vmov 0.0  }
0x187c   :  { %5991 = vmatmul.mubr.f32.vlgmr.msra.gmra.mxu0 %v5920_v16  ;;  %6062 = vmatmul.mubr.f32.vlgmr.msra.gmra.mxu1 %v5920_v16  ;;  %v13636_v16 = vld [vmem:[#allocation93_spill] sm:$0xff] }
0x187d   :  { %6102 = vmatpush1.msra.mxu0 %v11631_v23  ;;  %6173 = vmatpush1.msra.mxu1 %v11634_v34 }
0x187e   :  { %6103 = vmatprep.subr.mxu0 %v11637_v55  ;;  %6174 = vmatprep.subr.mxu1 %v11640_v15 }
0x187f   :  { %6104 = vmatpush1.msra.mxu0 %v11643_v28  ;;  %6175 = vmatpush1.msra.mxu1 %v11646_v8 }
0x1880   :  { %6105 = vmatprep.subr.mxu0 %v11649_v39  ;;  %6176 = vmatprep.subr.mxu1 %v11652_v45 }
0x1881   :  { %6106 = vmatpush1.msra.mxu0 %v11655_v20  ;;  %6177 = vmatpush1.msra.mxu1 %v11658_v46 }
0x1882   :  { %6107 = vmatprep.subr.mxu0 %v11661_v61  ;;  %6178 = vmatprep.subr.mxu1 %v11664_v1 }
0x1883   :  { %6108 = vmatpush1.msra.mxu0 %v11667_v62  ;;  %6179 = vmatpush1.msra.mxu1 %v11670_v12 }
0x1884   :  { %6109 = vmatprep.subr.mxu0 %v11673_v48  ;;  %6180 = vmatprep.subr.mxu1 %v11676_v54 }
0x1885   :  { %6110 = vmatpush1.msra.mxu0 %v11679_v35  ;;  %6181 = vmatpush1.msra.mxu1 %v11682_v33 }
0x1886   :  { %6111 = vmatprep.subr.mxu0 %v11685_v50  ;;  %6182 = vmatprep.subr.mxu1 %v11688_v60 }
0x1887   :  { %6112 = vmatpush1.msra.mxu0 %v11691_v47  ;;  %6183 = vmatpush1.msra.mxu1 %v11694_v49 }
0x1888   :  { %6113 = vmatprep.subr.mxu0 %v11697_v52  ;;  %6184 = vmatprep.subr.mxu1 %v11700_v53 }
0x1889   :  { %6114 = vmatpush1.msra.mxu0 %v11703_v21  ;;  %6185 = vmatpush1.msra.mxu1 %v11706_v25 }
0x188a   :  { %6115 = vmatprep.subr.mxu0 %v11709_v0  ;;  %6186 = vmatprep.subr.mxu1 %v11712_v18 }
0x188b   :  { %6116 = vmatpush1.msra.mxu0 %v11717_v9  ;;  %6187 = vmatpush1.msra.mxu1 %v11720_v10 }
0x188c   :  { %6117 = vmatprep.subr.mxu0 %v11729_v58  ;;  %6188 = vmatprep.subr.mxu1 %v11732_v59 }
0x188d   :  { %6118 = vmatpush1.msra.mxu0 %v11735_v27  ;;  %6189 = vmatpush1.msra.mxu1 %v11740_v7 }
0x188e   :  { %6119 = vmatprep.subr.mxu0 %v11738_v63  ;;  %6190 = vmatprep.subr.mxu1 %v11746_v40 }
0x188f   :  { %6120 = vmatpush1.msra.mxu0 %v11744_v41  ;;  %6191 = vmatpush1.msra.mxu1 %v11752_v43 }
0x1890   :  { %6121 = vmatprep.subr.mxu0 %v11748_v51  ;;  %6192 = vmatprep.subr.mxu1 %v11756_v37 }
0x1891   :  { %6122 = vmatpush1.msra.mxu0 %v11754_v3  ;;  %6193 = vmatpush1.msra.mxu1 %v11762_v13 }
0x1892   :  { %6123 = vmatprep.subr.mxu0 %v11760_v22  ;;  %6194 = vmatprep.subr.mxu1 %v11768_v17 }
0x1893   :  { %6124 = vmatpush1.msra.mxu0 %v11766_v42  ;;  %6195 = vmatpush1.msra.mxu1 %v13619_v4 }
0x1894   :  { %6125 = vmatprep.subr.mxu0 %v13620_v44  ;;  %6196 = vmatprep.subr.mxu1 %v13621_v11  ;;  %v13642_v11 = vld [vmem:[#allocation98_spill] sm:$0xff] }
0x1895   :  { %6126 = vmatpush1.msra.mxu0 %v13622_v26  ;;  %6197 = vmatpush1.msra.mxu1 %v13623_v2  ;;  %v13641_v26 = vld [vmem:[#allocation101_spill] sm:$0xff] }
0x1896   :  { %6127 = vmatprep.subr.mxu0 %v13624_v56  ;;  %6198 = vmatprep.subr.mxu1 %v13625_v19 }
0x1897   :  { %6128 = vmatpush1.msra.mxu0 %v13626_v30  ;;  %6199 = vmatpush1.msra.mxu1 %v13627_v24  ;;  %v13637_v24 = vld [vmem:[#allocation57_spill] sm:$0xff] }
0x1898   :  { %6129 = vmatprep.subr.mxu0 %v13628_v31  ;;  %6200 = vmatprep.subr.mxu1 %v13629_v29  ;;  %v13638_v31 = vld [vmem:[#allocation85_spill] sm:$0xff] }
0x1899   :  { %6130 = vmatpush1.msra.mxu0 %v13630_v6  ;;  %6201 = vmatpush1.msra.mxu1 %v13631_v57  ;;  %v13639_v6 = vld [vmem:[#allocation53_spill] sm:$0xff] }
0x189a   :  { %6131 = vmatprep.subr.mxu0 %v13632_v14  ;;  %6202 = vmatprep.subr.mxu1 %v13633_v32  ;;  %v13640_v14 = vld [vmem:[#allocation100_spill] sm:$0xff] }
0x189b   :  { %6132 = vmatpush1.msra.mxu0 %v13634_v38  ;;  %6165 = vmatprep.mubr.f32.mxu0 %v13635_v36 }
0x189c   :  { %6203 = vmatpush1.msra.mxu1 %v13636_v16  ;;  %6236 = vmatprep.mubr.f32.mxu1 %v13635_v36 }
0x189d   :  { %6276 = vmatprep.subr.mxu0 %v13637_v24  ;;  %6347 = vmatprep.subr.mxu1 %v13638_v31 }
0x193c   :  { %v5992_v29 = vpop.f32.mrf.mxu0  ;;  %v6063_v32 = vpop.f32.mrf.mxu1 }
0x193d   :  { %v6068_v30 = vadd.f32 %v5992_v29, %v13639_v6  ;;  %v6070_v36 = vadd.f32 %v6063_v32, %v13642_v11 }
0x193e   :  { %v5994_v57 = vpop.f32.mrf.mxu0  ;;  %v6065_v2 = vpop.f32.mrf.mxu1 }
0x193f   :  { %v7401_v19 = vmul.f32 -1.442695, %v6068_v30  ;;  %v6069_v56 = vadd.f32 %v5994_v57, %v13640_v14  ;;  %v6071_v16 = vadd.f32 %v6065_v2, %v13641_v26 }
0x1941   :  { %7980 = vpow2.f32 %v7401_v19  ;;  %v7402_v38 = vmul.f32 -1.442695, %v6069_v56  ;;  %v7403_v44 = vmul.f32 -1.442695, %v6071_v16 }
0x1943   :  { %7982 = vpow2.f32 %v7402_v38 }
0x1944   :  { %7984 = vtanh.f32 %v6070_v36 }
0x1945   :  { %7986 = vpow2.f32 %v7403_v44 }
0x194e   :  { %v7981_v24 = vpop.eup %7980 }
0x194f   :  { %v6075_v4 = vadd.f32 1.0, %v7981_v24 }
0x1950   :  { %v7983_v31 = vpop.eup %7982 }
0x1951   :  { %7988 = vrcp.f32 %v6075_v4  ;;  %v6081_v29 = vadd.f32 1.0, %v7983_v31  ;;  %v7985_v30 = vpop.eup %7984 }
0x1952   :  { %v7987_v6 = vpop.eup %7986 }
0x1953   :  { %7990 = vrcp.f32 %v6081_v29  ;;  %v6088_v14 = vadd.f32 1.0, %v7987_v6 }
0x1955   :  { %7992 = vrcp.f32 %v6088_v14  ;;  %v12144_v14 = vld [vmem:[#allocation19 + $0x1e0] sm:$0xff] }
0x195e   :  { %v7989_v19 = vpop.eup %7988 }
0x195f   :  { %v6092_v57 = vmul.f32 %v7989_v19, %v7985_v30 }
0x1960   :  { %v7991_v56 = vpop.eup %7990 }
0x1961   :  { %v6091_v38 = vmul.f32 %v7991_v56, %v11989_v5 }
0x1962   :  { %v7993_v11 = vpop.eup %7992 }
0x1963   :  { %v12063_v26 = vadd.f32 %v6092_v57, %v6091_v38  ;;  %v12147_v38 = vld [vmem:[#allocation19 + $0x1f0] sm:$0xff] }
0x1965   :  { %7994 = vtanh.f32 %v12063_v26 }
0x1972   :  { %v7995_v2 = vpop.eup %7994 }
0x1973   :  { %v6095_v32 = vmul.f32 %v7995_v2, %v7993_v11  ;;  %v12150_v11 = vld [vmem:[#allocation19 + $0x1c8] sm:$0xff]  ;;  %v12156_v2 = vld [vmem:[#allocation19 + $0x1c0] sm:$0xff] }
0x1975   :  { %6166 = vmatmul.mubr.f32.vlgmr.msra.gmra.mxu0 %v6095_v32  ;;  %6237 = vmatmul.mubr.f32.vlgmr.msra.gmra.mxu1 %v6095_v32  ;;  %v12159_v32 = vld [vmem:[#allocation19 + $0x1d0] sm:$0xff] }
0x1976   :  { %6277 = vmatpush1.msra.mxu0 %v11631_v23  ;;  %6348 = vmatpush1.msra.mxu1 %v11634_v34  ;;  %v13643_v23 = vld [vmem:[#allocation49_spill] sm:$0xff]  ;;  %v13644_v34 = vld [vmem:[#allocation87_spill] sm:$0xff] }
0x1977   :  { %6278 = vmatprep.subr.mxu0 %v11637_v55  ;;  %6349 = vmatprep.subr.mxu1 %v11640_v15  ;;  %v13645_v55 = vld [vmem:[#allocation52_spill] sm:$0xff]  ;;  %v13646_v15 = vld [vmem:[#allocation46_spill] sm:$0xff] }
0x1978   :  { %6279 = vmatpush1.msra.mxu0 %v11643_v28  ;;  %6350 = vmatpush1.msra.mxu1 %v11646_v8  ;;  %v13647_v28 = vld [vmem:[#allocation54_spill] sm:$0xff]  ;;  %v13648_v8 = vld [vmem:[#allocation56_spill] sm:$0xff] }
0x1979   :  { %6280 = vmatprep.subr.mxu0 %v11649_v39  ;;  %6351 = vmatprep.subr.mxu1 %v11652_v45  ;;  %v13649_v39 = vld [vmem:[#allocation88_spill] sm:$0xff]  ;;  %v13650_v45 = vld [vmem:[#allocation90_spill] sm:$0xff] }
0x197a   :  { %6281 = vmatpush1.msra.mxu0 %v11655_v20  ;;  %6352 = vmatpush1.msra.mxu1 %v11658_v46  ;;  %v13651_v20 = vld [vmem:[#allocation89_spill] sm:$0xff] }
0x197b   :  { %6282 = vmatprep.subr.mxu0 %v11661_v61  ;;  %6353 = vmatprep.subr.mxu1 %v11664_v1  ;;  %v13652_v46 = vld [vmem:[#allocation81_spill] sm:$0xff]  ;;  %v13653_v61 = vld [vmem:[#allocation80_spill] sm:$0xff]  ;;  %v13654_v1 = vld [vmem:[#allocation74_spill] sm:$0xff] }
0x197c   :  { %6283 = vmatpush1.msra.mxu0 %v11667_v62  ;;  %6354 = vmatpush1.msra.mxu1 %v11670_v12  ;;  %v13655_v62 = vld [vmem:[#allocation66_spill] sm:$0xff]  ;;  %v13656_v12 = vld [vmem:[#allocation76_spill] sm:$0xff] }
0x197d   :  { %6284 = vmatprep.subr.mxu0 %v11673_v48  ;;  %6355 = vmatprep.subr.mxu1 %v11676_v54  ;;  %v13657_v48 = vld [vmem:[#allocation45_spill] sm:$0xff]  ;;  %v13658_v54 = vld [vmem:[#allocation47_spill] sm:$0xff] }
0x197e   :  { %6285 = vmatpush1.msra.mxu0 %v11679_v35  ;;  %6356 = vmatpush1.msra.mxu1 %v11682_v33  ;;  %v13659_v35 = vmov 0.0   ;;  %v13660_v33 = vld [vmem:[#allocation93_spill] sm:$0xff] }
0x197f   :  { %6286 = vmatprep.subr.mxu0 %v11685_v50  ;;  %6357 = vmatprep.subr.mxu1 %v11688_v60  ;;  %v12130_v50 = vld [vmem:[#allocation19 + $0x1e8] sm:$0xff]  ;;  %v12133_v60 = vld [vmem:[#allocation19 + $0x1f8] sm:$0xff] }
0x1980   :  { %6287 = vmatpush1.msra.mxu0 %v11691_v47  ;;  %6358 = vmatpush1.msra.mxu1 %v11694_v49  ;;  %v13661_v49 = vld [vmem:[#allocation86_spill] sm:$0xff] }
0x1981   :  { %6288 = vmatprep.subr.mxu0 %v11697_v52  ;;  %6359 = vmatprep.subr.mxu1 %v11700_v53 }
0x1982   :  { %6289 = vmatpush1.msra.mxu0 %v11703_v21  ;;  %6360 = vmatpush1.msra.mxu1 %v11706_v25  ;;  %v13662_v25 = vld [vmem:[#allocation68_spill] sm:$0xff] }
0x1983   :  { %6290 = vmatprep.subr.mxu0 %v11709_v0  ;;  %6361 = vmatprep.subr.mxu1 %v11712_v18 }
0x1984   :  { %6291 = vmatpush1.msra.mxu0 %v11717_v9  ;;  %6362 = vmatpush1.msra.mxu1 %v11720_v10 }
0x1985   :  { %6292 = vmatprep.subr.mxu0 %v11729_v58  ;;  %6363 = vmatprep.subr.mxu1 %v11732_v59  ;;  %v13663_v58 = vld [vmem:[#allocation51_spill] sm:$0xff] }
0x1986   :  { %6293 = vmatpush1.msra.mxu0 %v11735_v27  ;;  %6364 = vmatpush1.msra.mxu1 %v11740_v7  ;;  %v13664_v27 = vld [vmem:[#allocation69_spill] sm:$0xff] }
0x1987   :  { %6294 = vmatprep.subr.mxu0 %v11738_v63  ;;  %6365 = vmatprep.subr.mxu1 %v11746_v40 }
0x1988   :  { %6295 = vmatpush1.msra.mxu0 %v11744_v41  ;;  %6366 = vmatpush1.msra.mxu1 %v11752_v43 }
0x1989   :  { %6296 = vmatprep.subr.mxu0 %v11748_v51  ;;  %6367 = vmatprep.subr.mxu1 %v11756_v37 }
0x198a   :  { %6297 = vmatpush1.msra.mxu0 %v11754_v3  ;;  %6368 = vmatpush1.msra.mxu1 %v11762_v13 }
0x198b   :  { %6298 = vmatprep.subr.mxu0 %v11760_v22  ;;  %6369 = vmatprep.subr.mxu1 %v11768_v17 }
0x198c   :  { %6299 = vmatpush1.msra.mxu0 %v11766_v42  ;;  %6370 = vmatpush1.msra.mxu1 %v13643_v23 }
0x198d   :  { %6300 = vmatprep.subr.mxu0 %v13644_v34  ;;  %6371 = vmatprep.subr.mxu1 %v13645_v55 }
0x198e   :  { %6301 = vmatpush1.msra.mxu0 %v13646_v15  ;;  %6372 = vmatpush1.msra.mxu1 %v13647_v28 }
0x198f   :  { %6302 = vmatprep.subr.mxu0 %v13648_v8  ;;  %6373 = vmatprep.subr.mxu1 %v13649_v39 }
0x1990   :  { %6303 = vmatpush1.msra.mxu0 %v13650_v45  ;;  %6374 = vmatpush1.msra.mxu1 %v13651_v20 }
0x1991   :  { %6304 = vmatprep.subr.mxu0 %v13652_v46  ;;  %6375 = vmatprep.subr.mxu1 %v13653_v61 }
0x1992   :  { %6305 = vmatpush1.msra.mxu0 %v13654_v1  ;;  %6376 = vmatpush1.msra.mxu1 %v13655_v62 }
0x1993   :  { %6306 = vmatprep.subr.mxu0 %v13656_v12  ;;  %6377 = vmatprep.subr.mxu1 %v13657_v48 }
0x1994   :  { %6307 = vmatpush1.msra.mxu0 %v13658_v54  ;;  %6340 = vmatprep.mubr.f32.mxu0 %v13659_v35 }
0x1995   :  { %6378 = vmatpush1.msra.mxu1 %v13660_v33  ;;  %6411 = vmatprep.mubr.f32.mxu1 %v13659_v35 }
0x1996   :  { %6451 = vmatprep.subr.mxu0 %v12130_v50  ;;  %6522 = vmatprep.subr.mxu1 %v12133_v60 }
0x1a35   :  { %v6167_v47 = vpop.f32.mrf.mxu0  ;;  %v6238_v18 = vpop.f32.mrf.mxu1 }
0x1a36   :  { %v6243_v52 = vadd.f32 %v6167_v47, %v13661_v49  ;;  %v6245_v63 = vadd.f32 %v6238_v18, %v13664_v27  ;;  %v12162_v47 = vld [vmem:[#allocation19 + $0x1a8] sm:$0xff]  ;;  %v12165_v49 = vld [vmem:[#allocation19 + $0x1b8] sm:$0xff]  ;;  %v12183_v18 = vld [vmem:[#allocation19 + $0x190] sm:$0xff] }
0x1a37   :  { %v6169_v53 = vpop.f32.mrf.mxu0  ;;  %v6240_v10 = vpop.f32.mrf.mxu1  ;;  %v12198_v27 = vld [vmem:[#allocation19 + $0x148] sm:$0xff] }
0x1a38   :  { %v7404_v21 = vmul.f32 -1.442695, %v6243_v52  ;;  %v6244_v0 = vadd.f32 %v6169_v53, %v13662_v25  ;;  %v6246_v59 = vadd.f32 %v6240_v10, %v13663_v58  ;;  %v12168_v52 = vld [vmem:[#allocation19 + $0x1a0] sm:$0xff]  ;;  %v12171_v53 = vld [vmem:[#allocation19 + $0x1b0] sm:$0xff]  ;;  %v12177_v25 = vld [vmem:[#allocation19 + $0x198] sm:$0xff] }
0x1a39   :  { %v12189_v10 = vld [vmem:[#allocation19 + $0x178] sm:$0xff]  ;;  %v12192_v58 = vld [vmem:[#allocation19 + $0x160] sm:$0xff] }
0x1a3a   :  { %7996 = vpow2.f32 %v7404_v21  ;;  %v7405_v9 = vmul.f32 -1.442695, %v6244_v0  ;;  %v7406_v7 = vmul.f32 -1.442695, %v6246_v59  ;;  %v12174_v21 = vld [vmem:[#allocation19 + $0x188] sm:$0xff]  ;;  %v12180_v0 = vld [vmem:[#allocation19 + $0x180] sm:$0xff] }
0x1a3b   :  { %v12195_v59 = vld [vmem:[#allocation19 + $0x170] sm:$0xff] }
0x1a3c   :  { %7998 = vpow2.f32 %v7405_v9  ;;  %v12186_v9 = vld [vmem:[#allocation19 + $0x168] sm:$0xff] }
0x1a3d   :  { %8000 = vtanh.f32 %v6245_v63  ;;  %v12201_v63 = vld [vmem:[#allocation19 + $0x158] sm:$0xff] }
0x1a3e   :  { %8002 = vpow2.f32 %v7406_v7  ;;  %v12204_v7 = vld [vmem:[#allocation19 + $0x140] sm:$0xff] }
0x1a47   :  { %v7997_v41 = vpop.eup %7996 }
0x1a48   :  { %v6250_v51 = vadd.f32 1.0, %v7997_v41  ;;  %v12207_v41 = vld [vmem:[#allocation19 + $0x150] sm:$0xff] }
0x1a49   :  { %v7999_v5 = vpop.eup %7998 }
0x1a4a   :  { %8004 = vrcp.f32 %v6250_v51  ;;  %v6256_v4 = vadd.f32 1.0, %v7999_v5  ;;  %v8001_v44 = vpop.eup %8000  ;;  %v12210_v51 = vld [vmem:[#allocation19 + $0x128] sm:$0xff]  ;;  %v12213_v5 = vld [vmem:[#allocation19 + $0x138] sm:$0xff] }
0x1a4b   :  { %v8003_v36 = vpop.eup %8002 }
0x1a4c   :  { %8006 = vrcp.f32 %v6256_v4  ;;  %v6263_v29 = vadd.f32 1.0, %v8003_v36  ;;  %v12216_v4 = vld [vmem:[#allocation19 + $0x120] sm:$0xff]  ;;  %v12222_v36 = vld [vmem:[#allocation19 + $0x108] sm:$0xff] }
0x1a4e   :  { %8008 = vrcp.f32 %v6263_v29  ;;  %v12234_v29 = vld [vmem:[#allocation19 + $0xe8] sm:$0xff] }
0x1a57   :  { %v8005_v16 = vpop.eup %8004 }
0x1a58   :  { %v6267_v24 = vmul.f32 %v8005_v16, %v8001_v44  ;;  %v12219_v44 = vld [vmem:[#allocation19 + $0x130] sm:$0xff]  ;;  %v12225_v16 = vld [vmem:[#allocation19 + $0x118] sm:$0xff] }
0x1a59   :  { %v8007_v31 = vpop.eup %8006 }
0x1a5a   :  { %v6266_v30 = vmul.f32 %v8007_v31, %v12063_v26  ;;  %v12153_v26 = vld [vmem:[#allocation19 + $0x1d8] sm:$0xff]  ;;  %v12231_v31 = vld [vmem:[#allocation19 + $0x110] sm:$0xff] }
0x1a5b   :  { %v8009_v19 = vpop.eup %8008  ;;  %13665 = vst [vmem:[#allocation43_spill] sm:$0xff] %v12231_v31 }
0x1a5c   :  { %v12141_v6 = vadd.f32 %v6267_v24, %v6266_v30  ;;  %v12228_v24 = vld [vmem:[#allocation19 + $0x100] sm:$0xff]  ;;  %v12237_v30 = vld [vmem:[#allocation19 + $0xf8] sm:$0xff] }
0x1a5d   :  { %13666 = vst [vmem:[#allocation62_spill] sm:$0xff] %v12237_v30 }
0x1a5e   :  { %8010 = vtanh.f32 %v12141_v6 }
0x1a6b   :  { %v8011_v57 = vpop.eup %8010 }
0x1a6c   :  { %v6270_v56 = vmul.f32 %v8011_v57, %v8009_v19  ;;  %v12240_v19 = vld [vmem:[#allocation19 + $0xe0] sm:$0xff]  ;;  %v12243_v57 = vld [vmem:[#allocation19 + $0xf0] sm:$0xff] }
0x1a6e   :  { %6341 = vmatmul.mubr.f32.vlgmr.msra.gmra.mxu0 %v6270_v56  ;;  %6412 = vmatmul.mubr.f32.vlgmr.msra.gmra.mxu1 %v6270_v56  ;;  %v12246_v56 = vld [vmem:[#allocation19 + $0xc8] sm:$0xff] }
0x1a6f   :  { %6452 = vmatpush1.msra.mxu0 %v12144_v14  ;;  %6523 = vmatpush1.msra.mxu1 %v12147_v38 }
0x1a70   :  { %6453 = vmatprep.subr.mxu0 %v12150_v11  ;;  %6524 = vmatprep.subr.mxu1 %v12153_v26 }
0x1a71   :  { %6454 = vmatpush1.msra.mxu0 %v12156_v2  ;;  %6525 = vmatpush1.msra.mxu1 %v12159_v32 }
0x1a72   :  { %6455 = vmatprep.subr.mxu0 %v12162_v47  ;;  %6526 = vmatprep.subr.mxu1 %v12165_v49 }
0x1a73   :  { %6456 = vmatpush1.msra.mxu0 %v12168_v52  ;;  %6527 = vmatpush1.msra.mxu1 %v12171_v53 }
0x1a74   :  { %6457 = vmatprep.subr.mxu0 %v12174_v21  ;;  %6528 = vmatprep.subr.mxu1 %v12177_v25 }
0x1a75   :  { %6458 = vmatpush1.msra.mxu0 %v12180_v0  ;;  %6529 = vmatpush1.msra.mxu1 %v12183_v18 }
0x1a76   :  { %6459 = vmatprep.subr.mxu0 %v12186_v9  ;;  %6530 = vmatprep.subr.mxu1 %v12189_v10 }
0x1a77   :  { %6460 = vmatpush1.msra.mxu0 %v12192_v58  ;;  %6531 = vmatpush1.msra.mxu1 %v12195_v59 }
0x1a78   :  { %6461 = vmatprep.subr.mxu0 %v12198_v27  ;;  %6532 = vmatprep.subr.mxu1 %v12201_v63 }
0x1a79   :  { %6462 = vmatpush1.msra.mxu0 %v12204_v7  ;;  %6533 = vmatpush1.msra.mxu1 %v12207_v41 }
0x1a7a   :  { %6463 = vmatprep.subr.mxu0 %v12210_v51  ;;  %6534 = vmatprep.subr.mxu1 %v12213_v5 }
0x1a7b   :  { %6464 = vmatpush1.msra.mxu0 %v12216_v4  ;;  %6535 = vmatpush1.msra.mxu1 %v12219_v44 }
0x1a7c   :  { %6465 = vmatprep.subr.mxu0 %v12222_v36  ;;  %6536 = vmatprep.subr.mxu1 %v12225_v16 }
0x1a7d   :  { %6466 = vmatpush1.msra.mxu0 %v12228_v24  ;;  %6537 = vmatpush1.msra.mxu1 %v12231_v31  ;;  %v12250_v31 = vld [vmem:[#allocation19 + $0xc0] sm:$0xff] }
0x1a7e   :  { %6467 = vmatprep.subr.mxu0 %v12234_v29  ;;  %6538 = vmatprep.subr.mxu1 %v12237_v30  ;;  %v12254_v30 = vld [vmem:[#allocation19 + $0xa8] sm:$0xff] }
0x1a7f   :  { %6468 = vmatpush1.msra.mxu0 %v12240_v19  ;;  %6539 = vmatpush1.msra.mxu1 %v12243_v57 }
0x1a80   :  { %6469 = vmatprep.subr.mxu0 %v12246_v56  ;;  %6540 = vmatprep.subr.mxu1 %v11746_v40 }
0x1a81   :  { %6470 = vmatpush1.msra.mxu0 %v12250_v31  ;;  %6541 = vmatpush1.msra.mxu1 %v11752_v43  ;;  %v13667_v43 = vld [vmem:[#allocation48_spill] sm:$0xff] }
0x1a82   :  { %6471 = vmatprep.subr.mxu0 %v12254_v30  ;;  %6542 = vmatprep.subr.mxu1 %v11756_v37 }
0x1a83   :  { %6472 = vmatpush1.msra.mxu0 %v11754_v3  ;;  %6543 = vmatpush1.msra.mxu1 %v11762_v13  ;;  %v13668_v13 = vld [vmem:[#allocation75_spill] sm:$0xff] }
0x1a84   :  { %6473 = vmatprep.subr.mxu0 %v11760_v22  ;;  %6544 = vmatprep.subr.mxu1 %v11768_v17 }
0x1a85   :  { %6474 = vmatpush1.msra.mxu0 %v11766_v42  ;;  %6545 = vmatpush1.msra.mxu1 %v13643_v23 }
0x1a86   :  { %6475 = vmatprep.subr.mxu0 %v13644_v34  ;;  %6546 = vmatprep.subr.mxu1 %v13645_v55  ;;  %v13669_v55 = vld [vmem:[#allocation60_spill] sm:$0xff] }
0x1a87   :  { %6476 = vmatpush1.msra.mxu0 %v13646_v15  ;;  %6547 = vmatpush1.msra.mxu1 %v13647_v28  ;;  %v13670_v28 = vld [vmem:[#allocation42_spill] sm:$0xff] }
0x1a88   :  { %6477 = vmatprep.subr.mxu0 %v13648_v8  ;;  %6548 = vmatprep.subr.mxu1 %v13649_v39 }
0x1a89   :  { %6478 = vmatpush1.msra.mxu0 %v13650_v45  ;;  %6549 = vmatpush1.msra.mxu1 %v13651_v20 }
0x1a8a   :  { %6479 = vmatprep.subr.mxu0 %v13652_v46  ;;  %6550 = vmatprep.subr.mxu1 %v13653_v61 }
0x1a8b   :  { %6480 = vmatpush1.msra.mxu0 %v13654_v1  ;;  %6551 = vmatpush1.msra.mxu1 %v13655_v62 }
0x1a8c   :  { %6481 = vmatprep.subr.mxu0 %v13656_v12  ;;  %6552 = vmatprep.subr.mxu1 %v13657_v48 }
0x1a8d   :  { %6482 = vmatpush1.msra.mxu0 %v13658_v54  ;;  %6515 = vmatprep.mubr.f32.mxu0 %v13659_v35 }
0x1a8e   :  { %6553 = vmatpush1.msra.mxu1 %v13660_v33  ;;  %6586 = vmatprep.mubr.f32.mxu1 %v13659_v35 }
0x1a8f   :  { %6626 = vmatprep.subr.mxu0 %v12130_v50  ;;  %6697 = vmatprep.subr.mxu1 %v12133_v60 }
0x1b2e   :  { %v6342_v40 = vpop.f32.mrf.mxu0  ;;  %v6413_v17 = vpop.f32.mrf.mxu1 }
0x1b2f   :  { %v6418_v3 = vadd.f32 %v6342_v40, %v13667_v43  ;;  %v6420_v8 = vadd.f32 %v6413_v17, %v13670_v28  ;;  %v12331_v17 = vld [vmem:[#allocation19 + $0xd0] sm:$0xff]  ;;  %v12347_v28 = vld [vmem:[#allocation19 + $0x98] sm:$0xff] }
0x1b30   :  { %v6344_v37 = vpop.f32.mrf.mxu0  ;;  %v6415_v34 = vpop.f32.mrf.mxu1 }
0x1b31   :  { %v7407_v22 = vmul.f32 -1.442695, %v6418_v3  ;;  %v6419_v42 = vadd.f32 %v6344_v37, %v13668_v13  ;;  %v6421_v15 = vadd.f32 %v6415_v34, %v13669_v55  ;;  %v13672_v13 = vld [vmem:[#allocation62_spill] sm:$0xff]  ;;  %v12338_v34 = vld [vmem:[#allocation19 + $0xa0] sm:$0xff]  ;;  %v12341_v55 = vld [vmem:[#allocation19 + $0xb0] sm:$0xff] }
0x1b33   :  { %8012 = vpow2.f32 %v7407_v22  ;;  %v7408_v23 = vmul.f32 -1.442695, %v6419_v42  ;;  %v7409_v39 = vmul.f32 -1.442695, %v6421_v15  ;;  %v12327_v42 = vld [vmem:[#allocation19 + $0xd8] sm:$0xff]  ;;  %v12344_v15 = vld [vmem:[#allocation19 + $0x88] sm:$0xff] }
0x1b35   :  { %8014 = vpow2.f32 %v7408_v23  ;;  %v12335_v23 = vld [vmem:[#allocation19 + $0xb8] sm:$0xff] }
0x1b36   :  { %8016 = vtanh.f32 %v6420_v8  ;;  %v12350_v8 = vld [vmem:[#allocation19 + $0x80] sm:$0xff] }
0x1b37   :  { %8018 = vpow2.f32 %v7409_v39  ;;  %v12353_v39 = vld [vmem:[#allocation19 + $0x90] sm:$0xff] }
0x1b38   :  { %13673 = vst [vmem:[#allocation44_spill] sm:$0xff] %v12353_v39 }
0x1b40   :  { %v8013_v45 = vpop.eup %8012 }
0x1b41   :  { %v6425_v20 = vadd.f32 1.0, %v8013_v45  ;;  %v12356_v45 = vld [vmem:[#allocation19 + $0x68] sm:$0xff] }
0x1b42   :  { %v8015_v46 = vpop.eup %8014  ;;  %13674 = vst [vmem:[#allocation36_spill] sm:$0xff] %v12356_v45 }
0x1b43   :  { %8020 = vrcp.f32 %v6425_v20  ;;  %v6431_v61 = vadd.f32 1.0, %v8015_v46  ;;  %v8017_v1 = vpop.eup %8016  ;;  %v12359_v20 = vld [vmem:[#allocation19 + $0x78] sm:$0xff]  ;;  %v12362_v46 = vld [vmem:[#allocation19 + $0x60] sm:$0xff] }
0x1b44   :  { %v8019_v62 = vpop.eup %8018  ;;  %13675 = vst [vmem:[#allocation77_spill] sm:$0xff] %v12359_v20  ;;  %13676 = vst [vmem:[#allocation65_spill] sm:$0xff] %v12362_v46 }
0x1b45   :  { %8022 = vrcp.f32 %v6431_v61  ;;  %v6438_v33 = vadd.f32 1.0, %v8019_v62  ;;  %v12365_v61 = vld [vmem:[#allocation19 + $0x70] sm:$0xff]  ;;  %v12371_v62 = vld [vmem:[#allocation19 + $0x58] sm:$0xff] }
0x1b46   :  { %13677 = vst [vmem:[#allocation79_spill] sm:$0xff] %v12365_v61  ;;  %13679 = vst [vmem:[#allocation70_spill] sm:$0xff] %v12371_v62 }
0x1b47   :  { %8024 = vrcp.f32 %v6438_v33  ;;  %v12383_v33 = vld [vmem:[#allocation19 + $0x38] sm:$0xff] }
0x1b48   :  { %13683 = vst [vmem:[#allocation92_spill] sm:$0xff] %v12383_v33 }
0x1b50   :  { %v8021_v12 = vpop.eup %8020 }
0x1b51   :  { %v6442_v48 = vmul.f32 %v8021_v12, %v8017_v1  ;;  %v12368_v1 = vld [vmem:[#allocation19 + $0x48] sm:$0xff]  ;;  %v12374_v12 = vld [vmem:[#allocation19 + $0x40] sm:$0xff] }
0x1b52   :  { %v8023_v54 = vpop.eup %8022  ;;  %13678 = vst [vmem:[#allocation38_spill] sm:$0xff] %v12368_v1  ;;  %13680 = vst [vmem:[#allocation35_spill] sm:$0xff] %v12374_v12 }
0x1b53   :  { %v6441_v40 = vmul.f32 %v8023_v54, %v12141_v6  ;;  %v13671_v6 = vld [vmem:[#allocation43_spill] sm:$0xff]  ;;  %v12380_v54 = vld [vmem:[#allocation19 + $0x28] sm:$0xff] }
0x1b54   :  { %v8025_v3 = vpop.eup %8024  ;;  %13682 = vst [vmem:[#allocation67_spill] sm:$0xff] %v12380_v54 }
0x1b55   :  { %v12289_v43 = vadd.f32 %v6442_v48, %v6441_v40  ;;  %v12377_v48 = vld [vmem:[#allocation19 + $0x50] sm:$0xff]  ;;  %v12386_v40 = vld [vmem:[#allocation19 + $0x20] sm:$0xff] }
0x1b56   :  { %13681 = vst [vmem:[#allocation78_spill] sm:$0xff] %v12377_v48  ;;  %13684 = vst [vmem:[#allocation91_spill] sm:$0xff] %v12386_v40 }
0x1b57   :  { %8026 = vtanh.f32 %v12289_v43 }
0x1b64   :  { %v8027_v37 = vpop.eup %8026 }
0x1b65   :  { %v6445_v22 = vmul.f32 %v8027_v37, %v8025_v3  ;;  %v12389_v3 = vld [vmem:[#allocation19 + $0x30] sm:$0xff]  ;;  %v12392_v37 = vld [vmem:[#allocation19 + $0x8] sm:$0xff] }
0x1b66   :  { %13685 = vst [vmem:[#allocation39_spill] sm:$0xff] %v12389_v3  ;;  %13686 = vst [vmem:[#allocation104_spill] sm:$0xff] %v12392_v37 }
0x1b67   :  { %6516 = vmatmul.mubr.f32.vlgmr.msra.gmra.mxu0 %v6445_v22  ;;  %6587 = vmatmul.mubr.f32.vlgmr.msra.gmra.mxu1 %v6445_v22  ;;  %v12395_v22 = vld [vmem:[#allocation19 + $0x18] sm:$0xff] }
0x1b68   :  { %6627 = vmatpush1.msra.mxu0 %v12144_v14  ;;  %6698 = vmatpush1.msra.mxu1 %v12147_v38  ;;  %13687 = vst [vmem:[#allocation71_spill] sm:$0xff] %v12395_v22 }
0x1b69   :  { %6628 = vmatprep.subr.mxu0 %v12150_v11  ;;  %6699 = vmatprep.subr.mxu1 %v12153_v26 }
0x1b6a   :  { %6629 = vmatpush1.msra.mxu0 %v12156_v2  ;;  %6700 = vmatpush1.msra.mxu1 %v12159_v32 }
0x1b6b   :  { %6630 = vmatprep.subr.mxu0 %v12162_v47  ;;  %6701 = vmatprep.subr.mxu1 %v12165_v49 }
0x1b6c   :  { %6631 = vmatpush1.msra.mxu0 %v12168_v52  ;;  %6702 = vmatpush1.msra.mxu1 %v12171_v53 }
0x1b6d   :  { %6632 = vmatprep.subr.mxu0 %v12174_v21  ;;  %6703 = vmatprep.subr.mxu1 %v12177_v25 }
0x1b6e   :  { %6633 = vmatpush1.msra.mxu0 %v12180_v0  ;;  %6704 = vmatpush1.msra.mxu1 %v12183_v18 }
0x1b6f   :  { %6634 = vmatprep.subr.mxu0 %v12186_v9  ;;  %6705 = vmatprep.subr.mxu1 %v12189_v10 }
0x1b70   :  { %6635 = vmatpush1.msra.mxu0 %v12192_v58  ;;  %6706 = vmatpush1.msra.mxu1 %v12195_v59 }
0x1b71   :  { %6636 = vmatprep.subr.mxu0 %v12198_v27  ;;  %6707 = vmatprep.subr.mxu1 %v12201_v63 }
0x1b72   :  { %6637 = vmatpush1.msra.mxu0 %v12204_v7  ;;  %6708 = vmatpush1.msra.mxu1 %v12207_v41 }
0x1b73   :  { %6638 = vmatprep.subr.mxu0 %v12210_v51  ;;  %6709 = vmatprep.subr.mxu1 %v12213_v5 }
0x1b74   :  { %6639 = vmatpush1.msra.mxu0 %v12216_v4  ;;  %6710 = vmatpush1.msra.mxu1 %v12219_v44 }
0x1b75   :  { %6640 = vmatprep.subr.mxu0 %v12222_v36  ;;  %6711 = vmatprep.subr.mxu1 %v12225_v16 }
0x1b76   :  { %6641 = vmatpush1.msra.mxu0 %v12228_v24  ;;  %6712 = vmatpush1.msra.mxu1 %v13671_v6 }
0x1b77   :  { %6642 = vmatprep.subr.mxu0 %v12234_v29  ;;  %6713 = vmatprep.subr.mxu1 %v13672_v13 }
0x1b78   :  { %6643 = vmatpush1.msra.mxu0 %v12240_v19  ;;  %6714 = vmatpush1.msra.mxu1 %v12243_v57 }
0x1b79   :  { %6644 = vmatprep.subr.mxu0 %v12246_v56  ;;  %6715 = vmatprep.subr.mxu1 %v12327_v42 }
0x1b7a   :  { %6645 = vmatpush1.msra.mxu0 %v12250_v31  ;;  %6716 = vmatpush1.msra.mxu1 %v12331_v17 }
0x1b7b   :  { %6646 = vmatprep.subr.mxu0 %v12254_v30  ;;  %6717 = vmatprep.subr.mxu1 %v12335_v23 }
0x1b7c   :  { %6647 = vmatpush1.msra.mxu0 %v12338_v34  ;;  %6718 = vmatpush1.msra.mxu1 %v12341_v55 }
0x1b7d   :  { %6648 = vmatprep.subr.mxu0 %v12344_v15  ;;  %6719 = vmatprep.subr.mxu1 %v12347_v28 }
0x1b7e   :  { %6649 = vmatpush1.msra.mxu0 %v12350_v8  ;;  %6720 = vmatpush1.msra.mxu1 %v12353_v39 }
0x1b7f   :  { %6650 = vmatprep.subr.mxu0 %v12356_v45  ;;  %6721 = vmatprep.subr.mxu1 %v12359_v20  ;;  %v13693_v20 = vld [vmem:[#allocation34_spill] sm:$0xff] }
0x1b80   :  { %6651 = vmatpush1.msra.mxu0 %v12362_v46  ;;  %6722 = vmatpush1.msra.mxu1 %v12365_v61  ;;  %v13692_v46 = vld [vmem:[#allocation41_spill] sm:$0xff] }
0x1b81   :  { %6652 = vmatprep.subr.mxu0 %v12368_v1  ;;  %6723 = vmatprep.subr.mxu1 %v12371_v62 }
0x1b82   :  { %6653 = vmatpush1.msra.mxu0 %v12374_v12  ;;  %6724 = vmatpush1.msra.mxu1 %v12377_v48  ;;  %v13691_v12 = vld [vmem:[#allocation40_spill] sm:$0xff] }
0x1b83   :  { %6654 = vmatprep.subr.mxu0 %v12380_v54  ;;  %6725 = vmatprep.subr.mxu1 %v12383_v33  ;;  %v12398_v54 = vld [vmem:[#allocation19] sm:$0xff]  ;;  %v12402_v33 = vld [vmem:[#allocation19 + $0x10] sm:$0xff] }
0x1b84   :  { %6655 = vmatpush1.msra.mxu0 %v12386_v40  ;;  %6726 = vmatpush1.msra.mxu1 %v12389_v3  ;;  %13688 = vst [vmem:[#allocation72_spill] sm:$0xff] %v12398_v54  ;;  %13689 = vst [vmem:[#allocation102_spill] sm:$0xff] %v12402_v33  ;;  %v13690_v3 = vld [vmem:[#allocation55_spill] sm:$0xff] }
0x1b85   :  { %6656 = vmatprep.subr.mxu0 %v12392_v37  ;;  %6727 = vmatprep.subr.mxu1 %v12395_v22 }
0x1b86   :  { %6657 = vmatpush1.msra.mxu0 %v12398_v54  ;;  %6690 = vmatprep.mubr.f32.mxu0 %v13659_v35 }
0x1b87   :  { %6728 = vmatpush1.msra.mxu1 %v12402_v33  ;;  %6761 = vmatprep.mubr.f32.mxu1 %v13659_v35 }
0x1b88   :  { %6801 = vmatprep.subr.mxu0 %v12130_v50  ;;  %6872 = vmatprep.subr.mxu1 %v12133_v60 }
0x1c27   :  { %v6517_v37 = vpop.f32.mrf.mxu0  ;;  %v6588_v54 = vpop.f32.mrf.mxu1 }
0x1c28   :  { %v6593_v40 = vadd.f32 %v6517_v37, %v13690_v3  ;;  %v6595_v35 = vadd.f32 %v6588_v54, %v13693_v20  ;;  %v7007_v54 = vld [vmem:[#allocation20 + $0xf8] sm:$0xff] }
0x1c29   :  { %v6519_v22 = vpop.f32.mrf.mxu0  ;;  %v6590_v61 = vpop.f32.mrf.mxu1 }
0x1c2a   :  { %v7410_v48 = vmul.f32 -1.442695, %v6593_v40  ;;  %v6594_v62 = vadd.f32 %v6519_v22, %v13691_v12  ;;  %v6596_v33 = vadd.f32 %v6590_v61, %v13692_v46 }
0x1c2c   :  { %8028 = vpow2.f32 %v7410_v48  ;;  %v7411_v1 = vmul.f32 -1.442695, %v6594_v62  ;;  %v7412_v45 = vmul.f32 -1.442695, %v6596_v33  ;;  %v6991_v33 = vld [vmem:[#allocation20 + $0x78] sm:$0xff] }
0x1c2e   :  { %8030 = vpow2.f32 %v7411_v1 }
0x1c2f   :  { %8032 = vtanh.f32 %v6595_v35 }
0x1c30   :  { %8034 = vpow2.f32 %v7412_v45 }
0x1c39   :  { %v8029_v50 = vpop.eup %8028 }
0x1c3a   :  { %v6600_v39 = vadd.f32 1.0, %v8029_v50  ;;  %v7006_v50 = vld [vmem:[#allocation20 + $0xf0] sm:$0xff] }
0x1c3b   :  { %v8031_v60 = vpop.eup %8030 }
0x1c3c   :  { %8036 = vrcp.f32 %v6600_v39  ;;  %v6606_v3 = vadd.f32 1.0, %v8031_v60  ;;  %v8033_v40 = vpop.eup %8032  ;;  %v6990_v60 = vld [vmem:[#allocation20 + $0x70] sm:$0xff] }
0x1c3d   :  { %v8035_v12 = vpop.eup %8034 }
0x1c3e   :  { %8038 = vrcp.f32 %v6606_v3  ;;  %v6613_v1 = vadd.f32 1.0, %v8035_v12  ;;  %v7005_v3 = vld [vmem:[#allocation20 + $0xe8] sm:$0xff]  ;;  %v7004_v12 = vld [vmem:[#allocation20 + $0xe0] sm:$0xff] }
0x1c40   :  { %8040 = vrcp.f32 %v6613_v1  ;;  %v7002_v1 = vld [vmem:[#allocation20 + $0xd0] sm:$0xff] }
0x1c49   :  { %v8037_v48 = vpop.eup %8036 }
0x1c4a   :  { %v6617_v37 = vmul.f32 %v8037_v48, %v8033_v40  ;;  %v6989_v40 = vld [vmem:[#allocation20 + $0x68] sm:$0xff]  ;;  %v6988_v48 = vld [vmem:[#allocation20 + $0x60] sm:$0xff] }
0x1c4b   :  { %v8039_v62 = vpop.eup %8038 }
0x1c4c   :  { %v6616_v22 = vmul.f32 %v8039_v62, %v12289_v43  ;;  %v6987_v62 = vld [vmem:[#allocation20 + $0x58] sm:$0xff] }
0x1c4d   :  { %v8041_v20 = vpop.eup %8040 }
0x1c4e   :  { %v12413_v46 = vadd.f32 %v6617_v37, %v6616_v22  ;;  %v7003_v37 = vld [vmem:[#allocation20 + $0xd8] sm:$0xff]  ;;  %v6986_v22 = vld [vmem:[#allocation20 + $0x50] sm:$0xff] }
0x1c50   :  { %8042 = vtanh.f32 %v12413_v46 }
0x1c5d   :  { %v8043_v35 = vpop.eup %8042 }
0x1c5e   :  { %v6620_v61 = vmul.f32 %v8043_v35, %v8041_v20  ;;  %v6985_v20 = vld [vmem:[#allocation20 + $0x48] sm:$0xff]  ;;  %v7000_v35 = vld [vmem:[#allocation20 + $0xc0] sm:$0xff] }
0x1c60   :  { %6691 = vmatmul.mubr.f32.vlgmr.msra.gmra.mxu0 %v6620_v61  ;;  %6762 = vmatmul.mubr.f32.vlgmr.msra.gmra.mxu1 %v6620_v61  ;;  %v6984_v61 = vld [vmem:[#allocation20 + $0x40] sm:$0xff] }
0x1c61   :  { %6802 = vmatpush1.msra.mxu0 %v12144_v14  ;;  %6873 = vmatpush1.msra.mxu1 %v12147_v38  ;;  %v13694_v14 = vld [vmem:[#allocation44_spill] sm:$0xff] }
0x1c62   :  { %6803 = vmatprep.subr.mxu0 %v12150_v11  ;;  %6874 = vmatprep.subr.mxu1 %v12153_v26  ;;  %v13695_v38 = vld [vmem:[#allocation36_spill] sm:$0xff]  ;;  %v13696_v11 = vld [vmem:[#allocation77_spill] sm:$0xff] }
0x1c63   :  { %6804 = vmatpush1.msra.mxu0 %v12156_v2  ;;  %6875 = vmatpush1.msra.mxu1 %v12159_v32  ;;  %v13697_v26 = vld [vmem:[#allocation65_spill] sm:$0xff]  ;;  %v13698_v2 = vld [vmem:[#allocation79_spill] sm:$0xff]  ;;  %v13699_v32 = vld [vmem:[#allocation38_spill] sm:$0xff] }
0x1c64   :  { %6805 = vmatprep.subr.mxu0 %v12162_v47  ;;  %6876 = vmatprep.subr.mxu1 %v12165_v49  ;;  %v13700_v47 = vld [vmem:[#allocation70_spill] sm:$0xff]  ;;  %v13701_v49 = vld [vmem:[#allocation35_spill] sm:$0xff] }
0x1c65   :  { %6806 = vmatpush1.msra.mxu0 %v12168_v52  ;;  %6877 = vmatpush1.msra.mxu1 %v12171_v53  ;;  %v13702_v52 = vld [vmem:[#allocation78_spill] sm:$0xff]  ;;  %v13703_v53 = vld [vmem:[#allocation67_spill] sm:$0xff] }
0x1c66   :  { %6807 = vmatprep.subr.mxu0 %v12174_v21  ;;  %6878 = vmatprep.subr.mxu1 %v12177_v25  ;;  %v13704_v21 = vld [vmem:[#allocation92_spill] sm:$0xff]  ;;  %v13705_v25 = vld [vmem:[#allocation91_spill] sm:$0xff] }
0x1c67   :  { %6808 = vmatpush1.msra.mxu0 %v12180_v0  ;;  %6879 = vmatpush1.msra.mxu1 %v12183_v18  ;;  %v13706_v0 = vld [vmem:[#allocation39_spill] sm:$0xff]  ;;  %v13707_v18 = vld [vmem:[#allocation104_spill] sm:$0xff] }
0x1c68   :  { %6809 = vmatprep.subr.mxu0 %v12186_v9  ;;  %6880 = vmatprep.subr.mxu1 %v12189_v10  ;;  %v13708_v9 = vld [vmem:[#allocation71_spill] sm:$0xff]  ;;  %v13709_v10 = vld [vmem:[#allocation72_spill] sm:$0xff] }
0x1c69   :  { %6810 = vmatpush1.msra.mxu0 %v12192_v58  ;;  %6881 = vmatpush1.msra.mxu1 %v12195_v59  ;;  %v13710_v58 = vmov 0.0   ;;  %v13711_v59 = vld [vmem:[#allocation102_spill] sm:$0xff] }
0x1c6a   :  { %6811 = vmatprep.subr.mxu0 %v12198_v27  ;;  %6882 = vmatprep.subr.mxu1 %v12201_v63  ;;  %v13712_v63 = vld [vmem:[#allocation82_spill] sm:$0xff] }
0x1c6b   :  { %6812 = vmatpush1.msra.mxu0 %v12204_v7  ;;  %6883 = vmatpush1.msra.mxu1 %v12207_v41 }
0x1c6c   :  { %6813 = vmatprep.subr.mxu0 %v12210_v51  ;;  %6884 = vmatprep.subr.mxu1 %v12213_v5  ;;  %v13713_v5 = vld [vmem:[#allocation83_spill] sm:$0xff] }
0x1c6d   :  { %6814 = vmatpush1.msra.mxu0 %v12216_v4  ;;  %6885 = vmatpush1.msra.mxu1 %v12219_v44 }
0x1c6e   :  { %6815 = vmatprep.subr.mxu0 %v12222_v36  ;;  %6886 = vmatprep.subr.mxu1 %v12225_v16 }
0x1c6f   :  { %6816 = vmatpush1.msra.mxu0 %v12228_v24  ;;  %6887 = vmatpush1.msra.mxu1 %v13671_v6  ;;  %v13714_v24 = vld [vmem:[#allocation84_spill] sm:$0xff] }
0x1c70   :  { %6817 = vmatprep.subr.mxu0 %v12234_v29  ;;  %6888 = vmatprep.subr.mxu1 %v13672_v13  ;;  %v13715_v29 = vld [vmem:[#allocation37_spill] sm:$0xff] }
0x1c71   :  { %6818 = vmatpush1.msra.mxu0 %v12240_v19  ;;  %6889 = vmatpush1.msra.mxu1 %v12243_v57 }
0x1c72   :  { %6819 = vmatprep.subr.mxu0 %v12246_v56  ;;  %6890 = vmatprep.subr.mxu1 %v12327_v42 }
0x1c73   :  { %6820 = vmatpush1.msra.mxu0 %v12250_v31  ;;  %6891 = vmatpush1.msra.mxu1 %v12331_v17 }
0x1c74   :  { %6821 = vmatprep.subr.mxu0 %v12254_v30  ;;  %6892 = vmatprep.subr.mxu1 %v12335_v23 }
0x1c75   :  { %6822 = vmatpush1.msra.mxu0 %v12338_v34  ;;  %6893 = vmatpush1.msra.mxu1 %v12341_v55 }
0x1c76   :  { %6823 = vmatprep.subr.mxu0 %v12344_v15  ;;  %6894 = vmatprep.subr.mxu1 %v12347_v28 }
0x1c77   :  { %6824 = vmatpush1.msra.mxu0 %v12350_v8  ;;  %6895 = vmatpush1.msra.mxu1 %v13694_v14  ;;  %v6999_v14 = vld [vmem:[#allocation20 + $0xb8] sm:$0xff] }
0x1c78   :  { %6825 = vmatprep.subr.mxu0 %v13695_v38  ;;  %6896 = vmatprep.subr.mxu1 %v13696_v11  ;;  %v6983_v38 = vld [vmem:[#allocation20 + $0x38] sm:$0xff]  ;;  %v6998_v11 = vld [vmem:[#allocation20 + $0xb0] sm:$0xff] }
0x1c79   :  { %6826 = vmatpush1.msra.mxu0 %v13697_v26  ;;  %6897 = vmatpush1.msra.mxu1 %v13698_v2  ;;  %v6982_v26 = vld [vmem:[#allocation20 + $0x30] sm:$0xff]  ;;  %v6997_v2 = vld [vmem:[#allocation20 + $0xa8] sm:$0xff] }
0x1c7a   :  { %6827 = vmatprep.subr.mxu0 %v13699_v32  ;;  %6898 = vmatprep.subr.mxu1 %v13700_v47  ;;  %v6981_v32 = vld [vmem:[#allocation20 + $0x28] sm:$0xff]  ;;  %v6996_v47 = vld [vmem:[#allocation20 + $0xa0] sm:$0xff] }
0x1c7b   :  { %6828 = vmatpush1.msra.mxu0 %v13701_v49  ;;  %6899 = vmatpush1.msra.mxu1 %v13702_v52  ;;  %v6980_v49 = vld [vmem:[#allocation20 + $0x20] sm:$0xff]  ;;  %v6995_v52 = vld [vmem:[#allocation20 + $0x98] sm:$0xff] }
0x1c7c   :  { %6829 = vmatprep.subr.mxu0 %v13703_v53  ;;  %6900 = vmatprep.subr.mxu1 %v13704_v21  ;;  %v6979_v53 = vld [vmem:[#allocation20 + $0x18] sm:$0xff]  ;;  %v6994_v21 = vld [vmem:[#allocation20 + $0x90] sm:$0xff] }
0x1c7d   :  { %6830 = vmatpush1.msra.mxu0 %v13705_v25  ;;  %6901 = vmatpush1.msra.mxu1 %v13706_v0  ;;  %v6978_v25 = vld [vmem:[#allocation20 + $0x10] sm:$0xff]  ;;  %v6993_v0 = vld [vmem:[#allocation20 + $0x88] sm:$0xff] }
0x1c7e   :  { %6831 = vmatprep.subr.mxu0 %v13707_v18  ;;  %6902 = vmatprep.subr.mxu1 %v13708_v9  ;;  %v6977_v18 = vld [vmem:[#allocation20 + $0x8] sm:$0xff]  ;;  %v6992_v9 = vld [vmem:[#allocation20 + $0x80] sm:$0xff] }
0x1c7f   :  { %6832 = vmatpush1.msra.mxu0 %v13709_v10  ;;  %6865 = vmatprep.mubr.f32.mxu0 %v13710_v58  ;;  %v6976_v10 = vld [vmem:[#allocation20] sm:$0xff] }
0x1c80   :  { %6903 = vmatpush1.msra.mxu1 %v13711_v59  ;;  %6936 = vmatprep.mubr.f32.mxu1 %v13710_v58  ;;  %v7101_v59 = vld [vmem:[#allocation22 + $0x78] sm:$0xff] }
0x1c81   :  { %7491 = vmatprep.subr.mxu1 %v13710_v58  ;;  %7422 = vmatprep.subr.mxu0 %v7007_v54 }
0x1d20   :  { %v6692_v27 = vpop.f32.mrf.mxu0  ;;  %v6763_v44 = vpop.f32.mrf.mxu1 }
0x1d21   :  { %v6768_v7 = vadd.f32 %v6692_v27, %v13712_v63  ;;  %v6770_v30 = vadd.f32 %v6763_v44, %v13715_v29  ;;  %v7100_v27 = vld [vmem:[#allocation22 + $0x70] sm:$0xff]  ;;  %v7099_v63 = vld [vmem:[#allocation22 + $0x68] sm:$0xff]  ;;  %v7093_v44 = vld [vmem:[#allocation22 + $0x38] sm:$0xff] }
0x1d22   :  { %v6694_v41 = vpop.f32.mrf.mxu0  ;;  %v6765_v16 = vpop.f32.mrf.mxu1 }
0x1d23   :  { %v7413_v51 = vmul.f32 -1.442695, %v6768_v7  ;;  %v6769_v4 = vadd.f32 %v6694_v41, %v13713_v5  ;;  %v6771_v31 = vadd.f32 %v6765_v16, %v13714_v24  ;;  %v7098_v7 = vld [vmem:[#allocation22 + $0x60] sm:$0xff]  ;;  %v7097_v41 = vld [vmem:[#allocation22 + $0x58] sm:$0xff]  ;;  %v7095_v5 = vld [vmem:[#allocation22 + $0x48] sm:$0xff] }
0x1d24   :  { %v7091_v16 = vld [vmem:[#allocation22 + $0x28] sm:$0xff] }
0x1d25   :  { %8044 = vpow2.f32 %v7413_v51  ;;  %v7414_v36 = vmul.f32 -1.442695, %v6769_v4  ;;  %v7415_v19 = vmul.f32 -1.442695, %v6771_v31  ;;  %v7096_v51 = vld [vmem:[#allocation22 + $0x50] sm:$0xff]  ;;  %v7094_v4 = vld [vmem:[#allocation22 + $0x40] sm:$0xff] }
0x1d26   :  { %v13716_v31 = vld [vmem:[#allocation94_spill] sm:$0xff] }
0x1d27   :  { %8046 = vpow2.f32 %v7414_v36  ;;  %v7092_v36 = vld [vmem:[#allocation22 + $0x30] sm:$0xff] }
0x1d28   :  { %8048 = vtanh.f32 %v6770_v30 }
0x1d29   :  { %8050 = vpow2.f32 %v7415_v19 }
0x1d32   :  { %v8045_v57 = vpop.eup %8044 }
0x1d33   :  { %v6775_v56 = vadd.f32 1.0, %v8045_v57  ;;  %v13717_v57 = vld [vmem:[#allocation97_spill] sm:$0xff] }
0x1d34   :  { %v8047_v43 = vpop.eup %8046 }
0x1d35   :  { %8052 = vrcp.f32 %v6775_v56  ;;  %v6781_v6 = vadd.f32 1.0, %v8047_v43  ;;  %v8049_v13 = vpop.eup %8048 }
0x1d36   :  { %v8051_v42 = vpop.eup %8050 }
0x1d37   :  { %8054 = vrcp.f32 %v6781_v6  ;;  %v6788_v55 = vadd.f32 1.0, %v8051_v42  ;;  %v13718_v42 = vld [vmem:[#allocation95_spill] sm:$0xff] }
0x1d39   :  { %8056 = vrcp.f32 %v6788_v55 }
0x1d42   :  { %v8053_v17 = vpop.eup %8052 }
0x1d43   :  { %v6792_v23 = vmul.f32 %v8053_v17, %v8049_v13 }
0x1d44   :  { %v8055_v34 = vpop.eup %8054 }
0x1d45   :  { %v6791_v15 = vmul.f32 %v8055_v34, %v12413_v46  ;;  %v7001_v46 = vld [vmem:[#allocation20 + $0xc8] sm:$0xff] }
0x1d46   :  { %v8057_v8 = vpop.eup %8056 }
0x1d47   :  { %v12486_v28 = vadd.f32 %v6792_v23, %v6791_v15  ;;  %v13719_v23 = vld [vmem:[#allocation96_spill] sm:$0xff] }
0x1d49   :  { %8058 = vtanh.f32 %v12486_v28 }
0x1d56   :  { %v8059_v39 = vpop.eup %8058 }
0x1d57   :  { %v6795_v45 = vmul.f32 %v8059_v39, %v8057_v8 }
0x1d59   :  { %6866 = vmatmul.mubr.f32.vlgmr.msra.gmra.mxu0 %v6795_v45  ;;  %6937 = vmatmul.mubr.f32.vlgmr.msra.gmra.mxu1 %v6795_v45 }
0x1d5a   :  { %7423 = vmatpush3.msra.mxu0 %v6991_v33  ;;  %7492 = vmatpush3.msra.mxu1 %v7101_v59  ;;  %v7419_v59 = vld [vmem:[%s12554_s14] ss:$0 sm:$0xff] }
0x1d5b   :  { %7424 = vmatprep.subr.mxu0 %v7006_v50  ;;  %7493 = vmatprep.subr.mxu1 %v13710_v58 }
0x1d5c   :  { %7425 = vmatpush3.msra.mxu0 %v6990_v60  ;;  %7494 = vmatpush3.msra.mxu1 %v7100_v27 }
0x1d5d   :  { %7426 = vmatprep.subr.mxu0 %v7005_v3  ;;  %7495 = vmatprep.subr.mxu1 %v13710_v58 }
0x1d5e   :  { %7427 = vmatpush3.msra.mxu0 %v6989_v40  ;;  %7496 = vmatpush3.msra.mxu1 %v7099_v63 }
0x1d5f   :  { %7428 = vmatprep.subr.mxu0 %v7004_v12  ;;  %7497 = vmatprep.subr.mxu1 %v13710_v58 }
0x1d60   :  { %7429 = vmatpush3.msra.mxu0 %v6988_v48  ;;  %7498 = vmatpush3.msra.mxu1 %v7098_v7 }
0x1d61   :  { %7430 = vmatprep.subr.mxu0 %v7003_v37  ;;  %7499 = vmatprep.subr.mxu1 %v13710_v58 }
0x1d62   :  { %7431 = vmatpush3.msra.mxu0 %v6987_v62  ;;  %7500 = vmatpush3.msra.mxu1 %v7097_v41 }
0x1d63   :  { %7432 = vmatprep.subr.mxu0 %v7002_v1  ;;  %7501 = vmatprep.subr.mxu1 %v13710_v58 }
0x1d64   :  { %7433 = vmatpush3.msra.mxu0 %v6986_v22  ;;  %7502 = vmatpush3.msra.mxu1 %v7096_v51  ;;  %v7182_v51 = vld [vmem:[#allocation23 + $0x10] sm:$0xff] }
0x1d65   :  { %7434 = vmatprep.subr.mxu0 %v7001_v46  ;;  %7503 = vmatprep.subr.mxu1 %v13710_v58  ;;  %v13720_v46 = vld [vmem:[#allocation50_spill] sm:$0xff] }
0x1d66   :  { %7435 = vmatpush3.msra.mxu0 %v6985_v20  ;;  %7504 = vmatpush3.msra.mxu1 %v7095_v5  ;;  %v6974_v20 = vmax.f32 %v13720_v46, 0.0  ;;  %v7181_v5 = vld [vmem:[#allocation23 + $0x8] sm:$0xff] }
0x1d67   :  { %7436 = vmatprep.subr.mxu0 %v7000_v35  ;;  %7505 = vmatprep.subr.mxu1 %v13710_v58  ;;  %v7090_v35 = vld [vmem:[#allocation22 + $0x20] sm:$0xff] }
0x1d68   :  { %7437 = vmatpush3.msra.mxu0 %v6984_v61  ;;  %7506 = vmatpush3.msra.mxu1 %v7094_v4  ;;  %v7089_v61 = vld [vmem:[#allocation22 + $0x18] sm:$0xff]  ;;  %v7180_v4 = vld [vmem:[#allocation23] sm:$0xff] }
0x1d69   :  { %7438 = vmatprep.subr.mxu0 %v6999_v14  ;;  %7507 = vmatprep.subr.mxu1 %v13710_v58  ;;  %v7087_v14 = vld [vmem:[#allocation22 + $0x8] sm:$0xff] }
0x1d6a   :  { %7439 = vmatpush3.msra.mxu0 %v6983_v38  ;;  %7508 = vmatpush3.msra.mxu1 %v7093_v44  ;;  %v7086_v38 = vld [vmem:[#allocation22] sm:$0xff] }
0x1d6b   :  { %7440 = vmatprep.subr.mxu0 %v6998_v11  ;;  %7509 = vmatprep.subr.mxu1 %v13710_v58  ;;  %v7195_v11 = vld [vmem:[#allocation23 + $0x78] sm:$0xff]  ;;  %v7420_v44 = vld [vmem:[%s12556_s16] ss:$0 sm:$0xff] }
0x1d6c   :  { %7441 = vmatpush3.msra.mxu0 %v6982_v26  ;;  %7510 = vmatpush3.msra.mxu1 %v7092_v36  ;;  %v7194_v26 = vld [vmem:[#allocation23 + $0x70] sm:$0xff] }
0x1d6d   :  { %7442 = vmatprep.subr.mxu0 %v6997_v2  ;;  %7511 = vmatprep.subr.mxu1 %v13710_v58  ;;  %v7193_v2 = vld [vmem:[#allocation23 + $0x68] sm:$0xff] }
0x1d6e   :  { %7443 = vmatpush3.msra.mxu0 %v6981_v32  ;;  %7512 = vmatpush3.msra.mxu1 %v7091_v16  ;;  %v7192_v32 = vld [vmem:[#allocation23 + $0x60] sm:$0xff] }
0x1d6f   :  { %7444 = vmatprep.subr.mxu0 %v6996_v47  ;;  %7513 = vmatprep.subr.mxu1 %v13710_v58  ;;  %v7191_v47 = vld [vmem:[#allocation23 + $0x58] sm:$0xff] }
0x1d70   :  { %7445 = vmatpush3.msra.mxu0 %v6980_v49  ;;  %7514 = vmatpush3.msra.mxu1 %v7090_v35  ;;  %v7190_v49 = vld [vmem:[#allocation23 + $0x50] sm:$0xff] }
0x1d71   :  { %7446 = vmatprep.subr.mxu0 %v6995_v52  ;;  %7515 = vmatprep.subr.mxu1 %v13710_v58  ;;  %v7189_v52 = vld [vmem:[#allocation23 + $0x48] sm:$0xff] }
0x1d72   :  { %7447 = vmatpush3.msra.mxu0 %v6979_v53  ;;  %7516 = vmatpush3.msra.mxu1 %v7089_v61  ;;  %v7188_v53 = vld [vmem:[#allocation23 + $0x40] sm:$0xff] }
0x1d73   :  { %7448 = vmatprep.subr.mxu0 %v6994_v21  ;;  %7517 = vmatprep.subr.mxu1 %v13710_v58  ;;  %v7187_v21 = vld [vmem:[#allocation23 + $0x38] sm:$0xff] }
0x1d74   :  { %7449 = vmatpush3.msra.mxu0 %v6978_v25  ;;  %7523 = vmatprep.mubr.msk.f32.mxu1 %vm8633_vm1, %v13710_v58  ;;  %v7186_v25 = vld [vmem:[#allocation23 + $0x30] sm:$0xff] }
0x1d75   :  { %7450 = vmatprep.subr.mxu0 %v6993_v0  ;;  %v7185_v0 = vld [vmem:[#allocation23 + $0x28] sm:$0xff] }
0x1d76   :  { %7451 = vmatpush3.msra.mxu0 %v6977_v18  ;;  %v7184_v18 = vld [vmem:[#allocation23 + $0x20] sm:$0xff] }
0x1d77   :  { %7452 = vmatprep.subr.mxu0 %v6992_v9  ;;  %v7183_v9 = vld [vmem:[#allocation23 + $0x18] sm:$0xff] }
0x1d78   :  { %7453 = vmatpush3.msra.mxu0 %v6976_v10 }
0x1d79   :  { %7526 = vmatprep.subr.mxu0 %v13710_v58 }
0x1e19   :  { %v6867_v24 = vpop.f32.mrf.mxu0  ;;  %v6938_v43 = vpop.f32.mrf.mxu1 }
0x1e1a   :  { %v6943_v29 = vadd.f32 %v6867_v24, %v13716_v31  ;;  %v6945_v34 = vadd.f32 %v6938_v43, %v13719_v23 }
0x1e1b   :  { %v6869_v30 = vpop.f32.mrf.mxu0  ;;  %v6940_v13 = vpop.f32.mrf.mxu1 }
0x1e1c   :  { %v7416_v19 = vmul.f32 -1.442695, %v6943_v29  ;;  %v6944_v56 = vadd.f32 %v6869_v30, %v13717_v57  ;;  %v6946_v17 = vadd.f32 %v6940_v13, %v13718_v42  ;;  %v7421_v29 = vld [vmem:[%s12558_s18] ss:$0 sm:$0xff] }
0x1e1e   :  { %8060 = vpow2.f32 %v7416_v19  ;;  %v7417_v6 = vmul.f32 -1.442695, %v6944_v56  ;;  %v7418_v55 = vmul.f32 -1.442695, %v6946_v17 }
0x1e20   :  { %8062 = vpow2.f32 %v7417_v6 }
0x1e21   :  { %8064 = vtanh.f32 %v6945_v34 }
0x1e22   :  { %8066 = vpow2.f32 %v7418_v55 }
0x1e2b   :  { %v8061_v15 = vpop.eup %8060 }
0x1e2c   :  { %v6950_v8 = vadd.f32 1.0, %v8061_v15 }
0x1e2d   :  { %v8063_v39 = vpop.eup %8062 }
0x1e2e   :  { %8068 = vrcp.f32 %v6950_v8  ;;  %v6956_v45 = vadd.f32 1.0, %v8063_v39  ;;  %v8065_v54 = vpop.eup %8064 }
0x1e2f   :  { %v8067_v33 = vpop.eup %8066 }
0x1e30   :  { %8070 = vrcp.f32 %v6956_v45  ;;  %v6963_v40 = vadd.f32 1.0, %v8067_v33 }
0x1e32   :  { %8072 = vrcp.f32 %v6963_v40 }
0x1e3b   :  { %v8069_v50 = vpop.eup %8068 }
0x1e3c   :  { %v6967_v60 = vmul.f32 %v8069_v50, %v8065_v54 }
0x1e3d   :  { %v8071_v3 = vpop.eup %8070 }
0x1e3e   :  { %v6966_v12 = vmul.f32 %v8071_v3, %v12486_v28  ;;  %v7088_v28 = vld [vmem:[#allocation22 + $0x10] sm:$0xff] }
0x1e3f   :  { %v8073_v37 = vpop.eup %8072  ;;  %7518 = vmatpush3.msra.mxu1 %v7088_v28 }
0x1e40   :  { %v6968_v48 = vadd.f32 %v6967_v60, %v6966_v12  ;;  %7519 = vmatprep.subr.mxu1 %v13710_v58 }
0x1e41   :  { %7520 = vmatpush3.msra.mxu1 %v7087_v14 }
0x1e42   :  { %8074 = vtanh.f32 %v6968_v48  ;;  %7521 = vmatprep.subr.mxu1 %v13710_v58 }
0x1e43   :  { %7522 = vmatpush3.msra.mxu1 %v7086_v38 }
0x1e4f   :  { %v8075_v62 = vpop.eup %8074 }
0x1e50   :  { %v6970_v1 = vmul.f32 %v8075_v62, %v8073_v37 }
0x1e52   :  { %v6975_v22 = vmax.f32 %v6970_v1, 0.0 }
0x1e54   :  { %7079 = vmatprep.mubr.f32.mxu0 %v6975_v22 }
0x1e55   :  { %7080 = vmatmul.mubr.f32.vlgmr.msra.gmra.mxu0 %v6974_v20 }
0x1e56   :  { %7558 = vmatprep.mubr.msk.f32.mxu0 %vm8633_vm1, %v13710_v58  ;;  %7527 = vmatpush3.msra.mxu0 %v7195_v11 }
0x1e57   :  { %7528 = vmatprep.subr.mxu0 %v13710_v58 }
0x1e58   :  { %7529 = vmatpush3.msra.mxu0 %v7194_v26 }
0x1e59   :  { %7530 = vmatprep.subr.mxu0 %v13710_v58 }
0x1e5a   :  { %7531 = vmatpush3.msra.mxu0 %v7193_v2 }
0x1e5b   :  { %7532 = vmatprep.subr.mxu0 %v13710_v58 }
0x1e5c   :  { %7533 = vmatpush3.msra.mxu0 %v7192_v32 }
0x1e5d   :  { %7534 = vmatprep.subr.mxu0 %v13710_v58 }
0x1e5e   :  { %7535 = vmatpush3.msra.mxu0 %v7191_v47 }
0x1e5f   :  { %7536 = vmatprep.subr.mxu0 %v13710_v58 }
0x1e60   :  { %7537 = vmatpush3.msra.mxu0 %v7190_v49 }
0x1e61   :  { %7538 = vmatprep.subr.mxu0 %v13710_v58 }
0x1e62   :  { %7539 = vmatpush3.msra.mxu0 %v7189_v52 }
0x1e63   :  { %7540 = vmatprep.subr.mxu0 %v13710_v58 }
0x1e64   :  { %7541 = vmatpush3.msra.mxu0 %v7188_v53 }
0x1e65   :  { %7542 = vmatprep.subr.mxu0 %v13710_v58 }
0x1e66   :  { %7543 = vmatpush3.msra.mxu0 %v7187_v21 }
0x1e67   :  { %7544 = vmatprep.subr.mxu0 %v13710_v58 }
0x1e68   :  { %7545 = vmatpush3.msra.mxu0 %v7186_v25 }
0x1e69   :  { %7546 = vmatprep.subr.mxu0 %v13710_v58 }
0x1e6a   :  { %7547 = vmatpush3.msra.mxu0 %v7185_v0 }
0x1e6b   :  { %7548 = vmatprep.subr.mxu0 %v13710_v58 }
0x1e6c   :  { %7549 = vmatpush3.msra.mxu0 %v7184_v18 }
0x1e6d   :  { %7550 = vmatprep.subr.mxu0 %v13710_v58 }
0x1e6e   :  { %7551 = vmatpush3.msra.mxu0 %v7183_v9 }
0x1e6f   :  { %7552 = vmatprep.subr.mxu0 %v13710_v58 }
0x1e70   :  { %7553 = vmatpush3.msra.mxu0 %v7182_v51 }
0x1e71   :  { %7554 = vmatprep.subr.mxu0 %v13710_v58 }
0x1e72   :  { %7555 = vmatpush3.msra.mxu0 %v7181_v5 }
0x1e73   :  { %7556 = vmatprep.subr.mxu0 %v13710_v58 }
0x1e74   :  { %7557 = vmatpush3.msra.mxu0 %v7180_v4 }
0x1f15   :  { %v7454_v10 = vpop.f32.mrf.mxu0 }
0x1f17   :  { %v7455_v27 = vpop.f32.mrf.mxu0 }
0x1f18   :  { %v7456_v63 = vadd.f32 %v7455_v27, %v7454_v10 }
0x1f1a   :  { %v7082_v7 = vadd.f32 %v7456_v63, %v7419_v59 }
0x1f1c   :  { %v7085_v41 = vmax.f32 %v7082_v7, 0.0 }
0x1f1e   :  { %7524 = vmatmul.mubr.f32.vlgmr.msra.gmra.mxu1 %v7085_v41 }
0x1fde   :  { %v7175_v36 = vpop.f32.mrf.mxu1 }
0x1fdf   :  { %v7176_v16 = vadd.f32 %v7420_v44, %v7175_v36 }
0x1fe0   :  { %v7525_v24 = vpop.f32.mrf.mxu1 }
0x1fe1   :  { %v7179_v31 = vmax.f32 %v7176_v16, 0.0 }
0x1fe3   :  { %7559 = vmatmul.mubr.f32.vlgmr.msra.gmra.mxu0 %v7179_v31 }
0x20a3   :  { %v7269_v30 = vpop.f32.mrf.mxu0 }
0x20a4   :  { %v7270_v19 = vadd.f32 %v7421_v29, %v7269_v30 }
0x20a5   :  { %v7560_v58 = vpop.f32.mrf.mxu0 }
0x20a6   :  { %7273 = vst [vmem:[#allocation25] sm:$0xff] %v7270_v19 }
0x20a7   :  { %8591 = shalt.err (!%p8588_p8)
}
0x20a8   :  { %7283 = dma.vmem_to_hbm [thread:$0]  %s7281_s25, 128, %s12559_s19, [#allocation7]  }
0x20a9   :  { %8614 = dma.done.wait [#allocation7], 128  }
0x20aa   :  { %8615 = vsyncadd [#allocation7], 4294967168 }
0x20ab   :  { %7287 = vsyncpa [#allocation6], 1 }
0x20ac   :  { %7288 = vsyncpa [#allocation9], 1 }
0x20ad   :  { %7289 = vsyncpa [#allocation12], 1 }
0x20ae   :  { %7290 = vsyncpa [#allocation15], 1 }
0x20af   :  { %7291 = vsyncpa [#allocation18], 1 }
0x20b0   :  { %7292 = vsyncpa [#allocation21], 1 }
0x20b1   :  { %7293 = vsyncpa [#allocation24], 1 }
0x20b2   :  { %7294 = vsyncpa [#allocation7], 1 }

</bundles_post_ra>
